<compile_context>
chip_gen: v7x
topology: tpu7x:2x2x1
jax: 0.10.0
libtpu: 0.0.40
codegen_flags: <defaults>
</compile_context>

<pallas_src>
import functools
import math

import jax
import jax.numpy as jnp
from jax import lax
from jax.experimental import pallas as pl
from jax.experimental.pallas import tpu as pltpu

# ---- module hyper-params (small, consistent with the PyTorch module) ----------
N_HEADS = 2
N_EMBED = 32
CHANNELS = N_HEADS * N_EMBED          # 64, must be divisible by 32 (GroupNorm groups)
N_GROUPS = 32
D_CONTEXT = 64                        # d_context (default 768 in torch; small here)
EPS = 1e-5                            # GroupNorm / LayerNorm default eps
NEG_INF = -1e30


# ---- in-kernel math helpers ----------------------------------------------------
def _erf(x):
    # Exact-torch F.gelu uses erf; keep the A&S 7.1.26 polynomial (|err| < 1.5e-7)
    # rather than the tanh approximation so semantics match the reference module.
    sign = jnp.where(x >= 0.0, 1.0, -1.0)
    a = jnp.abs(x)
    t = 1.0 / (1.0 + 0.3275911 * a)
    poly = ((((1.061405429 * t - 1.453152027) * t + 1.421413741) * t
             - 0.284496736) * t + 0.254829592) * t
    return sign * (1.0 - poly * jnp.exp(-a * a))


def _gelu(x):  # exact (erf-based) GELU, matching torch F.gelu default
    return 0.5 * x * (1.0 + _erf(x * (1.0 / math.sqrt(2.0))))


def _silu(x):
    return x * jax.nn.sigmoid(x)


def _layernorm(x, g, b):
    mu = jnp.mean(x, axis=-1, keepdims=True)
    var = jnp.mean((x - mu) ** 2, axis=-1, keepdims=True)  # biased, like torch
    return (x - mu) * lax.rsqrt(var + EPS) * g + b


def _groupnorm_slice(xb, gmat, g, b, n):
    # xb: (HW, C) tokens of ONE batch element; gmat: (C, C) constant group matrix.
    # Two-pass variance: mean first, then E[(x - mean)^2] per group.
    col_sum = jnp.sum(xb, axis=0, keepdims=True)                                   # (1, C)
    mean = jnp.dot(col_sum, gmat, preferred_element_type=jnp.float32) * (1.0 / n)  # (1, C)
    d = xb - mean
    col_sq = jnp.sum(d * d, axis=0, keepdims=True)                                 # (1, C)
    var = jnp.dot(col_sq, gmat, preferred_element_type=jnp.float32) * (1.0 / n)    # (1, C)
    return d * lax.rsqrt(var + EPS) * g + b


def _attention(q, k, v, wo, *, bb, sq, skv, n_heads, kv_valid):
    # q: (bb*sq, C), k/v: (bb*skv, C), wo: (C, C) stored [in, out].
    # Per batch element / per head (both static, unrolled):
    #   out_b = sum_h softmax(q_bh k_bh^T / sqrt(d)) @ v_bh @ wo[h*d:(h+1)*d, :]
    # The W_o row-split replaces the lane-axis concat of head outputs.
    c = q.shape[-1]
    d = c // n_heads
    scale = 1.0 / math.sqrt(d)
    need_mask = kv_valid < skv
    outs = []
    for bi in range(bb):
        qb = q[bi * sq:(bi + 1) * sq, :]
        kb = k[bi * skv:(bi + 1) * skv, :]
        vb = v[bi * skv:(bi + 1) * skv, :]
        acc = None
        for h in range(n_heads):
            qh = qb[:, h * d:(h + 1) * d]
            kh = kb[:, h * d:(h + 1) * d]
            vh = vb[:, h * d:(h + 1) * d]
            s = lax.dot_general(qh, kh, (((1,), (1,)), ((), ())),
                                preferred_element_type=jnp.float32) * scale
            if need_mask:  # static check: only when context was padded
                col = lax.broadcasted_iota(jnp.int32, s.shape, 1)
                s = jnp.where(col < kv_valid, s, NEG_INF)
            s = s - jnp.max(s, axis=-1, keepdims=True)
            p = jnp.exp(s)
            denom = jnp.sum(p, axis=-1, keepdims=True)
            oh = jnp.dot(p, vh, preferred_element_type=jnp.float32)
            oh = oh * pl.reciprocal(denom, approx=True)          # EUP, not VALU divide
            contrib = jnp.dot(oh, wo[h * d:(h + 1) * d, :],
                              preferred_element_type=jnp.float32)
            acc = contrib if acc is None else acc + contrib
        outs.append(acc)
    return outs[0] if bb == 1 else jnp.concatenate(outs, axis=0)


# ---- the Pallas kernel: `bb` batch elements per grid step -----------------------
def attention_block_kernel(
    x_ref, ctx_ref, gmat_ref,
    gn_g, gn_b, ci_w, ci_b,
    ln1_g, ln1_b, a1_wqkv, a1_wo, a1_bo,
    ln2_g, ln2_b, a2_wq, a2_wkv, a2_wo, a2_bo,
    ln3_g, ln3_b, gg1_w, gg1_b, gg2_w, gg2_b,
    co_w, co_b,
    o_ref,
    *, bb, hw, kv_valid,
):
    c = CHANNELS
    x0 = x_ref[...].reshape(bb * hw, c)          # residual_long (token layout), M = bb*HW
    ctx = ctx_ref[...]                           # (bb, S_kv, D_CONTEXT)
    s_kv = ctx.shape[1]
    gmat = gmat_ref[...]

    # group_norm (per batch element) -> silu -> conv_input (1x1 conv == channel matmul)
    n = float(hw * (c // N_GROUPS))
    gn = [_groupnorm_slice(x0[bi * hw:(bi + 1) * hw, :], gmat, gn_g[...], gn_b[...], n)
          for bi in range(bb)]
    x = gn[0] if bb == 1 else jnp.concatenate(gn, axis=0)
    x = _silu(x)
    x = jnp.dot(x, ci_w[...], preferred_element_type=jnp.float32) + ci_b[...]

    # --- self-attention block (LN1 + SelfAttention, fused QKV, no in_proj bias) ---
    res = x
    xn = _layernorm(x, ln1_g[...], ln1_b[...])
    qkv = jnp.dot(xn, a1_wqkv[...], preferred_element_type=jnp.float32)   # (M, 3C)
    attn = _attention(qkv[:, :c], qkv[:, c:2 * c], qkv[:, 2 * c:], a1_wo[...],
                      bb=bb, sq=hw, skv=hw, n_heads=N_HEADS, kv_valid=hw)
    x = attn + a1_bo[...] + res

    # --- cross-attention block (LN2 + CrossAttention over context, fused KV) ---
    res = x
    xn = _layernorm(x, ln2_g[...], ln2_b[...])
    q = jnp.dot(xn, a2_wq[...], preferred_element_type=jnp.float32)       # (M, C)
    ctx2 = ctx.reshape(bb * s_kv, D_CONTEXT)
    kv = jnp.dot(ctx2, a2_wkv[...], preferred_element_type=jnp.float32)   # (bb*S, 2C)
    attn = _attention(q, kv[:, :c], kv[:, c:], a2_wo[...],
                      bb=bb, sq=hw, skv=s_kv, n_heads=N_HEADS, kv_valid=kv_valid)
    x = attn + a2_bo[...] + res

    # --- GEGLU feed-forward (LN3 + linear_geglu_1/2) ---
    res = x
    xn = _layernorm(x, ln3_g[...], ln3_b[...])
    hfull = jnp.dot(xn, gg1_w[...], preferred_element_type=jnp.float32) + gg1_b[...]
    h1 = hfull[:, : 4 * c]
    gate = hfull[:, 4 * c:]
    x = jnp.dot(h1 * _gelu(gate), gg2_w[...], preferred_element_type=jnp.float32)
    x = x + gg2_b[...] + res

    # conv_output (1x1) + long residual
    x = jnp.dot(x, co_w[...], preferred_element_type=jnp.float32) + co_b[...]
    o_ref[...] = (x + x0).reshape(bb, hw, c)


# ---- wrapper: NCHW <-> token layout is glue; compute is in the kernel ----------
def _tensorcores_per_chip():
    # v7x packs 2 TensorCores per chip (a "parallel" grid axis shards across them);
    # v5e / v6e expose a single TC, where a batch grid is just a serial loop and
    # batch is better fused into the matmul M dimension.
    try:
        kind = jax.devices()[0].device_kind.lower()
    except Exception:
        return 1
    return 2 if "v7" in kind else 1


def _pick_grid_batches(b):
    g = max(1, min(b, _tensorcores_per_chip()))
    while b % g:
        g -= 1
    return g


def unet_attention_block(x_nchw, context, params, grid_batches=None):
    b, c, h, w = x_nchw.shape
    assert c == CHANNELS
    hw = h * w
    x_tok = jnp.transpose(x_nchw.reshape(b, c, hw), (0, 2, 1))  # (B, HW, C)

    # Pad context length to a sublane multiple; padded keys are masked in-kernel.
    s_ctx = context.shape[1]
    s_pad = ((s_ctx + 7) // 8) * 8
    if s_pad != s_ctx:
        context = jnp.pad(context, ((0, 0), (0, s_pad - s_ctx), (0, 0)))
    d_ctx = context.shape[2]

    # Constant GroupNorm group-aggregation matrix (hoisted out of the kernel).
    gid = jnp.arange(c, dtype=jnp.int32) // (c // N_GROUPS)
    gmat = (gid[:, None] == gid[None, :]).astype(jnp.float32)   # (C, C)

    if grid_batches is None:
        grid_batches = _pick_grid_batches(b)
    bb = b // grid_batches                                      # batch elems per grid step

    kernel = functools.partial(attention_block_kernel, bb=bb, hw=hw, kv_valid=s_ctx)

    in_specs = [
        pl.BlockSpec((bb, hw, c), lambda i: (i, 0, 0)),
        pl.BlockSpec((bb, s_pad, d_ctx), lambda i: (i, 0, 0)),
        pl.BlockSpec(gmat.shape, lambda i: (0, 0)),
    ] + [pl.BlockSpec(p.shape, lambda i: (0, 0)) for p in params]

    out_tok = pl.pallas_call(
        kernel,
        out_shape=jax.ShapeDtypeStruct((b, hw, c), jnp.float32),
        grid=(grid_batches,),
        in_specs=in_specs,
        out_specs=pl.BlockSpec((bb, hw, c), lambda i: (i, 0, 0)),
        compiler_params=pltpu.CompilerParams(
            dimension_semantics=("parallel",)),
    )(x_tok, context, gmat, *params)

    return jnp.transpose(out_tok, (0, 2, 1)).reshape(b, c, h, w)


# ---- deterministic synthetic parameters (kernel expects [in, out] matrices) ----
def init_params(key):
    C, D = CHANNELS, D_CONTEXT
    specs = [
        ("gn_g", (1, C), "gamma"), ("gn_b", (1, C), "beta"),
        ("ci_w", (C, C), "w"), ("ci_b", (1, C), "beta"),
        ("ln1_g", (1, C), "gamma"), ("ln1_b", (1, C), "beta"),
        ("a1_wqkv", (C, 3 * C), "w"),                     # fused q|k|v in_proj
        ("a1_wo", (C, C), "w"), ("a1_bo", (1, C), "beta"),
        ("ln2_g", (1, C), "gamma"), ("ln2_b", (1, C), "beta"),
        ("a2_wq", (C, C), "w"), ("a2_wkv", (D, 2 * C), "w"),   # fused k|v proj
        ("a2_wo", (C, C), "w"), ("a2_bo", (1, C), "beta"),
        ("ln3_g", (1, C), "gamma"), ("ln3_b", (1, C), "beta"),
        ("gg1_w", (C, 8 * C), "w"), ("gg1_b", (1, 8 * C), "beta"),
        ("gg2_w", (4 * C, C), "w"), ("gg2_b", (1, C), "beta"),
        ("co_w", (C, C), "w"), ("co_b", (1, C), "beta"),
    ]
    keys = jax.random.split(key, len(specs))
    params = []
    for (_, shape, kind), k in zip(specs, keys):
        r = jax.random.normal(k, shape, dtype=jnp.float32)
        if kind == "gamma":
            params.append(1.0 + 0.05 * r)
        elif kind == "beta":
            params.append(0.05 * r)
        else:  # weight matrices, stored already transposed ([in, out]) vs torch [out, in]
            params.append(0.08 * r)
    return params


if __name__ == "__main__":
    key = jax.random.PRNGKey(0)
    k_x, k_ctx, k_p = jax.random.split(key, 3)

    B, H, W = 2, 8, 8
    S_CTX = 8
    x = jax.random.normal(k_x, (B, CHANNELS, H, W), dtype=jnp.float32)       # NCHW
    context = jax.random.normal(k_ctx, (B, S_CTX, D_CONTEXT), dtype=jnp.float32)
    params = init_params(k_p)

    y = unet_attention_block(x, context, params)
    jax.block_until_ready(y)
    assert y.shape == x.shape and y.dtype == jnp.float32
    print("KERNEL_OK")
</pallas_src>

<mosaic_0001>
module attributes {stable_mosaic.version = 11 : i64} {
  func.func @attention_block_kernel(%arg0: i32, %arg1: memref<2x64x64xf32, #tpu.memory_space<vmem>>, %arg2: memref<2x8x64xf32, #tpu.memory_space<vmem>>, %arg3: memref<64x64xf32, #tpu.memory_space<vmem>>, %arg4: memref<1x64xf32, #tpu.memory_space<vmem>>, %arg5: memref<1x64xf32, #tpu.memory_space<vmem>>, %arg6: memref<64x64xf32, #tpu.memory_space<vmem>>, %arg7: memref<1x64xf32, #tpu.memory_space<vmem>>, %arg8: memref<1x64xf32, #tpu.memory_space<vmem>>, %arg9: memref<1x64xf32, #tpu.memory_space<vmem>>, %arg10: memref<64x192xf32, #tpu.memory_space<vmem>>, %arg11: memref<64x64xf32, #tpu.memory_space<vmem>>, %arg12: memref<1x64xf32, #tpu.memory_space<vmem>>, %arg13: memref<1x64xf32, #tpu.memory_space<vmem>>, %arg14: memref<1x64xf32, #tpu.memory_space<vmem>>, %arg15: memref<64x64xf32, #tpu.memory_space<vmem>>, %arg16: memref<64x128xf32, #tpu.memory_space<vmem>>, %arg17: memref<64x64xf32, #tpu.memory_space<vmem>>, %arg18: memref<1x64xf32, #tpu.memory_space<vmem>>, %arg19: memref<1x64xf32, #tpu.memory_space<vmem>>, %arg20: memref<1x64xf32, #tpu.memory_space<vmem>>, %arg21: memref<64x512xf32, #tpu.memory_space<vmem>>, %arg22: memref<1x512xf32, #tpu.memory_space<vmem>>, %arg23: memref<256x64xf32, #tpu.memory_space<vmem>>, %arg24: memref<1x64xf32, #tpu.memory_space<vmem>>, %arg25: memref<64x64xf32, #tpu.memory_space<vmem>>, %arg26: memref<1x64xf32, #tpu.memory_space<vmem>>, %arg27: memref<2x64x64xf32, #tpu.memory_space<vmem>>) attributes {dimension_semantics = [#tpu.dimension_semantics<parallel>], iteration_bounds = array<i64: 1>, scalar_prefetch = 0 : i64, scratch_operands = 0 : i64, tpu.core_type = #tpu.core_type<tc>, window_params = [{transform_indices = @transform_0, window_bounds = array<i64: 2, 64, 64>}, {transform_indices = @transform_1, window_bounds = array<i64: 2, 8, 64>}, {pipeline_mode = #tpu.pipeline_mode<synchronous>, transform_indices = @transform_2, window_bounds = array<i64: 64, 64>}, {pipeline_mode = #tpu.pipeline_mode<synchronous>, transform_indices = @transform_3, window_bounds = array<i64: 1, 64>}, {pipeline_mode = #tpu.pipeline_mode<synchronous>, transform_indices = @transform_4, window_bounds = array<i64: 1, 64>}, {pipeline_mode = #tpu.pipeline_mode<synchronous>, transform_indices = @transform_5, window_bounds = array<i64: 64, 64>}, {pipeline_mode = #tpu.pipeline_mode<synchronous>, transform_indices = @transform_6, window_bounds = array<i64: 1, 64>}, {pipeline_mode = #tpu.pipeline_mode<synchronous>, transform_indices = @transform_7, window_bounds = array<i64: 1, 64>}, {pipeline_mode = #tpu.pipeline_mode<synchronous>, transform_indices = @transform_8, window_bounds = array<i64: 1, 64>}, {pipeline_mode = #tpu.pipeline_mode<synchronous>, transform_indices = @transform_9, window_bounds = array<i64: 64, 192>}, {pipeline_mode = #tpu.pipeline_mode<synchronous>, transform_indices = @transform_10, window_bounds = array<i64: 64, 64>}, {pipeline_mode = #tpu.pipeline_mode<synchronous>, transform_indices = @transform_11, window_bounds = array<i64: 1, 64>}, {pipeline_mode = #tpu.pipeline_mode<synchronous>, transform_indices = @transform_12, window_bounds = array<i64: 1, 64>}, {pipeline_mode = #tpu.pipeline_mode<synchronous>, transform_indices = @transform_13, window_bounds = array<i64: 1, 64>}, {pipeline_mode = #tpu.pipeline_mode<synchronous>, transform_indices = @transform_14, window_bounds = array<i64: 64, 64>}, {pipeline_mode = #tpu.pipeline_mode<synchronous>, transform_indices = @transform_15, window_bounds = array<i64: 64, 128>}, {pipeline_mode = #tpu.pipeline_mode<synchronous>, transform_indices = @transform_16, window_bounds = array<i64: 64, 64>}, {pipeline_mode = #tpu.pipeline_mode<synchronous>, transform_indices = @transform_17, window_bounds = array<i64: 1, 64>}, {pipeline_mode = #tpu.pipeline_mode<synchronous>, transform_indices = @transform_18, window_bounds = array<i64: 1, 64>}, {pipeline_mode = #tpu.pipeline_mode<synchronous>, transform_indices = @transform_19, window_bounds = array<i64: 1, 64>}, {pipeline_mode = #tpu.pipeline_mode<synchronous>, transform_indices = @transform_20, window_bounds = array<i64: 64, 512>}, {pipeline_mode = #tpu.pipeline_mode<synchronous>, transform_indices = @transform_21, window_bounds = array<i64: 1, 512>}, {pipeline_mode = #tpu.pipeline_mode<synchronous>, transform_indices = @transform_22, window_bounds = array<i64: 256, 64>}, {pipeline_mode = #tpu.pipeline_mode<synchronous>, transform_indices = @transform_23, window_bounds = array<i64: 1, 64>}, {pipeline_mode = #tpu.pipeline_mode<synchronous>, transform_indices = @transform_24, window_bounds = array<i64: 64, 64>}, {pipeline_mode = #tpu.pipeline_mode<synchronous>, transform_indices = @transform_25, window_bounds = array<i64: 1, 64>}, {transform_indices = @transform_26, window_bounds = array<i64: 2, 64, 64>}]} {
    %c0 = arith.constant 0 : index
    %c0_0 = arith.constant 0 : index
    %c0_1 = arith.constant 0 : index
    %0 = vector.load %arg1[%c0, %c0_0, %c0_1] : memref<2x64x64xf32, #tpu.memory_space<vmem>>, vector<2x64x64xf32>
    %1 = vector.shape_cast %0 : vector<2x64x64xf32> to vector<128x64xf32>
    %c0_2 = arith.constant 0 : index
    %c0_3 = arith.constant 0 : index
    %c0_4 = arith.constant 0 : index
    %2 = vector.load %arg2[%c0_2, %c0_3, %c0_4] : memref<2x8x64xf32, #tpu.memory_space<vmem>>, vector<2x8x64xf32>
    %c0_5 = arith.constant 0 : index
    %c0_6 = arith.constant 0 : index
    %3 = vector.load %arg3[%c0_5, %c0_6] : memref<64x64xf32, #tpu.memory_space<vmem>>, vector<64x64xf32>
    %4 = vector.extract_strided_slice %1 {offsets = [0, 0], sizes = [64, 64], strides = [1, 1]} : vector<128x64xf32> to vector<64x64xf32>
    %c0_7 = arith.constant 0 : index
    %c0_8 = arith.constant 0 : index
    %5 = vector.load %arg4[%c0_7, %c0_8] : memref<1x64xf32, #tpu.memory_space<vmem>>, vector<1x64xf32>
    %c0_9 = arith.constant 0 : index
    %c0_10 = arith.constant 0 : index
    %6 = vector.load %arg5[%c0_9, %c0_10] : memref<1x64xf32, #tpu.memory_space<vmem>>, vector<1x64xf32>
    %cst = arith.constant dense<0.000000e+00> : vector<64xf32>
    %7 = vector.multi_reduction <add>, %4, %cst [0] : vector<64x64xf32> to vector<64xf32>
    %8 = vector.shape_cast %7 : vector<64xf32> to vector<1x64xf32>
    %cst_11 = arith.constant dense<0.000000e+00> : vector<1x64xf32>
    %9 = tpu.matmul %8, %3, %cst_11 {dimension_numbers = #tpu.dot_dimension_numbers<[1], [0], [0], [1], [0, 0, 1, 1], [], []>} : vector<1x64xf32>, vector<64x64xf32>, vector<1x64xf32> -> vector<1x64xf32>
    %cst_12 = arith.constant 7.812500e-03 : f32
    %10 = vector.broadcast %cst_12 : f32 to vector<1x64xf32>
    %11 = arith.mulf %9, %10 : vector<1x64xf32>
    %12 = vector.broadcast %11 : vector<1x64xf32> to vector<64x64xf32>
    %13 = arith.subf %4, %12 : vector<64x64xf32>
    %14 = arith.mulf %13, %13 : vector<64x64xf32>
    %cst_13 = arith.constant dense<0.000000e+00> : vector<64xf32>
    %15 = vector.multi_reduction <add>, %14, %cst_13 [0] : vector<64x64xf32> to vector<64xf32>
    %16 = vector.shape_cast %15 : vector<64xf32> to vector<1x64xf32>
    %cst_14 = arith.constant dense<0.000000e+00> : vector<1x64xf32>
    %17 = tpu.matmul %16, %3, %cst_14 {dimension_numbers = #tpu.dot_dimension_numbers<[1], [0], [0], [1], [0, 0, 1, 1], [], []>} : vector<1x64xf32>, vector<64x64xf32>, vector<1x64xf32> -> vector<1x64xf32>
    %cst_15 = arith.constant 7.812500e-03 : f32
    %18 = vector.broadcast %cst_15 : f32 to vector<1x64xf32>
    %19 = arith.mulf %17, %18 : vector<1x64xf32>
    %cst_16 = arith.constant 9.99999974E-6 : f32
    %20 = vector.broadcast %cst_16 : f32 to vector<1x64xf32>
    %21 = arith.addf %19, %20 : vector<1x64xf32>
    %22 = math.rsqrt %21 : vector<1x64xf32>
    %23 = vector.broadcast %22 : vector<1x64xf32> to vector<64x64xf32>
    %24 = arith.mulf %13, %23 : vector<64x64xf32>
    %25 = vector.broadcast %5 : vector<1x64xf32> to vector<64x64xf32>
    %26 = arith.mulf %24, %25 : vector<64x64xf32>
    %27 = vector.broadcast %6 : vector<1x64xf32> to vector<64x64xf32>
    %28 = arith.addf %26, %27 : vector<64x64xf32>
    %29 = vector.extract_strided_slice %1 {offsets = [64, 0], sizes = [64, 64], strides = [1, 1]} : vector<128x64xf32> to vector<64x64xf32>
    %c0_17 = arith.constant 0 : index
    %c0_18 = arith.constant 0 : index
    %30 = vector.load %arg4[%c0_17, %c0_18] : memref<1x64xf32, #tpu.memory_space<vmem>>, vector<1x64xf32>
    %c0_19 = arith.constant 0 : index
    %c0_20 = arith.constant 0 : index
    %31 = vector.load %arg5[%c0_19, %c0_20] : memref<1x64xf32, #tpu.memory_space<vmem>>, vector<1x64xf32>
    %cst_21 = arith.constant dense<0.000000e+00> : vector<64xf32>
    %32 = vector.multi_reduction <add>, %29, %cst_21 [0] : vector<64x64xf32> to vector<64xf32>
    %33 = vector.shape_cast %32 : vector<64xf32> to vector<1x64xf32>
    %cst_22 = arith.constant dense<0.000000e+00> : vector<1x64xf32>
    %34 = tpu.matmul %33, %3, %cst_22 {dimension_numbers = #tpu.dot_dimension_numbers<[1], [0], [0], [1], [0, 0, 1, 1], [], []>} : vector<1x64xf32>, vector<64x64xf32>, vector<1x64xf32> -> vector<1x64xf32>
    %cst_23 = arith.constant 7.812500e-03 : f32
    %35 = vector.broadcast %cst_23 : f32 to vector<1x64xf32>
    %36 = arith.mulf %34, %35 : vector<1x64xf32>
    %37 = vector.broadcast %36 : vector<1x64xf32> to vector<64x64xf32>
    %38 = arith.subf %29, %37 : vector<64x64xf32>
    %39 = arith.mulf %38, %38 : vector<64x64xf32>
    %cst_24 = arith.constant dense<0.000000e+00> : vector<64xf32>
    %40 = vector.multi_reduction <add>, %39, %cst_24 [0] : vector<64x64xf32> to vector<64xf32>
    %41 = vector.shape_cast %40 : vector<64xf32> to vector<1x64xf32>
    %cst_25 = arith.constant dense<0.000000e+00> : vector<1x64xf32>
    %42 = tpu.matmul %41, %3, %cst_25 {dimension_numbers = #tpu.dot_dimension_numbers<[1], [0], [0], [1], [0, 0, 1, 1], [], []>} : vector<1x64xf32>, vector<64x64xf32>, vector<1x64xf32> -> vector<1x64xf32>
    %cst_26 = arith.constant 7.812500e-03 : f32
    %43 = vector.broadcast %cst_26 : f32 to vector<1x64xf32>
    %44 = arith.mulf %42, %43 : vector<1x64xf32>
    %cst_27 = arith.constant 9.99999974E-6 : f32
    %45 = vector.broadcast %cst_27 : f32 to vector<1x64xf32>
    %46 = arith.addf %44, %45 : vector<1x64xf32>
    %47 = math.rsqrt %46 : vector<1x64xf32>
    %48 = vector.broadcast %47 : vector<1x64xf32> to vector<64x64xf32>
    %49 = arith.mulf %38, %48 : vector<64x64xf32>
    %50 = vector.broadcast %30 : vector<1x64xf32> to vector<64x64xf32>
    %51 = arith.mulf %49, %50 : vector<64x64xf32>
    %52 = vector.broadcast %31 : vector<1x64xf32> to vector<64x64xf32>
    %53 = arith.addf %51, %52 : vector<64x64xf32>
    %54 = tpu.concatenate %28, %53 in 0 : vector<64x64xf32>, vector<64x64xf32> -> vector<128x64xf32>
    %55 = arith.negf %54 : vector<128x64xf32>
    %56 = math.exp %55 : vector<128x64xf32>
    %cst_28 = arith.constant 1.000000e+00 : f32
    %57 = vector.broadcast %cst_28 : f32 to vector<128x64xf32>
    %58 = arith.addf %57, %56 : vector<128x64xf32>
    %59 = arith.divf %57, %58 : vector<128x64xf32>
    %60 = arith.mulf %54, %59 : vector<128x64xf32>
    %c0_29 = arith.constant 0 : index
    %c0_30 = arith.constant 0 : index
    %61 = vector.load %arg6[%c0_29, %c0_30] : memref<64x64xf32, #tpu.memory_space<vmem>>, vector<64x64xf32>
    %cst_31 = arith.constant dense<0.000000e+00> : vector<128x64xf32>
    %62 = tpu.matmul %60, %61, %cst_31 {dimension_numbers = #tpu.dot_dimension_numbers<[1], [0], [0], [1], [0, 0, 1, 1], [], []>} : vector<128x64xf32>, vector<64x64xf32>, vector<128x64xf32> -> vector<128x64xf32>
    %c0_32 = arith.constant 0 : index
    %c0_33 = arith.constant 0 : index
    %63 = vector.load %arg7[%c0_32, %c0_33] : memref<1x64xf32, #tpu.memory_space<vmem>>, vector<1x64xf32>
    %64 = vector.broadcast %63 : vector<1x64xf32> to vector<128x64xf32>
    %65 = arith.addf %62, %64 : vector<128x64xf32>
    %c0_34 = arith.constant 0 : index
    %c0_35 = arith.constant 0 : index
    %66 = vector.load %arg8[%c0_34, %c0_35] : memref<1x64xf32, #tpu.memory_space<vmem>>, vector<1x64xf32>
    %c0_36 = arith.constant 0 : index
    %c0_37 = arith.constant 0 : index
    %67 = vector.load %arg9[%c0_36, %c0_37] : memref<1x64xf32, #tpu.memory_space<vmem>>, vector<1x64xf32>
    %cst_38 = arith.constant dense<0.000000e+00> : vector<128xf32>
    %68 = vector.multi_reduction <add>, %65, %cst_38 [1] : vector<128x64xf32> to vector<128xf32>
    %69 = vector.shape_cast %68 : vector<128xf32> to vector<128x1xf32>
    %cst_39 = arith.constant 6.400000e+01 : f32
    %70 = vector.broadcast %cst_39 : f32 to vector<128x1xf32>
    %71 = arith.divf %69, %70 : vector<128x1xf32>
    %72 = vector.broadcast %71 : vector<128x1xf32> to vector<128x64xf32>
    %73 = arith.subf %65, %72 : vector<128x64xf32>
    %74 = arith.mulf %73, %73 : vector<128x64xf32>
    %cst_40 = arith.constant dense<0.000000e+00> : vector<128xf32>
    %75 = vector.multi_reduction <add>, %74, %cst_40 [1] : vector<128x64xf32> to vector<128xf32>
    %76 = vector.shape_cast %75 : vector<128xf32> to vector<128x1xf32>
    %cst_41 = arith.constant 6.400000e+01 : f32
    %77 = vector.broadcast %cst_41 : f32 to vector<128x1xf32>
    %78 = arith.divf %76, %77 : vector<128x1xf32>
    %79 = vector.broadcast %71 : vector<128x1xf32> to vector<128x64xf32>
    %80 = arith.subf %65, %79 : vector<128x64xf32>
    %cst_42 = arith.constant 9.99999974E-6 : f32
    %81 = vector.broadcast %cst_42 : f32 to vector<128x1xf32>
    %82 = arith.addf %78, %81 : vector<128x1xf32>
    %83 = math.rsqrt %82 : vector<128x1xf32>
    %84 = vector.broadcast %83 : vector<128x1xf32> to vector<128x64xf32>
    %85 = arith.mulf %80, %84 : vector<128x64xf32>
    %86 = vector.broadcast %66 : vector<1x64xf32> to vector<128x64xf32>
    %87 = arith.mulf %85, %86 : vector<128x64xf32>
    %88 = vector.broadcast %67 : vector<1x64xf32> to vector<128x64xf32>
    %89 = arith.addf %87, %88 : vector<128x64xf32>
    %c0_43 = arith.constant 0 : index
    %c0_44 = arith.constant 0 : index
    %90 = vector.load %arg10[%c0_43, %c0_44] : memref<64x192xf32, #tpu.memory_space<vmem>>, vector<64x192xf32>
    %cst_45 = arith.constant dense<0.000000e+00> : vector<128x192xf32>
    %91 = tpu.matmul %89, %90, %cst_45 {dimension_numbers = #tpu.dot_dimension_numbers<[1], [0], [0], [1], [0, 0, 1, 1], [], []>} : vector<128x64xf32>, vector<64x192xf32>, vector<128x192xf32> -> vector<128x192xf32>
    %92 = vector.extract_strided_slice %91 {offsets = [0, 0], sizes = [128, 64], strides = [1, 1]} : vector<128x192xf32> to vector<128x64xf32>
    %93 = vector.extract_strided_slice %91 {offsets = [0, 64], sizes = [128, 64], strides = [1, 1]} : vector<128x192xf32> to vector<128x64xf32>
    %94 = vector.extract_strided_slice %91 {offsets = [0, 128], sizes = [128, 64], strides = [1, 1]} : vector<128x192xf32> to vector<128x64xf32>
    %c0_46 = arith.constant 0 : index
    %c0_47 = arith.constant 0 : index
    %95 = vector.load %arg11[%c0_46, %c0_47] : memref<64x64xf32, #tpu.memory_space<vmem>>, vector<64x64xf32>
    %96 = vector.extract_strided_slice %92 {offsets = [0, 0], sizes = [64, 64], strides = [1, 1]} : vector<128x64xf32> to vector<64x64xf32>
    %97 = vector.extract_strided_slice %93 {offsets = [0, 0], sizes = [64, 64], strides = [1, 1]} : vector<128x64xf32> to vector<64x64xf32>
    %98 = vector.extract_strided_slice %94 {offsets = [0, 0], sizes = [64, 64], strides = [1, 1]} : vector<128x64xf32> to vector<64x64xf32>
    %99 = vector.extract_strided_slice %96 {offsets = [0, 0], sizes = [64, 32], strides = [1, 1]} : vector<64x64xf32> to vector<64x32xf32>
    %100 = vector.extract_strided_slice %97 {offsets = [0, 0], sizes = [64, 32], strides = [1, 1]} : vector<64x64xf32> to vector<64x32xf32>
    %101 = vector.extract_strided_slice %98 {offsets = [0, 0], sizes = [64, 32], strides = [1, 1]} : vector<64x64xf32> to vector<64x32xf32>
    %cst_48 = arith.constant dense<0.000000e+00> : vector<64x64xf32>
    %102 = tpu.matmul %99, %100, %cst_48 {dimension_numbers = #tpu.dot_dimension_numbers<[1], [1], [0], [0], [0, 0, 1, 0], [], []>} : vector<64x32xf32>, vector<64x32xf32>, vector<64x64xf32> -> vector<64x64xf32>
    %cst_49 = arith.constant 0.176776692 : f32
    %103 = vector.broadcast %cst_49 : f32 to vector<64x64xf32>
    %104 = arith.mulf %102, %103 : vector<64x64xf32>
    %cst_50 = arith.constant dense<0xFF800000> : vector<64xf32>
    %105 = vector.multi_reduction <maximumf>, %104, %cst_50 [1] : vector<64x64xf32> to vector<64xf32>
    %106 = vector.shape_cast %105 : vector<64xf32> to vector<64x1xf32>
    %107 = vector.broadcast %106 : vector<64x1xf32> to vector<64x64xf32>
    %108 = arith.subf %104, %107 : vector<64x64xf32>
    %109 = math.exp %108 : vector<64x64xf32>
    %cst_51 = arith.constant dense<0.000000e+00> : vector<64xf32>
    %110 = vector.multi_reduction <add>, %109, %cst_51 [1] : vector<64x64xf32> to vector<64xf32>
    %111 = vector.shape_cast %110 : vector<64xf32> to vector<64x1xf32>
    %cst_52 = arith.constant dense<0.000000e+00> : vector<64x32xf32>
    %112 = tpu.matmul %109, %101, %cst_52 {dimension_numbers = #tpu.dot_dimension_numbers<[1], [0], [0], [1], [0, 0, 1, 1], [], []>} : vector<64x64xf32>, vector<64x32xf32>, vector<64x32xf32> -> vector<64x32xf32>
    %113 = tpu.reciprocal %111 {approx = true} : vector<64x1xf32> -> vector<64x1xf32>
    %114 = vector.broadcast %113 : vector<64x1xf32> to vector<64x32xf32>
    %115 = arith.mulf %112, %114 : vector<64x32xf32>
    %116 = vector.extract_strided_slice %95 {offsets = [0, 0], sizes = [32, 64], strides = [1, 1]} : vector<64x64xf32> to vector<32x64xf32>
    %cst_53 = arith.constant dense<0.000000e+00> : vector<64x64xf32>
    %117 = tpu.matmul %115, %116, %cst_53 {dimension_numbers = #tpu.dot_dimension_numbers<[1], [0], [0], [1], [0, 0, 1, 1], [], []>} : vector<64x32xf32>, vector<32x64xf32>, vector<64x64xf32> -> vector<64x64xf32>
    %118 = vector.extract_strided_slice %96 {offsets = [0, 32], sizes = [64, 32], strides = [1, 1]} : vector<64x64xf32> to vector<64x32xf32>
    %119 = vector.extract_strided_slice %97 {offsets = [0, 32], sizes = [64, 32], strides = [1, 1]} : vector<64x64xf32> to vector<64x32xf32>
    %120 = vector.extract_strided_slice %98 {offsets = [0, 32], sizes = [64, 32], strides = [1, 1]} : vector<64x64xf32> to vector<64x32xf32>
    %cst_54 = arith.constant dense<0.000000e+00> : vector<64x64xf32>
    %121 = tpu.matmul %118, %119, %cst_54 {dimension_numbers = #tpu.dot_dimension_numbers<[1], [1], [0], [0], [0, 0, 1, 0], [], []>} : vector<64x32xf32>, vector<64x32xf32>, vector<64x64xf32> -> vector<64x64xf32>
    %cst_55 = arith.constant 0.176776692 : f32
    %122 = vector.broadcast %cst_55 : f32 to vector<64x64xf32>
    %123 = arith.mulf %121, %122 : vector<64x64xf32>
    %cst_56 = arith.constant dense<0xFF800000> : vector<64xf32>
    %124 = vector.multi_reduction <maximumf>, %123, %cst_56 [1] : vector<64x64xf32> to vector<64xf32>
    %125 = vector.shape_cast %124 : vector<64xf32> to vector<64x1xf32>
    %126 = vector.broadcast %125 : vector<64x1xf32> to vector<64x64xf32>
    %127 = arith.subf %123, %126 : vector<64x64xf32>
    %128 = math.exp %127 : vector<64x64xf32>
    %cst_57 = arith.constant dense<0.000000e+00> : vector<64xf32>
    %129 = vector.multi_reduction <add>, %128, %cst_57 [1] : vector<64x64xf32> to vector<64xf32>
    %130 = vector.shape_cast %129 : vector<64xf32> to vector<64x1xf32>
    %cst_58 = arith.constant dense<0.000000e+00> : vector<64x32xf32>
    %131 = tpu.matmul %128, %120, %cst_58 {dimension_numbers = #tpu.dot_dimension_numbers<[1], [0], [0], [1], [0, 0, 1, 1], [], []>} : vector<64x64xf32>, vector<64x32xf32>, vector<64x32xf32> -> vector<64x32xf32>
    %132 = tpu.reciprocal %130 {approx = true} : vector<64x1xf32> -> vector<64x1xf32>
    %133 = vector.broadcast %132 : vector<64x1xf32> to vector<64x32xf32>
    %134 = arith.mulf %131, %133 : vector<64x32xf32>
    %135 = vector.extract_strided_slice %95 {offsets = [32, 0], sizes = [32, 64], strides = [1, 1]} : vector<64x64xf32> to vector<32x64xf32>
    %cst_59 = arith.constant dense<0.000000e+00> : vector<64x64xf32>
    %136 = tpu.matmul %134, %135, %cst_59 {dimension_numbers = #tpu.dot_dimension_numbers<[1], [0], [0], [1], [0, 0, 1, 1], [], []>} : vector<64x32xf32>, vector<32x64xf32>, vector<64x64xf32> -> vector<64x64xf32>
    %137 = arith.addf %117, %136 : vector<64x64xf32>
    %138 = vector.extract_strided_slice %92 {offsets = [64, 0], sizes = [64, 64], strides = [1, 1]} : vector<128x64xf32> to vector<64x64xf32>
    %139 = vector.extract_strided_slice %93 {offsets = [64, 0], sizes = [64, 64], strides = [1, 1]} : vector<128x64xf32> to vector<64x64xf32>
    %140 = vector.extract_strided_slice %94 {offsets = [64, 0], sizes = [64, 64], strides = [1, 1]} : vector<128x64xf32> to vector<64x64xf32>
    %141 = vector.extract_strided_slice %138 {offsets = [0, 0], sizes = [64, 32], strides = [1, 1]} : vector<64x64xf32> to vector<64x32xf32>
    %142 = vector.extract_strided_slice %139 {offsets = [0, 0], sizes = [64, 32], strides = [1, 1]} : vector<64x64xf32> to vector<64x32xf32>
    %143 = vector.extract_strided_slice %140 {offsets = [0, 0], sizes = [64, 32], strides = [1, 1]} : vector<64x64xf32> to vector<64x32xf32>
    %cst_60 = arith.constant dense<0.000000e+00> : vector<64x64xf32>
    %144 = tpu.matmul %141, %142, %cst_60 {dimension_numbers = #tpu.dot_dimension_numbers<[1], [1], [0], [0], [0, 0, 1, 0], [], []>} : vector<64x32xf32>, vector<64x32xf32>, vector<64x64xf32> -> vector<64x64xf32>
    %cst_61 = arith.constant 0.176776692 : f32
    %145 = vector.broadcast %cst_61 : f32 to vector<64x64xf32>
    %146 = arith.mulf %144, %145 : vector<64x64xf32>
    %cst_62 = arith.constant dense<0xFF800000> : vector<64xf32>
    %147 = vector.multi_reduction <maximumf>, %146, %cst_62 [1] : vector<64x64xf32> to vector<64xf32>
    %148 = vector.shape_cast %147 : vector<64xf32> to vector<64x1xf32>
    %149 = vector.broadcast %148 : vector<64x1xf32> to vector<64x64xf32>
    %150 = arith.subf %146, %149 : vector<64x64xf32>
    %151 = math.exp %150 : vector<64x64xf32>
    %cst_63 = arith.constant dense<0.000000e+00> : vector<64xf32>
    %152 = vector.multi_reduction <add>, %151, %cst_63 [1] : vector<64x64xf32> to vector<64xf32>
    %153 = vector.shape_cast %152 : vector<64xf32> to vector<64x1xf32>
    %cst_64 = arith.constant dense<0.000000e+00> : vector<64x32xf32>
    %154 = tpu.matmul %151, %143, %cst_64 {dimension_numbers = #tpu.dot_dimension_numbers<[1], [0], [0], [1], [0, 0, 1, 1], [], []>} : vector<64x64xf32>, vector<64x32xf32>, vector<64x32xf32> -> vector<64x32xf32>
    %155 = tpu.reciprocal %153 {approx = true} : vector<64x1xf32> -> vector<64x1xf32>
    %156 = vector.broadcast %155 : vector<64x1xf32> to vector<64x32xf32>
    %157 = arith.mulf %154, %156 : vector<64x32xf32>
    %158 = vector.extract_strided_slice %95 {offsets = [0, 0], sizes = [32, 64], strides = [1, 1]} : vector<64x64xf32> to vector<32x64xf32>
    %cst_65 = arith.constant dense<0.000000e+00> : vector<64x64xf32>
    %159 = tpu.matmul %157, %158, %cst_65 {dimension_numbers = #tpu.dot_dimension_numbers<[1], [0], [0], [1], [0, 0, 1, 1], [], []>} : vector<64x32xf32>, vector<32x64xf32>, vector<64x64xf32> -> vector<64x64xf32>
    %160 = vector.extract_strided_slice %138 {offsets = [0, 32], sizes = [64, 32], strides = [1, 1]} : vector<64x64xf32> to vector<64x32xf32>
    %161 = vector.extract_strided_slice %139 {offsets = [0, 32], sizes = [64, 32], strides = [1, 1]} : vector<64x64xf32> to vector<64x32xf32>
    %162 = vector.extract_strided_slice %140 {offsets = [0, 32], sizes = [64, 32], strides = [1, 1]} : vector<64x64xf32> to vector<64x32xf32>
    %cst_66 = arith.constant dense<0.000000e+00> : vector<64x64xf32>
    %163 = tpu.matmul %160, %161, %cst_66 {dimension_numbers = #tpu.dot_dimension_numbers<[1], [1], [0], [0], [0, 0, 1, 0], [], []>} : vector<64x32xf32>, vector<64x32xf32>, vector<64x64xf32> -> vector<64x64xf32>
    %cst_67 = arith.constant 0.176776692 : f32
    %164 = vector.broadcast %cst_67 : f32 to vector<64x64xf32>
    %165 = arith.mulf %163, %164 : vector<64x64xf32>
    %cst_68 = arith.constant dense<0xFF800000> : vector<64xf32>
    %166 = vector.multi_reduction <maximumf>, %165, %cst_68 [1] : vector<64x64xf32> to vector<64xf32>
    %167 = vector.shape_cast %166 : vector<64xf32> to vector<64x1xf32>
    %168 = vector.broadcast %167 : vector<64x1xf32> to vector<64x64xf32>
    %169 = arith.subf %165, %168 : vector<64x64xf32>
    %170 = math.exp %169 : vector<64x64xf32>
    %cst_69 = arith.constant dense<0.000000e+00> : vector<64xf32>
    %171 = vector.multi_reduction <add>, %170, %cst_69 [1] : vector<64x64xf32> to vector<64xf32>
    %172 = vector.shape_cast %171 : vector<64xf32> to vector<64x1xf32>
    %cst_70 = arith.constant dense<0.000000e+00> : vector<64x32xf32>
    %173 = tpu.matmul %170, %162, %cst_70 {dimension_numbers = #tpu.dot_dimension_numbers<[1], [0], [0], [1], [0, 0, 1, 1], [], []>} : vector<64x64xf32>, vector<64x32xf32>, vector<64x32xf32> -> vector<64x32xf32>
    %174 = tpu.reciprocal %172 {approx = true} : vector<64x1xf32> -> vector<64x1xf32>
    %175 = vector.broadcast %174 : vector<64x1xf32> to vector<64x32xf32>
    %176 = arith.mulf %173, %175 : vector<64x32xf32>
    %177 = vector.extract_strided_slice %95 {offsets = [32, 0], sizes = [32, 64], strides = [1, 1]} : vector<64x64xf32> to vector<32x64xf32>
    %cst_71 = arith.constant dense<0.000000e+00> : vector<64x64xf32>
    %178 = tpu.matmul %176, %177, %cst_71 {dimension_numbers = #tpu.dot_dimension_numbers<[1], [0], [0], [1], [0, 0, 1, 1], [], []>} : vector<64x32xf32>, vector<32x64xf32>, vector<64x64xf32> -> vector<64x64xf32>
    %179 = arith.addf %159, %178 : vector<64x64xf32>
    %180 = tpu.concatenate %137, %179 in 0 : vector<64x64xf32>, vector<64x64xf32> -> vector<128x64xf32>
    %c0_72 = arith.constant 0 : index
    %c0_73 = arith.constant 0 : index
    %181 = vector.load %arg12[%c0_72, %c0_73] : memref<1x64xf32, #tpu.memory_space<vmem>>, vector<1x64xf32>
    %182 = vector.broadcast %181 : vector<1x64xf32> to vector<128x64xf32>
    %183 = arith.addf %180, %182 : vector<128x64xf32>
    %184 = arith.addf %183, %65 : vector<128x64xf32>
    %c0_74 = arith.constant 0 : index
    %c0_75 = arith.constant 0 : index
    %185 = vector.load %arg13[%c0_74, %c0_75] : memref<1x64xf32, #tpu.memory_space<vmem>>, vector<1x64xf32>
    %c0_76 = arith.constant 0 : index
    %c0_77 = arith.constant 0 : index
    %186 = vector.load %arg14[%c0_76, %c0_77] : memref<1x64xf32, #tpu.memory_space<vmem>>, vector<1x64xf32>
    %cst_78 = arith.constant dense<0.000000e+00> : vector<128xf32>
    %187 = vector.multi_reduction <add>, %184, %cst_78 [1] : vector<128x64xf32> to vector<128xf32>
    %188 = vector.shape_cast %187 : vector<128xf32> to vector<128x1xf32>
    %cst_79 = arith.constant 6.400000e+01 : f32
    %189 = vector.broadcast %cst_79 : f32 to vector<128x1xf32>
    %190 = arith.divf %188, %189 : vector<128x1xf32>
    %191 = vector.broadcast %190 : vector<128x1xf32> to vector<128x64xf32>
    %192 = arith.subf %184, %191 : vector<128x64xf32>
    %193 = arith.mulf %192, %192 : vector<128x64xf32>
    %cst_80 = arith.constant dense<0.000000e+00> : vector<128xf32>
    %194 = vector.multi_reduction <add>, %193, %cst_80 [1] : vector<128x64xf32> to vector<128xf32>
    %195 = vector.shape_cast %194 : vector<128xf32> to vector<128x1xf32>
    %cst_81 = arith.constant 6.400000e+01 : f32
    %196 = vector.broadcast %cst_81 : f32 to vector<128x1xf32>
    %197 = arith.divf %195, %196 : vector<128x1xf32>
    %198 = vector.broadcast %190 : vector<128x1xf32> to vector<128x64xf32>
    %199 = arith.subf %184, %198 : vector<128x64xf32>
    %cst_82 = arith.constant 9.99999974E-6 : f32
    %200 = vector.broadcast %cst_82 : f32 to vector<128x1xf32>
    %201 = arith.addf %197, %200 : vector<128x1xf32>
    %202 = math.rsqrt %201 : vector<128x1xf32>
    %203 = vector.broadcast %202 : vector<128x1xf32> to vector<128x64xf32>
    %204 = arith.mulf %199, %203 : vector<128x64xf32>
    %205 = vector.broadcast %185 : vector<1x64xf32> to vector<128x64xf32>
    %206 = arith.mulf %204, %205 : vector<128x64xf32>
    %207 = vector.broadcast %186 : vector<1x64xf32> to vector<128x64xf32>
    %208 = arith.addf %206, %207 : vector<128x64xf32>
    %c0_83 = arith.constant 0 : index
    %c0_84 = arith.constant 0 : index
    %209 = vector.load %arg15[%c0_83, %c0_84] : memref<64x64xf32, #tpu.memory_space<vmem>>, vector<64x64xf32>
    %cst_85 = arith.constant dense<0.000000e+00> : vector<128x64xf32>
    %210 = tpu.matmul %208, %209, %cst_85 {dimension_numbers = #tpu.dot_dimension_numbers<[1], [0], [0], [1], [0, 0, 1, 1], [], []>} : vector<128x64xf32>, vector<64x64xf32>, vector<128x64xf32> -> vector<128x64xf32>
    %211 = vector.shape_cast %2 : vector<2x8x64xf32> to vector<16x64xf32>
    %c0_86 = arith.constant 0 : index
    %c0_87 = arith.constant 0 : index
    %212 = vector.load %arg16[%c0_86, %c0_87] : memref<64x128xf32, #tpu.memory_space<vmem>>, vector<64x128xf32>
    %cst_88 = arith.constant dense<0.000000e+00> : vector<16x128xf32>
    %213 = tpu.matmul %211, %212, %cst_88 {dimension_numbers = #tpu.dot_dimension_numbers<[1], [0], [0], [1], [0, 0, 1, 1], [], []>} : vector<16x64xf32>, vector<64x128xf32>, vector<16x128xf32> -> vector<16x128xf32>
    %214 = vector.extract_strided_slice %213 {offsets = [0, 0], sizes = [16, 64], strides = [1, 1]} : vector<16x128xf32> to vector<16x64xf32>
    %215 = vector.extract_strided_slice %213 {offsets = [0, 64], sizes = [16, 64], strides = [1, 1]} : vector<16x128xf32> to vector<16x64xf32>
    %c0_89 = arith.constant 0 : index
    %c0_90 = arith.constant 0 : index
    %216 = vector.load %arg17[%c0_89, %c0_90] : memref<64x64xf32, #tpu.memory_space<vmem>>, vector<64x64xf32>
    %217 = vector.extract_strided_slice %210 {offsets = [0, 0], sizes = [64, 64], strides = [1, 1]} : vector<128x64xf32> to vector<64x64xf32>
    %218 = vector.extract_strided_slice %214 {offsets = [0, 0], sizes = [8, 64], strides = [1, 1]} : vector<16x64xf32> to vector<8x64xf32>
    %219 = vector.extract_strided_slice %215 {offsets = [0, 0], sizes = [8, 64], strides = [1, 1]} : vector<16x64xf32> to vector<8x64xf32>
    %220 = vector.extract_strided_slice %217 {offsets = [0, 0], sizes = [64, 32], strides = [1, 1]} : vector<64x64xf32> to vector<64x32xf32>
    %221 = vector.extract_strided_slice %218 {offsets = [0, 0], sizes = [8, 32], strides = [1, 1]} : vector<8x64xf32> to vector<8x32xf32>
    %222 = vector.extract_strided_slice %219 {offsets = [0, 0], sizes = [8, 32], strides = [1, 1]} : vector<8x64xf32> to vector<8x32xf32>
    %cst_91 = arith.constant dense<0.000000e+00> : vector<64x8xf32>
    %223 = tpu.matmul %220, %221, %cst_91 {dimension_numbers = #tpu.dot_dimension_numbers<[1], [1], [0], [0], [0, 0, 1, 0], [], []>} : vector<64x32xf32>, vector<8x32xf32>, vector<64x8xf32> -> vector<64x8xf32>
    %cst_92 = arith.constant 0.176776692 : f32
    %224 = vector.broadcast %cst_92 : f32 to vector<64x8xf32>
    %225 = arith.mulf %223, %224 : vector<64x8xf32>
    %cst_93 = arith.constant dense<0xFF800000> : vector<64xf32>
    %226 = vector.multi_reduction <maximumf>, %225, %cst_93 [1] : vector<64x8xf32> to vector<64xf32>
    %227 = vector.shape_cast %226 : vector<64xf32> to vector<64x1xf32>
    %228 = vector.broadcast %227 : vector<64x1xf32> to vector<64x8xf32>
    %229 = arith.subf %225, %228 : vector<64x8xf32>
    %230 = math.exp %229 : vector<64x8xf32>
    %cst_94 = arith.constant dense<0.000000e+00> : vector<64xf32>
    %231 = vector.multi_reduction <add>, %230, %cst_94 [1] : vector<64x8xf32> to vector<64xf32>
    %232 = vector.shape_cast %231 : vector<64xf32> to vector<64x1xf32>
    %cst_95 = arith.constant dense<0.000000e+00> : vector<64x32xf32>
    %233 = tpu.matmul %230, %222, %cst_95 {dimension_numbers = #tpu.dot_dimension_numbers<[1], [0], [0], [1], [0, 0, 1, 1], [], []>} : vector<64x8xf32>, vector<8x32xf32>, vector<64x32xf32> -> vector<64x32xf32>
    %234 = tpu.reciprocal %232 {approx = true} : vector<64x1xf32> -> vector<64x1xf32>
    %235 = vector.broadcast %234 : vector<64x1xf32> to vector<64x32xf32>
    %236 = arith.mulf %233, %235 : vector<64x32xf32>
    %237 = vector.extract_strided_slice %216 {offsets = [0, 0], sizes = [32, 64], strides = [1, 1]} : vector<64x64xf32> to vector<32x64xf32>
    %cst_96 = arith.constant dense<0.000000e+00> : vector<64x64xf32>
    %238 = tpu.matmul %236, %237, %cst_96 {dimension_numbers = #tpu.dot_dimension_numbers<[1], [0], [0], [1], [0, 0, 1, 1], [], []>} : vector<64x32xf32>, vector<32x64xf32>, vector<64x64xf32> -> vector<64x64xf32>
    %239 = vector.extract_strided_slice %217 {offsets = [0, 32], sizes = [64, 32], strides = [1, 1]} : vector<64x64xf32> to vector<64x32xf32>
    %240 = vector.extract_strided_slice %218 {offsets = [0, 32], sizes = [8, 32], strides = [1, 1]} : vector<8x64xf32> to vector<8x32xf32>
    %241 = vector.extract_strided_slice %219 {offsets = [0, 32], sizes = [8, 32], strides = [1, 1]} : vector<8x64xf32> to vector<8x32xf32>
    %cst_97 = arith.constant dense<0.000000e+00> : vector<64x8xf32>
    %242 = tpu.matmul %239, %240, %cst_97 {dimension_numbers = #tpu.dot_dimension_numbers<[1], [1], [0], [0], [0, 0, 1, 0], [], []>} : vector<64x32xf32>, vector<8x32xf32>, vector<64x8xf32> -> vector<64x8xf32>
    %cst_98 = arith.constant 0.176776692 : f32
    %243 = vector.broadcast %cst_98 : f32 to vector<64x8xf32>
    %244 = arith.mulf %242, %243 : vector<64x8xf32>
    %cst_99 = arith.constant dense<0xFF800000> : vector<64xf32>
    %245 = vector.multi_reduction <maximumf>, %244, %cst_99 [1] : vector<64x8xf32> to vector<64xf32>
    %246 = vector.shape_cast %245 : vector<64xf32> to vector<64x1xf32>
    %247 = vector.broadcast %246 : vector<64x1xf32> to vector<64x8xf32>
    %248 = arith.subf %244, %247 : vector<64x8xf32>
    %249 = math.exp %248 : vector<64x8xf32>
    %cst_100 = arith.constant dense<0.000000e+00> : vector<64xf32>
    %250 = vector.multi_reduction <add>, %249, %cst_100 [1] : vector<64x8xf32> to vector<64xf32>
    %251 = vector.shape_cast %250 : vector<64xf32> to vector<64x1xf32>
    %cst_101 = arith.constant dense<0.000000e+00> : vector<64x32xf32>
    %252 = tpu.matmul %249, %241, %cst_101 {dimension_numbers = #tpu.dot_dimension_numbers<[1], [0], [0], [1], [0, 0, 1, 1], [], []>} : vector<64x8xf32>, vector<8x32xf32>, vector<64x32xf32> -> vector<64x32xf32>
    %253 = tpu.reciprocal %251 {approx = true} : vector<64x1xf32> -> vector<64x1xf32>
    %254 = vector.broadcast %253 : vector<64x1xf32> to vector<64x32xf32>
    %255 = arith.mulf %252, %254 : vector<64x32xf32>
    %256 = vector.extract_strided_slice %216 {offsets = [32, 0], sizes = [32, 64], strides = [1, 1]} : vector<64x64xf32> to vector<32x64xf32>
    %cst_102 = arith.constant dense<0.000000e+00> : vector<64x64xf32>
    %257 = tpu.matmul %255, %256, %cst_102 {dimension_numbers = #tpu.dot_dimension_numbers<[1], [0], [0], [1], [0, 0, 1, 1], [], []>} : vector<64x32xf32>, vector<32x64xf32>, vector<64x64xf32> -> vector<64x64xf32>
    %258 = arith.addf %238, %257 : vector<64x64xf32>
    %259 = vector.extract_strided_slice %210 {offsets = [64, 0], sizes = [64, 64], strides = [1, 1]} : vector<128x64xf32> to vector<64x64xf32>
    %260 = vector.extract_strided_slice %214 {offsets = [8, 0], sizes = [8, 64], strides = [1, 1]} : vector<16x64xf32> to vector<8x64xf32>
    %261 = vector.extract_strided_slice %215 {offsets = [8, 0], sizes = [8, 64], strides = [1, 1]} : vector<16x64xf32> to vector<8x64xf32>
    %262 = vector.extract_strided_slice %259 {offsets = [0, 0], sizes = [64, 32], strides = [1, 1]} : vector<64x64xf32> to vector<64x32xf32>
    %263 = vector.extract_strided_slice %260 {offsets = [0, 0], sizes = [8, 32], strides = [1, 1]} : vector<8x64xf32> to vector<8x32xf32>
    %264 = vector.extract_strided_slice %261 {offsets = [0, 0], sizes = [8, 32], strides = [1, 1]} : vector<8x64xf32> to vector<8x32xf32>
    %cst_103 = arith.constant dense<0.000000e+00> : vector<64x8xf32>
    %265 = tpu.matmul %262, %263, %cst_103 {dimension_numbers = #tpu.dot_dimension_numbers<[1], [1], [0], [0], [0, 0, 1, 0], [], []>} : vector<64x32xf32>, vector<8x32xf32>, vector<64x8xf32> -> vector<64x8xf32>
    %cst_104 = arith.constant 0.176776692 : f32
    %266 = vector.broadcast %cst_104 : f32 to vector<64x8xf32>
    %267 = arith.mulf %265, %266 : vector<64x8xf32>
    %cst_105 = arith.constant dense<0xFF800000> : vector<64xf32>
    %268 = vector.multi_reduction <maximumf>, %267, %cst_105 [1] : vector<64x8xf32> to vector<64xf32>
    %269 = vector.shape_cast %268 : vector<64xf32> to vector<64x1xf32>
    %270 = vector.broadcast %269 : vector<64x1xf32> to vector<64x8xf32>
    %271 = arith.subf %267, %270 : vector<64x8xf32>
    %272 = math.exp %271 : vector<64x8xf32>
    %cst_106 = arith.constant dense<0.000000e+00> : vector<64xf32>
    %273 = vector.multi_reduction <add>, %272, %cst_106 [1] : vector<64x8xf32> to vector<64xf32>
    %274 = vector.shape_cast %273 : vector<64xf32> to vector<64x1xf32>
    %cst_107 = arith.constant dense<0.000000e+00> : vector<64x32xf32>
    %275 = tpu.matmul %272, %264, %cst_107 {dimension_numbers = #tpu.dot_dimension_numbers<[1], [0], [0], [1], [0, 0, 1, 1], [], []>} : vector<64x8xf32>, vector<8x32xf32>, vector<64x32xf32> -> vector<64x32xf32>
    %276 = tpu.reciprocal %274 {approx = true} : vector<64x1xf32> -> vector<64x1xf32>
    %277 = vector.broadcast %276 : vector<64x1xf32> to vector<64x32xf32>
    %278 = arith.mulf %275, %277 : vector<64x32xf32>
    %279 = vector.extract_strided_slice %216 {offsets = [0, 0], sizes = [32, 64], strides = [1, 1]} : vector<64x64xf32> to vector<32x64xf32>
    %cst_108 = arith.constant dense<0.000000e+00> : vector<64x64xf32>
    %280 = tpu.matmul %278, %279, %cst_108 {dimension_numbers = #tpu.dot_dimension_numbers<[1], [0], [0], [1], [0, 0, 1, 1], [], []>} : vector<64x32xf32>, vector<32x64xf32>, vector<64x64xf32> -> vector<64x64xf32>
    %281 = vector.extract_strided_slice %259 {offsets = [0, 32], sizes = [64, 32], strides = [1, 1]} : vector<64x64xf32> to vector<64x32xf32>
    %282 = vector.extract_strided_slice %260 {offsets = [0, 32], sizes = [8, 32], strides = [1, 1]} : vector<8x64xf32> to vector<8x32xf32>
    %283 = vector.extract_strided_slice %261 {offsets = [0, 32], sizes = [8, 32], strides = [1, 1]} : vector<8x64xf32> to vector<8x32xf32>
    %cst_109 = arith.constant dense<0.000000e+00> : vector<64x8xf32>
    %284 = tpu.matmul %281, %282, %cst_109 {dimension_numbers = #tpu.dot_dimension_numbers<[1], [1], [0], [0], [0, 0, 1, 0], [], []>} : vector<64x32xf32>, vector<8x32xf32>, vector<64x8xf32> -> vector<64x8xf32>
    %cst_110 = arith.constant 0.176776692 : f32
    %285 = vector.broadcast %cst_110 : f32 to vector<64x8xf32>
    %286 = arith.mulf %284, %285 : vector<64x8xf32>
    %cst_111 = arith.constant dense<0xFF800000> : vector<64xf32>
    %287 = vector.multi_reduction <maximumf>, %286, %cst_111 [1] : vector<64x8xf32> to vector<64xf32>
    %288 = vector.shape_cast %287 : vector<64xf32> to vector<64x1xf32>
    %289 = vector.broadcast %288 : vector<64x1xf32> to vector<64x8xf32>
    %290 = arith.subf %286, %289 : vector<64x8xf32>
    %291 = math.exp %290 : vector<64x8xf32>
    %cst_112 = arith.constant dense<0.000000e+00> : vector<64xf32>
    %292 = vector.multi_reduction <add>, %291, %cst_112 [1] : vector<64x8xf32> to vector<64xf32>
    %293 = vector.shape_cast %292 : vector<64xf32> to vector<64x1xf32>
    %cst_113 = arith.constant dense<0.000000e+00> : vector<64x32xf32>
    %294 = tpu.matmul %291, %283, %cst_113 {dimension_numbers = #tpu.dot_dimension_numbers<[1], [0], [0], [1], [0, 0, 1, 1], [], []>} : vector<64x8xf32>, vector<8x32xf32>, vector<64x32xf32> -> vector<64x32xf32>
    %295 = tpu.reciprocal %293 {approx = true} : vector<64x1xf32> -> vector<64x1xf32>
    %296 = vector.broadcast %295 : vector<64x1xf32> to vector<64x32xf32>
    %297 = arith.mulf %294, %296 : vector<64x32xf32>
    %298 = vector.extract_strided_slice %216 {offsets = [32, 0], sizes = [32, 64], strides = [1, 1]} : vector<64x64xf32> to vector<32x64xf32>
    %cst_114 = arith.constant dense<0.000000e+00> : vector<64x64xf32>
    %299 = tpu.matmul %297, %298, %cst_114 {dimension_numbers = #tpu.dot_dimension_numbers<[1], [0], [0], [1], [0, 0, 1, 1], [], []>} : vector<64x32xf32>, vector<32x64xf32>, vector<64x64xf32> -> vector<64x64xf32>
    %300 = arith.addf %280, %299 : vector<64x64xf32>
    %301 = tpu.concatenate %258, %300 in 0 : vector<64x64xf32>, vector<64x64xf32> -> vector<128x64xf32>
    %c0_115 = arith.constant 0 : index
    %c0_116 = arith.constant 0 : index
    %302 = vector.load %arg18[%c0_115, %c0_116] : memref<1x64xf32, #tpu.memory_space<vmem>>, vector<1x64xf32>
    %303 = vector.broadcast %302 : vector<1x64xf32> to vector<128x64xf32>
    %304 = arith.addf %301, %303 : vector<128x64xf32>
    %305 = arith.addf %304, %184 : vector<128x64xf32>
    %c0_117 = arith.constant 0 : index
    %c0_118 = arith.constant 0 : index
    %306 = vector.load %arg19[%c0_117, %c0_118] : memref<1x64xf32, #tpu.memory_space<vmem>>, vector<1x64xf32>
    %c0_119 = arith.constant 0 : index
    %c0_120 = arith.constant 0 : index
    %307 = vector.load %arg20[%c0_119, %c0_120] : memref<1x64xf32, #tpu.memory_space<vmem>>, vector<1x64xf32>
    %cst_121 = arith.constant dense<0.000000e+00> : vector<128xf32>
    %308 = vector.multi_reduction <add>, %305, %cst_121 [1] : vector<128x64xf32> to vector<128xf32>
    %309 = vector.shape_cast %308 : vector<128xf32> to vector<128x1xf32>
    %cst_122 = arith.constant 6.400000e+01 : f32
    %310 = vector.broadcast %cst_122 : f32 to vector<128x1xf32>
    %311 = arith.divf %309, %310 : vector<128x1xf32>
    %312 = vector.broadcast %311 : vector<128x1xf32> to vector<128x64xf32>
    %313 = arith.subf %305, %312 : vector<128x64xf32>
    %314 = arith.mulf %313, %313 : vector<128x64xf32>
    %cst_123 = arith.constant dense<0.000000e+00> : vector<128xf32>
    %315 = vector.multi_reduction <add>, %314, %cst_123 [1] : vector<128x64xf32> to vector<128xf32>
    %316 = vector.shape_cast %315 : vector<128xf32> to vector<128x1xf32>
    %cst_124 = arith.constant 6.400000e+01 : f32
    %317 = vector.broadcast %cst_124 : f32 to vector<128x1xf32>
    %318 = arith.divf %316, %317 : vector<128x1xf32>
    %319 = vector.broadcast %311 : vector<128x1xf32> to vector<128x64xf32>
    %320 = arith.subf %305, %319 : vector<128x64xf32>
    %cst_125 = arith.constant 9.99999974E-6 : f32
    %321 = vector.broadcast %cst_125 : f32 to vector<128x1xf32>
    %322 = arith.addf %318, %321 : vector<128x1xf32>
    %323 = math.rsqrt %322 : vector<128x1xf32>
    %324 = vector.broadcast %323 : vector<128x1xf32> to vector<128x64xf32>
    %325 = arith.mulf %320, %324 : vector<128x64xf32>
    %326 = vector.broadcast %306 : vector<1x64xf32> to vector<128x64xf32>
    %327 = arith.mulf %325, %326 : vector<128x64xf32>
    %328 = vector.broadcast %307 : vector<1x64xf32> to vector<128x64xf32>
    %329 = arith.addf %327, %328 : vector<128x64xf32>
    %c0_126 = arith.constant 0 : index
    %c0_127 = arith.constant 0 : index
    %330 = vector.load %arg21[%c0_126, %c0_127] : memref<64x512xf32, #tpu.memory_space<vmem>>, vector<64x512xf32>
    %cst_128 = arith.constant dense<0.000000e+00> : vector<128x512xf32>
    %331 = tpu.matmul %329, %330, %cst_128 {dimension_numbers = #tpu.dot_dimension_numbers<[1], [0], [0], [1], [0, 0, 1, 1], [], []>} : vector<128x64xf32>, vector<64x512xf32>, vector<128x512xf32> -> vector<128x512xf32>
    %c0_129 = arith.constant 0 : index
    %c0_130 = arith.constant 0 : index
    %332 = vector.load %arg22[%c0_129, %c0_130] : memref<1x512xf32, #tpu.memory_space<vmem>>, vector<1x512xf32>
    %333 = vector.broadcast %332 : vector<1x512xf32> to vector<128x512xf32>
    %334 = arith.addf %331, %333 : vector<128x512xf32>
    %335 = vector.extract_strided_slice %334 {offsets = [0, 0], sizes = [128, 256], strides = [1, 1]} : vector<128x512xf32> to vector<128x256xf32>
    %336 = vector.extract_strided_slice %334 {offsets = [0, 256], sizes = [128, 256], strides = [1, 1]} : vector<128x512xf32> to vector<128x256xf32>
    %cst_131 = arith.constant 5.000000e-01 : f32
    %337 = vector.broadcast %cst_131 : f32 to vector<128x256xf32>
    %338 = arith.mulf %337, %336 : vector<128x256xf32>
    %cst_132 = arith.constant 0.707106769 : f32
    %339 = vector.broadcast %cst_132 : f32 to vector<128x256xf32>
    %340 = arith.mulf %336, %339 : vector<128x256xf32>
    %cst_133 = arith.constant 0.000000e+00 : f32
    %341 = vector.broadcast %cst_133 : f32 to vector<128x256xf32>
    %342 = arith.cmpf oge, %340, %341 : vector<128x256xf32>
    %cst_134 = arith.constant 1.000000e+00 : f32
    %cst_135 = arith.constant -1.000000e+00 : f32
    %343 = vector.broadcast %cst_134 : f32 to vector<128x256xf32>
    %344 = vector.broadcast %cst_135 : f32 to vector<128x256xf32>
    %345 = arith.select %342, %343, %344 : vector<128x256xi1>, vector<128x256xf32>
    %346 = math.absf %340 : vector<128x256xf32>
    %cst_136 = arith.constant 0.327591091 : f32
    %347 = vector.broadcast %cst_136 : f32 to vector<128x256xf32>
    %348 = arith.mulf %347, %346 : vector<128x256xf32>
    %cst_137 = arith.constant 1.000000e+00 : f32
    %349 = vector.broadcast %cst_137 : f32 to vector<128x256xf32>
    %350 = arith.addf %349, %348 : vector<128x256xf32>
    %cst_138 = arith.constant 1.000000e+00 : f32
    %351 = vector.broadcast %cst_138 : f32 to vector<128x256xf32>
    %352 = arith.divf %351, %350 : vector<128x256xf32>
    %cst_139 = arith.constant 1.06140542 : f32
    %353 = vector.broadcast %cst_139 : f32 to vector<128x256xf32>
    %354 = arith.mulf %353, %352 : vector<128x256xf32>
    %cst_140 = arith.constant 1.45315206 : f32
    %355 = vector.broadcast %cst_140 : f32 to vector<128x256xf32>
    %356 = arith.subf %354, %355 : vector<128x256xf32>
    %357 = arith.mulf %356, %352 : vector<128x256xf32>
    %cst_141 = arith.constant 1.42141378 : f32
    %358 = vector.broadcast %cst_141 : f32 to vector<128x256xf32>
    %359 = arith.addf %357, %358 : vector<128x256xf32>
    %360 = arith.mulf %359, %352 : vector<128x256xf32>
    %cst_142 = arith.constant 0.284496725 : f32
    %361 = vector.broadcast %cst_142 : f32 to vector<128x256xf32>
    %362 = arith.subf %360, %361 : vector<128x256xf32>
    %363 = arith.mulf %362, %352 : vector<128x256xf32>
    %cst_143 = arith.constant 0.254829586 : f32
    %364 = vector.broadcast %cst_143 : f32 to vector<128x256xf32>
    %365 = arith.addf %363, %364 : vector<128x256xf32>
    %366 = arith.mulf %365, %352 : vector<128x256xf32>
    %cst_144 = arith.constant 0.000000e+00 : f32
    %367 = vector.broadcast %cst_144 : f32 to vector<128x256xf32>
    %368 = arith.subf %367, %346 : vector<128x256xf32>
    %369 = arith.mulf %368, %346 : vector<128x256xf32>
    %370 = math.exp %369 : vector<128x256xf32>
    %371 = arith.mulf %366, %370 : vector<128x256xf32>
    %cst_145 = arith.constant 1.000000e+00 : f32
    %372 = vector.broadcast %cst_145 : f32 to vector<128x256xf32>
    %373 = arith.subf %372, %371 : vector<128x256xf32>
    %374 = arith.mulf %345, %373 : vector<128x256xf32>
    %cst_146 = arith.constant 1.000000e+00 : f32
    %375 = vector.broadcast %cst_146 : f32 to vector<128x256xf32>
    %376 = arith.addf %375, %374 : vector<128x256xf32>
    %377 = arith.mulf %338, %376 : vector<128x256xf32>
    %378 = arith.mulf %335, %377 : vector<128x256xf32>
    %c0_147 = arith.constant 0 : index
    %c0_148 = arith.constant 0 : index
    %379 = vector.load %arg23[%c0_147, %c0_148] : memref<256x64xf32, #tpu.memory_space<vmem>>, vector<256x64xf32>
    %cst_149 = arith.constant dense<0.000000e+00> : vector<128x64xf32>
    %380 = tpu.matmul %378, %379, %cst_149 {dimension_numbers = #tpu.dot_dimension_numbers<[1], [0], [0], [1], [0, 0, 1, 1], [], []>} : vector<128x256xf32>, vector<256x64xf32>, vector<128x64xf32> -> vector<128x64xf32>
    %c0_150 = arith.constant 0 : index
    %c0_151 = arith.constant 0 : index
    %381 = vector.load %arg24[%c0_150, %c0_151] : memref<1x64xf32, #tpu.memory_space<vmem>>, vector<1x64xf32>
    %382 = vector.broadcast %381 : vector<1x64xf32> to vector<128x64xf32>
    %383 = arith.addf %380, %382 : vector<128x64xf32>
    %384 = arith.addf %383, %305 : vector<128x64xf32>
    %c0_152 = arith.constant 0 : index
    %c0_153 = arith.constant 0 : index
    %385 = vector.load %arg25[%c0_152, %c0_153] : memref<64x64xf32, #tpu.memory_space<vmem>>, vector<64x64xf32>
    %cst_154 = arith.constant dense<0.000000e+00> : vector<128x64xf32>
    %386 = tpu.matmul %384, %385, %cst_154 {dimension_numbers = #tpu.dot_dimension_numbers<[1], [0], [0], [1], [0, 0, 1, 1], [], []>} : vector<128x64xf32>, vector<64x64xf32>, vector<128x64xf32> -> vector<128x64xf32>
    %c0_155 = arith.constant 0 : index
    %c0_156 = arith.constant 0 : index
    %387 = vector.load %arg26[%c0_155, %c0_156] : memref<1x64xf32, #tpu.memory_space<vmem>>, vector<1x64xf32>
    %388 = vector.broadcast %387 : vector<1x64xf32> to vector<128x64xf32>
    %389 = arith.addf %386, %388 : vector<128x64xf32>
    %390 = arith.addf %389, %1 : vector<128x64xf32>
    %391 = vector.shape_cast %390 : vector<128x64xf32> to vector<2x64x64xf32>
    %c0_157 = arith.constant 0 : index
    %c0_158 = arith.constant 0 : index
    %c0_159 = arith.constant 0 : index
    %392 = vector.load %arg27[%c0_157, %c0_158, %c0_159] : memref<2x64x64xf32, #tpu.memory_space<vmem>>, vector<2x64x64xf32>
    tpu.vector_store %arg27[%c0_157, %c0_158, %c0_159], %391 {strides = array<i32>} : memref<2x64x64xf32, #tpu.memory_space<vmem>>, vector<2x64x64xf32>,
    return
  }
  func.func @transform_0(%arg0: i32) -> (i32, i32, i32) {
    %c0_i32 = arith.constant 0 : i32
    %c0_i32_0 = arith.constant 0 : i32
    %c0_i32_1 = arith.constant 0 : i32
    return %arg0, %c0_i32, %c0_i32_0 : i32, i32, i32
  }
  func.func @transform_1(%arg0: i32) -> (i32, i32, i32) {
    %c0_i32 = arith.constant 0 : i32
    %c0_i32_0 = arith.constant 0 : i32
    %c0_i32_1 = arith.constant 0 : i32
    return %arg0, %c0_i32, %c0_i32_0 : i32, i32, i32
  }
  func.func @transform_2(%arg0: i32) -> (i32, i32) {
    %c0_i32 = arith.constant 0 : i32
    %c0_i32_0 = arith.constant 0 : i32
    %c0_i32_1 = arith.constant 0 : i32
    return %c0_i32, %c0_i32_0 : i32, i32
  }
  func.func @transform_3(%arg0: i32) -> (i32, i32) {
    %c0_i32 = arith.constant 0 : i32
    %c0_i32_0 = arith.constant 0 : i32
    %c0_i32_1 = arith.constant 0 : i32
    return %c0_i32, %c0_i32_0 : i32, i32
  }
  func.func @transform_4(%arg0: i32) -> (i32, i32) {
    %c0_i32 = arith.constant 0 : i32
    %c0_i32_0 = arith.constant 0 : i32
    %c0_i32_1 = arith.constant 0 : i32
    return %c0_i32, %c0_i32_0 : i32, i32
  }
  func.func @transform_5(%arg0: i32) -> (i32, i32) {
    %c0_i32 = arith.constant 0 : i32
    %c0_i32_0 = arith.constant 0 : i32
    %c0_i32_1 = arith.constant 0 : i32
    return %c0_i32, %c0_i32_0 : i32, i32
  }
  func.func @transform_6(%arg0: i32) -> (i32, i32) {
    %c0_i32 = arith.constant 0 : i32
    %c0_i32_0 = arith.constant 0 : i32
    %c0_i32_1 = arith.constant 0 : i32
    return %c0_i32, %c0_i32_0 : i32, i32
  }
  func.func @transform_7(%arg0: i32) -> (i32, i32) {
    %c0_i32 = arith.constant 0 : i32
    %c0_i32_0 = arith.constant 0 : i32
    %c0_i32_1 = arith.constant 0 : i32
    return %c0_i32, %c0_i32_0 : i32, i32
  }
  func.func @transform_8(%arg0: i32) -> (i32, i32) {
    %c0_i32 = arith.constant 0 : i32
    %c0_i32_0 = arith.constant 0 : i32
    %c0_i32_1 = arith.constant 0 : i32
    return %c0_i32, %c0_i32_0 : i32, i32
  }
  func.func @transform_9(%arg0: i32) -> (i32, i32) {
    %c0_i32 = arith.constant 0 : i32
    %c0_i32_0 = arith.constant 0 : i32
    %c0_i32_1 = arith.constant 0 : i32
    return %c0_i32, %c0_i32_0 : i32, i32
  }
  func.func @transform_10(%arg0: i32) -> (i32, i32) {
    %c0_i32 = arith.constant 0 : i32
    %c0_i32_0 = arith.constant 0 : i32
    %c0_i32_1 = arith.constant 0 : i32
    return %c0_i32, %c0_i32_0 : i32, i32
  }
  func.func @transform_11(%arg0: i32) -> (i32, i32) {
    %c0_i32 = arith.constant 0 : i32
    %c0_i32_0 = arith.constant 0 : i32
    %c0_i32_1 = arith.constant 0 : i32
    return %c0_i32, %c0_i32_0 : i32, i32
  }
  func.func @transform_12(%arg0: i32) -> (i32, i32) {
    %c0_i32 = arith.constant 0 : i32
    %c0_i32_0 = arith.constant 0 : i32
    %c0_i32_1 = arith.constant 0 : i32
    return %c0_i32, %c0_i32_0 : i32, i32
  }
  func.func @transform_13(%arg0: i32) -> (i32, i32) {
    %c0_i32 = arith.constant 0 : i32
    %c0_i32_0 = arith.constant 0 : i32
    %c0_i32_1 = arith.constant 0 : i32
    return %c0_i32, %c0_i32_0 : i32, i32
  }
  func.func @transform_14(%arg0: i32) -> (i32, i32) {
    %c0_i32 = arith.constant 0 : i32
    %c0_i32_0 = arith.constant 0 : i32
    %c0_i32_1 = arith.constant 0 : i32
    return %c0_i32, %c0_i32_0 : i32, i32
  }
  func.func @transform_15(%arg0: i32) -> (i32, i32) {
    %c0_i32 = arith.constant 0 : i32
    %c0_i32_0 = arith.constant 0 : i32
    %c0_i32_1 = arith.constant 0 : i32
    return %c0_i32, %c0_i32_0 : i32, i32
  }
  func.func @transform_16(%arg0: i32) -> (i32, i32) {
    %c0_i32 = arith.constant 0 : i32
    %c0_i32_0 = arith.constant 0 : i32
    %c0_i32_1 = arith.constant 0 : i32
    return %c0_i32, %c0_i32_0 : i32, i32
  }
  func.func @transform_17(%arg0: i32) -> (i32, i32) {
    %c0_i32 = arith.constant 0 : i32
    %c0_i32_0 = arith.constant 0 : i32
    %c0_i32_1 = arith.constant 0 : i32
    return %c0_i32, %c0_i32_0 : i32, i32
  }
  func.func @transform_18(%arg0: i32) -> (i32, i32) {
    %c0_i32 = arith.constant 0 : i32
    %c0_i32_0 = arith.constant 0 : i32
    %c0_i32_1 = arith.constant 0 : i32
    return %c0_i32, %c0_i32_0 : i32, i32
  }
  func.func @transform_19(%arg0: i32) -> (i32, i32) {
    %c0_i32 = arith.constant 0 : i32
    %c0_i32_0 = arith.constant 0 : i32
    %c0_i32_1 = arith.constant 0 : i32
    return %c0_i32, %c0_i32_0 : i32, i32
  }
  func.func @transform_20(%arg0: i32) -> (i32, i32) {
    %c0_i32 = arith.constant 0 : i32
    %c0_i32_0 = arith.constant 0 : i32
    %c0_i32_1 = arith.constant 0 : i32
    return %c0_i32, %c0_i32_0 : i32, i32
  }
  func.func @transform_21(%arg0: i32) -> (i32, i32) {
    %c0_i32 = arith.constant 0 : i32
    %c0_i32_0 = arith.constant 0 : i32
    %c0_i32_1 = arith.constant 0 : i32
    return %c0_i32, %c0_i32_0 : i32, i32
  }
  func.func @transform_22(%arg0: i32) -> (i32, i32) {
    %c0_i32 = arith.constant 0 : i32
    %c0_i32_0 = arith.constant 0 : i32
    %c0_i32_1 = arith.constant 0 : i32
    return %c0_i32, %c0_i32_0 : i32, i32
  }
  func.func @transform_23(%arg0: i32) -> (i32, i32) {
    %c0_i32 = arith.constant 0 : i32
    %c0_i32_0 = arith.constant 0 : i32
    %c0_i32_1 = arith.constant 0 : i32
    return %c0_i32, %c0_i32_0 : i32, i32
  }
  func.func @transform_24(%arg0: i32) -> (i32, i32) {
    %c0_i32 = arith.constant 0 : i32
    %c0_i32_0 = arith.constant 0 : i32
    %c0_i32_1 = arith.constant 0 : i32
    return %c0_i32, %c0_i32_0 : i32, i32
  }
  func.func @transform_25(%arg0: i32) -> (i32, i32) {
    %c0_i32 = arith.constant 0 : i32
    %c0_i32_0 = arith.constant 0 : i32
    %c0_i32_1 = arith.constant 0 : i32
    return %c0_i32, %c0_i32_0 : i32, i32
  }
  func.func @transform_26(%arg0: i32) -> (i32, i32, i32) {
    %c0_i32 = arith.constant 0 : i32
    %c0_i32_0 = arith.constant 0 : i32
    %c0_i32_1 = arith.constant 0 : i32
    return %arg0, %c0_i32, %c0_i32_0 : i32, i32, i32
  }
}

</mosaic_0001>

<bundles_post_ra>
// kernel: tpu_custom_call.1
= control target key start
LH: loop header
LB: loop body
LE: loop exit
PB: predicated region body
PF: predicated region fallthrough
CT: control target
= control target key end

     0   :  { %s15712_s0 = inlined_call_operand.vmem [shape: f32[2,64,64], index: 0, kind: input, shape index: {}]   ;;  %s15713_s1 = inlined_call_operand.hbm [shape: f32[2,8,64], index: 1, kind: input, shape index: {}]   ;;  %s15714_s2 = inlined_call_operand.vmem [shape: f32[64,64], index: 2, kind: input, shape index: {}]   ;;  %s15715_s3 = inlined_call_operand.vmem [shape: f32[1,64], index: 3, kind: input, shape index: {}]   ;;  %s15716_s4 = inlined_call_operand.vmem [shape: f32[1,64], index: 4, kind: input, shape index: {}]   ;;  %s15717_s5 = inlined_call_operand.hbm [shape: f32[64,64], index: 5, kind: input, shape index: {}]   ;;  %s15718_s6 = inlined_call_operand.vmem [shape: f32[1,64], index: 6, kind: input, shape index: {}]   ;;  %s15719_s7 = inlined_call_operand.vmem [shape: f32[1,64], index: 7, kind: input, shape index: {}]   ;;  %s15720_s8 = inlined_call_operand.vmem [shape: f32[1,64], index: 8, kind: input, shape index: {}]   ;;  %s15721_s9 = inlined_call_operand.hbm [shape: f32[64,192], index: 9, kind: input, shape index: {}]   ;;  %s15722_s10 = inlined_call_operand.hbm [shape: f32[64,64], index: 10, kind: input, shape index: {}]   ;;  %s15723_s11 = inlined_call_operand.vmem [shape: f32[1,64], index: 11, kind: input, shape index: {}]   ;;  %s15724_s12 = inlined_call_operand.vmem [shape: f32[1,64], index: 12, kind: input, shape index: {}]   ;;  %s15725_s13 = inlined_call_operand.hbm [shape: f32[1,64], index: 13, kind: input, shape index: {}]   ;;  %s15726_s14 = inlined_call_operand.hbm [shape: f32[64,64], index: 14, kind: input, shape index: {}]   ;;  %s15727_s15 = inlined_call_operand.hbm [shape: f32[64,128], index: 15, kind: input, shape index: {}]   ;;  %s15728_s16 = inlined_call_operand.hbm [shape: f32[64,64], index: 16, kind: input, shape index: {}]   ;;  %s15729_s17 = inlined_call_operand.hbm [shape: f32[1,64], index: 17, kind: input, shape index: {}]   ;;  %s15730_s18 = inlined_call_operand.hbm [shape: f32[1,64], index: 18, kind: input, shape index: {}]   ;;  %s15731_s19 = inlined_call_operand.hbm [shape: f32[1,64], index: 19, kind: input, shape index: {}]   ;;  %s15732_s20 = inlined_call_operand.vmem [shape: f32[64,512], index: 20, kind: input, shape index: {}]   ;;  %s15733_s21 = inlined_call_operand.vmem [shape: f32[1,512], index: 21, kind: input, shape index: {}]   ;;  %s15734_s22 = inlined_call_operand.vmem [shape: f32[256,64], index: 22, kind: input, shape index: {}]   ;;  %s15735_s23 = inlined_call_operand.vmem [shape: f32[1,64], index: 23, kind: input, shape index: {}]   ;;  %s15736_s24 = inlined_call_operand.hbm [shape: f32[64,64], index: 24, kind: input, shape index: {}]   ;;  %s15737_s25 = inlined_call_operand.vmem [shape: f32[1,64], index: 25, kind: input, shape index: {}]   ;;  %s15738_s26 = inlined_call_operand.hbm [shape: f32[2,64,64], index: 26, kind: output, shape index: {}]  }
   0x1   :  { %15780 = sst [smem:[#allocation61_spill]] %s15712_s0 }
   0x2   :  { %15781 = sst [smem:[#allocation62_spill]] %s15713_s1 }
   0x3   :  { %15782 = sst [smem:[#allocation63_spill]] %s15714_s2 }
   0x4   :  { %15783 = sst [smem:[#allocation64_spill]] %s15715_s3 }
   0x5   :  { %15784 = sst [smem:[#allocation65_spill]] %s15716_s4 }
   0x6   :  { %15785 = sst [smem:[#allocation66_spill]] %s15717_s5 }
   0x7   :  { %15786 = sst [smem:[#allocation67_spill]] %s15718_s6 }
   0x8   :  { %15787 = sst [smem:[#allocation68_spill]] %s15719_s7 }
   0x9   :  { %15788 = sst [smem:[#allocation69_spill]] %s15720_s8 }
   0xa   :  { %15789 = sst [smem:[#allocation70_spill]] %s15721_s9 }
   0xb   :  { %15790 = sst [smem:[#allocation71_spill]] %s15722_s10 }
   0xc   :  { %15791 = sst [smem:[#allocation72_spill]] %s15737_s25 }
   0xd   :  { %15792 = sst [smem:[#allocation73_spill]] %s15738_s26 }
   0xe   :  { %31 = vsyncpa [#allocation3], 0 }
   0xf   :  { %32 = vsyncpa [#allocation6], 0 }
  0x10   :  { %33 = vsyncpa [#allocation9], 0 }
  0x11   :  { %34 = vsyncpa [#allocation12], 0 }
  0x12   :  { %35 = vsyncpa [#allocation15], 0 }
  0x13   :  { %36 = vsyncpa [#allocation18], 0 }
  0x14   :  { %37 = vsyncpa [#allocation21], 0 }
  0x15   :  { %38 = vsyncpa [#allocation4], 0  ;;  %s11437_s27 = smov [#allocation5]   ;;  %s11438_s7 = smov [#allocation8]  }
  0x16   :  { %s64_s3 = sshll.u32 %s11437_s27, 4  ;;  %s94_s28 = sshll.u32 %s11438_s7, 4  ;;  %s65_s3 = int_to_ptr.vmem [resolvable:$true] %s64_s3  ;;  %s11596_s28 = int_to_ptr.vmem [resolvable:$true] %s94_s28 }
  0x17   :  { %s15793_s29 = sld [smem:[#allocation66_spill]] }
  0x1d   :  { %s11135_s0 = scalar_lea.hbm %s15793_s29, 1024 }
  0x1e   :  { %p11136_p0 = scmp.ne.s32.totalorder %s15793_s29, %s11135_s0  ;;  %p11139_p1 = scmp.lt.u32.totalorder %s11135_s0, %s15793_s29 }
  0x20   :  { %p11141_p2 = pnand %p11139_p1, %p11136_p0 }
  0x22   :  { %11144 = shalt.err (!%p11141_p2)
}
  0x23   :  { %s11145_s10 = scalar_lea.vmem %s65_s3, 1024  ;;  %p11150_p4 = scmp.lt.s32.totalorder %s65_s3, %s65_s3 }
  0x24   :  { %p11146_p3 = scmp.ne.s32.totalorder %s65_s3, %s11145_s10  ;;  %p11151_p5 = scmp.lt.s32.totalorder %s11145_s10, %s11145_s10 }
  0x26   :  { %p11152_p6 = por %p11151_p5, %p11150_p4 }
  0x28   :  { %p11153_p7 = pnand %p11152_p6, %p11146_p3 }
  0x2a   :  { %11156 = shalt.err (!%p11153_p7)
}
  0x2b   :  { %s11439_s6 = smov 128   ;;  %s11440_s1 = smov 8  }
  0x2c   :  { %70 = dma.hbm_to_vmem [thread:$0]  %s15793_s29, 1024, %s65_s3, [#allocation6], %s11439_s6, %s11439_s6, %s11440_s1  }
  0x2d   :  { %s15794_s0 = sld [smem:[#allocation71_spill]] }
  0x33   :  { %s11157_s9 = scalar_lea.hbm %s15794_s0, 1024 }
  0x34   :  { %p11158_p8 = scmp.ne.s32.totalorder %s15794_s0, %s11157_s9  ;;  %p11161_p9 = scmp.lt.u32.totalorder %s11157_s9, %s15794_s0 }
  0x36   :  { %p11163_p10 = pnand %p11161_p9, %p11158_p8 }
  0x38   :  { %11166 = shalt.err (!%p11163_p10)
}
  0x39   :  { %s11167_s26 = scalar_lea.vmem %s11596_s28, 1024  ;;  %p11172_p12 = scmp.lt.s32.totalorder %s11596_s28, %s11596_s28 }
  0x3a   :  { %p11168_p11 = scmp.ne.s32.totalorder %s11596_s28, %s11167_s26  ;;  %p11173_p13 = scmp.lt.s32.totalorder %s11167_s26, %s11167_s26 }
  0x3c   :  { %p11174_p0 = por %p11173_p13, %p11172_p12 }
  0x3e   :  { %p11175_p1 = pnand %p11174_p0, %p11168_p11 }
  0x40   :  { %11178 = shalt.err (!%p11175_p1)
}
  0x41   :  { %100 = dma.hbm_to_vmem [thread:$0]  %s15794_s0, 1024, %s11596_s28, [#allocation9], %s11439_s6, %s11439_s6, %s11440_s1  }
  0x42   :  { %s11441_s27 = smov [#allocation11]   ;;  %s11442_s8 = smov [#allocation14]  }
  0x43   :  { %s120_s7 = sshll.u32 %s11441_s27, 4  ;;  %s144_s4 = sshll.u32 %s11442_s8, 4  ;;  %s121_s7 = int_to_ptr.vmem [resolvable:$true] %s120_s7  ;;  %s11633_s4 = int_to_ptr.vmem [resolvable:$true] %s144_s4 }
  0x44   :  { %s11179_s30 = scalar_lea.hbm %s15726_s14, 1024 }
  0x45   :  { %p11180_p2 = scmp.ne.s32.totalorder %s15726_s14, %s11179_s30  ;;  %p11183_p3 = scmp.lt.u32.totalorder %s11179_s30, %s15726_s14 }
  0x47   :  { %p11185_p4 = pnand %p11183_p3, %p11180_p2 }
  0x49   :  { %11188 = shalt.err (!%p11185_p4)
}
  0x4a   :  { %s11189_s28 = scalar_lea.vmem %s121_s7, 1024  ;;  %p11194_p6 = scmp.lt.s32.totalorder %s121_s7, %s121_s7 }
  0x4b   :  { %p11190_p5 = scmp.ne.s32.totalorder %s121_s7, %s11189_s28  ;;  %p11195_p7 = scmp.lt.s32.totalorder %s11189_s28, %s11189_s28 }
  0x4d   :  { %p11196_p8 = por %p11195_p7, %p11194_p6 }
  0x4f   :  { %p11197_p9 = pnand %p11196_p8, %p11190_p5 }
  0x51   :  { %11200 = shalt.err (!%p11197_p9)
}
  0x52   :  { %126 = dma.hbm_to_vmem [thread:$0]  %s15726_s14, 1024, %s121_s7, [#allocation12], %s11439_s6, %s11439_s6, %s11440_s1  }
  0x53   :  { %s11201_s25 = scalar_lea.hbm %s15728_s16, 1024 }
  0x54   :  { %p11202_p10 = scmp.ne.s32.totalorder %s15728_s16, %s11201_s25  ;;  %p11205_p11 = scmp.lt.u32.totalorder %s11201_s25, %s15728_s16 }
  0x56   :  { %p11207_p12 = pnand %p11205_p11, %p11202_p10 }
  0x58   :  { %11210 = shalt.err (!%p11207_p12)
}
  0x59   :  { %s11211_s2 = scalar_lea.vmem %s11633_s4, 1024  ;;  %p11216_p0 = scmp.lt.s32.totalorder %s11633_s4, %s11633_s4 }
  0x5a   :  { %p11212_p13 = scmp.ne.s32.totalorder %s11633_s4, %s11211_s2  ;;  %p11217_p1 = scmp.lt.s32.totalorder %s11211_s2, %s11211_s2 }
  0x5c   :  { %p11218_p2 = por %p11217_p1, %p11216_p0 }
  0x5e   :  { %p11219_p3 = pnand %p11218_p2, %p11212_p13 }
  0x60   :  { %11222 = shalt.err (!%p11219_p3)
}
  0x61   :  { %150 = dma.hbm_to_vmem [thread:$0]  %s15728_s16, 1024, %s11633_s4, [#allocation15], %s11439_s6, %s11439_s6, %s11440_s1  }
  0x62   :  { %s11443_s5 = smov [#allocation17]   ;;  %s11444_s28 = smov [#allocation2]  }
  0x63   :  { %s167_s10 = sshll.u32 %s11443_s5, 4  ;;  %s46_s0 = sshll.u32 %s11444_s28, 4  ;;  %s168_s10 = int_to_ptr.vmem [resolvable:$true] %s167_s10  ;;  %s11670_s0 = int_to_ptr.vmem [resolvable:$true] %s46_s0 }
  0x64   :  { %s11223_s27 = scalar_lea.hbm %s15730_s18, 16 }
  0x65   :  { %p11224_p4 = scmp.ne.s32.totalorder %s15730_s18, %s11223_s27  ;;  %p11227_p5 = scmp.lt.u32.totalorder %s11223_s27, %s15730_s18 }
  0x67   :  { %p11229_p6 = pnand %p11227_p5, %p11224_p4 }
  0x69   :  { %11232 = shalt.err (!%p11229_p6)
}
  0x6a   :  { %s11233_s16 = scalar_lea.vmem %s168_s10, 16  ;;  %s11237_s4 = scalar_lea.vmem %s168_s10, 32 }
  0x6b   :  { %p11234_p7 = scmp.ne.s32.totalorder %s168_s10, %s11233_s16  ;;  %p11238_p8 = scmp.lt.s32.totalorder %s168_s10, %s168_s10 }
  0x6c   :  { %p11239_p9 = scmp.lt.s32.totalorder %s11237_s4, %s11233_s16 }
  0x6e   :  { %p11240_p10 = por %p11239_p9, %p11238_p8 }
  0x70   :  { %p11241_p11 = pnand %p11240_p10, %p11234_p7 }
  0x72   :  { %11244 = shalt.err (!%p11241_p11)
}
  0x73   :  { %170 = dma.hbm_to_vmem [thread:$0]  %s15730_s18, 16, %s168_s10, [#allocation18]  }
  0x74   :  { %s15795_s5 = sld [smem:[#allocation62_spill]] }
  0x7a   :  { %s11245_s28 = scalar_lea.hbm %s15795_s5, 256 }
  0x7b   :  { %p11246_p12 = scmp.ne.s32.totalorder %s15795_s5, %s11245_s28  ;;  %p11249_p13 = scmp.lt.u32.totalorder %s11245_s28, %s15795_s5 }
  0x7d   :  { %p11251_p0 = pnand %p11249_p13, %p11246_p12 }
  0x7f   :  { %11254 = shalt.err (!%p11251_p0)
}
  0x80   :  { %s11255_s8 = scalar_lea.vmem %s11670_s0, 256  ;;  %p11260_p2 = scmp.lt.s32.totalorder %s11670_s0, %s11670_s0 }
  0x81   :  { %p11256_p1 = scmp.ne.s32.totalorder %s11670_s0, %s11255_s8  ;;  %p11261_p3 = scmp.lt.s32.totalorder %s11255_s8, %s11255_s8 }
  0x83   :  { %p11262_p4 = por %p11261_p3, %p11260_p2 }
  0x85   :  { %p11263_p5 = pnand %p11262_p4, %p11256_p1 }
  0x87   :  { %11266 = shalt.err (!%p11263_p5)
}
  0x88   :  { %52 = dma.hbm_to_vmem [thread:$0]  %s15795_s5, 256, %s11670_s0, [#allocation3], %s11439_s6, %s11439_s6, %s11440_s1  }
  0x89   :  { %s11445_s9 = smov [#allocation7]   ;;  %s15796_s30 = sld [smem:[#allocation70_spill]] }
  0x8a   :  { %s82_s26 = sshll.u32 %s11445_s9, 4  ;;  %s83_s26 = int_to_ptr.vmem [resolvable:$true] %s82_s26 }
  0x8f   :  { %s11267_s2 = scalar_lea.hbm %s15796_s30, 2048 }
  0x90   :  { %p11268_p6 = scmp.ne.s32.totalorder %s15796_s30, %s11267_s2  ;;  %p11271_p7 = scmp.lt.u32.totalorder %s11267_s2, %s15796_s30 }
  0x92   :  { %p11273_p8 = pnand %p11271_p7, %p11268_p6 }
  0x94   :  { %11276 = shalt.err (!%p11273_p8)
}
  0x95   :  { %s11277_s29 = scalar_lea.vmem %s83_s26, 2048  ;;  %p11282_p10 = scmp.lt.s32.totalorder %s83_s26, %s83_s26 }
  0x96   :  { %p11278_p9 = scmp.ne.s32.totalorder %s83_s26, %s11277_s29  ;;  %p11283_p11 = scmp.lt.s32.totalorder %s11277_s29, %s11277_s29 }
  0x98   :  { %p11284_p12 = por %p11283_p11, %p11282_p10 }
  0x9a   :  { %p11285_p13 = pnand %p11284_p12, %p11278_p9 }
  0x9c   :  { %11288 = shalt.err (!%p11285_p13)
}
  0x9d   :  { %s11446_s0 = smov 256   ;;  %s11447_s5 = smov 16  }
  0x9e   :  { %88 = dma.hbm_to_vmem [thread:$0]  %s15796_s30, 2048, %s83_s26, [#allocation6], %s11446_s0, %s11446_s0, %s11447_s5  }
  0x9f   :  { %s11448_s8 = smov [#allocation10]   ;;  %s11449_s10 = smov [#allocation13]  }
  0xa0   :  { %s111_s18 = sshll.u32 %s11448_s8, 4  ;;  %s132_s9 = sshll.u32 %s11449_s10, 4  ;;  %s112_s18 = int_to_ptr.vmem [resolvable:$true] %s111_s18  ;;  %s133_s9 = int_to_ptr.vmem [resolvable:$true] %s132_s9 }
  0xa1   :  { %s11289_s2 = scalar_lea.hbm %s15725_s13, 16 }
  0xa2   :  { %p11290_p0 = scmp.ne.s32.totalorder %s15725_s13, %s11289_s2  ;;  %p11293_p1 = scmp.lt.u32.totalorder %s11289_s2, %s15725_s13 }
  0xa4   :  { %p11295_p2 = pnand %p11293_p1, %p11290_p0 }
  0xa6   :  { %11298 = shalt.err (!%p11295_p2)
}
  0xa7   :  { %s11299_s26 = scalar_lea.vmem %s112_s18, 16  ;;  %s11303_s30 = scalar_lea.vmem %s112_s18, 32 }
  0xa8   :  { %p11300_p3 = scmp.ne.s32.totalorder %s112_s18, %s11299_s26  ;;  %p11304_p4 = scmp.lt.s32.totalorder %s112_s18, %s112_s18 }
  0xa9   :  { %p11305_p5 = scmp.lt.s32.totalorder %s11303_s30, %s11299_s26 }
  0xab   :  { %p11306_p6 = por %p11305_p5, %p11304_p4 }
  0xad   :  { %p11307_p7 = pnand %p11306_p6, %p11300_p3 }
  0xaf   :  { %11310 = shalt.err (!%p11307_p7)
}
  0xb0   :  { %114 = dma.hbm_to_vmem [thread:$0]  %s15725_s13, 16, %s112_s18, [#allocation9]  }
  0xb1   :  { %s11311_s25 = scalar_lea.hbm %s15727_s15, 1024 }
  0xb2   :  { %p11312_p8 = scmp.ne.s32.totalorder %s15727_s15, %s11311_s25  ;;  %p11315_p9 = scmp.lt.u32.totalorder %s11311_s25, %s15727_s15 }
  0xb4   :  { %p11317_p10 = pnand %p11315_p9, %p11312_p8 }
  0xb6   :  { %11320 = shalt.err (!%p11317_p10)
}
  0xb7   :  { %s11321_s2 = scalar_lea.vmem %s133_s9, 1024  ;;  %p11326_p12 = scmp.lt.s32.totalorder %s133_s9, %s133_s9 }
  0xb8   :  { %p11322_p11 = scmp.ne.s32.totalorder %s133_s9, %s11321_s2  ;;  %p11327_p13 = scmp.lt.s32.totalorder %s11321_s2, %s11321_s2 }
  0xba   :  { %p11328_p0 = por %p11327_p13, %p11326_p12 }
  0xbc   :  { %p11329_p1 = pnand %p11328_p0, %p11322_p11 }
  0xbe   :  { %11332 = shalt.err (!%p11329_p1)
}
  0xbf   :  { %138 = dma.hbm_to_vmem [thread:$0]  %s15727_s15, 1024, %s133_s9, [#allocation12], %s11439_s6, %s11439_s6, %s11440_s1  }
  0xc0   :  { %s11450_s14 = smov [#allocation16]   ;;  %s11451_s28 = smov [#allocation19]  }
  0xc1   :  { %s157_s7 = sshll.u32 %s11450_s14, 4  ;;  %s177_s3 = sshll.u32 %s11451_s28, 4  ;;  %s158_s7 = int_to_ptr.vmem [resolvable:$true] %s157_s7  ;;  %s178_s3 = int_to_ptr.vmem [resolvable:$true] %s177_s3 }
  0xc2   :  { %s11333_s29 = scalar_lea.hbm %s15729_s17, 16 }
  0xc3   :  { %p11334_p2 = scmp.ne.s32.totalorder %s15729_s17, %s11333_s29  ;;  %p11337_p3 = scmp.lt.u32.totalorder %s11333_s29, %s15729_s17 }
  0xc5   :  { %p11339_p4 = pnand %p11337_p3, %p11334_p2 }
  0xc7   :  { %11342 = shalt.err (!%p11339_p4)
}
  0xc8   :  { %s11343_s15 = scalar_lea.vmem %s158_s7, 16  ;;  %s11347_s9 = scalar_lea.vmem %s158_s7, 32 }
  0xc9   :  { %p11344_p5 = scmp.ne.s32.totalorder %s158_s7, %s11343_s15  ;;  %p11348_p6 = scmp.lt.s32.totalorder %s158_s7, %s158_s7 }
  0xca   :  { %p11349_p7 = scmp.lt.s32.totalorder %s11347_s9, %s11343_s15 }
  0xcc   :  { %p11350_p8 = por %p11349_p7, %p11348_p6 }
  0xce   :  { %p11351_p9 = pnand %p11350_p8, %p11344_p5 }
  0xd0   :  { %11354 = shalt.err (!%p11351_p9)
}
  0xd1   :  { %160 = dma.hbm_to_vmem [thread:$0]  %s15729_s17, 16, %s158_s7, [#allocation15]  }
  0xd2   :  { %s11355_s2 = scalar_lea.hbm %s15731_s19, 16 }
  0xd3   :  { %p11356_p10 = scmp.ne.s32.totalorder %s15731_s19, %s11355_s2  ;;  %p11359_p11 = scmp.lt.u32.totalorder %s11355_s2, %s15731_s19 }
  0xd5   :  { %p11361_p12 = pnand %p11359_p11, %p11356_p10 }
  0xd7   :  { %11364 = shalt.err (!%p11361_p12)
}
  0xd8   :  { %s11365_s26 = scalar_lea.vmem %s178_s3, 16  ;;  %s11369_s30 = scalar_lea.vmem %s178_s3, 32 }
  0xd9   :  { %p11366_p13 = scmp.ne.s32.totalorder %s178_s3, %s11365_s26  ;;  %p11370_p0 = scmp.lt.s32.totalorder %s178_s3, %s178_s3 }
  0xda   :  { %p11371_p1 = scmp.lt.s32.totalorder %s11369_s30, %s11365_s26 }
  0xdc   :  { %p11372_p2 = por %p11371_p1, %p11370_p0 }
  0xde   :  { %p11373_p3 = pnand %p11372_p2, %p11366_p13 }
  0xe0   :  { %11376 = shalt.err (!%p11373_p3)
}
  0xe1   :  { %180 = dma.hbm_to_vmem [thread:$0]  %s15731_s19, 16, %s178_s3, [#allocation18]  }
  0xe2   :  { %s11452_s29 = smov [#allocation20]   ;;  %s11377_s25 = scalar_lea.hbm %s15736_s24, 1024 }
  0xe3   :  { %s194_s0 = sshll.u32 %s11452_s29, 4  ;;  %p11378_p4 = scmp.ne.s32.totalorder %s15736_s24, %s11377_s25  ;;  %s195_s0 = int_to_ptr.vmem [resolvable:$true] %s194_s0 }
  0xe4   :  { %p11381_p5 = scmp.lt.u32.totalorder %s11377_s25, %s15736_s24 }
  0xe6   :  { %p11383_p6 = pnand %p11381_p5, %p11378_p4 }
  0xe8   :  { %11386 = shalt.err (!%p11383_p6)
}
  0xe9   :  { %s11387_s16 = scalar_lea.vmem %s195_s0, 1024  ;;  %p11392_p8 = scmp.lt.s32.totalorder %s195_s0, %s195_s0 }
  0xea   :  { %p11388_p7 = scmp.ne.s32.totalorder %s195_s0, %s11387_s16  ;;  %p11393_p9 = scmp.lt.s32.totalorder %s11387_s16, %s11387_s16 }
  0xec   :  { %p11394_p10 = por %p11393_p9, %p11392_p8 }
  0xee   :  { %p11395_p11 = pnand %p11394_p10, %p11388_p7 }
  0xf0   :  { %11398 = shalt.err (!%p11395_p11)
}
  0xf1   :  { %200 = dma.hbm_to_vmem [thread:$0]  %s15736_s24, 1024, %s195_s0, [#allocation21], %s11439_s6, %s11439_s6, %s11440_s1  }
  0xf2   :  { %11421 = dma.done.wait [#allocation3], 256  }
  0xf3   :  { %11422 = vsyncadd [#allocation3], 4294967040 }
  0xf4   :  { %11423 = dma.done.wait [#allocation6], 3072  }
  0xf5   :  { %11424 = vsyncadd [#allocation6], 4294964224 }
  0xf6   :  { %11425 = dma.done.wait [#allocation9], 1040  }
  0xf7   :  { %11426 = vsyncadd [#allocation9], 4294966256 }
  0xf8   :  { %11427 = dma.done.wait [#allocation12], 2048  }
  0xf9   :  { %11428 = vsyncadd [#allocation12], 4294965248 }
  0xfa   :  { %11429 = dma.done.wait [#allocation15], 1040  }
  0xfb   :  { %11430 = vsyncadd [#allocation15], 4294966256 }
  0xfc   :  { %11431 = dma.done.wait [#allocation18], 32  }
  0xfd   :  { %11432 = vsyncadd [#allocation18], 4294967264 }
  0xfe   :  { %11433 = dma.done.wait [#allocation21], 1024  }
  0xff   :  { %11434 = vsyncadd [#allocation21], 4294966272  ;;  %v11453_v0 = vmov 0.0|0.0   ;;  %vm11454_vm0 = vmmov 0   ;;  %v15746_v1 = vmov 0.0   ;;  %s15797_s2 = sld [smem:[#allocation63_spill]] }
 0x100   :  { %9979 = vmatprep.subr.bf16.mxu0 %v11453_v0  ;;  %9284 = vmatprep.mubr.msk.f32.mxu0 %vm11454_vm0, %v15746_v1  ;;  %vm267_vm1 = vcmask 523264   ;;  %s15798_s29 = sld [smem:[#allocation61_spill]]  ;;  %s15801_s30 = sld [smem:[#allocation64_spill]]  ;;  %vm1592_vm2 = vcmask 261120   ;;  %vm4440_vm4 = vcmask 64512  }
 0x101   :  { %9991 = vmatprep.subr.bf16.mxu1 %v11453_v0  ;;  %9303 = vmatprep.mubr.msk.f32.mxu1 %vm11454_vm0, %v15746_v1  ;;  %s15802_s0 = sld [smem:[#allocation65_spill]]  ;;  %s15803_s25 = sld [smem:[#allocation67_spill]]  ;;  %vm12546_vm3 = vmpackc.low %vm1592_vm2, %vm1592_vm2 }
 0x102   :  { %s15815_s8 = sld [smem:[#allocation68_spill]]  ;;  %s15816_s19 = sld [smem:[#allocation69_spill]] }
 0x103   :  { %s11456_s3 = smov 64   ;;  %s11458_s24 = smov 96  }
 0x104   :  { %s15929_s5 = sld [smem:[#allocation72_spill]]  ;;  %s11460_s27 = smov [#allocation22]  }
 0x105   :  { %v257_v2 = vld [vmem:[%s15797_s2] sm:$0xff]  ;;  %v258_v3 = vld [vmem:[%s15797_s2 + $0x8] sm:$0xff]  ;;  %v259_v4 = vld [vmem:[%s15797_s2 + $0x10] sm:$0xff] }
 0x106   :  { %v11797_v5 = vpack.c.bf16 %v258_v3, %v257_v2  ;;  %v260_v6 = vld [vmem:[%s15797_s2 + $0x18] sm:$0xff]  ;;  %v11805_v7 = vld [vmem:[%s15798_s29] sm:$0xff]  ;;  %v11813_v9 = vld [vmem:[%s15798_s29 + $0x8] sm:$0xff] }
 0x107   :  { %v11808_v8 = vpack.c.bf16 %v260_v6, %v259_v4  ;;  %v11818_v10 = vld [vmem:[%s15798_s29 + $0x10] sm:$0xff]  ;;  %v11823_v11 = vld [vmem:[%s15798_s29 + $0x18] sm:$0xff]  ;;  %v268_v12 = vsel %vm267_vm1, %v11805_v7, 0.0  ;;  %v261_v13 = vld [vmem:[%s15797_s2 + $0x20] sm:$0xff]  ;;  %v269_v15 = vsel %vm267_vm1, %v11813_v9, 0.0 }
 0x108   :  { %9981 = vmatpush3.bf16.msra.mxu0 %v11797_v5  ;;  %9993 = vmatpush3.bf16.msra.mxu1 %v11797_v5  ;;  %v262_v14 = vld [vmem:[%s15797_s2 + $0x28] sm:$0xff]  ;;  %v271_v16 = vsel %vm267_vm1, %v11818_v10, 0.0  ;;  %v11843_v17 = vld [vmem:[%s15798_s29 + $0x20] sm:$0xff]  ;;  %v270_v18 = vadd.f32 %v269_v15, %v268_v12  ;;  %v273_v21 = vsel %vm267_vm1, %v11823_v11, 0.0  ;;  %v11860_v22 = vld [vmem:[%s15798_s29 + $0x50] sm:$0xff] }
 0x109   :  { %9982 = vmatprep.subr.bf16.mxu0 %v11453_v0  ;;  %9994 = vmatprep.subr.bf16.mxu1 %v11453_v0  ;;  %v11848_v19 = vld [vmem:[%s15798_s29 + $0x40] sm:$0xff]  ;;  %v11853_v20 = vld [vmem:[%s15798_s29 + $0x48] sm:$0xff]  ;;  %v11865_v23 = vld [vmem:[%s15798_s29 + $0x58] sm:$0xff]  ;;  %v11872_v26 = vpack.c.bf16 %v262_v14, %v261_v13  ;;  %v523_v31 = vsel %vm267_vm1, %v11860_v22, 0.0  ;;  %v275_v34 = vsel %vm267_vm1, %v11843_v17, 0.0 }
 0x10a   :  { %v520_v24 = vsel %vm267_vm1, %v11848_v19, 0.0  ;;  %v521_v25 = vsel %vm267_vm1, %v11853_v20, 0.0  ;;  %v11877_v27 = vld [vmem:[%s15798_s29 + $0x28] sm:$0xff]  ;;  %v272_v28 = vadd.f32 %v271_v16, %v270_v18  ;;  %v11882_v29 = vld [vmem:[%s15798_s29 + $0x60] sm:$0xff]  ;;  %v263_v32 = vld [vmem:[%s15797_s2 + $0x30] sm:$0xff]  ;;  %v525_v35 = vsel %vm267_vm1, %v11865_v23, 0.0 }
 0x10b   :  { %v522_v30 = vadd.f32 %v521_v25, %v520_v24  ;;  %v264_v33 = vld [vmem:[%s15797_s2 + $0x38] sm:$0xff]  ;;  %v11902_v36 = vld [vmem:[%s15798_s29 + $0x30] sm:$0xff]  ;;  %v11907_v38 = vld [vmem:[%s15798_s29 + $0x68] sm:$0xff]  ;;  %v277_v40 = vsel %vm267_vm1, %v11877_v27, 0.0  ;;  %v527_v41 = vsel %vm267_vm1, %v11882_v29, 0.0  ;;  %v363_v16 = vlaneseq  ;;  %s11457_s2 = smov 32  }
 0x10c   :  { %9984 = vmatpush3.bf16.msra.mxu0 %v11808_v8  ;;  %9996 = vmatpush3.bf16.msra.mxu1 %v11808_v8  ;;  %v274_v37 = vadd.f32 %v273_v21, %v272_v28  ;;  %v11914_v42 = vpack.c.bf16 %v264_v33, %v263_v32  ;;  %v11919_v43 = vld [vmem:[%s15798_s29 + $0x38] sm:$0xff]  ;;  %v11924_v45 = vld [vmem:[%s15798_s29 + $0x70] sm:$0xff]  ;;  %v279_v47 = vsel %vm267_vm1, %v11902_v36, 0.0  ;;  %v529_v48 = vsel %vm267_vm1, %v11907_v38, 0.0 }
 0x10d   :  { %9985 = vmatprep.subr.bf16.mxu0 %v11453_v0  ;;  %9997 = vmatprep.subr.bf16.mxu1 %v11453_v0  ;;  %v524_v39 = vadd.f32 %v523_v31, %v522_v30  ;;  %v11936_v50 = vld [vmem:[%s15798_s29 + $0x78] sm:$0xff]  ;;  %v281_v52 = vsel %vm267_vm1, %v11919_v43, 0.0  ;;  %v531_v53 = vsel %vm267_vm1, %v11924_v45, 0.0  ;;  %v11959_v18 = vshrl.u32 %v363_v16, 7 }
 0x10e   :  { %v276_v44 = vadd.f32 %v275_v34, %v274_v37  ;;  %v533_v56 = vsel %vm267_vm1, %v11936_v50, 0.0 }
 0x10f   :  { %v526_v46 = vadd.f32 %v525_v35, %v524_v39  ;;  %15799 = vst [vmem:[#allocation31_spill] sm:$0xff] %v11959_v18  ;;  %v11962_v21 = vsub.s32 0, %v11959_v18 }
 0x110   :  { %9987 = vmatpush3.bf16.msra.mxu0 %v11872_v26  ;;  %9999 = vmatpush3.bf16.msra.mxu1 %v11872_v26  ;;  %v278_v49 = vadd.f32 %v277_v40, %v276_v44 }
 0x111   :  { %9988 = vmatprep.subr.bf16.mxu0 %v11453_v0  ;;  %10000 = vmatprep.subr.bf16.mxu1 %v11453_v0  ;;  %v528_v51 = vadd.f32 %v527_v41, %v526_v46  ;;  %15800 = vst [vmem:[#allocation32_spill] sm:$0xff] %v11962_v21 }
 0x112   :  { %v280_v54 = vadd.f32 %v279_v47, %v278_v49 }
 0x113   :  { %v530_v55 = vadd.f32 %v529_v48, %v528_v51 }
 0x114   :  { %9990 = vmatpush3.bf16.msra.mxu0 %v11914_v42  ;;  %10002 = vmatpush3.bf16.msra.mxu1 %v11914_v42  ;;  %v282_v57 = vadd.f32 %v281_v52, %v280_v54 }
 0x115   :  { %10003 = vmatprep.subr.bf16.mxu0 %v11453_v0  ;;  %10015 = vmatprep.subr.bf16.mxu1 %v11453_v0  ;;  %v532_v58 = vadd.f32 %v531_v53, %v530_v55 }
 0x116   :  { %v283_v59 = vrot.slane %v282_v57, 4 }
 0x117   :  { %v534_v60 = vadd.f32 %v533_v56, %v532_v58 }
 0x118   :  { %v284_v61 = vadd.f32 %v283_v59, %v282_v57 }
 0x119   :  { %v535_v63 = vrot.slane %v534_v60, 4 }
 0x11a   :  { %v285_v62 = vrot.slane %v284_v61, 2 }
 0x11b   :  { %v536_v4 = vadd.f32 %v535_v63, %v534_v60 }
 0x11c   :  { %v286_v2 = vadd.f32 %v285_v62, %v284_v61 }
 0x11d   :  { %v537_v12 = vrot.slane %v536_v4, 2 }
 0x11e   :  { %v287_v3 = vrot.slane %v286_v2, 1 }
 0x11f   :  { %v538_v13 = vadd.f32 %v537_v12, %v536_v4 }
 0x120   :  { %v288_v6 = vadd.f32 %v287_v3, %v286_v2 }
 0x121   :  { %v539_v14 = vrot.slane %v538_v13, 1 }
 0x122   :  { %9285 = vmatmul.mubr.msk.f32.vlgmr.msra.gmra.mrb[0].mxu0 %vm267_vm1, %v288_v6 }
 0x123   :  { %10005 = vmatpush3.bf16.msra.mxu0 %v11797_v5  ;;  %9322 = vmatprep.mubr.msk.f32.mxu0 %vm11454_vm0, %v15746_v1  ;;  %v540_v15 = vadd.f32 %v539_v14, %v538_v13 }
 0x124   :  { %10006 = vmatprep.subr.bf16.mxu0 %v11453_v0 }
 0x127   :  { %10008 = vmatpush3.bf16.msra.mxu0 %v11808_v8 }
 0x128   :  { %10009 = vmatprep.subr.bf16.mxu0 %v11453_v0 }
 0x12b   :  { %10011 = vmatpush3.bf16.msra.mxu0 %v11872_v26 }
 0x12c   :  { %10012 = vmatprep.subr.bf16.mxu0 %v11453_v0 }
 0x12f   :  { %10014 = vmatpush3.bf16.msra.mxu0 %v11914_v42 }
 0x132   :  { %9323 = vmatmul.mubr.msk.f32.vlgmr.msra.gmra.mrb[2].mxu0 %vm267_vm1, %v540_v15 }
 0x1f5   :  { %v358_v24 = vpop.f32.mrb[0].mxu0 }
 0x1f6   :  { %v362_v25 = vmul.f32 0.0078125, %v358_v24  ;;  %v9286_v28 = vpop.f32.mrb[1].mxu0 }
 0x1f8   :  { %v366_v30 = vrot.slane %v362_v25, %v11962_v21 }
 0x1fa   :  { %v11966_v31 = vsub.f32 %v11805_v7, %v366_v30  ;;  %v11969_v32 = vsub.f32 %v11813_v9, %v366_v30  ;;  %v11972_v33 = vsub.f32 %v11818_v10, %v366_v30  ;;  %v11975_v34 = vsub.f32 %v11823_v11, %v366_v30 }
 0x1fb   :  { %v11978_v35 = vsub.f32 %v11843_v17, %v366_v30  ;;  %v11987_v9 = vsub.f32 %v11877_v27, %v366_v30  ;;  %v11994_v41 = vsub.f32 %v11902_v36, %v366_v30  ;;  %v12000_v47 = vsub.f32 %v11919_v43, %v366_v30 }
 0x1fc   :  { %v375_v37 = vmul.f32 %v11966_v31, %v11966_v31  ;;  %v376_v39 = vmul.f32 %v11969_v32, %v11969_v32  ;;  %v377_v7 = vmul.f32 %v11972_v33, %v11972_v33  ;;  %v378_v10 = vmul.f32 %v11975_v34, %v11975_v34 }
 0x1fd   :  { %v379_v44 = vmul.f32 %v11978_v35, %v11978_v35  ;;  %v380_v48 = vmul.f32 %v11987_v9, %v11987_v9  ;;  %v381_v52 = vmul.f32 %v11994_v41, %v11994_v41  ;;  %v382_v54 = vmul.f32 %v12000_v47, %v12000_v47 }
 0x1fe   :  { %v383_v11 = vsel %vm267_vm1, %v375_v37, 0.0  ;;  %v384_v17 = vsel %vm267_vm1, %v376_v39, 0.0  ;;  %v386_v46 = vsel %vm267_vm1, %v377_v7, 0.0  ;;  %v388_v49 = vsel %vm267_vm1, %v378_v10, 0.0 }
 0x1ff   :  { %v385_v40 = vadd.f32 %v384_v17, %v383_v11  ;;  %v390_v36 = vsel %vm267_vm1, %v379_v44, 0.0  ;;  %v392_v43 = vsel %vm267_vm1, %v380_v48, 0.0  ;;  %v394_v60 = vsel %vm267_vm1, %v381_v52, 0.0 }
 0x200   :  { %v396_v62 = vsel %vm267_vm1, %v382_v54, 0.0 }
 0x201   :  { %v387_v27 = vadd.f32 %v386_v46, %v385_v40 }
 0x203   :  { %v389_v51 = vadd.f32 %v388_v49, %v387_v27 }
 0x205   :  { %v610_v53 = vpop.f32.mrb[2].mxu0  ;;  %v391_v55 = vadd.f32 %v390_v36, %v389_v51 }
 0x206   :  { %v614_v56 = vmul.f32 0.0078125, %v610_v53  ;;  %v9324_v57 = vpop.f32.mrb[3].mxu0 }
 0x207   :  { %v393_v58 = vadd.f32 %v392_v43, %v391_v55 }
 0x208   :  { %v618_v59 = vrot.slane %v614_v56, %v11962_v21 }
 0x209   :  { %v395_v61 = vadd.f32 %v394_v60, %v393_v58  ;;  %v872_v58 = vld [vmem:[#allocation5] sm:$0xff] }
 0x20a   :  { %v12015_v63 = vsub.f32 %v11848_v19, %v618_v59  ;;  %v12018_v2 = vsub.f32 %v11853_v20, %v618_v59  ;;  %v12021_v3 = vsub.f32 %v11860_v22, %v618_v59  ;;  %v12024_v4 = vsub.f32 %v11865_v23, %v618_v59 }
 0x20b   :  { %v397_v6 = vadd.f32 %v396_v62, %v395_v61  ;;  %v12027_v12 = vsub.f32 %v11882_v29, %v618_v59  ;;  %v12030_v13 = vsub.f32 %v11907_v38, %v618_v59  ;;  %v12041_v15 = vsub.f32 %v11924_v45, %v618_v59  ;;  %v875_v61 = vld [vmem:[#allocation5 + $0x18] sm:$0xff] }
 0x20c   :  { %v627_v19 = vmul.f32 %v12015_v63, %v12015_v63  ;;  %v628_v20 = vmul.f32 %v12018_v2, %v12018_v2  ;;  %v629_v22 = vmul.f32 %v12021_v3, %v12021_v3  ;;  %v630_v23 = vmul.f32 %v12024_v4, %v12024_v4 }
 0x20d   :  { %v398_v14 = vrot.slane %v397_v6, 4  ;;  %v631_v29 = vmul.f32 %v12027_v12, %v12027_v12  ;;  %v12049_v30 = vsub.f32 %v11936_v50, %v618_v59  ;;  %v632_v37 = vmul.f32 %v12030_v13, %v12030_v13  ;;  %v873_v59 = vld [vmem:[#allocation5 + $0x8] sm:$0xff] }
 0x20e   :  { %v635_v38 = vsel %vm267_vm1, %v627_v19, 0.0  ;;  %v636_v16 = vsel %vm267_vm1, %v628_v20, 0.0  ;;  %v638_v28 = vsel %vm267_vm1, %v629_v22, 0.0  ;;  %v640_v45 = vsel %vm267_vm1, %v630_v23, 0.0  ;;  %v877_v19 = vld [vmem:[#allocation5 + $0x28] sm:$0xff]  ;;  %v879_v20 = vld [vmem:[#allocation5 + $0x38] sm:$0xff] }
 0x20f   :  { %v399_v24 = vadd.f32 %v398_v14, %v397_v6  ;;  %v637_v25 = vadd.f32 %v636_v16, %v635_v38  ;;  %v633_v10 = vmul.f32 %v12041_v15, %v12041_v15  ;;  %v642_v11 = vsel %vm267_vm1, %v631_v29, 0.0  ;;  %v876_v6 = vld [vmem:[#allocation5 + $0x20] sm:$0xff] }
 0x210   :  { %v634_v44 = vmul.f32 %v12049_v30, %v12049_v30  ;;  %v644_v50 = vsel %vm267_vm1, %v632_v37, 0.0  ;;  %v10027_v60 = vpack.c.bf16 %v873_v59, %v872_v58 }
 0x211   :  { %v400_v39 = vrot.slane %v399_v24, 2  ;;  %v639_v7 = vadd.f32 %v638_v28, %v637_v25  ;;  %v646_v48 = vsel %vm267_vm1, %v633_v10, 0.0  ;;  %v12078_v28 = vld [vmem:[%s15801_s30] ss:$0 sm:$0xff] }
 0x212   :  { %v648_v52 = vsel %vm267_vm1, %v634_v44, 0.0  ;;  %10028 = vmatprep.subr.bf16.mxu0 %v10027_v60 }
 0x213   :  { %v401_v17 = vadd.f32 %v400_v39, %v399_v24  ;;  %v641_v40 = vadd.f32 %v640_v45, %v639_v7  ;;  %10030 = vmatpush3.bf16.msra.mxu0 %v10027_v60 }
 0x215   :  { %v402_v46 = vrot.slane %v401_v17, 1  ;;  %v643_v27 = vadd.f32 %v642_v11, %v641_v40 }
 0x217   :  { %v403_v49 = vadd.f32 %v402_v46, %v401_v17  ;;  %v645_v51 = vadd.f32 %v644_v50, %v643_v27  ;;  %v12087_v17 = vld [vmem:[%s15802_s0] ss:$0 sm:$0xff] }
 0x219   :  { %9304 = vmatmul.mubr.msk.f32.vlgmr.msra.gmra.mrb[0].mxu1 %vm267_vm1, %v403_v49  ;;  %v647_v36 = vadd.f32 %v646_v48, %v645_v51 }
 0x21a   :  { %10017 = vmatpush3.bf16.msra.mxu1 %v11797_v5  ;;  %9341 = vmatprep.mubr.msk.f32.mxu1 %vm11454_vm0, %v15746_v1 }
 0x21b   :  { %10018 = vmatprep.subr.bf16.mxu1 %v11453_v0  ;;  %v649_v53 = vadd.f32 %v648_v52, %v647_v36 }
 0x21d   :  { %v650_v54 = vrot.slane %v649_v53, 4 }
 0x21e   :  { %10020 = vmatpush3.bf16.msra.mxu1 %v11808_v8  ;;  %v874_v8 = vld [vmem:[#allocation5 + $0x10] sm:$0xff] }
 0x21f   :  { %10021 = vmatprep.subr.bf16.mxu1 %v11453_v0  ;;  %v651_v55 = vadd.f32 %v650_v54, %v649_v53  ;;  %v10031_v62 = vpack.c.bf16 %v875_v61, %v874_v8 }
 0x221   :  { %v652_v56 = vrot.slane %v651_v55, 2  ;;  %10032 = vmatprep.subr.bf16.mxu0 %v10031_v62 }
 0x222   :  { %10023 = vmatpush3.bf16.msra.mxu1 %v11872_v26  ;;  %v878_v26 = vld [vmem:[#allocation5 + $0x30] sm:$0xff]  ;;  %10034 = vmatpush3.bf16.msra.mxu0 %v10031_v62 }
 0x223   :  { %10024 = vmatprep.subr.bf16.mxu1 %v11453_v0  ;;  %v653_v43 = vadd.f32 %v652_v56, %v651_v55  ;;  %v10035_v0 = vpack.c.bf16 %v877_v19, %v876_v6 }
 0x225   :  { %v654_v57 = vrot.slane %v653_v43, 1  ;;  %10036 = vmatprep.subr.bf16.mxu0 %v10035_v0 }
 0x226   :  { %10026 = vmatpush3.bf16.msra.mxu1 %v11914_v42  ;;  %v10039_v42 = vpack.c.bf16 %v879_v20, %v878_v26  ;;  %10038 = vmatpush3.bf16.msra.mxu0 %v10035_v0 }
 0x227   :  { %v655_v5 = vadd.f32 %v654_v57, %v653_v43 }
 0x228   :  { %10040 = vmatprep.subr.bf16.mxu0 %v10039_v42 }
 0x229   :  { %9342 = vmatmul.mubr.msk.f32.vlgmr.msra.gmra.mrb[2].mxu1 %vm267_vm1, %v655_v5 }
 0x22a   :  { %1463 = vmatprep.mubr.f32.mxu1 %v15746_v1  ;;  %10042 = vmatpush3.bf16.msra.mxu0 %v10039_v42 }
 0x2ec   :  { %v473_v22 = vpop.f32.mrb[0].mxu1 }
 0x2ed   :  { %v477_v14 = vmul.f32 0.0078125, %v473_v22  ;;  %v9305_v23 = vpop.f32.mrb[1].mxu1 }
 0x2ef   :  { %v478_v29 = vadd.f32 1e-05, %v477_v14 }
 0x2f1   :  { %10571 = vrsqrt.f32 %v478_v29 }
 0x2fb   :  { %v10572_v38 = vpop.eup %10571 }
 0x2fc   :  { %v483_v16 = vrot.slane %v10572_v38, %v11962_v21  ;;  %v725_v24 = vpop.f32.mrb[2].mxu1 }
 0x2fd   :  { %v729_v25 = vmul.f32 0.0078125, %v725_v24  ;;  %v9343_v37 = vpop.f32.mrb[3].mxu1 }
 0x2fe   :  { %v484_v45 = vmul.f32 %v483_v16, %v11966_v31  ;;  %v485_v39 = vmul.f32 %v483_v16, %v11969_v32  ;;  %v486_v7 = vmul.f32 %v483_v16, %v11972_v33  ;;  %v487_v10 = vmul.f32 %v483_v16, %v11975_v34 }
 0x2ff   :  { %v730_v11 = vadd.f32 1e-05, %v729_v25  ;;  %v488_v40 = vmul.f32 %v483_v16, %v11978_v35  ;;  %v489_v44 = vmul.f32 %v483_v16, %v11987_v9  ;;  %v490_v50 = vmul.f32 %v483_v16, %v11994_v41 }
 0x300   :  { %v498_v31 = vmul.f32 %v12078_v28, %v484_v45  ;;  %v499_v32 = vmul.f32 %v12078_v28, %v485_v39  ;;  %v500_v33 = vmul.f32 %v12078_v28, %v486_v7  ;;  %v501_v34 = vmul.f32 %v12078_v28, %v487_v10 }
 0x301   :  { %10573 = vrsqrt.f32 %v730_v11  ;;  %v502_v46 = vmul.f32 %v12078_v28, %v488_v40  ;;  %v503_v27 = vmul.f32 %v12078_v28, %v489_v44  ;;  %v504_v48 = vmul.f32 %v12078_v28, %v490_v50 }
 0x302   :  { %v12100_v35 = vadd.f32 %v12087_v17, %v498_v31  ;;  %v12103_v9 = vadd.f32 %v12087_v17, %v499_v32  ;;  %v12106_v41 = vadd.f32 %v12087_v17, %v500_v33  ;;  %v12109_v49 = vadd.f32 %v12087_v17, %v501_v34 }
 0x303   :  { %v12112_v51 = vadd.f32 %v12087_v17, %v502_v46  ;;  %v12115_v52 = vadd.f32 %v12087_v17, %v503_v27  ;;  %v491_v36 = vmul.f32 %v483_v16, %v12000_v47  ;;  %v12122_v56 = vadd.f32 %v12087_v17, %v504_v48 }
 0x304   :  { %v8357_v53 = vmul.f32 -1.442695, %v12100_v35  ;;  %v8358_v54 = vmul.f32 -1.442695, %v12103_v9  ;;  %v8359_v55 = vmul.f32 -1.442695, %v12106_v41 }
 0x305   :  { %v8360_v43 = vmul.f32 -1.442695, %v12109_v49  ;;  %v505_v57 = vmul.f32 %v12078_v28, %v491_v36  ;;  %v8361_v5 = vmul.f32 -1.442695, %v12112_v51  ;;  %v8362_v58 = vmul.f32 -1.442695, %v12115_v52 }
 0x306   :  { %10575 = vpow2.f32 %v8357_v53  ;;  %v8363_v59 = vmul.f32 -1.442695, %v12122_v56 }
 0x307   :  { %10577 = vpow2.f32 %v8358_v54  ;;  %v12129_v47 = vadd.f32 %v12087_v17, %v505_v57 }
 0x308   :  { %10579 = vpow2.f32 %v8359_v55 }
 0x309   :  { %10581 = vpow2.f32 %v8360_v43  ;;  %v8364_v8 = vmul.f32 -1.442695, %v12129_v47 }
 0x30a   :  { %10583 = vpow2.f32 %v8361_v5 }
 0x30b   :  { %v10574_v60 = vpop.eup %10573  ;;  %10585 = vpow2.f32 %v8362_v58 }
 0x30c   :  { %v735_v61 = vrot.slane %v10574_v60, %v11962_v21  ;;  %10587 = vpow2.f32 %v8363_v59 }
 0x30d   :  { %10589 = vpow2.f32 %v8364_v8 }
 0x30e   :  { %v736_v62 = vmul.f32 %v735_v61, %v12015_v63  ;;  %v737_v6 = vmul.f32 %v735_v61, %v12018_v2  ;;  %v738_v19 = vmul.f32 %v735_v61, %v12021_v3  ;;  %v739_v0 = vmul.f32 %v735_v61, %v12024_v4 }
 0x30f   :  { %v740_v26 = vmul.f32 %v735_v61, %v12027_v12  ;;  %v741_v14 = vmul.f32 %v735_v61, %v12030_v13  ;;  %v742_v63 = vmul.f32 %v735_v61, %v12041_v15  ;;  %v743_v13 = vmul.f32 %v735_v61, %v12049_v30 }
 0x310   :  { %v10576_v20 = vpop.eup %10575  ;;  %v744_v42 = vmul.f32 %v12078_v28, %v736_v62  ;;  %v745_v22 = vmul.f32 %v12078_v28, %v737_v6  ;;  %v746_v38 = vmul.f32 %v12078_v28, %v738_v19  ;;  %v747_v3 = vmul.f32 %v12078_v28, %v739_v0 }
 0x311   :  { %v10578_v23 = vpop.eup %10577  ;;  %v808_v29 = vadd.f32 1.0, %v10576_v20  ;;  %v748_v4 = vmul.f32 %v12078_v28, %v740_v26  ;;  %v749_v15 = vmul.f32 %v12078_v28, %v741_v14  ;;  %v750_v40 = vmul.f32 %v12078_v28, %v742_v63 }
 0x312   :  { %v10580_v2 = vpop.eup %10579  ;;  %v809_v16 = vadd.f32 1.0, %v10578_v23  ;;  %v12147_v25 = vadd.f32 %v12087_v17, %v744_v42  ;;  %v12151_v39 = vadd.f32 %v12087_v17, %v745_v22  ;;  %v12155_v11 = vadd.f32 %v12087_v17, %v746_v38 }
 0x313   :  { %v10582_v12 = vpop.eup %10581  ;;  %10591 = vrcp.f32 %v808_v29  ;;  %v810_v24 = vadd.f32 1.0, %v10580_v2  ;;  %v12159_v30 = vadd.f32 %v12087_v17, %v747_v3  ;;  %v12162_v31 = vadd.f32 %v12087_v17, %v748_v4 }
 0x314   :  { %v10584_v37 = vpop.eup %10583  ;;  %10593 = vrcp.f32 %v809_v16  ;;  %v811_v45 = vadd.f32 1.0, %v10582_v12  ;;  %v8365_v34 = vmul.f32 -1.442695, %v12147_v25  ;;  %v751_v46 = vmul.f32 %v12078_v28, %v743_v13 }
 0x315   :  { %v10586_v7 = vpop.eup %10585  ;;  %10595 = vrcp.f32 %v810_v24  ;;  %v812_v10 = vadd.f32 1.0, %v10584_v37  ;;  %v8366_v48 = vmul.f32 -1.442695, %v12151_v39  ;;  %v12168_v36 = vadd.f32 %v12087_v17, %v749_v15 }
 0x316   :  { %v10588_v44 = vpop.eup %10587  ;;  %10597 = vrcp.f32 %v811_v45  ;;  %v813_v50 = vadd.f32 1.0, %v10586_v7  ;;  %v8367_v53 = vmul.f32 -1.442695, %v12155_v11  ;;  %v12172_v54 = vadd.f32 %v12087_v17, %v750_v40 }
 0x317   :  { %v10590_v32 = vpop.eup %10589  ;;  %10599 = vrcp.f32 %v812_v10  ;;  %v814_v33 = vadd.f32 1.0, %v10588_v44  ;;  %v8368_v55 = vmul.f32 -1.442695, %v12159_v30  ;;  %v12176_v43 = vadd.f32 %v12087_v17, %v751_v46 }
 0x318   :  { %10601 = vrcp.f32 %v813_v50  ;;  %v815_v27 = vadd.f32 1.0, %v10590_v32  ;;  %v8369_v28 = vmul.f32 -1.442695, %v12162_v31  ;;  %v8370_v57 = vmul.f32 -1.442695, %v12168_v36 }
 0x319   :  { %10603 = vrcp.f32 %v814_v33  ;;  %v8371_v58 = vmul.f32 -1.442695, %v12172_v54  ;;  %v8372_v60 = vmul.f32 -1.442695, %v12176_v43 }
 0x31a   :  { %10605 = vrcp.f32 %v815_v27 }
 0x31b   :  { %10607 = vpow2.f32 %v8365_v34 }
 0x31c   :  { %10609 = vpow2.f32 %v8366_v48 }
 0x31d   :  { %v10592_v5 = vpop.eup %10591  ;;  %10611 = vpow2.f32 %v8367_v53 }
 0x31e   :  { %v10594_v59 = vpop.eup %10593  ;;  %v856_v8 = vmul.f32 %v10592_v5, %v12100_v35  ;;  %10613 = vpow2.f32 %v8368_v55 }
 0x31f   :  { %v10596_v61 = vpop.eup %10595  ;;  %v857_v17 = vmul.f32 %v10594_v59, %v12103_v9  ;;  %10615 = vpow2.f32 %v8369_v28 }
 0x320   :  { %v10598_v62 = vpop.eup %10597  ;;  %9360 = vmatprep.mubr.msk.f32.mxu0 %vm267_vm1, %v856_v8  ;;  %v858_v6 = vmul.f32 %v10596_v61, %v12106_v41  ;;  %10617 = vpow2.f32 %v8370_v57 }
 0x321   :  { %v10600_v19 = vpop.eup %10599  ;;  %9361 = vmatmul.mubr.msk.f32.vlgmr.msra.gmra.mrb[4].mxu0 %vm267_vm1, %v857_v17  ;;  %10619 = vpow2.f32 %v8371_v58  ;;  %v859_v26 = vmul.f32 %v10598_v62, %v12109_v49 }
 0x322   :  { %v10602_v0 = vpop.eup %10601  ;;  %9363 = vmatprep.mubr.msk.f32.mxu0 %vm267_vm1, %v858_v6  ;;  %10621 = vpow2.f32 %v8372_v60  ;;  %v860_v9 = vmul.f32 %v10600_v19, %v12112_v51 }
 0x323   :  { %v10604_v35 = vpop.eup %10603  ;;  %v861_v23 = vmul.f32 %v10602_v0, %v12115_v52 }
 0x324   :  { %v10606_v20 = vpop.eup %10605  ;;  %v862_v63 = vmul.f32 %v10604_v35, %v12122_v56 }
 0x325   :  { %v10608_v42 = vpop.eup %10607  ;;  %9364 = vmatmul.mubr.msk.f32.gmra.mrb[6].mxu0 %vm267_vm1, %v859_v26  ;;  %v863_v12 = vmul.f32 %v10606_v20, %v12129_v47 }
 0x326   :  { %v10610_v22 = vpop.eup %10609  ;;  %9366 = vmatprep.mubr.msk.f32.mxu0 %vm267_vm1, %v860_v9  ;;  %v816_v41 = vadd.f32 1.0, %v10608_v42 }
 0x327   :  { %v10612_v14 = vpop.eup %10611  ;;  %v817_v29 = vadd.f32 1.0, %v10610_v22 }
 0x328   :  { %v10614_v38 = vpop.eup %10613  ;;  %10623 = vrcp.f32 %v816_v41  ;;  %v818_v2 = vadd.f32 1.0, %v10612_v14 }
 0x329   :  { %v10616_v49 = vpop.eup %10615  ;;  %9367 = vmatmul.mubr.msk.f32.gmra.mrb[8].mxu0 %vm267_vm1, %v861_v23  ;;  %10625 = vrcp.f32 %v817_v29  ;;  %v819_v51 = vadd.f32 1.0, %v10614_v38 }
 0x32a   :  { %v10618_v16 = vpop.eup %10617  ;;  %9369 = vmatprep.mubr.msk.f32.mxu0 %vm267_vm1, %v862_v63  ;;  %10627 = vrcp.f32 %v818_v2  ;;  %v820_v3 = vadd.f32 1.0, %v10616_v49 }
 0x32b   :  { %v10620_v4 = vpop.eup %10619  ;;  %10629 = vrcp.f32 %v819_v51  ;;  %v821_v52 = vadd.f32 1.0, %v10618_v16 }
 0x32c   :  { %v10622_v24 = vpop.eup %10621  ;;  %10631 = vrcp.f32 %v820_v3  ;;  %v822_v56 = vadd.f32 1.0, %v10620_v4 }
 0x32d   :  { %9370 = vmatmul.mubr.msk.f32.gmra.mrb[10].mxu0 %vm267_vm1, %v863_v12  ;;  %10633 = vrcp.f32 %v821_v52  ;;  %v823_v13 = vadd.f32 1.0, %v10622_v24 }
 0x32e   :  { %10635 = vrcp.f32 %v822_v56 }
 0x32f   :  { %10637 = vrcp.f32 %v823_v13 }
 0x332   :  { %v10624_v37 = vpop.eup %10623 }
 0x333   :  { %v10626_v45 = vpop.eup %10625  ;;  %v864_v15 = vmul.f32 %v10624_v37, %v12147_v25 }
 0x334   :  { %v10628_v7 = vpop.eup %10627  ;;  %v865_v10 = vmul.f32 %v10626_v45, %v12151_v39 }
 0x335   :  { %v10630_v40 = vpop.eup %10629  ;;  %9372 = vmatprep.mubr.msk.f32.mxu0 %vm267_vm1, %v864_v15  ;;  %v866_v47 = vmul.f32 %v10628_v7, %v12155_v11 }
 0x336   :  { %v10632_v44 = vpop.eup %10631  ;;  %9373 = vmatmul.mubr.msk.f32.gmra.mrb[12].mxu0 %vm267_vm1, %v865_v10  ;;  %v867_v50 = vmul.f32 %v10630_v40, %v12159_v30  ;;  %v8373_v30 = vld [vmem:[%s15803_s25] ss:$0 sm:$0xff]  ;;  %s8333_s25 = sshll.u32 %s11460_s27, 4  ;;  %s8334_s25 = int_to_ptr.vmem [resolvable:$true] %s8333_s25 }
 0x337   :  { %9375 = vmatprep.mubr.msk.f32.mxu0 %vm267_vm1, %v866_v47  ;;  %v10634_v32 = vpop.eup %10633  ;;  %v868_v33 = vmul.f32 %v10632_v44, %v12162_v31  ;;  %s11399_s16 = scalar_lea.vmem %s8334_s25, 2048  ;;  %p11404_p13 = scmp.lt.s32.totalorder %s8334_s25, %s8334_s25 }
 0x338   :  { %v10636_v25 = vpop.eup %10635  ;;  %v869_v39 = vmul.f32 %v10634_v32, %v12168_v36  ;;  %p11400_p12 = scmp.ne.s32.totalorder %s8334_s25, %s11399_s16  ;;  %p11405_p0 = scmp.lt.s32.totalorder %s11399_s16, %s11399_s16 }
 0x339   :  { %v10638_v34 = vpop.eup %10637  ;;  %v870_v11 = vmul.f32 %v10636_v25, %v12172_v54 }
 0x33a   :  { %9376 = vmatmul.mubr.msk.f32.gmra.mrb[14].mxu0 %vm267_vm1, %v867_v50  ;;  %v871_v46 = vmul.f32 %v10638_v34, %v12176_v43  ;;  %p11406_p1 = por %p11405_p0, %p11404_p13 }
 0x33b   :  { %9378 = vmatprep.mubr.msk.f32.mxu0 %vm267_vm1, %v868_v33 }
 0x33c   :  { %p11407_p2 = pnand %p11406_p1, %p11400_p12 }
 0x33e   :  { %9379 = vmatmul.mubr.msk.f32.gmra.mrb[16].mxu0 %vm267_vm1, %v869_v39 }
 0x33f   :  { %9381 = vmatprep.mubr.msk.f32.mxu0 %vm267_vm1, %v870_v11 }
 0x342   :  { %9382 = vmatmul.mubr.msk.f32.gmra.mrb[18].mxu0 %vm267_vm1, %v871_v46 }
 0x3f4   :  { %v9362_v31 = vpop.f32.mrb[4].mxu0 }
 0x3f5   :  { %v1001_v27 = vpop.f32.mrb[5].mxu0  ;;  %v12219_v36 = vadd.f32 %v9362_v31, %v8373_v30 }
 0x3f6   :  { %v12217_v48 = vadd.f32 %v8373_v30, %v1001_v27 }
 0x3f7   :  { %v1085_v58 = vsel %vm267_vm1, %v12219_v36, 0.0 }
 0x3f8   :  { %v9365_v53 = vpop.f32.mrb[6].mxu0  ;;  %v1082_v54 = vsel %vm267_vm1, %v12217_v48, 0.0 }
 0x3f9   :  { %v1011_v55 = vpop.f32.mrb[7].mxu0  ;;  %1083 = vadd.xlane.f32.xlu0 %v1082_v54  ;;  %v12225_v43 = vadd.f32 %v9365_v53, %v8373_v30 }
 0x3fa   :  { %v12223_v28 = vadd.f32 %v8373_v30, %v1011_v55 }
 0x3fb   :  { %v1091_v17 = vsel %vm267_vm1, %v12225_v43, 0.0 }
 0x3fc   :  { %v9368_v57 = vpop.f32.mrb[8].mxu0  ;;  %v1088_v5 = vsel %vm267_vm1, %v12223_v28, 0.0 }
 0x3fd   :  { %v1021_v59 = vpop.f32.mrb[9].mxu0  ;;  %1089 = vadd.xlane.f32.xlu1 %v1088_v5  ;;  %1086 = vadd.xlane.f32.xlu0 %v1085_v58  ;;  %v12233_v60 = vadd.f32 %v9368_v57, %v8373_v30 }
 0x3fe   :  { %v12231_v8 = vadd.f32 %v8373_v30, %v1021_v59 }
 0x3ff   :  { %v1097_v35 = vsel %vm267_vm1, %v12233_v60, 0.0 }
 0x400   :  { %15804 = vst [vmem:[#allocation33_spill] sm:$0xff] %v12231_v8  ;;  %v9371_v61 = vpop.f32.mrb[10].mxu0  ;;  %v1094_v62 = vsel %vm267_vm1, %v12231_v8, 0.0 }
 0x401   :  { %v1031_v6 = vpop.f32.mrb[11].mxu0  ;;  %1092 = vadd.xlane.f32.xlu1 %v1091_v17  ;;  %1095 = vadd.xlane.f32.xlu0 %v1094_v62  ;;  %v12241_v0 = vadd.f32 %v9371_v61, %v8373_v30 }
 0x402   :  { %v12239_v19 = vadd.f32 %v8373_v30, %v1031_v6 }
 0x403   :  { %15806 = vst [vmem:[#allocation35_spill] sm:$0xff] %v12241_v0  ;;  %v1103_v20 = vsel %vm267_vm1, %v12241_v0, 0.0 }
 0x404   :  { %15805 = vst [vmem:[#allocation34_spill] sm:$0xff] %v12239_v19  ;;  %v1100_v26 = vsel %vm267_vm1, %v12239_v19, 0.0 }
 0x405   :  { %1098 = vadd.xlane.f32.xlu1 %v1097_v35  ;;  %1101 = vadd.xlane.f32.xlu0 %v1100_v26 }
 0x409   :  { %v9374_v9 = vpop.f32.mrb[12].mxu0  ;;  %1104 = vadd.xlane.f32.xlu1 %v1103_v20 }
 0x40a   :  { %v12249_v42 = vadd.f32 %v9374_v9, %v8373_v30  ;;  %v1041_v22 = vpop.f32.mrb[13].mxu0 }
 0x40b   :  { %v12251_v41 = vadd.f32 %v8373_v30, %v1041_v22 }
 0x40c   :  { %15807 = vst [vmem:[#allocation36_spill] sm:$0xff] %v12249_v42 }
 0x40d   :  { %15808 = vst [vmem:[#allocation37_spill] sm:$0xff] %v12251_v41  ;;  %v9377_v14 = vpop.f32.mrb[14].mxu0 }
 0x40e   :  { %v12253_v23 = vadd.f32 %v9377_v14, %v8373_v30  ;;  %v1051_v29 = vpop.f32.mrb[15].mxu0 }
 0x40f   :  { %v12255_v38 = vadd.f32 %v8373_v30, %v1051_v29  ;;  %v1106_v29 = vsel %vm267_vm1, %v12251_v41, 0.0 }
 0x410   :  { %15809 = vst [vmem:[#allocation38_spill] sm:$0xff] %v12253_v23 }
 0x411   :  { %15810 = vst [vmem:[#allocation39_spill] sm:$0xff] %v12255_v38  ;;  %v9380_v63 = vpop.f32.mrb[16].mxu0 }
 0x412   :  { %v12257_v2 = vadd.f32 %v9380_v63, %v8373_v30  ;;  %v1061_v49 = vpop.f32.mrb[17].mxu0  ;;  %v1109_v63 = vsel %vm267_vm1, %v12249_v42, 0.0 }
 0x413   :  { %v12259_v51 = vadd.f32 %v8373_v30, %v1061_v49  ;;  %v1112_v49 = vsel %vm267_vm1, %v12255_v38, 0.0 }
 0x414   :  { %15811 = vst [vmem:[#allocation40_spill] sm:$0xff] %v12257_v2 }
 0x415   :  { %15812 = vst [vmem:[#allocation41_spill] sm:$0xff] %v12259_v51  ;;  %v9383_v16 = vpop.f32.mrb[18].mxu0 }
 0x416   :  { %v12261_v3 = vadd.f32 %v9383_v16, %v8373_v30  ;;  %v1071_v4 = vpop.f32.mrb[19].mxu0  ;;  %v1115_v16 = vsel %vm267_vm1, %v12253_v23, 0.0 }
 0x417   :  { %v12263_v12 = vadd.f32 %v8373_v30, %v1071_v4  ;;  %v1118_v4 = vsel %vm267_vm1, %v12259_v51, 0.0 }
 0x418   :  { %15813 = vst [vmem:[#allocation42_spill] sm:$0xff] %v12261_v3 }
 0x419   :  { %15814 = vst [vmem:[#allocation43_spill] sm:$0xff] %v12263_v12 }
 0x486   :  { %v1084_v52 = vpop.xlane.xlu0 %1083 }
 0x487   :  { %v1131_v24 = vmul.f32 0.015625, %v1084_v52  ;;  %v1121_v52 = vsel %vm267_vm1, %v12257_v2, 0.0 }
 0x489   :  { %v12266_v56 = vsub.f32 %v12217_v48, %v1131_v24  ;;  %v1124_v24 = vsel %vm267_vm1, %v12263_v12, 0.0 }
 0x48a   :  { %v1090_v13 = vpop.xlane.xlu1 %1089  ;;  %v1087_v37 = vpop.xlane.xlu0 %1086 }
 0x48b   :  { %v1133_v45 = vmul.f32 0.015625, %v1090_v13  ;;  %v1132_v15 = vmul.f32 0.015625, %v1087_v37  ;;  %v1163_v7 = vmul.f32 %v12266_v56, %v12266_v56  ;;  %v1336_v13 = vld [vmem:[#allocation7 + $0x8] sm:$0xff]  ;;  %v1338_v37 = vld [vmem:[#allocation7 + $0x18] sm:$0xff] }
 0x48d   :  { %v12271_v10 = vsub.f32 %v12223_v28, %v1133_v45  ;;  %v12274_v40 = vsub.f32 %v12219_v36, %v1132_v15  ;;  %v1179_v47 = vsel %vm267_vm1, %v1163_v7, 0.0  ;;  %v1335_v45 = vld [vmem:[#allocation7] sm:$0xff]  ;;  %v10043_v15 = vpack.c.bf16 %v1338_v37, %v1336_v13  ;;  %v1337_v7 = vld [vmem:[#allocation7 + $0x10] sm:$0xff] }
 0x48e   :  { %v1093_v44 = vpop.xlane.xlu1 %1092  ;;  %1180 = vadd.xlane.f32.xlu0 %v1179_v47  ;;  %v1096_v50 = vpop.xlane.xlu0 %1095  ;;  %v1340_v47 = vld [vmem:[#allocation7 + $0x28] sm:$0xff] }
 0x48f   :  { %v1134_v32 = vmul.f32 0.015625, %v1093_v44  ;;  %v1135_v33 = vmul.f32 0.015625, %v1096_v50  ;;  %v1165_v25 = vmul.f32 %v12271_v10, %v12271_v10  ;;  %v1164_v39 = vmul.f32 %v12274_v40, %v12274_v40  ;;  %v1342_v44 = vld [vmem:[#allocation7 + $0x38] sm:$0xff]  ;;  %10044 = vmatprep.subr.bf16.mxu1 %v10043_v15 }
 0x490   :  { %v1127_v50 = vsel %vm267_vm1, %v12261_v3, 0.0 }
 0x491   :  { %v12282_v34 = vsub.f32 %v12225_v43, %v1134_v32  ;;  %v12285_v11 = vsub.f32 %v12231_v8, %v1135_v33  ;;  %v1185_v46 = vsel %vm267_vm1, %v1165_v25, 0.0  ;;  %v1182_v30 = vsel %vm267_vm1, %v1164_v39, 0.0  ;;  %v1339_v25 = vld [vmem:[#allocation7 + $0x20] sm:$0xff]  ;;  %v1341_v39 = vld [vmem:[#allocation7 + $0x30] sm:$0xff] }
 0x492   :  { %v1099_v31 = vpop.xlane.xlu1 %1098  ;;  %1186 = vadd.xlane.f32.xlu0 %v1185_v46  ;;  %1183 = vadd.xlane.f32.xlu1 %v1182_v30  ;;  %v1102_v27 = vpop.xlane.xlu0 %1101  ;;  %v10045_v32 = vpack.c.bf16 %v1337_v7, %v1335_v45  ;;  %v10047_v33 = vpack.c.bf16 %v1342_v44, %v1340_v47  ;;  %v1344_v46 = vld [vmem:[#allocation7 + $0x48] sm:$0xff]  ;;  %v1346_v30 = vld [vmem:[#allocation7 + $0x58] sm:$0xff] }
 0x493   :  { %v1136_v53 = vmul.f32 0.015625, %v1099_v31  ;;  %v1137_v54 = vmul.f32 0.015625, %v1102_v27  ;;  %v1166_v55 = vmul.f32 %v12282_v34, %v12282_v34  ;;  %v1167_v57 = vmul.f32 %v12285_v11, %v12285_v11 }
 0x494   :  { %10046 = vmatpush1.bf16.msra.mxu1 %v10045_v32  ;;  %v10049_v31 = vpack.c.bf16 %v1341_v39, %v1339_v25  ;;  %v10051_v27 = vpack.c.bf16 %v1346_v30, %v1344_v46 }
 0x495   :  { %v12294_v5 = vsub.f32 %v12233_v60, %v1136_v53  ;;  %v12297_v58 = vsub.f32 %v12239_v19, %v1137_v54  ;;  %v1188_v59 = vsel %vm267_vm1, %v1166_v55, 0.0  ;;  %v1191_v61 = vsel %vm267_vm1, %v1167_v57, 0.0  ;;  %10048 = vmatprep.subr.bf16.mxu1 %v10047_v33  ;;  %v1343_v53 = vld [vmem:[#allocation7 + $0x40] sm:$0xff]  ;;  %v1345_v54 = vld [vmem:[#allocation7 + $0x50] sm:$0xff]  ;;  %v1348_v55 = vld [vmem:[#allocation7 + $0x68] sm:$0xff] }
 0x496   :  { %v1105_v17 = vpop.xlane.xlu1 %1104  ;;  %1189 = vadd.xlane.f32.xlu1 %v1188_v59  ;;  %1192 = vadd.xlane.f32.xlu0 %v1191_v61  ;;  %v1350_v57 = vld [vmem:[#allocation7 + $0x78] sm:$0xff]  ;;  %v10053_v59 = vpack.c.bf16 %v1345_v54, %v1343_v53  ;;  %v12332_v33 = vld [vmem:[%s15815_s8] ss:$0 sm:$0xff] }
 0x497   :  { %v1138_v62 = vmul.f32 0.015625, %v1105_v17  ;;  %v1168_v6 = vmul.f32 %v12294_v5, %v12294_v5  ;;  %v1169_v35 = vmul.f32 %v12297_v58, %v12297_v58  ;;  %v10055_v61 = vpack.c.bf16 %v1350_v57, %v1348_v55  ;;  %v1347_v17 = vld [vmem:[#allocation7 + $0x60] sm:$0xff] }
 0x498   :  { %10050 = vmatpush1.bf16.msra.mxu1 %v10049_v31  ;;  %v12338_v31 = vld [vmem:[%s15816_s19] ss:$0 sm:$0xff] }
 0x499   :  { %v12306_v26 = vsub.f32 %v12241_v0, %v1138_v62  ;;  %v1194_v20 = vsel %vm267_vm1, %v1168_v6, 0.0  ;;  %v1197_v9 = vsel %vm267_vm1, %v1169_v35, 0.0  ;;  %10052 = vmatprep.subr.bf16.mxu1 %v10051_v27  ;;  %v1349_v62 = vld [vmem:[#allocation7 + $0x70] sm:$0xff] }
 0x49a   :  { %1195 = vadd.xlane.f32.xlu1 %v1194_v20  ;;  %1198 = vadd.xlane.f32.xlu0 %v1197_v9  ;;  %v10057_v6 = vpack.c.bf16 %v1349_v62, %v1347_v17 }
 0x49b   :  { %v1170_v22 = vmul.f32 %v12306_v26, %v12306_v26 }
 0x49c   :  { %10054 = vmatpush1.bf16.msra.mxu1 %v10053_v59 }
 0x49d   :  { %v1200_v14 = vsel %vm267_vm1, %v1170_v22, 0.0  ;;  %10056 = vmatprep.subr.bf16.mxu1 %v10055_v61 }
 0x49e   :  { %1201 = vadd.xlane.f32.xlu1 %v1200_v14  ;;  %1107 = vadd.xlane.f32.xlu0 %v1106_v29 }
 0x4a0   :  { %10058 = vmatpush1.bf16.msra.mxu1 %v10057_v6 }
 0x4a2   :  { %1110 = vadd.xlane.f32.xlu1 %v1109_v63  ;;  %1113 = vadd.xlane.f32.xlu0 %v1112_v49 }
 0x4a6   :  { %1116 = vadd.xlane.f32.xlu1 %v1115_v16  ;;  %1119 = vadd.xlane.f32.xlu0 %v1118_v4 }
 0x4aa   :  { %1122 = vadd.xlane.f32.xlu1 %v1121_v52  ;;  %1125 = vadd.xlane.f32.xlu0 %v1124_v24 }
 0x4ae   :  { %1128 = vadd.xlane.f32.xlu1 %v1127_v50 }
 0x51b   :  { %v1181_v35 = vpop.xlane.xlu0 %1180 }
 0x51c   :  { %v1227_v20 = vmul.f32 0.015625, %v1181_v35 }
 0x51e   :  { %v1243_v9 = vadd.f32 1e-05, %v1227_v20 }
 0x51f   :  { %v1184_v22 = vpop.xlane.xlu1 %1183  ;;  %v1187_v14 = vpop.xlane.xlu0 %1186 }
 0x520   :  { %10639 = vrsqrt.f32 %v1243_v9  ;;  %v1228_v29 = vmul.f32 0.015625, %v1184_v22  ;;  %v1229_v63 = vmul.f32 0.015625, %v1187_v14 }
 0x522   :  { %v1244_v49 = vadd.f32 1e-05, %v1228_v29  ;;  %v1245_v16 = vadd.f32 1e-05, %v1229_v63 }
 0x523   :  { %v1190_v4 = vpop.xlane.xlu1 %1189  ;;  %v1193_v52 = vpop.xlane.xlu0 %1192 }
 0x524   :  { %10641 = vrsqrt.f32 %v1244_v49  ;;  %v1230_v24 = vmul.f32 0.015625, %v1190_v4  ;;  %v1231_v13 = vmul.f32 0.015625, %v1193_v52 }
 0x525   :  { %10643 = vrsqrt.f32 %v1245_v16 }
 0x526   :  { %v1246_v37 = vadd.f32 1e-05, %v1230_v24  ;;  %v1247_v45 = vadd.f32 1e-05, %v1231_v13 }
 0x527   :  { %v1196_v15 = vpop.xlane.xlu1 %1195  ;;  %v1199_v7 = vpop.xlane.xlu0 %1198 }
 0x528   :  { %10645 = vrsqrt.f32 %v1246_v37  ;;  %v1232_v47 = vmul.f32 0.015625, %v1196_v15  ;;  %v1233_v32 = vmul.f32 0.015625, %v1199_v7 }
 0x529   :  { %10647 = vrsqrt.f32 %v1247_v45 }
 0x52a   :  { %v10640_v44 = vpop.eup %10639  ;;  %v1248_v50 = vadd.f32 1e-05, %v1232_v47  ;;  %v1249_v55 = vadd.f32 1e-05, %v1233_v32 }
 0x52b   :  { %v1275_v25 = vmul.f32 %v10640_v44, %v12266_v56  ;;  %v1202_v39 = vpop.xlane.xlu1 %1201  ;;  %v1108_v46 = vpop.xlane.xlu0 %1107 }
 0x52c   :  { %v1139_v30 = vmul.f32 0.015625, %v1108_v46  ;;  %v1234_v27 = vmul.f32 0.015625, %v1202_v39  ;;  %10649 = vrsqrt.f32 %v1248_v50 }
 0x52d   :  { %v1297_v53 = vmul.f32 %v12332_v33, %v1275_v25  ;;  %10651 = vrsqrt.f32 %v1249_v55 }
 0x52e   :  { %v10642_v54 = vpop.eup %10641  ;;  %v12342_v57 = vsub.f32 %v12251_v41, %v1139_v30  ;;  %v1250_v9 = vadd.f32 1e-05, %v1234_v27 }
 0x52f   :  { %v10644_v59 = vpop.eup %10643  ;;  %v1111_v61 = vpop.xlane.xlu1 %1110  ;;  %v1319_v17 = vadd.f32 %v12338_v31, %v1297_v53  ;;  %v1276_v62 = vmul.f32 %v10642_v54, %v12274_v40 }
 0x530   :  { %v1114_v56 = vpop.xlane.xlu0 %1113  ;;  %v1140_v6 = vmul.f32 0.015625, %v1111_v61  ;;  %v1171_v20 = vmul.f32 %v12342_v57, %v12342_v57  ;;  %v1277_v14 = vmul.f32 %v10644_v59, %v12271_v10  ;;  %10653 = vrsqrt.f32 %v1250_v9 }
 0x531   :  { %v1141_v35 = vmul.f32 0.015625, %v1114_v56  ;;  %8392 = vmatmul.mubr.msk.f32.vlgmr.msra.gmra.mrb[4].mxu1 %vm267_vm1, %v1319_v17  ;;  %v1298_v22 = vmul.f32 %v12332_v33, %v1276_v62 }
 0x532   :  { %v10646_v29 = vpop.eup %10645  ;;  %v12352_v63 = vsub.f32 %v12249_v42, %v1140_v6  ;;  %v1203_v40 = vsel %vm267_vm1, %v1171_v20, 0.0  ;;  %1469 = vmatprep.mubr.f32.mxu1 %v15746_v1  ;;  %v1299_v24 = vmul.f32 %v12332_v33, %v1277_v14 }
 0x533   :  { %v12355_v49 = vsub.f32 %v12255_v38, %v1141_v35  ;;  %v1117_v16 = vpop.xlane.xlu1 %1116  ;;  %1204 = vadd.xlane.f32.xlu0 %v1203_v40  ;;  %v1320_v52 = vadd.f32 %v12338_v31, %v1298_v22  ;;  %v1278_v10 = vmul.f32 %v10646_v29, %v12282_v34  ;;  %v10648_v13 = vpop.eup %10647 }
 0x534   :  { %v1120_v4 = vpop.xlane.xlu0 %1119  ;;  %v1142_v37 = vmul.f32 0.015625, %v1117_v16  ;;  %v1172_v15 = vmul.f32 %v12352_v63, %v12352_v63  ;;  %v1321_v39 = vadd.f32 %v12338_v31, %v1299_v24  ;;  %v1279_v30 = vmul.f32 %v10648_v13, %v12285_v11 }
 0x535   :  { %v1143_v45 = vmul.f32 0.015625, %v1120_v4  ;;  %v1173_v7 = vmul.f32 %v12355_v49, %v12355_v49  ;;  %8393 = vmatmul.mubr.msk.f32.gmra.mrb[6].mxu1 %vm267_vm1, %v1320_v52  ;;  %v1300_v46 = vmul.f32 %v12332_v33, %v1278_v10 }
 0x536   :  { %v12368_v47 = vsub.f32 %v12253_v23, %v1142_v37  ;;  %v1206_v34 = vsel %vm267_vm1, %v1172_v15, 0.0  ;;  %1475 = vmatprep.mubr.f32.mxu1 %v15746_v1  ;;  %v10650_v27 = vpop.eup %10649  ;;  %v1301_v35 = vmul.f32 %v12332_v33, %v1279_v30 }
 0x537   :  { %v12371_v44 = vsub.f32 %v12259_v51, %v1143_v45  ;;  %v1209_v50 = vsel %vm267_vm1, %v1173_v7, 0.0  ;;  %1207 = vadd.xlane.f32.xlu1 %v1206_v34  ;;  %v1123_v32 = vpop.xlane.xlu1 %1122  ;;  %v1322_v6 = vadd.f32 %v12338_v31, %v1300_v46  ;;  %v1280_v20 = vmul.f32 %v10650_v27, %v12294_v5  ;;  %v10652_v9 = vpop.eup %10651 }
 0x538   :  { %1210 = vadd.xlane.f32.xlu0 %v1209_v50  ;;  %v1126_v25 = vpop.xlane.xlu0 %1125  ;;  %v1144_v53 = vmul.f32 0.015625, %v1123_v32  ;;  %v1174_v55 = vmul.f32 %v12368_v47, %v12368_v47  ;;  %v1323_v52 = vadd.f32 %v12338_v31, %v1301_v35  ;;  %v1281_v10 = vmul.f32 %v10652_v9, %v12297_v58 }
 0x539   :  { %v1145_v54 = vmul.f32 0.015625, %v1126_v25  ;;  %v1175_v59 = vmul.f32 %v12371_v44, %v12371_v44  ;;  %8394 = vmatmul.mubr.msk.f32.gmra.mrb[8].mxu1 %vm267_vm1, %v1321_v39  ;;  %v1302_v24 = vmul.f32 %v12332_v33, %v1280_v20 }
 0x53a   :  { %v12385_v61 = vsub.f32 %v12257_v2, %v1144_v53  ;;  %v1212_v17 = vsel %vm267_vm1, %v1174_v55, 0.0  ;;  %1481 = vmatprep.mubr.f32.mxu1 %v15746_v1  ;;  %v10654_v5 = vpop.eup %10653  ;;  %v1303_v15 = vmul.f32 %v12332_v33, %v1281_v10 }
 0x53b   :  { %v12388_v56 = vsub.f32 %v12263_v12, %v1145_v54  ;;  %v1215_v11 = vsel %vm267_vm1, %v1175_v59, 0.0  ;;  %1213 = vadd.xlane.f32.xlu1 %v1212_v17  ;;  %v1129_v62 = vpop.xlane.xlu1 %1128  ;;  %v1324_v45 = vadd.f32 %v12338_v31, %v1302_v24  ;;  %v1282_v7 = vmul.f32 %v10654_v5, %v12306_v26 }
 0x53c   :  { %1216 = vadd.xlane.f32.xlu0 %v1215_v11  ;;  %v1146_v22 = vmul.f32 0.015625, %v1129_v62  ;;  %v1176_v14 = vmul.f32 %v12385_v61, %v12385_v61  ;;  %v1325_v58 = vadd.f32 %v12338_v31, %v1303_v15 }
 0x53d   :  { %v1177_v29 = vmul.f32 %v12388_v56, %v12388_v56  ;;  %8395 = vmatmul.mubr.msk.f32.gmra.mrb[10].mxu1 %vm267_vm1, %v1322_v6  ;;  %v1304_v34 = vmul.f32 %v12332_v33, %v1282_v7 }
 0x53e   :  { %v12402_v40 = vsub.f32 %v12261_v3, %v1146_v22  ;;  %v1218_v16 = vsel %vm267_vm1, %v1176_v14, 0.0  ;;  %1487 = vmatprep.mubr.f32.mxu1 %v15746_v1 }
 0x53f   :  { %v1221_v4 = vsel %vm267_vm1, %v1177_v29, 0.0  ;;  %1219 = vadd.xlane.f32.xlu1 %v1218_v16  ;;  %v1326_v50 = vadd.f32 %v12338_v31, %v1304_v34 }
 0x540   :  { %1222 = vadd.xlane.f32.xlu0 %v1221_v4  ;;  %v1178_v13 = vmul.f32 %v12402_v40, %v12402_v40 }
 0x541   :  { %8396 = vmatmul.mubr.msk.f32.gmra.mrb[12].mxu1 %vm267_vm1, %v1323_v52 }
 0x542   :  { %v1224_v37 = vsel %vm267_vm1, %v1178_v13, 0.0  ;;  %1493 = vmatprep.mubr.f32.mxu1 %v15746_v1 }
 0x543   :  { %1225 = vadd.xlane.f32.xlu1 %v1224_v37 }
 0x545   :  { %8397 = vmatmul.mubr.msk.f32.gmra.mrb[14].mxu1 %vm267_vm1, %v1324_v45 }
 0x546   :  { %1499 = vmatprep.mubr.f32.mxu1 %v15746_v1 }
 0x549   :  { %8398 = vmatmul.mubr.msk.f32.gmra.mrb[16].mxu1 %vm267_vm1, %v1325_v58 }
 0x54a   :  { %1505 = vmatprep.mubr.f32.mxu1 %v15746_v1 }
 0x54d   :  { %8399 = vmatmul.mubr.msk.f32.gmra.mrb[18].mxu1 %vm267_vm1, %v1326_v50 }
 0x54e   :  { %1511 = vmatprep.mubr.f32.mxu1 %v15746_v1 }
 0x5c0   :  { %v1205_v32 = vpop.xlane.xlu0 %1204 }
 0x5c1   :  { %v1235_v26 = vmul.f32 0.015625, %v1205_v32 }
 0x5c3   :  { %v1251_v25 = vadd.f32 1e-05, %v1235_v26 }
 0x5c4   :  { %v1208_v39 = vpop.xlane.xlu1 %1207 }
 0x5c5   :  { %v1211_v46 = vpop.xlane.xlu0 %1210  ;;  %10655 = vrsqrt.f32 %v1251_v25  ;;  %v1236_v30 = vmul.f32 0.015625, %v1208_v39 }
 0x5c6   :  { %v1237_v27 = vmul.f32 0.015625, %v1211_v46 }
 0x5c7   :  { %v1252_v53 = vadd.f32 1e-05, %v1236_v30 }
 0x5c8   :  { %v1253_v54 = vadd.f32 1e-05, %v1237_v27  ;;  %v1214_v55 = vpop.xlane.xlu1 %1213 }
 0x5c9   :  { %v1217_v59 = vpop.xlane.xlu0 %1216  ;;  %10657 = vrsqrt.f32 %v1252_v53  ;;  %v1238_v17 = vmul.f32 0.015625, %v1214_v55 }
 0x5ca   :  { %v1239_v11 = vmul.f32 0.015625, %v1217_v59  ;;  %10659 = vrsqrt.f32 %v1253_v54 }
 0x5cb   :  { %v1254_v62 = vadd.f32 1e-05, %v1238_v17 }
 0x5cc   :  { %v1255_v6 = vadd.f32 1e-05, %v1239_v11  ;;  %v1220_v35 = vpop.xlane.xlu1 %1219 }
 0x5cd   :  { %v1223_v20 = vpop.xlane.xlu0 %1222  ;;  %10661 = vrsqrt.f32 %v1254_v62  ;;  %v1240_v9 = vmul.f32 0.015625, %v1220_v35 }
 0x5ce   :  { %10663 = vrsqrt.f32 %v1255_v6  ;;  %v1241_v29 = vmul.f32 0.015625, %v1223_v20 }
 0x5cf   :  { %v10656_v22 = vpop.eup %10655  ;;  %v1256_v14 = vadd.f32 1e-05, %v1240_v9 }
 0x5d0   :  { %v1226_v16 = vpop.xlane.xlu1 %1225  ;;  %v1283_v4 = vmul.f32 %v10656_v22, %v12342_v57  ;;  %v1257_v24 = vadd.f32 1e-05, %v1241_v29 }
 0x5d1   :  { %10665 = vrsqrt.f32 %v1256_v14  ;;  %v1242_v10 = vmul.f32 0.015625, %v1226_v16 }
 0x5d2   :  { %v1305_v5 = vmul.f32 %v12332_v33, %v1283_v4  ;;  %10667 = vrsqrt.f32 %v1257_v24 }
 0x5d3   :  { %v10658_v52 = vpop.eup %10657  ;;  %v1258_v57 = vadd.f32 1e-05, %v1242_v10 }
 0x5d4   :  { %v10660_v13 = vpop.eup %10659  ;;  %v1327_v37 = vadd.f32 %v12338_v31, %v1305_v5  ;;  %v1284_v45 = vmul.f32 %v10658_v52, %v12352_v63 }
 0x5d5   :  { %v1285_v15 = vmul.f32 %v10660_v13, %v12355_v49  ;;  %10669 = vrsqrt.f32 %v1258_v57 }
 0x5d6   :  { %8400 = vmatmul.mubr.msk.f32.gmra.mrb[20].mxu1 %vm267_vm1, %v1327_v37  ;;  %v1306_v7 = vmul.f32 %v12332_v33, %v1284_v45 }
 0x5d7   :  { %v10662_v58 = vpop.eup %10661  ;;  %1517 = vmatprep.mubr.f32.mxu1 %v15746_v1  ;;  %v1307_v50 = vmul.f32 %v12332_v33, %v1285_v15 }
 0x5d8   :  { %v1328_v34 = vadd.f32 %v12338_v31, %v1306_v7  ;;  %v1286_v32 = vmul.f32 %v10662_v58, %v12368_v47  ;;  %v10664_v26 = vpop.eup %10663 }
 0x5d9   :  { %v1329_v63 = vadd.f32 %v12338_v31, %v1307_v50  ;;  %v1287_v25 = vmul.f32 %v10664_v26, %v12371_v44 }
 0x5da   :  { %8401 = vmatmul.mubr.msk.f32.gmra.mrb[22].mxu1 %vm267_vm1, %v1328_v34  ;;  %v1308_v49 = vmul.f32 %v12332_v33, %v1286_v32 }
 0x5db   :  { %1523 = vmatprep.mubr.f32.mxu1 %v15746_v1  ;;  %v10666_v39 = vpop.eup %10665  ;;  %v1309_v47 = vmul.f32 %v12332_v33, %v1287_v25 }
 0x5dc   :  { %v1330_v46 = vadd.f32 %v12338_v31, %v1308_v49  ;;  %v1288_v30 = vmul.f32 %v10666_v39, %v12385_v61  ;;  %v10668_v27 = vpop.eup %10667 }
 0x5dd   :  { %v1331_v53 = vadd.f32 %v12338_v31, %v1309_v47  ;;  %v1289_v54 = vmul.f32 %v10668_v27, %v12388_v56 }
 0x5de   :  { %8402 = vmatmul.mubr.msk.f32.gmra.mrb[24].mxu1 %vm267_vm1, %v1329_v63  ;;  %v1310_v44 = vmul.f32 %v12332_v33, %v1288_v30 }
 0x5df   :  { %1529 = vmatprep.mubr.f32.mxu1 %v15746_v1  ;;  %v10670_v55 = vpop.eup %10669  ;;  %v1311_v61 = vmul.f32 %v12332_v33, %v1289_v54 }
 0x5e0   :  { %v1332_v59 = vadd.f32 %v12338_v31, %v1310_v44  ;;  %v1290_v17 = vmul.f32 %v10670_v55, %v12402_v40 }
 0x5e1   :  { %v1333_v11 = vadd.f32 %v12338_v31, %v1311_v61 }
 0x5e2   :  { %8403 = vmatmul.mubr.msk.f32.gmra.mrb[26].mxu1 %vm267_vm1, %v1330_v46  ;;  %v1312_v62 = vmul.f32 %v12332_v33, %v1290_v17 }
 0x5e3   :  { %1535 = vmatprep.mubr.f32.mxu1 %v15746_v1 }
 0x5e4   :  { %v1334_v56 = vadd.f32 %v12338_v31, %v1312_v62 }
 0x5e6   :  { %8404 = vmatmul.mubr.msk.f32.gmra.mrb[28].mxu1 %vm267_vm1, %v1331_v53 }
 0x5e7   :  { %1541 = vmatprep.mubr.f32.mxu1 %v15746_v1 }
 0x5ea   :  { %8405 = vmatmul.mubr.msk.f32.gmra.mrb[30].mxu1 %vm267_vm1, %v1332_v59 }
 0x5eb   :  { %1547 = vmatprep.mubr.f32.mxu1 %v15746_v1 }
 0x5ee   :  { %8406 = vmatmul.mubr.msk.f32.gmra.mrb[32].mxu1 %vm267_vm1, %v1333_v11 }
 0x5ef   :  { %1553 = vmatprep.mubr.f32.mxu1 %v15746_v1 }
 0x5f2   :  { %8407 = vmatmul.mubr.msk.f32.gmra.mrb[34].mxu1 %vm267_vm1, %v1334_v56 }
 0x604   :  { %v1465_v6 = vpop.f32.mrb[4].mxu1 }
 0x605   :  { %v1467_v35 = vpop.f32.mrb[5].mxu1  ;;  %9400 = vmatprep.mubr.msk.f32.mxu0 %vm1592_vm2, %v1465_v6 }
 0x608   :  { %v12467_v40 = vpop.f32.mrb[6].mxu1 }
 0x609   :  { %v1473_v20 = vpop.f32.mrb[7].mxu1  ;;  %v10451_v9 = vpack.i.bf16 %v12467_v40, %v1465_v6 }
 0x60a   :  { %v10491_v22 = vpack.i.bf16 %v1473_v20, %v1467_v35  ;;  %v12470_v33 = vpack.c.bf16 %v1473_v20, %v1467_v35 }
 0x60b   :  { %10452 = vrot.lane.b32.xlu0 %v10451_v9, %s11456_s3 }
 0x60c   :  { %v12473_v14 = vpop.f32.mrb[8].mxu1 }
 0x60d   :  { %v12475_v31 = vpop.f32.mrb[9].mxu1 }
 0x610   :  { %v12477_v29 = vpop.f32.mrb[10].mxu1 }
 0x611   :  { %v12479_v16 = vpop.f32.mrb[11].mxu1  ;;  %v10456_v4 = vpack.i.bf16 %v12477_v29, %v12473_v14 }
 0x612   :  { %v12487_v52 = vpack.c.bf16 %v12479_v16, %v12475_v31 }
 0x613   :  { %10457 = vrot.lane.b32.xlu1 %v10456_v4, %s11456_s3 }
 0x614   :  { %v12490_v24 = vpop.f32.mrb[12].mxu1 }
 0x615   :  { %v12492_v10 = vpop.f32.mrb[13].mxu1 }
 0x618   :  { %v12494_v13 = vpop.f32.mrb[14].mxu1 }
 0x619   :  { %v12496_v37 = vpop.f32.mrb[15].mxu1  ;;  %v10461_v45 = vpack.i.bf16 %v12494_v13, %v12490_v24 }
 0x61a   :  { %v12504_v7 = vpack.c.bf16 %v12496_v37, %v12492_v10 }
 0x61b   :  { %10462 = vrot.lane.b32.xlu1 %v10461_v45, %s11456_s3 }
 0x61c   :  { %v12507_v58 = vpop.f32.mrb[16].mxu1 }
 0x61d   :  { %v12509_v57 = vpop.f32.mrb[17].mxu1 }
 0x61f   :  { %10467 = vrot.lane.b32.xlu1 %v10451_v9, %s11457_s2 }
 0x620   :  { %v12512_v34 = vpop.f32.mrb[18].mxu1 }
 0x621   :  { %v12514_v50 = vpop.f32.mrb[19].mxu1  ;;  %v10471_v32 = vpack.i.bf16 %v12512_v34, %v12507_v58 }
 0x622   :  { %v12522_v63 = vpack.c.bf16 %v12514_v50, %v12509_v57 }
 0x623   :  { %10477 = vrot.lane.b32.xlu1 %v10456_v4, %s11457_s2  ;;  %10472 = vrot.lane.b32.xlu0 %v10471_v32, %s11456_s3 }
 0x627   :  { %10487 = vrot.lane.b32.xlu1 %v10471_v32, %s11457_s2  ;;  %10482 = vrot.lane.b32.xlu0 %v10461_v45, %s11457_s2 }
 0x62b   :  { %1957 = vrot.lane.b32.xlu1 %v12467_v40, %s11458_s24  ;;  %1955 = vrot.lane.b32.xlu0 %v1465_v6, %s11458_s24 }
 0x62f   :  { %1961 = vrot.lane.b32.xlu1 %v12477_v29, %s11458_s24  ;;  %1959 = vrot.lane.b32.xlu0 %v12473_v14, %s11458_s24 }
 0x633   :  { %1965 = vrot.lane.b32.xlu1 %v12494_v13, %s11458_s24  ;;  %1963 = vrot.lane.b32.xlu0 %v12490_v24, %s11458_s24 }
 0x637   :  { %1969 = vrot.lane.b32.xlu1 %v12512_v34, %s11458_s24  ;;  %1967 = vrot.lane.b32.xlu0 %v12507_v58, %s11458_s24 }
 0x63b   :  { %10492 = vrot.lane.b32.xlu1 %v10491_v22, %s11458_s24 }
 0x67d   :  { %v10453_v49 = vpop.permute.xlu0 %10452 }
 0x67e   :  { %v10455_v25 = vunpack.i.h.bf16 %v10453_v49  ;;  %v10454_v39 = vunpack.i.l.bf16 %v10453_v49 }
 0x680   :  { %v10059_v47 = vpack.c.bf16 %v10455_v25, %v10454_v39 }
 0x682   :  { %10061 = vmatprep.subr.msk.bf16.mxu0 %vm12546_vm3, %v10059_v47 }
 0x683   :  { %10064 = vmatpush3.bf16.xpose.msk.msra.mxu0 %vm12546_vm3, %v10059_v47 }
 0x685   :  { %v10458_v30 = vpop.permute.xlu1 %10457 }
 0x686   :  { %v10460_v27 = vunpack.i.h.bf16 %v10458_v30  ;;  %v10459_v53 = vunpack.i.l.bf16 %v10458_v30 }
 0x688   :  { %v10065_v44 = vpack.c.bf16 %v10460_v27, %v10459_v53 }
 0x68a   :  { %10067 = vmatprep.subr.msk.bf16.mxu0 %vm12546_vm3, %v10065_v44 }
 0x68b   :  { %10070 = vmatpush3.bf16.xpose.msk.msra.mxu0 %vm12546_vm3, %v10065_v44 }
 0x68d   :  { %v10463_v54 = vpop.permute.xlu1 %10462 }
 0x68e   :  { %v10465_v55 = vunpack.i.h.bf16 %v10463_v54  ;;  %v10464_v59 = vunpack.i.l.bf16 %v10463_v54 }
 0x690   :  { %v10071_v61 = vpack.c.bf16 %v10465_v55, %v10464_v59 }
 0x691   :  { %v10468_v17 = vpop.permute.xlu1 %10467 }
 0x692   :  { %v10470_v11 = vunpack.i.h.bf16 %v10468_v17  ;;  %v10469_v62 = vunpack.i.l.bf16 %v10468_v17  ;;  %10073 = vmatprep.subr.msk.bf16.mxu0 %vm12546_vm3, %v10071_v61 }
 0x693   :  { %10076 = vmatpush3.bf16.xpose.msk.msra.mxu0 %vm12546_vm3, %v10071_v61 }
 0x694   :  { %v10099_v56 = vpack.c.bf16 %v10470_v11, %v10469_v62 }
 0x695   :  { %v10478_v6 = vpop.permute.xlu1 %10477  ;;  %v10473_v35 = vpop.permute.xlu0 %10472 }
 0x696   :  { %v10480_v20 = vunpack.i.h.bf16 %v10478_v6  ;;  %v10479_v9 = vunpack.i.l.bf16 %v10478_v6  ;;  %v10475_v22 = vunpack.i.h.bf16 %v10473_v35  ;;  %v10474_v4 = vunpack.i.l.bf16 %v10473_v35  ;;  %10101 = vmatprep.subr.msk.bf16.mxu1 %vm12546_vm3, %v10099_v56 }
 0x697   :  { %10104 = vmatpush3.bf16.xpose.msk.msra.mxu1 %vm12546_vm3, %v10099_v56 }
 0x698   :  { %v10105_v45 = vpack.c.bf16 %v10480_v20, %v10479_v9  ;;  %v10077_v32 = vpack.c.bf16 %v10475_v22, %v10474_v4 }
 0x699   :  { %v10488_v49 = vpop.permute.xlu1 %10487  ;;  %v10483_v25 = vpop.permute.xlu0 %10482 }
 0x69a   :  { %v10485_v39 = vunpack.i.h.bf16 %v10483_v25  ;;  %v10484_v47 = vunpack.i.l.bf16 %v10483_v25  ;;  %10079 = vmatprep.subr.msk.bf16.mxu0 %vm12546_vm3, %v10077_v32  ;;  %10107 = vmatprep.subr.msk.bf16.mxu1 %vm12546_vm3, %v10105_v45  ;;  %v10490_v54 = vunpack.i.h.bf16 %v10488_v49  ;;  %v10489_v55 = vunpack.i.l.bf16 %v10488_v49 }
 0x69b   :  { %10082 = vmatpush3.bf16.xpose.msk.msra.mxu0 %vm12546_vm3, %v10077_v32 }
 0x69c   :  { %10084 = vmatprep.subr.bf16.mxu0 %v12470_v33  ;;  %v10111_v53 = vpack.c.bf16 %v10485_v39, %v10484_v47  ;;  %v10117_v61 = vpack.c.bf16 %v10490_v54, %v10489_v55 }
 0x69d   :  { %v1958_v30 = vpop.permute.xlu1 %1957  ;;  %v1956_v27 = vpop.permute.xlu0 %1955 }
 0x69e   :  { %9456 = vmatprep.mubr.msk.f32.mxu1 %vm1592_vm2, %v1956_v27 }
 0x69f   :  { %10110 = vmatpush3.bf16.xpose.msk.msra.mxu1 %vm12546_vm3, %v10105_v45 }
 0x6a0   :  { %10113 = vmatprep.subr.msk.bf16.mxu1 %vm12546_vm3, %v10111_v53 }
 0x6a1   :  { %v1962_v44 = vpop.permute.xlu1 %1961  ;;  %v1960_v6 = vpop.permute.xlu0 %1959 }
 0x6a2   :  { %9401 = vmatmul.mubr.msk.f32.vlgmr.msra.gmra.mrb[20].mxu0 %vm1592_vm2, %v12467_v40 }
 0x6a3   :  { %9403 = vmatprep.mubr.msk.f32.mxu0 %vm1592_vm2, %v12473_v14  ;;  %10086 = vmatpush3.bf16.msra.mxu0 %v12470_v33 }
 0x6a4   :  { %10088 = vmatprep.subr.bf16.mxu0 %v12487_v52 }
 0x6a5   :  { %v1966_v59 = vpop.permute.xlu1 %1965  ;;  %v1964_v4 = vpop.permute.xlu0 %1963 }
 0x6a6   :  { %9404 = vmatmul.mubr.msk.f32.gmra.mrb[22].mxu0 %vm1592_vm2, %v12477_v29 }
 0x6a7   :  { %9406 = vmatprep.mubr.msk.f32.mxu0 %vm1592_vm2, %v12490_v24  ;;  %10090 = vmatpush3.bf16.msra.mxu0 %v12487_v52 }
 0x6a8   :  { %10116 = vmatpush3.bf16.xpose.msk.msra.mxu1 %vm12546_vm3, %v10111_v53  ;;  %10092 = vmatprep.subr.bf16.mxu0 %v12504_v7 }
 0x6a9   :  { %10119 = vmatprep.subr.msk.bf16.mxu1 %vm12546_vm3, %v10117_v61  ;;  %v1970_v40 = vpop.permute.xlu1 %1969  ;;  %v1513_v33 = vpop.f32.mrb[20].mxu1 }
 0x6aa   :  { %3025 = vrot.lane.b32.xlu0 %v1513_v33, %s11458_s24  ;;  %v12595_v14 = vpop.f32.mrb[21].mxu1  ;;  %9407 = vmatmul.mubr.msk.f32.gmra.mrb[24].mxu0 %vm1592_vm2, %v12494_v13  ;;  %v1968_v47 = vpop.permute.xlu0 %1967 }
 0x6ab   :  { %9409 = vmatprep.mubr.msk.f32.mxu0 %vm1592_vm2, %v12507_v58  ;;  %10094 = vmatpush3.bf16.msra.mxu0 %v12504_v7 }
 0x6ac   :  { %10096 = vmatprep.subr.bf16.mxu0 %v12522_v63 }
 0x6ad   :  { %v10493_v29 = vpop.permute.xlu1 %10492  ;;  %v12603_v52 = vpop.f32.mrb[22].mxu1 }
 0x6ae   :  { %v10495_v24 = vunpack.i.h.bf16 %v10493_v29  ;;  %v10494_v17 = vunpack.i.l.bf16 %v10493_v29  ;;  %3027 = vrot.lane.b32.xlu1 %v12603_v52, %s11458_s24  ;;  %v12607_v11 = vpop.f32.mrb[23].mxu1  ;;  %9410 = vmatmul.mubr.msk.f32.gmra.mrb[26].mxu0 %vm1592_vm2, %v12512_v34  ;;  %v10496_v13 = vpack.i.bf16 %v12603_v52, %v1513_v33 }
 0x6af   :  { %v12616_v58 = vpack.c.bf16 %v12607_v11, %v12595_v14  ;;  %10098 = vmatpush3.bf16.msra.mxu0 %v12522_v63 }
 0x6b0   :  { %10122 = vmatpush3.bf16.xpose.msk.msra.mxu1 %vm12546_vm3, %v10117_v61  ;;  %10497 = vrot.lane.b32.xlu0 %v10496_v13, %s11456_s3  ;;  %v12622_v62 = vpack.c.bf16 %v10495_v24, %v10494_v17 }
 0x6b1   :  { %v12624_v56 = vpop.f32.mrb[24].mxu1 }
 0x6b2   :  { %v12626_v34 = vpop.f32.mrb[25].mxu1  ;;  %10124 = vmatprep.subr.bf16.mxu0 %v12622_v62 }
 0x6b4   :  { %10502 = vrot.lane.b32.xlu0 %v10496_v13, %s11457_s2 }
 0x6b5   :  { %v12630_v35 = vpop.f32.mrb[26].mxu1 }
 0x6b6   :  { %v12632_v20 = vpop.f32.mrb[27].mxu1  ;;  %v10506_v63 = vpack.i.bf16 %v12630_v35, %v12624_v56 }
 0x6b7   :  { %v12640_v22 = vpack.c.bf16 %v12632_v20, %v12626_v34  ;;  %9457 = vmatmul.mubr.msk.f32.vlgmr.msra.gmra.mrb[36].mxu1 %vm1592_vm2, %v1958_v30 }
 0x6b8   :  { %9459 = vmatprep.mubr.msk.f32.mxu1 %vm1592_vm2, %v1960_v6  ;;  %3029 = vrot.lane.b32.xlu0 %v12624_v56, %s11458_s24 }
 0x6b9   :  { %10507 = vrot.lane.b32.xlu1 %v10506_v63, %s11456_s3  ;;  %v12647_v45 = vpop.f32.mrb[28].mxu1 }
 0x6ba   :  { %v12649_v32 = vpop.f32.mrb[29].mxu1 }
 0x6bb   :  { %9460 = vmatmul.mubr.msk.f32.gmra.mrb[38].mxu1 %vm1592_vm2, %v1962_v44 }
 0x6bc   :  { %9462 = vmatprep.mubr.msk.f32.mxu1 %vm1592_vm2, %v1964_v4  ;;  %3033 = vrot.lane.b32.xlu0 %v12647_v45, %s11458_s24 }
 0x6bd   :  { %10512 = vrot.lane.b32.xlu1 %v10506_v63, %s11457_s2  ;;  %v12656_v49 = vpop.f32.mrb[30].mxu1 }
 0x6be   :  { %v12658_v25 = vpop.f32.mrb[31].mxu1  ;;  %v10516_v39 = vpack.i.bf16 %v12656_v49, %v12647_v45 }
 0x6bf   :  { %v12666_v27 = vpack.c.bf16 %v12658_v25, %v12649_v32  ;;  %9463 = vmatmul.mubr.msk.f32.gmra.mrb[40].mxu1 %vm1592_vm2, %v1966_v59 }
 0x6c0   :  { %9465 = vmatprep.mubr.msk.f32.mxu1 %vm1592_vm2, %v1968_v47  ;;  %10517 = vrot.lane.b32.xlu0 %v10516_v39, %s11456_s3 }
 0x6c1   :  { %3031 = vrot.lane.b32.xlu1 %v12630_v35, %s11458_s24  ;;  %v12673_v53 = vpop.f32.mrb[32].mxu1 }
 0x6c2   :  { %v12675_v44 = vpop.f32.mrb[33].mxu1 }
 0x6c3   :  { %9466 = vmatmul.mubr.msk.f32.gmra.mrb[42].mxu1 %vm1592_vm2, %v1970_v40 }
 0x6c4   :  { %9552 = vmatprep.mubr.msk.f32.mxu1 %vm1592_vm2, %v1513_v33  ;;  %10522 = vrot.lane.b32.xlu0 %v10516_v39, %s11457_s2 }
 0x6c5   :  { %3035 = vrot.lane.b32.xlu1 %v12656_v49, %s11458_s24  ;;  %v12682_v54 = vpop.f32.mrb[34].mxu1 }
 0x6c6   :  { %v12684_v55 = vpop.f32.mrb[35].mxu1  ;;  %v10526_v59 = vpack.i.bf16 %v12682_v54, %v12673_v53 }
 0x6c7   :  { %v12692_v40 = vpack.c.bf16 %v12684_v55, %v12675_v44 }
 0x6c8   :  { %3037 = vrot.lane.b32.xlu0 %v12673_v53, %s11458_s24 }
 0x6c9   :  { %10527 = vrot.lane.b32.xlu1 %v10526_v59, %s11456_s3 }
 0x6cd   :  { %10532 = vrot.lane.b32.xlu1 %v10526_v59, %s11457_s2 }
 0x6d1   :  { %3039 = vrot.lane.b32.xlu1 %v12682_v54, %s11458_s24 }
 0x71c   :  { %v3026_v33 = vpop.permute.xlu0 %3025 }
 0x720   :  { %v3028_v63 = vpop.permute.xlu1 %3027 }
 0x722   :  { %v10498_v29 = vpop.permute.xlu0 %10497 }
 0x723   :  { %v10500_v24 = vunpack.i.h.bf16 %v10498_v29  ;;  %v10499_v17 = vunpack.i.l.bf16 %v10498_v29 }
 0x725   :  { %v10155_v13 = vpack.c.bf16 %v10500_v24, %v10499_v17 }
 0x726   :  { %v10503_v6 = vpop.permute.xlu0 %10502 }
 0x727   :  { %10157 = vmatprep.subr.msk.bf16.mxu1 %vm12546_vm3, %v10155_v13 }
 0x728   :  { %10160 = vmatpush3.bf16.xpose.msk.msra.mxu1 %vm12546_vm3, %v10155_v13 }
 0x72a   :  { %v3030_v4 = vpop.permute.xlu0 %3029 }
 0x72b   :  { %v10508_v39 = vpop.permute.xlu1 %10507 }
 0x72c   :  { %v10510_v47 = vunpack.i.h.bf16 %v10508_v39  ;;  %v10509_v59 = vunpack.i.l.bf16 %v10508_v39  ;;  %v10505_v39 = vunpack.i.h.bf16 %v10503_v6 }
 0x72e   :  { %v10161_v1 = vpack.c.bf16 %v10510_v47, %v10509_v59  ;;  %v3034_v9 = vpop.permute.xlu0 %3033  ;;  %v10504_v47 = vunpack.i.l.bf16 %v10503_v6 }
 0x72f   :  { %v10513_v61 = vpop.permute.xlu1 %10512 }
 0x730   :  { %10163 = vmatprep.subr.msk.bf16.mxu1 %vm12546_vm3, %v10161_v1  ;;  %v10195_v21 = vpack.c.bf16 %v10505_v39, %v10504_v47 }
 0x731   :  { %10166 = vmatpush3.bf16.xpose.msk.msra.mxu1 %vm12546_vm3, %v10161_v1  ;;  %v10515_v1 = vunpack.i.h.bf16 %v10513_v61 }
 0x732   :  { %v10518_v29 = vpop.permute.xlu0 %10517 }
 0x733   :  { %v3032_v24 = vpop.permute.xlu1 %3031  ;;  %v10520_v17 = vunpack.i.h.bf16 %v10518_v29  ;;  %v10519_v30 = vunpack.i.l.bf16 %v10518_v29 }
 0x735   :  { %v10167_v7 = vpack.c.bf16 %v10520_v17, %v10519_v30  ;;  %v10514_v30 = vunpack.i.l.bf16 %v10513_v61 }
 0x737   :  { %v3036_v5 = vpop.permute.xlu1 %3035  ;;  %10169 = vmatprep.subr.msk.bf16.mxu1 %vm12546_vm3, %v10167_v7  ;;  %v10201_v29 = vpack.c.bf16 %v10515_v1, %v10514_v30 }
 0x739   :  { %10172 = vmatpush3.bf16.xpose.msk.msra.mxu1 %vm12546_vm3, %v10167_v7  ;;  %v10523_v7 = vpop.permute.xlu0 %10522 }
 0x73b   :  { %v10528_v13 = vpop.permute.xlu1 %10527 }
 0x73c   :  { %v10530_v59 = vunpack.i.h.bf16 %v10528_v13  ;;  %v10529_v26 = vunpack.i.l.bf16 %v10528_v13 }
 0x73e   :  { %v10173_v15 = vpack.c.bf16 %v10530_v59, %v10529_v26  ;;  %v10524_v26 = vunpack.i.l.bf16 %v10523_v7 }
 0x740   :  { %10175 = vmatprep.subr.msk.bf16.mxu1 %vm12546_vm3, %v10173_v15 }
 0x741   :  { %10178 = vmatpush3.bf16.xpose.msk.msra.mxu1 %vm12546_vm3, %v10173_v15  ;;  %v10525_v15 = vunpack.i.h.bf16 %v10523_v7 }
 0x742   :  { %10197 = vmatprep.subr.msk.bf16.mxu1 %vm12546_vm3, %v10195_v21 }
 0x743   :  { %v10207_v61 = vpack.c.bf16 %v10525_v15, %v10524_v26 }
 0x748   :  { %9553 = vmatmul.mubr.msk.f32.vlgmr.msra.gmra.mrb[44].mxu1 %vm1592_vm2, %v12603_v52  ;;  %v10533_v52 = vpop.permute.xlu1 %10532 }
 0x749   :  { %9555 = vmatprep.mubr.msk.f32.mxu1 %vm1592_vm2, %v12624_v56  ;;  %10200 = vmatpush3.bf16.xpose.msk.msra.mxu1 %vm12546_vm3, %v10195_v21  ;;  %v10535_v21 = vunpack.i.h.bf16 %v10533_v52  ;;  %v10534_v56 = vunpack.i.l.bf16 %v10533_v52 }
 0x74a   :  { %10203 = vmatprep.subr.msk.bf16.mxu1 %vm12546_vm3, %v10201_v29 }
 0x74c   :  { %9556 = vmatmul.mubr.msk.f32.gmra.mrb[46].mxu1 %vm1592_vm2, %v12630_v35  ;;  %v10213_v35 = vpack.c.bf16 %v10535_v21, %v10534_v56 }
 0x74d   :  { %9558 = vmatprep.mubr.msk.f32.mxu1 %vm1592_vm2, %v12647_v45  ;;  %v3038_v45 = vpop.permute.xlu0 %3037 }
 0x750   :  { %9559 = vmatmul.mubr.msk.f32.gmra.mrb[48].mxu1 %vm1592_vm2, %v12656_v49  ;;  %v3040_v49 = vpop.permute.xlu1 %3039 }
 0x751   :  { %9561 = vmatprep.mubr.msk.f32.mxu1 %vm1592_vm2, %v12673_v53  ;;  %10206 = vmatpush3.bf16.xpose.msk.msra.mxu1 %vm12546_vm3, %v10201_v29 }
 0x752   :  { %10209 = vmatprep.subr.msk.bf16.mxu1 %vm12546_vm3, %v10207_v61 }
 0x754   :  { %9562 = vmatmul.mubr.msk.f32.gmra.mrb[50].mxu1 %vm1592_vm2, %v12682_v54 }
 0x755   :  { %9608 = vmatprep.mubr.msk.f32.mxu1 %vm1592_vm2, %v3026_v33 }
 0x759   :  { %10212 = vmatpush3.bf16.xpose.msk.msra.mxu1 %vm12546_vm3, %v10207_v61 }
 0x75a   :  { %10215 = vmatprep.subr.msk.bf16.mxu1 %vm12546_vm3, %v10213_v35 }
 0x761   :  { %10218 = vmatpush3.bf16.xpose.msk.msra.mxu1 %vm12546_vm3, %v10213_v35 }
 0x768   :  { %9609 = vmatmul.mubr.msk.f32.vlgmr.msra.gmra.mrb[52].mxu1 %vm1592_vm2, %v3028_v63 }
 0x769   :  { %9611 = vmatprep.mubr.msk.f32.mxu1 %vm1592_vm2, %v3030_v4 }
 0x76c   :  { %9612 = vmatmul.mubr.msk.f32.gmra.mrb[54].mxu1 %vm1592_vm2, %v3032_v24 }
 0x76d   :  { %9614 = vmatprep.mubr.msk.f32.mxu1 %vm1592_vm2, %v3034_v9 }
 0x770   :  { %9615 = vmatmul.mubr.msk.f32.gmra.mrb[56].mxu1 %vm1592_vm2, %v3036_v5 }
 0x771   :  { %9617 = vmatprep.mubr.msk.f32.mxu1 %vm1592_vm2, %v3038_v45 }
 0x774   :  { %9618 = vmatmul.mubr.msk.f32.gmra.mrb[58].mxu1 %vm1592_vm2, %v3040_v49 }
 0x775   :  { %v9402_v53 = vpop.f32.mrb[20].mxu0 }
 0x776   :  { %v12754_v54 = vmul.f32 0.17677669, %v9402_v53  ;;  %v1691_v46 = vpop.f32.mrb[21].mxu0 }
 0x777   :  { %v12762_v59 = vmul.f32 0.17677669, %v1691_v46 }
 0x778   :  { %v1741_v33 = vsel %vm267_vm1, %v12754_v54, -inf }
 0x779   :  { %1742 = vmax.xlane.f32.xlu1 %v1741_v33  ;;  %v9405_v6 = vpop.f32.mrb[22].mxu0  ;;  %v1738_v61 = vsel %vm267_vm1, %v12762_v59, -inf }
 0x77a   :  { %v1701_v63 = vpop.f32.mrb[23].mxu0  ;;  %v12770_v26 = vmul.f32 0.17677669, %v9405_v6 }
 0x77c   :  { %v1747_v49 = vsel %vm267_vm1, %v12770_v26, -inf }
 0x77d   :  { %v9408_v4 = vpop.f32.mrb[24].mxu0 }
 0x77e   :  { %v1711_v9 = vpop.f32.mrb[25].mxu0 }
 0x77f   :  { %v12784_v46 = vmul.f32 0.17677669, %v1711_v9 }
 0x781   :  { %v9411_v24 = vpop.f32.mrb[26].mxu0 }
 0x782   :  { %v1721_v17 = vpop.f32.mrb[27].mxu0 }
 0x78a   :  { %v9458_v5 = vpop.f32.mrb[36].mxu1 }
 0x78b   :  { %v12758_v13 = vmul.f32 0.17677669, %v9458_v5  ;;  %v2085_v39 = vpop.f32.mrb[37].mxu1  ;;  %v12786_v5 = vmul.f32 0.17677669, %v1701_v63 }
 0x78c   :  { %v12760_v47 = vmul.f32 0.17677669, %v2085_v39 }
 0x78d   :  { %v2135_v1 = vsel %vm267_vm1, %v12758_v13, -inf  ;;  %v1744_v9 = vsel %vm267_vm1, %v12786_v5, -inf }
 0x78e   :  { %2136 = vmax.xlane.f32.xlu0 %v2135_v1  ;;  %v9461_v30 = vpop.f32.mrb[38].mxu1  ;;  %v2132_v29 = vsel %vm267_vm1, %v12760_v47, -inf  ;;  %v12790_v1 = vmul.f32 0.17677669, %v1721_v17 }
 0x78f   :  { %v2095_v7 = vpop.f32.mrb[39].mxu1  ;;  %2133 = vmax.xlane.f32.xlu1 %v2132_v29  ;;  %v12778_v45 = vmul.f32 0.17677669, %v9461_v30  ;;  %v1750_v30 = vsel %vm267_vm1, %v12784_v46, -inf  ;;  %v12794_v29 = vmul.f32 0.17677669, %v9408_v4 }
 0x790   :  { %v12768_v15 = vmul.f32 0.17677669, %v2095_v7  ;;  %v1756_v63 = vsel %vm267_vm1, %v12790_v1, -inf }
 0x791   :  { %v2141_v39 = vsel %vm267_vm1, %v12778_v45, -inf  ;;  %v1753_v17 = vsel %vm267_vm1, %v12794_v29, -inf }
 0x792   :  { %v9464_v52 = vpop.f32.mrb[40].mxu1  ;;  %1739 = vmax.xlane.f32.xlu0 %v1738_v61  ;;  %v2138_v21 = vsel %vm267_vm1, %v12768_v15, -inf  ;;  %v12804_v61 = vmul.f32 0.17677669, %v9411_v24  ;;  %v15819_v24 = vpack.i.bf16 %v12496_v37, %v12492_v10 }
 0x793   :  { %v12776_v56 = vmul.f32 0.17677669, %v9464_v52  ;;  %v2105_v35 = vpop.f32.mrb[41].mxu1  ;;  %2139 = vmax.xlane.f32.xlu1 %v2138_v21 }
 0x794   :  { %v12800_v7 = vmul.f32 0.17677669, %v2105_v35  ;;  %v1759_v21 = vsel %vm267_vm1, %v12804_v61, -inf }
 0x795   :  { %v2147_v53 = vsel %vm267_vm1, %v12776_v56, -inf }
 0x796   :  { %v9467_v33 = vpop.f32.mrb[42].mxu1  ;;  %1748 = vmax.xlane.f32.xlu0 %v1747_v49  ;;  %v2144_v4 = vsel %vm267_vm1, %v12800_v7, -inf }
 0x797   :  { %v2115_v6 = vpop.f32.mrb[43].mxu1  ;;  %2148 = vmax.xlane.f32.xlu1 %v2147_v53  ;;  %v12808_v52 = vmul.f32 0.17677669, %v9467_v33  ;;  %v15820_v33 = vpack.i.bf16 %v12514_v50, %v12509_v57 }
 0x798   :  { %v12812_v49 = vmul.f32 0.17677669, %v2115_v6  ;;  %v15821_v6 = vpack.i.bf16 %v12479_v16, %v12475_v31 }
 0x799   :  { %v2153_v35 = vsel %vm267_vm1, %v12808_v52, -inf }
 0x79a   :  { %2142 = vmax.xlane.f32.xlu0 %v2141_v39  ;;  %v2150_v53 = vsel %vm267_vm1, %v12812_v49, -inf }
 0x79b   :  { %1751 = vmax.xlane.f32.xlu1 %v1750_v30 }
 0x79e   :  { %1745 = vmax.xlane.f32.xlu0 %v1744_v9 }
 0x79f   :  { %1757 = vmax.xlane.f32.xlu1 %v1756_v63 }
 0x7a2   :  { %1754 = vmax.xlane.f32.xlu0 %v1753_v17 }
 0x7a6   :  { %2145 = vmax.xlane.f32.xlu0 %v2144_v4 }
 0x7aa   :  { %1760 = vmax.xlane.f32.xlu0 %v1759_v21 }
 0x7ae   :  { %2154 = vmax.xlane.f32.xlu0 %v2153_v35 }
 0x7b0   :  { %10542 = vrot.lane.b32.xlu1 %v15819_v24, %s11458_s24 }
 0x7b2   :  { %2151 = vmax.xlane.f32.xlu0 %v2150_v53 }
 0x7b4   :  { %10547 = vrot.lane.b32.xlu1 %v15820_v33, %s11458_s24 }
 0x7c8   :  { %10537 = vrot.lane.b32.xlu0 %v15821_v6, %s11458_s24 }
 0x806   :  { %v1743_v39 = vpop.xlane.xlu1 %1742 }
 0x807   :  { %v1763_v17 = vsub.f32 %v12754_v54, %v1743_v39 }
 0x809   :  { %v1772_v54 = vmul.f32 1.442695, %v1763_v17 }
 0x81b   :  { %v12830_v30 = vpop.xlane.xlu0 %2136  ;;  %v9554_v9 = vpop.f32.mrb[44].mxu1 }
 0x81c   :  { %v12832_v10 = vmul.f32 0.17677669, %v9554_v9  ;;  %v2761_v37 = vpop.f32.mrb[45].mxu1  ;;  %v12834_v63 = vpop.xlane.xlu1 %2133 }
 0x81d   :  { %v12837_v4 = vmul.f32 0.17677669, %v2761_v37 }
 0x81e   :  { %v2811_v57 = vsel %vm267_vm1, %v12832_v10, -inf }
 0x81f   :  { %v9557_v50 = vpop.f32.mrb[46].mxu1  ;;  %v1740_v21 = vpop.xlane.xlu0 %1739  ;;  %2812 = vmax.xlane.f32.xlu1 %v2811_v57  ;;  %v2808_v31 = vsel %vm267_vm1, %v12837_v4, -inf }
 0x820   :  { %v12843_v16 = vmul.f32 0.17677669, %v9557_v50  ;;  %v1762_v35 = vsub.f32 %v12762_v59, %v1740_v21  ;;  %v2771_v24 = vpop.f32.mrb[47].mxu1  ;;  %v12846_v53 = vpop.xlane.xlu1 %2139  ;;  %2809 = vmax.xlane.f32.xlu0 %v2808_v31 }
 0x821   :  { %v12848_v33 = vmul.f32 0.17677669, %v2771_v24 }
 0x822   :  { %v1770_v6 = vmul.f32 1.442695, %v1762_v35  ;;  %v2817_v39 = vsel %vm267_vm1, %v12843_v16, -inf }
 0x823   :  { %v9560_v9 = vpop.f32.mrb[48].mxu1  ;;  %v1749_v37 = vpop.xlane.xlu0 %1748  ;;  %2818 = vmax.xlane.f32.xlu1 %v2817_v39  ;;  %v2814_v57 = vsel %vm267_vm1, %v12848_v33, -inf }
 0x824   :  { %10671 = vpow2.f32 %v1770_v6  ;;  %v12854_v50 = vmul.f32 0.17677669, %v9560_v9  ;;  %v2781_v59 = vpop.f32.mrb[49].mxu1  ;;  %v12856_v21 = vpop.xlane.xlu1 %2148  ;;  %2815 = vmax.xlane.f32.xlu0 %v2814_v57  ;;  %v1765_v12 = vsub.f32 %v12770_v26, %v1749_v37 }
 0x825   :  { %10673 = vpow2.f32 %v1772_v54  ;;  %v12858_v17 = vmul.f32 0.17677669, %v2781_v59 }
 0x826   :  { %v2823_v31 = vsel %vm267_vm1, %v12854_v50, -inf  ;;  %v1776_v26 = vmul.f32 1.442695, %v1765_v12  ;;  %v2156_v12 = vsub.f32 %v12760_v47, %v12834_v63 }
 0x827   :  { %v9563_v35 = vpop.f32.mrb[50].mxu1  ;;  %v2143_v24 = vpop.xlane.xlu0 %2142  ;;  %2824 = vmax.xlane.f32.xlu1 %v2823_v31  ;;  %v2820_v39 = vsel %vm267_vm1, %v12858_v17, -inf }
 0x828   :  { %v12864_v18 = vmul.f32 0.17677669, %v9563_v35  ;;  %v2791_v6 = vpop.f32.mrb[51].mxu1  ;;  %v1752_v9 = vpop.xlane.xlu1 %1751  ;;  %2821 = vmax.xlane.f32.xlu0 %v2820_v39  ;;  %v2157_v39 = vsub.f32 %v12758_v13, %v12830_v30  ;;  %v2164_v30 = vmul.f32 1.442695, %v2156_v12 }
 0x829   :  { %v12867_v57 = vmul.f32 0.17677669, %v2791_v6  ;;  %v1766_v54 = vsub.f32 %v12784_v46, %v1752_v9 }
 0x82a   :  { %v2829_v59 = vsel %vm267_vm1, %v12864_v18, -inf }
 0x82b   :  { %v1746_v3 = vpop.xlane.xlu0 %1745  ;;  %2830 = vmax.xlane.f32.xlu1 %v2829_v59  ;;  %v2826_v31 = vsel %vm267_vm1, %v12867_v57, -inf  ;;  %v1778_v6 = vmul.f32 1.442695, %v1766_v54  ;;  %v2159_v54 = vsub.f32 %v12778_v45, %v2143_v24 }
 0x82c   :  { %v1764_v35 = vsub.f32 %v12786_v5, %v1746_v3  ;;  %2827 = vmax.xlane.f32.xlu0 %v2826_v31  ;;  %v1758_v51 = vpop.xlane.xlu1 %1757  ;;  %v2166_v5 = vmul.f32 1.442695, %v2157_v39 }
 0x82d   :  { %v1768_v9 = vsub.f32 %v12790_v1, %v1758_v51  ;;  %v2170_v47 = vmul.f32 1.442695, %v2159_v54 }
 0x82e   :  { %v12877_v37 = vpop.eup %10671  ;;  %v1774_v46 = vmul.f32 1.442695, %v1764_v35 }
 0x82f   :  { %v10674_v2 = vpop.eup %10673  ;;  %9428 = vmatprep.mubr.msk.f32.mxu0 %vm267_vm1, %v12877_v37  ;;  %v1755_v59 = vpop.xlane.xlu0 %1754  ;;  %v1782_v13 = vmul.f32 1.442695, %v1768_v9 }
 0x830   :  { %10675 = vpow2.f32 %v1774_v46  ;;  %v1767_v3 = vsub.f32 %v12794_v29, %v1755_v59  ;;  %9429 = vmatmul.mubr.msk.f32.vlgmr.msra.gmra.mrb[28].mxu0 %vm267_vm1, %v10674_v2  ;;  %v2158_v29 = vsub.f32 %v12768_v15, %v12846_v53  ;;  %v2161_v53 = vsub.f32 %v12776_v56, %v12856_v21  ;;  %v10543_v59 = vpop.permute.xlu1 %10542 }
 0x831   :  { %10677 = vpow2.f32 %v1776_v26  ;;  %10126 = vmatpush3.bf16.msra.mxu0 %v12622_v62  ;;  %v1789_v54 = vsel %vm267_vm1, %v10674_v2, 0.0 }
 0x832   :  { %10679 = vpow2.f32 %v1778_v6  ;;  %v1780_v51 = vmul.f32 1.442695, %v1767_v3  ;;  %v2168_v62 = vmul.f32 1.442695, %v2158_v29 }
 0x833   :  { %v2146_v1 = vpop.xlane.xlu0 %2145 }
 0x834   :  { %10681 = vpow2.f32 %v1780_v51  ;;  %v2160_v3 = vsub.f32 %v12800_v7, %v2146_v1  ;;  %v2174_v7 = vmul.f32 1.442695, %v2161_v53  ;;  %v10548_v53 = vpop.permute.xlu1 %10547 }
 0x835   :  { %10683 = vpow2.f32 %v2166_v5 }
 0x836   :  { %10685 = vpow2.f32 %v1782_v13  ;;  %v2172_v1 = vmul.f32 1.442695, %v2160_v3 }
 0x837   :  { %v1761_v31 = vpop.xlane.xlu0 %1760  ;;  %10687 = vpow2.f32 %v2164_v30 }
 0x838   :  { %v1769_v35 = vsub.f32 %v12804_v61, %v1761_v31 }
 0x83a   :  { %v12891_v63 = vpop.eup %10675  ;;  %v1784_v39 = vmul.f32 1.442695, %v1769_v35 }
 0x83b   :  { %v12893_v26 = vpop.eup %10677  ;;  %9431 = vmatprep.mubr.msk.f32.mxu0 %vm267_vm1, %v12891_v63  ;;  %v9610_v6 = vpop.f32.mrb[52].mxu1 }
 0x83c   :  { %v2155_v45 = vpop.xlane.xlu0 %2154  ;;  %v12897_v24 = vpop.eup %10679  ;;  %10689 = vpow2.f32 %v1784_v39  ;;  %v12899_v15 = vmul.f32 0.17677669, %v9610_v6  ;;  %9432 = vmatmul.mubr.msk.f32.gmra.mrb[30].mxu0 %vm267_vm1, %v12893_v26  ;;  %v10544_v39 = vunpack.i.l.bf16 %v10543_v59 }
 0x83d   :  { %v3155_v61 = vpop.f32.mrb[53].mxu1  ;;  %10691 = vpow2.f32 %v2170_v47  ;;  %9434 = vmatprep.mubr.msk.f32.mxu0 %vm267_vm1, %v12897_v24  ;;  %v2163_v3 = vsub.f32 %v12808_v52, %v2155_v45 }
 0x83e   :  { %v12905_v46 = vmul.f32 0.17677669, %v3155_v61  ;;  %v12909_v9 = vpop.eup %10681  ;;  %10693 = vpow2.f32 %v2168_v62  ;;  %v3205_v5 = vsel %vm267_vm1, %v12899_v15, -inf  ;;  %v10545_v62 = vunpack.i.h.bf16 %v10543_v59 }
 0x83f   :  { %v12914_v12 = vpop.eup %10683  ;;  %v12916_v13 = vpop.f32.mrb[54].mxu1  ;;  %3206 = vmax.xlane.f32.xlu1 %v3205_v5  ;;  %10695 = vpow2.f32 %v2174_v7  ;;  %v1786_v59 = vsel %vm267_vm1, %v12877_v37, 0.0 }
 0x840   :  { %v2152_v56 = vpop.xlane.xlu0 %2151  ;;  %v3202_v21 = vsel %vm267_vm1, %v12905_v46, -inf  ;;  %v12920_v51 = vpop.eup %10685  ;;  %9435 = vmatmul.mubr.msk.f32.gmra.mrb[32].mxu0 %vm267_vm1, %v12909_v9  ;;  %v2183_v47 = vsel %vm267_vm1, %v12914_v12, 0.0  ;;  %10697 = vpow2.f32 %v2172_v1  ;;  %v10131_v45 = vpack.c.bf16 %v10545_v62, %v10544_v39 }
 0x841   :  { %v12924_v30 = vpop.f32.mrb[55].mxu1  ;;  %3203 = vmax.xlane.f32.xlu0 %v3202_v21  ;;  %9437 = vmatprep.mubr.msk.f32.mxu0 %vm267_vm1, %v12920_v51  ;;  %v10688_v29 = vpop.eup %10687  ;;  %v2162_v21 = vsub.f32 %v12812_v49, %v2152_v56  ;;  %v2178_v49 = vmul.f32 1.442695, %v2163_v3  ;;  %v1795_v62 = vsel %vm267_vm1, %v12893_v26, 0.0  ;;  %v1801_v26 = vsel %vm267_vm1, %v12909_v9, 0.0 }
 0x843   :  { %v12929_v31 = vpop.f32.mrb[56].mxu1  ;;  %1790 = vadd.xlane.f32.xlu1 %v1789_v54  ;;  %v2180_v54 = vsel %vm267_vm1, %v10688_v29, 0.0  ;;  %v2176_v56 = vmul.f32 1.442695, %v2162_v21  ;;  %10699 = vpow2.f32 %v2178_v49  ;;  %v15822_v49 = vpack.i.bf16 %v12607_v11, %v12595_v14  ;;  %v1566_v14 = vld [vmem:[#allocation8 + $0x30] sm:$0xff]  ;;  %v1567_v11 = vld [vmem:[#allocation8 + $0x38] sm:$0xff] }
 0x844   :  { %v10538_v35 = vpop.permute.xlu0 %10537  ;;  %v12933_v5 = vpop.f32.mrb[57].mxu1 }
 0x845   :  { %v10540_v6 = vunpack.i.h.bf16 %v10538_v35  ;;  %v10539_v61 = vunpack.i.l.bf16 %v10538_v35  ;;  %2184 = vadd.xlane.f32.xlu0 %v2183_v47  ;;  %v10550_v35 = vunpack.i.h.bf16 %v10548_v53  ;;  %v10549_v47 = vunpack.i.l.bf16 %v10548_v53 }
 0x846   :  { %v10690_v2 = vpop.eup %10689  ;;  %10701 = vpow2.f32 %v2176_v56  ;;  %v12973_v9 = vmul.f32 0.17677669, %v12933_v5  ;;  %v15823_v56 = vpack.i.bf16 %v12658_v25, %v12649_v32  ;;  %v13018_v32 = vpack.c.bf16 %v1567_v11, %v1566_v14  ;;  %v1560_v25 = vld [vmem:[#allocation8] sm:$0xff] }
 0x847   :  { %v10127_v38 = vpack.c.bf16 %v10540_v6, %v10539_v61  ;;  %v10692_v23 = vpop.eup %10691  ;;  %v12938_v41 = vpop.f32.mrb[58].mxu1  ;;  %2181 = vadd.xlane.f32.xlu1 %v2180_v54  ;;  %9438 = vmatmul.mubr.msk.f32.gmra.mrb[34].mxu0 %vm267_vm1, %v10690_v2  ;;  %v10135_v37 = vpack.c.bf16 %v10550_v35, %v10549_v47 }
 0x848   :  { %v10694_v7 = vpop.eup %10693  ;;  %v3185_v52 = vpop.f32.mrb[59].mxu1  ;;  %9484 = vmatprep.mubr.msk.f32.mxu0 %vm267_vm1, %v10688_v29  ;;  %v2189_v1 = vsel %vm267_vm1, %v10692_v23, 0.0  ;;  %v3214_v5 = vsel %vm267_vm1, %v12973_v9, -inf }
 0x849   :  { %1787 = vadd.xlane.f32.xlu0 %v1786_v59  ;;  %10128 = vmatprep.subr.bf16.mxu0 %v10127_v38  ;;  %v2186_v6 = vsel %vm267_vm1, %v10694_v7, 0.0  ;;  %v10696_v39 = vpop.eup %10695 }
 0x84a   :  { %10130 = vmatpush3.bf16.msra.mxu0 %v10127_v38  ;;  %v1792_v38 = vsel %vm267_vm1, %v12891_v63, 0.0  ;;  %v10698_v29 = vpop.eup %10697  ;;  %v2195_v61 = vsel %vm267_vm1, %v10696_v39, 0.0  ;;  %v1798_v63 = vsel %vm267_vm1, %v12897_v24, 0.0  ;;  %v12969_v24 = vmul.f32 0.17677669, %v12916_v13 }
 0x84b   :  { %10132 = vmatprep.subr.bf16.mxu0 %v10131_v45  ;;  %2190 = vadd.xlane.f32.xlu1 %v2189_v1  ;;  %v2192_v53 = vsel %vm267_vm1, %v10698_v29, 0.0  ;;  %v12983_v13 = vmul.f32 0.17677669, %v3185_v52  ;;  %v1804_v52 = vsel %vm267_vm1, %v12920_v51, 0.0  ;;  %v15825_v51 = vpack.i.bf16 %v12632_v20, %v12626_v34  ;;  %v1564_v1 = vld [vmem:[#allocation8 + $0x20] sm:$0xff] }
 0x84c   :  { %v3211_v35 = vsel %vm267_vm1, %v12969_v24, -inf }
 0x84d   :  { %2187 = vadd.xlane.f32.xlu0 %v2186_v6  ;;  %v10700_v3 = vpop.eup %10699  ;;  %v3220_v47 = vsel %vm267_vm1, %v12983_v13, -inf  ;;  %v1565_v6 = vld [vmem:[#allocation8 + $0x28] sm:$0xff] }
 0x84e   :  { %10134 = vmatpush3.bf16.msra.mxu0 %v10131_v45  ;;  %v2201_v54 = vsel %vm267_vm1, %v10700_v3, 0.0 }
 0x84f   :  { %10136 = vmatprep.subr.bf16.mxu0 %v10135_v37  ;;  %1796 = vadd.xlane.f32.xlu1 %v1795_v62 }
 0x850   :  { %v10702_v21 = vpop.eup %10701 }
 0x851   :  { %1793 = vadd.xlane.f32.xlu0 %v1792_v38  ;;  %v2198_v59 = vsel %vm267_vm1, %v10702_v21, 0.0 }
 0x852   :  { %10138 = vmatpush3.bf16.msra.mxu0 %v10135_v37  ;;  %v13014_v37 = vpack.c.bf16 %v1565_v6, %v1564_v1 }
 0x853   :  { %2196 = vadd.xlane.f32.xlu1 %v2195_v61 }
 0x854   :  { %10140 = vmatprep.subr.bf16.mxu0 %v13014_v37 }
 0x855   :  { %2193 = vadd.xlane.f32.xlu0 %v2192_v53  ;;  %9485 = vmatmul.mubr.msk.f32.vlgmr.msra.gmra.mrb[36].mxu0 %vm267_vm1, %v12914_v12  ;;  %v12963_v12 = vmul.f32 0.17677669, %v12924_v30 }
 0x856   :  { %9487 = vmatprep.mubr.msk.f32.mxu0 %vm267_vm1, %v10694_v7  ;;  %v12979_v7 = vmul.f32 0.17677669, %v12929_v31  ;;  %v12992_v31 = vmul.f32 0.17677669, %v12938_v41  ;;  %v15824_v41 = vpack.i.bf16 %v12684_v55, %v12675_v44  ;;  %10142 = vmatpush3.bf16.msra.mxu0 %v13014_v37  ;;  %v1561_v44 = vld [vmem:[#allocation8 + $0x8] sm:$0xff] }
 0x857   :  { %1802 = vadd.xlane.f32.xlu1 %v1801_v26  ;;  %v3208_v30 = vsel %vm267_vm1, %v12963_v12, -inf  ;;  %10144 = vmatprep.subr.bf16.mxu0 %v13018_v32  ;;  %v13022_v34 = vpack.c.bf16 %v1561_v44, %v1560_v25 }
 0x858   :  { %v3223_v45 = vsel %vm267_vm1, %v12992_v31, -inf }
 0x859   :  { %1799 = vadd.xlane.f32.xlu0 %v1798_v63  ;;  %9488 = vmatmul.mubr.msk.f32.gmra.mrb[38].mxu0 %vm267_vm1, %v10692_v23  ;;  %v1807_v23 = vsel %vm267_vm1, %v10690_v2, 0.0  ;;  %v3217_v2 = vsel %vm267_vm1, %v12979_v7, -inf }
 0x85a   :  { %9490 = vmatprep.mubr.msk.f32.mxu0 %vm267_vm1, %v10698_v29  ;;  %10146 = vmatpush3.bf16.msra.mxu0 %v13018_v32 }
 0x85b   :  { %2202 = vadd.xlane.f32.xlu1 %v2201_v54  ;;  %10148 = vmatprep.subr.bf16.mxu0 %v13022_v34 }
 0x85d   :  { %2199 = vadd.xlane.f32.xlu0 %v2198_v59  ;;  %9491 = vmatmul.mubr.msk.f32.gmra.mrb[40].mxu0 %vm267_vm1, %v10696_v39 }
 0x85e   :  { %9493 = vmatprep.mubr.msk.f32.mxu0 %vm267_vm1, %v10702_v21 }
 0x85f   :  { %1808 = vadd.xlane.f32.xlu1 %v1807_v23 }
 0x861   :  { %3209 = vmax.xlane.f32.xlu0 %v3208_v30  ;;  %9494 = vmatmul.mubr.msk.f32.gmra.mrb[42].mxu0 %vm267_vm1, %v10700_v3 }
 0x863   :  { %3212 = vmax.xlane.f32.xlu1 %v3211_v35 }
 0x865   :  { %3215 = vmax.xlane.f32.xlu0 %v3214_v5 }
 0x867   :  { %3218 = vmax.xlane.f32.xlu1 %v3217_v2 }
 0x869   :  { %3221 = vmax.xlane.f32.xlu0 %v3220_v47 }
 0x86d   :  { %1805 = vadd.xlane.f32.xlu0 %v1804_v52 }
 0x871   :  { %3224 = vmax.xlane.f32.xlu0 %v3223_v45 }
 0x878   :  { %10552 = vrot.lane.b32.xlu1 %v15822_v49, %s11458_s24 }
 0x87c   :  { %10562 = vrot.lane.b32.xlu1 %v15823_v56, %s11458_s24 }
 0x880   :  { %10567 = vrot.lane.b32.xlu1 %v15824_v41, %s11458_s24 }
 0x887   :  { %10557 = vrot.lane.b32.xlu0 %v15825_v51, %s11458_s24 }
 0x8ac   :  { %v13025_v20 = vpop.xlane.xlu1 %2812 }
 0x8ad   :  { %v2810_v55 = vpop.xlane.xlu0 %2809 }
 0x8b0   :  { %v13027_v62 = vpop.xlane.xlu1 %2818 }
 0x8b1   :  { %v2816_v39 = vpop.xlane.xlu0 %2815 }
 0x8b4   :  { %v13029_v38 = vpop.xlane.xlu1 %2824 }
 0x8b5   :  { %v13031_v29 = vpop.xlane.xlu0 %2821 }
 0x8b8   :  { %v13033_v61 = vpop.xlane.xlu1 %2830 }
 0x8b9   :  { %v13035_v53 = vpop.xlane.xlu0 %2827 }
 0x8cc   :  { %v3207_v26 = vpop.xlane.xlu1 %3206 }
 0x8cd   :  { %v3227_v3 = vsub.f32 %v12899_v15, %v3207_v26 }
 0x8ce   :  { %v3204_v63 = vpop.xlane.xlu0 %3203 }
 0x8cf   :  { %v3226_v21 = vsub.f32 %v12905_v46, %v3204_v63  ;;  %v3236_v54 = vmul.f32 1.442695, %v3227_v3 }
 0x8d0   :  { %v13039_v23 = vpop.xlane.xlu1 %1790 }
 0x8d1   :  { %v3234_v59 = vmul.f32 1.442695, %v3226_v21  ;;  %10703 = vpow2.f32 %v3236_v54 }
 0x8d2   :  { %v13041_v30 = vpop.xlane.xlu0 %2184 }
 0x8d3   :  { %10705 = vpow2.f32 %v3234_v59 }
 0x8d4   :  { %v13043_v35 = vpop.xlane.xlu1 %2181 }
 0x8d6   :  { %v13045_v5 = vpop.xlane.xlu0 %1787 }
 0x8d8   :  { %v13047_v2 = vpop.xlane.xlu1 %2190 }
 0x8da   :  { %v13049_v47 = vpop.xlane.xlu0 %2187 }
 0x8db   :  { %v13051_v15 = vpop.eup %10703 }
 0x8dc   :  { %v13055_v46 = vpop.xlane.xlu1 %1796  ;;  %v3253_v45 = vsel %vm267_vm1, %v13051_v15, 0.0 }
 0x8dd   :  { %v13053_v52 = vpop.eup %10705  ;;  %3254 = vadd.xlane.f32.xlu0 %v3253_v45 }
 0x8de   :  { %v13059_v49 = vpop.xlane.xlu0 %1793  ;;  %v3250_v56 = vsel %vm267_vm1, %v13053_v52, 0.0 }
 0x8df   :  { %3251 = vadd.xlane.f32.xlu1 %v3250_v56  ;;  %v2832_v56 = vsub.f32 %v12837_v4, %v2810_v55  ;;  %v2833_v4 = vsub.f32 %v12832_v10, %v13025_v20  ;;  %v2835_v10 = vsub.f32 %v12843_v16, %v13027_v62 }
 0x8e0   :  { %v13063_v41 = vpop.xlane.xlu1 %2196 }
 0x8e1   :  { %v2846_v16 = vmul.f32 1.442695, %v2835_v10 }
 0x8e2   :  { %v13065_v51 = vpop.xlane.xlu0 %2193 }
 0x8e4   :  { %v13067_v1 = vpop.xlane.xlu1 %1802 }
 0x8e6   :  { %v13069_v6 = vpop.xlane.xlu0 %1799 }
 0x8e8   :  { %v13071_v14 = vpop.xlane.xlu1 %2202 }
 0x8ea   :  { %v13073_v11 = vpop.xlane.xlu0 %2199 }
 0x8ec   :  { %v13075_v25 = vpop.xlane.xlu1 %1808 }
 0x8ee   :  { %v3210_v44 = vpop.xlane.xlu0 %3209 }
 0x8ef   :  { %v3228_v26 = vsub.f32 %v12963_v12, %v3210_v44  ;;  %v2834_v44 = vsub.f32 %v12848_v33, %v2816_v39 }
 0x8f0   :  { %v3213_v63 = vpop.xlane.xlu1 %3212 }
 0x8f1   :  { %v3238_v3 = vmul.f32 1.442695, %v3228_v26  ;;  %v3229_v21 = vsub.f32 %v12969_v24, %v3213_v63  ;;  %v2840_v24 = vmul.f32 1.442695, %v2832_v56 }
 0x8f2   :  { %v3216_v54 = vpop.xlane.xlu0 %3215 }
 0x8f3   :  { %10707 = vpow2.f32 %v3238_v3  ;;  %v3230_v59 = vsub.f32 %v12973_v9, %v3216_v54  ;;  %v3240_v45 = vmul.f32 1.442695, %v3229_v21  ;;  %v2844_v9 = vmul.f32 1.442695, %v2834_v44 }
 0x8f4   :  { %v3219_v19 = vpop.xlane.xlu1 %3218 }
 0x8f5   :  { %v3242_v42 = vmul.f32 1.442695, %v3230_v59  ;;  %10709 = vpow2.f32 %v3240_v45  ;;  %v3231_v0 = vsub.f32 %v12979_v7, %v3219_v19  ;;  %v2836_v19 = vsub.f32 %v12858_v17, %v13031_v29 }
 0x8f6   :  { %v3222_v8 = vpop.xlane.xlu0 %3221  ;;  %v2842_v7 = vmul.f32 1.442695, %v2833_v4  ;;  %v2838_v17 = vsub.f32 %v12867_v57, %v13035_v53  ;;  %v2837_v57 = vsub.f32 %v12854_v50, %v13029_v38 }
 0x8f7   :  { %10711 = vpow2.f32 %v3242_v42  ;;  %v3232_v12 = vsub.f32 %v12983_v13, %v3222_v8  ;;  %v3244_v26 = vmul.f32 1.442695, %v3231_v0  ;;  %v2848_v20 = vmul.f32 1.442695, %v2836_v19 }
 0x8f8   :  { %v2852_v53 = vmul.f32 1.442695, %v2838_v17  ;;  %v2850_v44 = vmul.f32 1.442695, %v2837_v57 }
 0x8f9   :  { %v3246_v63 = vmul.f32 1.442695, %v3232_v12  ;;  %10713 = vpow2.f32 %v3244_v26  ;;  %v2839_v26 = vsub.f32 %v12864_v18, %v13033_v61 }
 0x8fa   :  { %v13084_v3 = vpop.xlane.xlu0 %1805 }
 0x8fb   :  { %10715 = vpow2.f32 %v3246_v63  ;;  %v2854_v63 = vmul.f32 1.442695, %v2839_v26  ;;  %v1562_v26 = vld [vmem:[#allocation8 + $0x10] sm:$0xff] }
 0x8fc   :  { %10717 = vpow2.f32 %v2840_v24 }
 0x8fd   :  { %v13088_v55 = vpop.eup %10707  ;;  %10719 = vpow2.f32 %v2844_v9 }
 0x8fe   :  { %v3225_v8 = vpop.xlane.xlu0 %3224  ;;  %v3256_v0 = vsel %vm267_vm1, %v13088_v55, 0.0 }
 0x8ff   :  { %v3233_v42 = vsub.f32 %v12992_v31, %v3225_v8  ;;  %3257 = vadd.xlane.f32.xlu0 %v3256_v0  ;;  %v13095_v33 = vpop.eup %10709 }
 0x900   :  { %v3259_v29 = vsel %vm267_vm1, %v13095_v33, 0.0 }
 0x901   :  { %v13099_v13 = vpop.eup %10711  ;;  %v3248_v39 = vmul.f32 1.442695, %v3233_v42  ;;  %3260 = vadd.xlane.f32.xlu1 %v3259_v29 }
 0x902   :  { %v3262_v31 = vsel %vm267_vm1, %v13099_v13, 0.0 }
 0x903   :  { %10721 = vpow2.f32 %v3248_v39  ;;  %3263 = vadd.xlane.f32.xlu0 %v3262_v31  ;;  %v13107_v21 = vpop.eup %10713  ;;  %v13109_v62 = vpop.f32.mrb[28].mxu0 }
 0x904   :  { %10723 = vpow2.f32 %v2842_v7  ;;  %v13115_v59 = vpop.f32.mrb[29].mxu0  ;;  %v3265_v45 = vsel %vm267_vm1, %v13107_v21, 0.0 }
 0x905   :  { %v13111_v54 = vpop.eup %10715  ;;  %10725 = vpow2.f32 %v2848_v20  ;;  %3266 = vadd.xlane.f32.xlu1 %v3265_v45 }
 0x906   :  { %v3268_v56 = vsel %vm267_vm1, %v13111_v54, 0.0  ;;  %v13121_v12 = vpop.eup %10717  ;;  %10727 = vpow2.f32 %v2846_v16 }
 0x907   :  { %3269 = vadd.xlane.f32.xlu0 %v3268_v56  ;;  %10729 = vpow2.f32 %v2852_v53  ;;  %v13125_v50 = vpop.eup %10719  ;;  %v2856_v38 = vsel %vm267_vm1, %v13121_v12, 0.0 }
 0x908   :  { %10731 = vpow2.f32 %v2850_v44  ;;  %v2862_v9 = vsel %vm267_vm1, %v13125_v50, 0.0 }
 0x909   :  { %10733 = vpow2.f32 %v2854_v63 }
 0x90a   :  { %10735 = vrcp.f32 %v13043_v35 }
 0x90b   :  { %2857 = vadd.xlane.f32.xlu0 %v2856_v38  ;;  %10737 = vrcp.f32 %v13041_v30  ;;  %v1563_v38 = vld [vmem:[#allocation8 + $0x18] sm:$0xff] }
 0x90c   :  { %10739 = vrcp.f32 %v13049_v47 }
 0x90d   :  { %v13129_v24 = vpop.eup %10721  ;;  %10741 = vrcp.f32 %v13047_v2 }
 0x90e   :  { %v13131_v4 = vpop.eup %10723  ;;  %v3271_v19 = vsel %vm267_vm1, %v13129_v24, 0.0  ;;  %10743 = vrcp.f32 %v13065_v51 }
 0x90f   :  { %v13137_v18 = vpop.eup %10725  ;;  %2863 = vadd.xlane.f32.xlu0 %v2862_v9  ;;  %3272 = vadd.xlane.f32.xlu1 %v3271_v19  ;;  %v13139_v61 = vpop.f32.mrb[30].mxu0  ;;  %v2859_v7 = vsel %vm267_vm1, %v13131_v4, 0.0  ;;  %10745 = vrcp.f32 %v13063_v41 }
 0x910   :  { %v13141_v8 = vpop.f32.mrb[31].mxu0  ;;  %v13143_v0 = vpop.eup %10727  ;;  %v2868_v42 = vsel %vm267_vm1, %v13137_v18, 0.0  ;;  %10747 = vrcp.f32 %v13073_v11 }
 0x911   :  { %v13149_v10 = vpop.eup %10729  ;;  %v2865_v29 = vsel %vm267_vm1, %v13143_v0, 0.0  ;;  %10749 = vrcp.f32 %v13071_v14 }
 0x912   :  { %v2874_v39 = vsel %vm267_vm1, %v13149_v10, 0.0  ;;  %v13159_v31 = vpop.eup %10731  ;;  %10751 = vrcp.f32 %v13045_v5 }
 0x913   :  { %2869 = vadd.xlane.f32.xlu0 %v2868_v42  ;;  %2860 = vadd.xlane.f32.xlu1 %v2859_v7  ;;  %v13151_v20 = vpop.f32.mrb[32].mxu0  ;;  %v2871_v16 = vsel %vm267_vm1, %v13159_v31, 0.0  ;;  %v13163_v57 = vpop.eup %10733  ;;  %v13178_v7 = vpack.c.bf16 %v1563_v38, %v1562_v26  ;;  %10753 = vrcp.f32 %v13039_v23 }
 0x914   :  { %v13153_v17 = vpop.f32.mrb[33].mxu0  ;;  %v2877_v56 = vsel %vm267_vm1, %v13163_v57, 0.0  ;;  %v10736_v63 = vpop.eup %10735  ;;  %10755 = vrcp.f32 %v13059_v49 }
 0x915   :  { %v10738_v19 = vpop.eup %10737  ;;  %10757 = vrcp.f32 %v13055_v46 }
 0x916   :  { %v10740_v2 = vpop.eup %10739  ;;  %10759 = vrcp.f32 %v13069_v6 }
 0x917   :  { %2875 = vadd.xlane.f32.xlu0 %v2874_v39  ;;  %2866 = vadd.xlane.f32.xlu1 %v2865_v29  ;;  %v10742_v41 = vpop.eup %10741  ;;  %10761 = vrcp.f32 %v13067_v1 }
 0x918   :  { %v10744_v14 = vpop.eup %10743  ;;  %10763 = vrcp.f32 %v13084_v3 }
 0x919   :  { %v10746_v5 = vpop.eup %10745  ;;  %10765 = vrcp.f32 %v13075_v25  ;;  %v10553_v25 = vpop.permute.xlu1 %10552 }
 0x91a   :  { %v13165_v53 = vpop.f32.mrb[34].mxu0  ;;  %v10748_v23 = vpop.eup %10747 }
 0x91b   :  { %2872 = vadd.xlane.f32.xlu1 %v2871_v16  ;;  %v13167_v45 = vpop.f32.mrb[35].mxu0  ;;  %v10750_v49 = vpop.eup %10749 }
 0x91f   :  { %2878 = vadd.xlane.f32.xlu1 %v2877_v56 }
 0x928   :  { %v9486_v44 = vpop.f32.mrb[36].mxu0 }
 0x929   :  { %v2326_v9 = vpop.f32.mrb[37].mxu0  ;;  %v2374_v35 = vmul.f32 %v10738_v19, %v9486_v44 }
 0x92a   :  { %v2373_v42 = vmul.f32 %v10736_v63, %v2326_v9  ;;  %v10752_v63 = vpop.eup %10751 }
 0x92b   :  { %v1947_v19 = vmul.f32 %v10752_v63, %v13115_v59  ;;  %v10754_v46 = vpop.eup %10753 }
 0x92c   :  { %v9489_v30 = vpop.f32.mrb[38].mxu0  ;;  %9504 = vmatprep.mubr.msk.f32.mxu0 %vm1592_vm2, %v2373_v42  ;;  %v10756_v6 = vpop.eup %10755  ;;  %v1948_v42 = vmul.f32 %v10754_v46, %v13109_v62 }
 0x92d   :  { %v2336_v47 = vpop.f32.mrb[39].mxu0  ;;  %9505 = vmatmul.mubr.msk.f32.vlgmr.msra.gmra.mrb[44].mxu0 %vm1592_vm2, %v2374_v35  ;;  %v2376_v39 = vmul.f32 %v10742_v41, %v9489_v30  ;;  %v1949_v35 = vmul.f32 %v10756_v6, %v13141_v8  ;;  %v10758_v1 = vpop.eup %10757 }
 0x92e   :  { %v2375_v51 = vmul.f32 %v10740_v2, %v2336_v47  ;;  %10150 = vmatpush3.bf16.msra.mxu0 %v13022_v34  ;;  %v10760_v3 = vpop.eup %10759  ;;  %v1950_v59 = vmul.f32 %v10758_v1, %v13139_v61  ;;  %v10555_v61 = vunpack.i.h.bf16 %v10553_v25  ;;  %v10554_v47 = vunpack.i.l.bf16 %v10553_v25  ;;  %v10558_v41 = vpop.permute.xlu0 %10557 }
 0x92f   :  { %10152 = vmatprep.subr.bf16.mxu0 %v13178_v7  ;;  %v1951_v30 = vmul.f32 %v10760_v3, %v13153_v17  ;;  %v10762_v62 = vpop.eup %10761  ;;  %v15828_v3 = vld [vmem:[#allocation34_spill] sm:$0xff] }
 0x930   :  { %v9492_v11 = vpop.f32.mrb[40].mxu0  ;;  %9507 = vmatprep.mubr.msk.f32.mxu0 %vm1592_vm2, %v2375_v51  ;;  %v10764_v8 = vpop.eup %10763 }
 0x931   :  { %v2346_v29 = vpop.f32.mrb[41].mxu0  ;;  %9508 = vmatmul.mubr.msk.f32.gmra.mrb[46].mxu0 %vm1592_vm2, %v2376_v39  ;;  %v2378_v56 = vmul.f32 %v10746_v5, %v9492_v11  ;;  %v1953_v2 = vmul.f32 %v10764_v8, %v13167_v45  ;;  %v10766_v17 = vpop.eup %10765  ;;  %v10559_v39 = vunpack.i.l.bf16 %v10558_v41  ;;  %v10219_v45 = vpack.c.bf16 %v10555_v61, %v10554_v47 }
 0x932   :  { %v2377_v16 = vmul.f32 %v10744_v14, %v2346_v29  ;;  %10154 = vmatpush3.bf16.msra.mxu0 %v13178_v7  ;;  %v10563_v51 = vpop.permute.xlu1 %10562 }
 0x933   :  { %10180 = vmatprep.subr.bf16.mxu0 %v12616_v58  ;;  %v10565_v11 = vunpack.i.h.bf16 %v10563_v51 }
 0x934   :  { %v9495_v44 = vpop.f32.mrb[42].mxu0  ;;  %9510 = vmatprep.mubr.msk.f32.mxu0 %vm1592_vm2, %v2377_v16 }
 0x935   :  { %v2356_v26 = vpop.f32.mrb[43].mxu0  ;;  %9511 = vmatmul.mubr.msk.f32.gmra.mrb[48].mxu0 %vm1592_vm2, %v2378_v56  ;;  %v2380_v9 = vmul.f32 %v10750_v49, %v9495_v44 }
 0x936   :  { %v2379_v38 = vmul.f32 %v10748_v23, %v2356_v26  ;;  %v10568_v14 = vpop.permute.xlu1 %10567 }
 0x937   :  { %v10570_v29 = vunpack.i.h.bf16 %v10568_v14  ;;  %v10569_v5 = vunpack.i.l.bf16 %v10568_v14 }
 0x938   :  { %9513 = vmatprep.mubr.msk.f32.mxu0 %vm1592_vm2, %v2379_v38 }
 0x939   :  { %9514 = vmatmul.mubr.msk.f32.gmra.mrb[50].mxu0 %vm1592_vm2, %v2380_v9 }
 0x93a   :  { %9524 = vmatprep.mubr.msk.f32.mxu0 %vm1592_vm2, %v1947_v19 }
 0x93d   :  { %9525 = vmatmul.mubr.msk.f32.vlgmr.msra.gmra.mrb[44].mxu0 %vm1592_vm2, %v1948_v42 }
 0x93e   :  { %10182 = vmatpush3.bf16.msra.mxu0 %v12616_v58  ;;  %9527 = vmatprep.mubr.msk.f32.mxu0 %vm1592_vm2, %v1949_v35  ;;  %v1952_v58 = vmul.f32 %v10762_v62, %v13151_v20  ;;  %v10560_v20 = vunpack.i.h.bf16 %v10558_v41 }
 0x93f   :  { %10184 = vmatprep.subr.bf16.mxu0 %v12640_v22 }
 0x941   :  { %9528 = vmatmul.mubr.msk.f32.gmra.mrb[46].mxu0 %vm1592_vm2, %v1950_v59 }
 0x942   :  { %10186 = vmatpush3.bf16.msra.mxu0 %v12640_v22  ;;  %9530 = vmatprep.mubr.msk.f32.mxu0 %vm1592_vm2, %v1951_v30  ;;  %v1954_v22 = vmul.f32 %v10766_v17, %v13165_v53  ;;  %v10223_v53 = vpack.c.bf16 %v10560_v20, %v10559_v39 }
 0x943   :  { %10188 = vmatprep.subr.bf16.mxu0 %v12666_v27 }
 0x945   :  { %9531 = vmatmul.mubr.msk.f32.gmra.mrb[48].mxu0 %vm1592_vm2, %v1952_v58 }
 0x946   :  { %10190 = vmatpush3.bf16.msra.mxu0 %v12666_v27  ;;  %9533 = vmatprep.mubr.msk.f32.mxu0 %vm1592_vm2, %v1953_v2  ;;  %v10564_v27 = vunpack.i.l.bf16 %v10563_v51 }
 0x947   :  { %10192 = vmatprep.subr.bf16.mxu0 %v12692_v40 }
 0x949   :  { %9534 = vmatmul.mubr.msk.f32.gmra.mrb[50].mxu0 %vm1592_vm2, %v1954_v22 }
 0x94a   :  { %10194 = vmatpush3.bf16.msra.mxu0 %v12692_v40  ;;  %9580 = vmatprep.mubr.msk.f32.mxu0 %vm267_vm1, %v13121_v12  ;;  %v10227_v40 = vpack.c.bf16 %v10565_v11, %v10564_v27  ;;  %v10231_v12 = vpack.c.bf16 %v10570_v29, %v10569_v5 }
 0x94b   :  { %10220 = vmatprep.subr.bf16.mxu0 %v10219_v45 }
 0x94d   :  { %9581 = vmatmul.mubr.msk.f32.vlgmr.msra.gmra.mrb[52].mxu0 %vm267_vm1, %v13131_v4 }
 0x94e   :  { %10222 = vmatpush3.bf16.msra.mxu0 %v10219_v45  ;;  %9583 = vmatprep.mubr.msk.f32.mxu0 %vm267_vm1, %v13125_v50 }
 0x94f   :  { %10224 = vmatprep.subr.bf16.mxu0 %v10223_v53 }
 0x951   :  { %9584 = vmatmul.mubr.msk.f32.gmra.mrb[54].mxu0 %vm267_vm1, %v13143_v0 }
 0x952   :  { %10226 = vmatpush3.bf16.msra.mxu0 %v10223_v53  ;;  %9586 = vmatprep.mubr.msk.f32.mxu0 %vm267_vm1, %v13137_v18 }
 0x953   :  { %10228 = vmatprep.subr.bf16.mxu0 %v10227_v40 }
 0x955   :  { %9587 = vmatmul.mubr.msk.f32.gmra.mrb[56].mxu0 %vm267_vm1, %v13159_v31 }
 0x956   :  { %10230 = vmatpush3.bf16.msra.mxu0 %v10227_v40  ;;  %9589 = vmatprep.mubr.msk.f32.mxu0 %vm267_vm1, %v13149_v10 }
 0x957   :  { %10232 = vmatprep.subr.bf16.mxu0 %v10231_v12 }
 0x959   :  { %9590 = vmatmul.mubr.msk.f32.gmra.mrb[58].mxu0 %vm267_vm1, %v13163_v57 }
 0x95a   :  { %10234 = vmatpush3.bf16.msra.mxu0 %v10231_v12  ;;  %9636 = vmatprep.mubr.msk.f32.mxu0 %vm267_vm1, %v13053_v52 }
 0x95b   :  { %10236 = vmatprep.subr.bf16.mxu0 %v13014_v37 }
 0x95d   :  { %9637 = vmatmul.mubr.msk.f32.vlgmr.msra.gmra.mrb[60].mxu0 %vm267_vm1, %v13051_v15 }
 0x95e   :  { %9639 = vmatprep.mubr.msk.f32.mxu0 %vm267_vm1, %v13088_v55  ;;  %10238 = vmatpush3.bf16.msra.mxu0 %v13014_v37  ;;  %v13264_v37 = vld [vmem:[%s15723_s11] ss:$0 sm:$0xff] }
 0x95f   :  { %10240 = vmatprep.subr.bf16.mxu0 %v13018_v32 }
 0x961   :  { %9640 = vmatmul.mubr.msk.f32.gmra.mrb[62].mxu0 %vm267_vm1, %v13095_v33 }
 0x962   :  { %9642 = vmatprep.mubr.msk.f32.mxu0 %vm267_vm1, %v13099_v13  ;;  %10242 = vmatpush3.bf16.msra.mxu0 %v13018_v32 }
 0x963   :  { %10244 = vmatprep.subr.bf16.mxu0 %v13022_v34 }
 0x965   :  { %9643 = vmatmul.mubr.msk.f32.gmra.mrb[64].mxu0 %vm267_vm1, %v13107_v21 }
 0x966   :  { %9645 = vmatprep.mubr.msk.f32.mxu0 %vm267_vm1, %v13111_v54 }
 0x969   :  { %9646 = vmatmul.mubr.msk.f32.gmra.mrb[66].mxu0 %vm267_vm1, %v13129_v24 }
 0x96a   :  { %v3255_v4 = vpop.xlane.xlu0 %3254 }
 0x98c   :  { %v3258_v56 = vpop.xlane.xlu0 %3257 }
 0x990   :  { %v3264_v1 = vpop.xlane.xlu0 %3263 }
 0x994   :  { %v3270_v47 = vpop.xlane.xlu0 %3269 }
 0x998   :  { %v2858_v51 = vpop.xlane.xlu0 %2857 }
 0x99c   :  { %v2864_v29 = vpop.xlane.xlu0 %2863 }
 0xa10   :  { %v9526_v15 = vpop.f32.mrb[44].mxu0 }
 0xa11   :  { %v3717_v52 = vadd.f32 %v9526_v15, %v13264_v37  ;;  %v2600_v32 = vpop.f32.mrb[45].mxu0 }
 0xa12   :  { %v3716_v55 = vadd.f32 %v13264_v37, %v2600_v32 }
 0xa13   :  { %v13269_v33 = vadd.f32 %v3717_v52, %v12219_v36 }
 0xa14   :  { %v13272_v13 = vadd.f32 %v3716_v55, %v12217_v48  ;;  %v9529_v21 = vpop.f32.mrb[46].mxu0 }
 0xa15   :  { %v3719_v54 = vadd.f32 %v9529_v21, %v13264_v37  ;;  %v2610_v50 = vpop.f32.mrb[47].mxu0  ;;  %v3753_v24 = vsel %vm267_vm1, %v13269_v33, 0.0 }
 0xa16   :  { %v3718_v18 = vadd.f32 %v13264_v37, %v2610_v50  ;;  %3754 = vadd.xlane.f32.xlu1 %v3753_v24  ;;  %v3750_v0 = vsel %vm267_vm1, %v13272_v13, 0.0  ;;  %v2870_v50 = vpop.xlane.xlu0 %2869 }
 0xa17   :  { %v13281_v36 = vadd.f32 %v3719_v54, %v12225_v43  ;;  %3751 = vadd.xlane.f32.xlu0 %v3750_v0  ;;  %v3252_v43 = vpop.xlane.xlu1 %3251 }
 0xa18   :  { %v13284_v48 = vadd.f32 %v3718_v18, %v12223_v28  ;;  %v9532_v10 = vpop.f32.mrb[48].mxu0  ;;  %v15826_v28 = vld [vmem:[#allocation33_spill] sm:$0xff]  ;;  %10767 = vrcp.f32 %v3252_v43 }
 0xa19   :  { %v3721_v31 = vadd.f32 %v9532_v10, %v13264_v37  ;;  %v2620_v57 = vpop.f32.mrb[49].mxu0  ;;  %v3759_v16 = vsel %vm267_vm1, %v13281_v36, 0.0  ;;  %10769 = vrcp.f32 %v3255_v4 }
 0xa1a   :  { %v3720_v44 = vadd.f32 %v13264_v37, %v2620_v57  ;;  %3760 = vadd.xlane.f32.xlu1 %v3759_v16  ;;  %v3756_v23 = vsel %vm267_vm1, %v13284_v48, 0.0  ;;  %10771 = vrcp.f32 %v3258_v56 }
 0xa1b   :  { %v13293_v26 = vadd.f32 %v3721_v31, %v12233_v60  ;;  %3757 = vadd.xlane.f32.xlu0 %v3756_v23  ;;  %v3261_v42 = vpop.xlane.xlu1 %3260  ;;  %v15827_v60 = vld [vmem:[#allocation35_spill] sm:$0xff]  ;;  %v2876_v23 = vpop.xlane.xlu0 %2875 }
 0xa1c   :  { %v13296_v49 = vadd.f32 %v3720_v44, %v15826_v28  ;;  %v9535_v38 = vpop.f32.mrb[50].mxu0  ;;  %10773 = vrcp.f32 %v3261_v42 }
 0xa1d   :  { %v3723_v63 = vadd.f32 %v9535_v38, %v13264_v37  ;;  %v2630_v9 = vpop.f32.mrb[51].mxu0  ;;  %v3765_v19 = vsel %vm267_vm1, %v13293_v26, 0.0  ;;  %10775 = vrcp.f32 %v3264_v1 }
 0xa1e   :  { %v3722_v46 = vadd.f32 %v13264_v37, %v2630_v9  ;;  %3766 = vadd.xlane.f32.xlu1 %v3765_v19  ;;  %v3762_v6 = vsel %vm267_vm1, %v13296_v49, 0.0 }
 0xa1f   :  { %v13305_v35 = vadd.f32 %v3723_v63, %v15827_v60  ;;  %3763 = vadd.xlane.f32.xlu0 %v3762_v6  ;;  %v3267_v2 = vpop.xlane.xlu1 %3266 }
 0xa20   :  { %v13308_v59 = vadd.f32 %v3722_v46, %v15828_v3  ;;  %v13310_v30 = vpop.f32.mrb[52].mxu0  ;;  %10777 = vrcp.f32 %v3267_v2 }
 0xa21   :  { %v13312_v62 = vpop.f32.mrb[53].mxu0  ;;  %v3771_v25 = vsel %vm267_vm1, %v13305_v35, 0.0  ;;  %10779 = vrcp.f32 %v3270_v47 }
 0xa22   :  { %3772 = vadd.xlane.f32.xlu1 %v3771_v25  ;;  %v3768_v8 = vsel %vm267_vm1, %v13308_v59, 0.0  ;;  %v10768_v27 = vpop.eup %10767 }
 0xa23   :  { %3769 = vadd.xlane.f32.xlu0 %v3768_v8  ;;  %v3273_v41 = vpop.xlane.xlu1 %3272  ;;  %v10770_v14 = vpop.eup %10769 }
 0xa24   :  { %v13318_v58 = vpop.f32.mrb[54].mxu0  ;;  %10781 = vrcp.f32 %v3273_v41  ;;  %v10772_v15 = vpop.eup %10771 }
 0xa25   :  { %v13320_v61 = vpop.f32.mrb[55].mxu0  ;;  %10783 = vrcp.f32 %v2858_v51 }
 0xa26   :  { %v10774_v55 = vpop.eup %10773 }
 0xa27   :  { %v2861_v45 = vpop.xlane.xlu1 %2860  ;;  %v10776_v4 = vpop.eup %10775 }
 0xa28   :  { %v13322_v17 = vpop.f32.mrb[56].mxu0  ;;  %10785 = vrcp.f32 %v2861_v45 }
 0xa29   :  { %v13324_v22 = vpop.f32.mrb[57].mxu0  ;;  %10787 = vrcp.f32 %v2864_v29 }
 0xa2a   :  { %v10778_v0 = vpop.eup %10777 }
 0xa2b   :  { %v2867_v52 = vpop.xlane.xlu1 %2866  ;;  %v10780_v16 = vpop.eup %10779 }
 0xa2c   :  { %v13326_v20 = vpop.f32.mrb[58].mxu0  ;;  %10789 = vrcp.f32 %v2867_v52 }
 0xa2d   :  { %v13328_v39 = vpop.f32.mrb[59].mxu0  ;;  %10791 = vrcp.f32 %v2870_v50 }
 0xa2e   :  { %v10782_v44 = vpop.eup %10781 }
 0xa2f   :  { %v2873_v31 = vpop.xlane.xlu1 %2872  ;;  %v10784_v28 = vpop.eup %10783 }
 0xa30   :  { %v9638_v11 = vpop.f32.mrb[60].mxu0  ;;  %10793 = vrcp.f32 %v2873_v31  ;;  %v3017_v63 = vmul.f32 %v10784_v28, %v13312_v62 }
 0xa31   :  { %v3396_v53 = vpop.f32.mrb[61].mxu0  ;;  %v3444_v40 = vmul.f32 %v10770_v14, %v9638_v11  ;;  %10795 = vrcp.f32 %v2876_v23 }
 0xa32   :  { %v3443_v5 = vmul.f32 %v10768_v27, %v3396_v53  ;;  %v10786_v9 = vpop.eup %10785 }
 0xa33   :  { %v10788_v19 = vpop.eup %10787  ;;  %v3018_v46 = vmul.f32 %v10786_v9, %v13310_v30  ;;  %v4204_v9 = vld [vmem:[#allocation13 + $0x8] sm:$0xff] }
 0xa34   :  { %v9641_v12 = vpop.f32.mrb[62].mxu0  ;;  %9656 = vmatprep.mubr.msk.f32.mxu0 %vm1592_vm2, %v3443_v5  ;;  %v3019_v6 = vmul.f32 %v10788_v19, %v13320_v61 }
 0xa35   :  { %v3406_v32 = vpop.f32.mrb[63].mxu0  ;;  %9657 = vmatmul.mubr.msk.f32.vlgmr.msra.gmra.mrb[68].mxu0 %vm1592_vm2, %v3444_v40  ;;  %v3446_v54 = vmul.f32 %v10774_v55, %v9641_v12 }
 0xa36   :  { %v3445_v21 = vmul.f32 %v10772_v15, %v3406_v32  ;;  %10246 = vmatpush3.bf16.msra.mxu0 %v13022_v34  ;;  %v10790_v42 = vpop.eup %10789 }
 0xa37   :  { %10248 = vmatprep.subr.bf16.mxu0 %v13178_v7  ;;  %v10792_v60 = vpop.eup %10791  ;;  %v3020_v1 = vmul.f32 %v10790_v42, %v13318_v58 }
 0xa38   :  { %v9644_v24 = vpop.f32.mrb[64].mxu0  ;;  %9659 = vmatprep.mubr.msk.f32.mxu0 %vm1592_vm2, %v3445_v21  ;;  %v3021_v3 = vmul.f32 %v10792_v60, %v13324_v22  ;;  %v4205_v60 = vld [vmem:[#allocation13 + $0x10] sm:$0xff] }
 0xa39   :  { %v3416_v18 = vpop.f32.mrb[65].mxu0  ;;  %9660 = vmatmul.mubr.msk.f32.gmra.mrb[70].mxu0 %vm1592_vm2, %v3446_v54  ;;  %v3448_v57 = vmul.f32 %v10778_v0, %v9644_v24 }
 0xa3a   :  { %v3447_v10 = vmul.f32 %v10776_v4, %v3416_v18  ;;  %10250 = vmatpush3.bf16.msra.mxu0 %v13178_v7  ;;  %v2879_v7 = vpop.xlane.xlu1 %2878  ;;  %v10794_v62 = vpop.eup %10793 }
 0xa3b   :  { %10797 = vrcp.f32 %v2879_v7  ;;  %v10796_v25 = vpop.eup %10795  ;;  %v3022_v30 = vmul.f32 %v10794_v62, %v13322_v17  ;;  %v4203_v7 = vld [vmem:[#allocation13] sm:$0xff] }
 0xa3c   :  { %v9647_v34 = vpop.f32.mrb[66].mxu0  ;;  %9662 = vmatprep.mubr.msk.f32.mxu0 %vm1592_vm2, %v3447_v10  ;;  %v3023_v8 = vmul.f32 %v10796_v25, %v13328_v39  ;;  %v10267_v19 = vpack.c.bf16 %v4204_v9, %v4203_v7  ;;  %v4005_v25 = vld [vmem:[#allocation11 + $0x18] sm:$0xff] }
 0xa3d   :  { %v3426_v56 = vpop.f32.mrb[67].mxu0  ;;  %9663 = vmatmul.mubr.msk.f32.gmra.mrb[72].mxu0 %vm1592_vm2, %v3448_v57  ;;  %v3450_v38 = vmul.f32 %v10782_v44, %v9647_v34 }
 0xa3e   :  { %v3449_v43 = vmul.f32 %v10780_v16, %v3426_v56  ;;  %10268 = vmatprep.subr.bf16.mxu0 %v10267_v19 }
 0xa40   :  { %9665 = vmatprep.mubr.msk.f32.mxu0 %vm1592_vm2, %v3449_v43 }
 0xa41   :  { %9666 = vmatmul.mubr.msk.f32.gmra.mrb[74].mxu0 %vm1592_vm2, %v3450_v38 }
 0xa42   :  { %9676 = vmatprep.mubr.msk.f32.mxu0 %vm1592_vm2, %v3017_v63 }
 0xa45   :  { %9677 = vmatmul.mubr.msk.f32.vlgmr.msra.gmra.mrb[68].mxu0 %vm1592_vm2, %v3018_v46  ;;  %v10798_v2 = vpop.eup %10797  ;;  %v4002_v46 = vld [vmem:[#allocation11] sm:$0xff] }
 0xa46   :  { %9679 = vmatprep.mubr.msk.f32.mxu0 %vm1592_vm2, %v3019_v6  ;;  %v3024_v61 = vmul.f32 %v10798_v2, %v13326_v20  ;;  %v4003_v6 = vld [vmem:[#allocation11 + $0x8] sm:$0xff]  ;;  %10270 = vmatpush3.bf16.msra.mxu0 %v10267_v19 }
 0xa47   :  { %v10251_v42 = vpack.c.bf16 %v4003_v6, %v4002_v46  ;;  %v15833_v46 = vld [vmem:[#allocation40_spill] sm:$0xff] }
 0xa49   :  { %9680 = vmatmul.mubr.msk.f32.gmra.mrb[70].mxu0 %vm1592_vm2, %v3020_v1  ;;  %v4206_v1 = vld [vmem:[#allocation13 + $0x18] sm:$0xff]  ;;  %10252 = vmatprep.subr.bf16.mxu1 %v10251_v42 }
 0xa4a   :  { %9682 = vmatprep.mubr.msk.f32.mxu0 %vm1592_vm2, %v3021_v3  ;;  %v4004_v3 = vld [vmem:[#allocation11 + $0x10] sm:$0xff]  ;;  %v10271_v62 = vpack.c.bf16 %v4206_v1, %v4205_v60  ;;  %10254 = vmatpush3.bf16.msra.mxu1 %v10251_v42 }
 0xa4b   :  { %v10255_v2 = vpack.c.bf16 %v4005_v25, %v4004_v3  ;;  %v15834_v42 = vld [vmem:[#allocation41_spill] sm:$0xff] }
 0xa4c   :  { %10272 = vmatprep.subr.bf16.mxu0 %v10271_v62 }
 0xa4d   :  { %9683 = vmatmul.mubr.msk.f32.gmra.mrb[72].mxu0 %vm1592_vm2, %v3022_v30  ;;  %v4207_v30 = vld [vmem:[#allocation13 + $0x20] sm:$0xff]  ;;  %10256 = vmatprep.subr.bf16.mxu1 %v10255_v2 }
 0xa4e   :  { %9685 = vmatprep.mubr.msk.f32.mxu0 %vm1592_vm2, %v3023_v8  ;;  %v4208_v8 = vld [vmem:[#allocation13 + $0x28] sm:$0xff]  ;;  %10274 = vmatpush3.bf16.msra.mxu0 %v10271_v62 }
 0xa4f   :  { %10258 = vmatpush3.bf16.msra.mxu1 %v10255_v2  ;;  %v15835_v2 = vld [vmem:[#allocation42_spill] sm:$0xff] }
 0xa51   :  { %9686 = vmatmul.mubr.msk.f32.gmra.mrb[74].mxu0 %vm1592_vm2, %v3024_v61  ;;  %v10275_v61 = vpack.c.bf16 %v4208_v8, %v4207_v30 }
 0xa53   :  { %10276 = vmatprep.subr.bf16.mxu0 %v10275_v61 }
 0xa54   :  { %10278 = vmatpush3.bf16.msra.mxu0 %v10275_v61 }
 0xaa3   :  { %v3755_v58 = vpop.xlane.xlu1 %3754 }
 0xaa4   :  { %v3799_v47 = vmul.f32 0.015625, %v3755_v58  ;;  %v3752_v41 = vpop.xlane.xlu0 %3751  ;;  %v4006_v58 = vld [vmem:[#allocation11 + $0x20] sm:$0xff] }
 0xaa5   :  { %v3798_v22 = vmul.f32 0.015625, %v3752_v41  ;;  %v4209_v41 = vld [vmem:[#allocation13 + $0x30] sm:$0xff] }
 0xaa6   :  { %v13358_v51 = vsub.f32 %v13269_v33, %v3799_v47  ;;  %v4007_v47 = vld [vmem:[#allocation11 + $0x28] sm:$0xff] }
 0xaa7   :  { %v13361_v17 = vsub.f32 %v13272_v13, %v3798_v22  ;;  %v3761_v39 = vpop.xlane.xlu1 %3760  ;;  %v4210_v22 = vld [vmem:[#allocation13 + $0x38] sm:$0xff] }
 0xaa8   :  { %v3801_v45 = vmul.f32 0.015625, %v3761_v39  ;;  %v3758_v11 = vpop.xlane.xlu0 %3757  ;;  %v3831_v27 = vmul.f32 %v13358_v51, %v13358_v51  ;;  %v10259_v39 = vpack.c.bf16 %v4007_v47, %v4006_v58  ;;  %v15836_v58 = vld [vmem:[#allocation43_spill] sm:$0xff] }
 0xaa9   :  { %v3800_v53 = vmul.f32 0.015625, %v3758_v11  ;;  %v3830_v20 = vmul.f32 %v13361_v17, %v13361_v17  ;;  %v4008_v11 = vld [vmem:[#allocation11 + $0x30] sm:$0xff] }
 0xaaa   :  { %v13368_v14 = vsub.f32 %v13281_v36, %v3801_v45  ;;  %v3849_v29 = vsel %vm267_vm1, %v3831_v27, 0.0  ;;  %v255_v45 = vld [vmem:[#allocation2] sm:$0xff]  ;;  %v4009_v27 = vld [vmem:[#allocation11 + $0x38] sm:$0xff]  ;;  %10260 = vmatprep.subr.bf16.mxu1 %v10259_v39 }
 0xaab   :  { %v13372_v5 = vsub.f32 %v13284_v48, %v3800_v53  ;;  %v3767_v40 = vpop.xlane.xlu1 %3766  ;;  %3850 = vadd.xlane.f32.xlu1 %v3849_v29  ;;  %v3846_v12 = vsel %vm267_vm1, %v3830_v20, 0.0  ;;  %9744 = vmatprep.mubr.msk.f32.mxu0 %vm267_vm1, %v255_v45  ;;  %v10279_v53 = vpack.c.bf16 %v4210_v22, %v4209_v41  ;;  %v10263_v20 = vpack.c.bf16 %v4009_v27, %v4008_v11  ;;  %v256_v29 = vld [vmem:[#allocation2 + $0x8] sm:$0xff] }
 0xaac   :  { %v3803_v15 = vmul.f32 0.015625, %v3767_v40  ;;  %v3764_v52 = vpop.xlane.xlu0 %3763  ;;  %3847 = vadd.xlane.f32.xlu0 %v3846_v12  ;;  %v3833_v32 = vmul.f32 %v13368_v14, %v13368_v14  ;;  %10262 = vmatpush3.bf16.msra.mxu1 %v10259_v39 }
 0xaad   :  { %v3802_v55 = vmul.f32 0.015625, %v3764_v52  ;;  %v3832_v21 = vmul.f32 %v13372_v5, %v13372_v5  ;;  %10280 = vmatprep.subr.bf16.mxu0 %v10279_v53  ;;  %10264 = vmatprep.subr.bf16.mxu1 %v10263_v20 }
 0xaae   :  { %v13380_v54 = vsub.f32 %v13293_v26, %v3803_v15  ;;  %v3855_v50 = vsel %vm267_vm1, %v3833_v32, 0.0  ;;  %10282 = vmatpush3.bf16.msra.mxu0 %v10279_v53  ;;  %v15829_v32 = vld [vmem:[#allocation36_spill] sm:$0xff] }
 0xaaf   :  { %v13384_v24 = vsub.f32 %v13296_v49, %v3802_v55  ;;  %3856 = vadd.xlane.f32.xlu1 %v3855_v50  ;;  %v3773_v4 = vpop.xlane.xlu1 %3772  ;;  %v3852_v18 = vsel %vm267_vm1, %v3832_v21, 0.0  ;;  %v15830_v21 = vld [vmem:[#allocation37_spill] sm:$0xff] }
 0xab0   :  { %v3805_v0 = vmul.f32 0.015625, %v3773_v4  ;;  %3853 = vadd.xlane.f32.xlu0 %v3852_v18  ;;  %v3770_v10 = vpop.xlane.xlu0 %3769  ;;  %v3835_v31 = vmul.f32 %v13380_v54, %v13380_v54  ;;  %10266 = vmatpush3.bf16.msra.mxu1 %v10263_v20 }
 0xab1   :  { %v3804_v57 = vmul.f32 0.015625, %v3770_v10  ;;  %v3834_v34 = vmul.f32 %v13384_v24, %v13384_v24  ;;  %9745 = vmatmul.mubr.msk.f32.vlgmr.msra.gmra.mrb[76].mxu0 %vm267_vm1, %v256_v29 }
 0xab2   :  { %v13392_v16 = vsub.f32 %v13305_v35, %v3805_v0  ;;  %v3861_v56 = vsel %vm267_vm1, %v3835_v31, 0.0 }
 0xab3   :  { %v13396_v44 = vsub.f32 %v13308_v59, %v3804_v57  ;;  %3862 = vadd.xlane.f32.xlu1 %v3861_v56  ;;  %v3858_v23 = vsel %vm267_vm1, %v3834_v34, 0.0  ;;  %v15831_v34 = vld [vmem:[#allocation38_spill] sm:$0xff] }
 0xab4   :  { %3859 = vadd.xlane.f32.xlu0 %v3858_v23  ;;  %v3837_v43 = vmul.f32 %v13392_v16, %v13392_v16  ;;  %v15832_v23 = vld [vmem:[#allocation39_spill] sm:$0xff] }
 0xab5   :  { %v3836_v28 = vmul.f32 %v13396_v44, %v13396_v44 }
 0xab6   :  { %v3867_v38 = vsel %vm267_vm1, %v3837_v43, 0.0 }
 0xab7   :  { %3868 = vadd.xlane.f32.xlu1 %v3867_v38  ;;  %v3864_v63 = vsel %vm267_vm1, %v3836_v28, 0.0 }
 0xab8   :  { %3865 = vadd.xlane.f32.xlu0 %v3864_v63 }
 0xb18   :  { %v9678_v40 = vpop.f32.mrb[68].mxu0 }
 0xb19   :  { %v3725_v12 = vadd.f32 %v9678_v40, %v13264_v37  ;;  %v3670_v15 = vpop.f32.mrb[69].mxu0 }
 0xb1a   :  { %v3724_v52 = vadd.f32 %v13264_v37, %v3670_v15 }
 0xb1b   :  { %v13410_v55 = vadd.f32 %v3725_v12, %v15829_v32 }
 0xb1c   :  { %v13413_v50 = vadd.f32 %v3724_v52, %v15830_v21  ;;  %v9681_v4 = vpop.f32.mrb[70].mxu0 }
 0xb1d   :  { %v3727_v18 = vadd.f32 %v9681_v4, %v13264_v37  ;;  %v3680_v0 = vpop.f32.mrb[71].mxu0  ;;  %v3777_v10 = vsel %vm267_vm1, %v13410_v55, 0.0 }
 0xb1e   :  { %v3726_v31 = vadd.f32 %v13264_v37, %v3680_v0  ;;  %3778 = vadd.xlane.f32.xlu1 %v3777_v10  ;;  %v3774_v57 = vsel %vm267_vm1, %v13413_v50, 0.0 }
 0xb1f   :  { %v13422_v56 = vadd.f32 %v3727_v18, %v15831_v34  ;;  %3775 = vadd.xlane.f32.xlu0 %v3774_v57 }
 0xb20   :  { %v13425_v43 = vadd.f32 %v3726_v31, %v15832_v23  ;;  %v9684_v28 = vpop.f32.mrb[72].mxu0 }
 0xb21   :  { %v3729_v38 = vadd.f32 %v9684_v28, %v13264_v37  ;;  %v3690_v63 = vpop.f32.mrb[73].mxu0  ;;  %v3783_v7 = vsel %vm267_vm1, %v13422_v56, 0.0 }
 0xb22   :  { %v3728_v9 = vadd.f32 %v13264_v37, %v3690_v63  ;;  %3784 = vadd.xlane.f32.xlu1 %v3783_v7  ;;  %v3780_v19 = vsel %vm267_vm1, %v13425_v43, 0.0 }
 0xb23   :  { %v13434_v6 = vadd.f32 %v3729_v38, %v15833_v46  ;;  %3781 = vadd.xlane.f32.xlu0 %v3780_v19  ;;  %v13458_v38 = vld [vmem:[%s15724_s12] ss:$0 sm:$0xff] }
 0xb24   :  { %v13437_v60 = vadd.f32 %v3728_v9, %v15834_v42  ;;  %v9687_v1 = vpop.f32.mrb[74].mxu0 }
 0xb25   :  { %v3731_v3 = vadd.f32 %v9687_v1, %v13264_v37  ;;  %v3700_v62 = vpop.f32.mrb[75].mxu0  ;;  %v3789_v25 = vsel %vm267_vm1, %v13434_v6, 0.0  ;;  %v13463_v1 = vld [vmem:[#allocation10] ss:$0 sm:$0xff] }
 0xb26   :  { %v3730_v30 = vadd.f32 %v13264_v37, %v3700_v62  ;;  %3790 = vadd.xlane.f32.xlu1 %v3789_v25  ;;  %v3786_v8 = vsel %vm267_vm1, %v13437_v60, 0.0 }
 0xb27   :  { %v13446_v61 = vadd.f32 %v3731_v3, %v15835_v2  ;;  %3787 = vadd.xlane.f32.xlu0 %v3786_v8 }
 0xb28   :  { %v13449_v47 = vadd.f32 %v3730_v30, %v15836_v58 }
 0xb29   :  { %v3795_v41 = vsel %vm267_vm1, %v13446_v61, 0.0 }
 0xb2a   :  { %3796 = vadd.xlane.f32.xlu1 %v3795_v41  ;;  %v3792_v22 = vsel %vm267_vm1, %v13449_v47, 0.0 }
 0xb2b   :  { %3793 = vadd.xlane.f32.xlu0 %v3792_v22 }
 0xb38   :  { %v3851_v37 = vpop.xlane.xlu1 %3850 }
 0xb39   :  { %v3895_v39 = vmul.f32 0.015625, %v3851_v37  ;;  %v3848_v45 = vpop.xlane.xlu0 %3847 }
 0xb3a   :  { %v3894_v11 = vmul.f32 0.015625, %v3848_v45 }
 0xb3b   :  { %v3911_v27 = vadd.f32 1e-05, %v3895_v39 }
 0xb3c   :  { %v3910_v53 = vadd.f32 1e-05, %v3894_v11  ;;  %v3857_v20 = vpop.xlane.xlu1 %3856 }
 0xb3d   :  { %10799 = vrsqrt.f32 %v3911_v27  ;;  %v3897_v29 = vmul.f32 0.015625, %v3857_v20  ;;  %v3854_v40 = vpop.xlane.xlu0 %3853 }
 0xb3e   :  { %10801 = vrsqrt.f32 %v3910_v53  ;;  %v3896_v12 = vmul.f32 0.015625, %v3854_v40 }
 0xb3f   :  { %v3913_v15 = vadd.f32 1e-05, %v3897_v29 }
 0xb40   :  { %v3912_v52 = vadd.f32 1e-05, %v3896_v12  ;;  %v3863_v32 = vpop.xlane.xlu1 %3862 }
 0xb41   :  { %10803 = vrsqrt.f32 %v3913_v15  ;;  %v3899_v21 = vmul.f32 0.015625, %v3863_v32  ;;  %v3860_v4 = vpop.xlane.xlu0 %3859 }
 0xb42   :  { %10805 = vrsqrt.f32 %v3912_v52  ;;  %v3898_v18 = vmul.f32 0.015625, %v3860_v4 }
 0xb43   :  { %v3915_v0 = vadd.f32 1e-05, %v3899_v21 }
 0xb44   :  { %v3914_v10 = vadd.f32 1e-05, %v3898_v18  ;;  %v3869_v31 = vpop.xlane.xlu1 %3868 }
 0xb45   :  { %10807 = vrsqrt.f32 %v3915_v0  ;;  %v3901_v57 = vmul.f32 0.015625, %v3869_v31  ;;  %v3866_v34 = vpop.xlane.xlu0 %3865 }
 0xb46   :  { %10809 = vrsqrt.f32 %v3914_v10  ;;  %v3900_v23 = vmul.f32 0.015625, %v3866_v34 }
 0xb47   :  { %v10800_v28 = vpop.eup %10799  ;;  %v3917_v63 = vadd.f32 1e-05, %v3901_v57 }
 0xb48   :  { %v10802_v7 = vpop.eup %10801  ;;  %v3943_v9 = vmul.f32 %v10800_v28, %v13358_v51  ;;  %v3916_v19 = vadd.f32 1e-05, %v3900_v23 }
 0xb49   :  { %10811 = vrsqrt.f32 %v3917_v63  ;;  %v3942_v46 = vmul.f32 %v10802_v7, %v13361_v17 }
 0xb4a   :  { %v3965_v42 = vmul.f32 %v13458_v38, %v3943_v9  ;;  %10813 = vrsqrt.f32 %v3916_v19 }
 0xb4b   :  { %v10804_v3 = vpop.eup %10803  ;;  %v3964_v62 = vmul.f32 %v13458_v38, %v3942_v46 }
 0xb4c   :  { %v10806_v25 = vpop.eup %10805  ;;  %v3945_v30 = vmul.f32 %v10804_v3, %v13368_v14  ;;  %v3987_v51 = vadd.f32 %v13463_v1, %v3965_v42 }
 0xb4d   :  { %v3986_v8 = vadd.f32 %v13463_v1, %v3964_v62  ;;  %v3944_v2 = vmul.f32 %v10806_v25, %v13372_v5 }
 0xb4e   :  { %v3967_v58 = vmul.f32 %v13458_v38, %v3945_v30 }
 0xb4f   :  { %v10808_v17 = vpop.eup %10807  ;;  %9704 = vmatprep.mubr.msk.f32.mxu1 %vm267_vm1, %v3986_v8  ;;  %v3966_v41 = vmul.f32 %v13458_v38, %v3944_v2 }
 0xb50   :  { %v10810_v22 = vpop.eup %10809  ;;  %9705 = vmatmul.mubr.msk.f32.vlgmr.msra.gmra.mrb[60].mxu1 %vm267_vm1, %v3987_v51  ;;  %v3947_v37 = vmul.f32 %v10808_v17, %v13380_v54  ;;  %v3989_v5 = vadd.f32 %v13463_v1, %v3967_v58 }
 0xb51   :  { %v3988_v14 = vadd.f32 %v13463_v1, %v3966_v41  ;;  %v3946_v39 = vmul.f32 %v10810_v22, %v13384_v24 }
 0xb52   :  { %v3969_v45 = vmul.f32 %v13458_v38, %v3947_v37 }
 0xb53   :  { %v10812_v11 = vpop.eup %10811  ;;  %9707 = vmatprep.mubr.msk.f32.mxu1 %vm267_vm1, %v3988_v14  ;;  %v3968_v27 = vmul.f32 %v13458_v38, %v3946_v39 }
 0xb54   :  { %v10814_v53 = vpop.eup %10813  ;;  %9708 = vmatmul.mubr.msk.f32.gmra.mrb[62].mxu1 %vm267_vm1, %v3989_v5  ;;  %v3949_v20 = vmul.f32 %v10812_v11, %v13392_v16  ;;  %v3991_v24 = vadd.f32 %v13463_v1, %v3969_v45 }
 0xb55   :  { %v3990_v54 = vadd.f32 %v13463_v1, %v3968_v27  ;;  %v3948_v29 = vmul.f32 %v10814_v53, %v13396_v44 }
 0xb56   :  { %v3971_v40 = vmul.f32 %v13458_v38, %v3949_v20 }
 0xb57   :  { %9710 = vmatprep.mubr.msk.f32.mxu1 %vm267_vm1, %v3990_v54  ;;  %v3970_v12 = vmul.f32 %v13458_v38, %v3948_v29 }
 0xb58   :  { %9711 = vmatmul.mubr.msk.f32.gmra.mrb[64].mxu1 %vm267_vm1, %v3991_v24  ;;  %v3993_v52 = vadd.f32 %v13463_v1, %v3971_v40 }
 0xb59   :  { %v3992_v15 = vadd.f32 %v13463_v1, %v3970_v12 }
 0xb5b   :  { %9713 = vmatprep.mubr.msk.f32.mxu1 %vm267_vm1, %v3992_v15 }
 0xb5c   :  { %9714 = vmatmul.mubr.msk.f32.gmra.mrb[66].mxu1 %vm267_vm1, %v3993_v52 }
 0xb84   :  { %v13494_v4 = vpop.f32.mrb[76].mxu0 }
 0xb85   :  { %v13499_v0 = vpop.f32.mrb[77].mxu0 }
 0xb86   :  { %9747 = vmatprep.subr.msk.mxu1 %vm1592_vm2, %v13499_v0 }
 0xb87   :  { %9748 = vmatpush3.xpose.msk.msra.mxu1 %vm1592_vm2, %v13499_v0 }
 0xbab   :  { %v3779_v16 = vpop.xlane.xlu1 %3778 }
 0xbac   :  { %v3807_v44 = vmul.f32 0.015625, %v3779_v16  ;;  %v3776_v32 = vpop.xlane.xlu0 %3775 }
 0xbad   :  { %v3806_v21 = vmul.f32 0.015625, %v3776_v32 }
 0xbae   :  { %v13497_v18 = vsub.f32 %v13410_v55, %v3807_v44 }
 0xbaf   :  { %v13502_v10 = vsub.f32 %v13413_v50, %v3806_v21  ;;  %v3785_v31 = vpop.xlane.xlu1 %3784 }
 0xbb0   :  { %v3809_v57 = vmul.f32 0.015625, %v3785_v31  ;;  %v3782_v34 = vpop.xlane.xlu0 %3781  ;;  %v3839_v23 = vmul.f32 %v13497_v18, %v13497_v18 }
 0xbb1   :  { %v3808_v28 = vmul.f32 0.015625, %v3782_v34  ;;  %v3838_v63 = vmul.f32 %v13502_v10, %v13502_v10 }
 0xbb2   :  { %v13513_v7 = vsub.f32 %v13422_v56, %v3809_v57  ;;  %v3873_v9 = vsel %vm267_vm1, %v3839_v23, 0.0 }
 0xbb3   :  { %v13517_v19 = vsub.f32 %v13425_v43, %v3808_v28  ;;  %v3791_v46 = vpop.xlane.xlu1 %3790  ;;  %3874 = vadd.xlane.f32.xlu1 %v3873_v9  ;;  %v3870_v42 = vsel %vm267_vm1, %v3838_v63, 0.0 }
 0xbb4   :  { %v3811_v3 = vmul.f32 0.015625, %v3791_v46  ;;  %v3788_v62 = vpop.xlane.xlu0 %3787  ;;  %3871 = vadd.xlane.f32.xlu0 %v3870_v42  ;;  %v3841_v25 = vmul.f32 %v13513_v7, %v13513_v7 }
 0xbb5   :  { %v3810_v30 = vmul.f32 0.015625, %v3788_v62  ;;  %v3840_v8 = vmul.f32 %v13517_v19, %v13517_v19 }
 0xbb6   :  { %v13525_v2 = vsub.f32 %v13434_v6, %v3811_v3  ;;  %v3879_v51 = vsel %vm267_vm1, %v3841_v25, 0.0 }
 0xbb7   :  { %v13529_v58 = vsub.f32 %v13437_v60, %v3810_v30  ;;  %3880 = vadd.xlane.f32.xlu1 %v3879_v51  ;;  %v3797_v17 = vpop.xlane.xlu1 %3796  ;;  %v3876_v41 = vsel %vm267_vm1, %v3840_v8, 0.0 }
 0xbb8   :  { %v3813_v22 = vmul.f32 0.015625, %v3797_v17  ;;  %3877 = vadd.xlane.f32.xlu0 %v3876_v41  ;;  %v3794_v37 = vpop.xlane.xlu0 %3793  ;;  %v3843_v14 = vmul.f32 %v13525_v2, %v13525_v2 }
 0xbb9   :  { %v3812_v39 = vmul.f32 0.015625, %v3794_v37  ;;  %v3842_v5 = vmul.f32 %v13529_v58, %v13529_v58 }
 0xbba   :  { %v13537_v45 = vsub.f32 %v13446_v61, %v3813_v22  ;;  %v3885_v11 = vsel %vm267_vm1, %v3843_v14, 0.0 }
 0xbbb   :  { %v13541_v27 = vsub.f32 %v13449_v47, %v3812_v39  ;;  %3886 = vadd.xlane.f32.xlu1 %v3885_v11  ;;  %v3882_v53 = vsel %vm267_vm1, %v3842_v5, 0.0 }
 0xbbc   :  { %3883 = vadd.xlane.f32.xlu0 %v3882_v53  ;;  %v3845_v20 = vmul.f32 %v13537_v45, %v13537_v45 }
 0xbbd   :  { %v3844_v54 = vmul.f32 %v13541_v27, %v13541_v27 }
 0xbbe   :  { %v3891_v29 = vsel %vm267_vm1, %v3845_v20, 0.0 }
 0xbbf   :  { %3892 = vadd.xlane.f32.xlu1 %v3891_v29  ;;  %v3888_v24 = vsel %vm267_vm1, %v3844_v54, 0.0 }
 0xbc0   :  { %3889 = vadd.xlane.f32.xlu0 %v3888_v24 }
 0xbd6   :  { %4677 = vrot.lane.b32.xlu0 %v13499_v0, %s11458_s24 }
 0xc23   :  { %v13552_v40 = vpop.f32.mrb[60].mxu1 }
 0xc24   :  { %v13554_v12 = vpop.f32.mrb[61].mxu1  ;;  %4663 = vrot.lane.b32.xlu1 %v13552_v40, %s11458_s24 }
 0xc27   :  { %v13558_v15 = vpop.f32.mrb[62].mxu1 }
 0xc28   :  { %v13560_v52 = vpop.f32.mrb[63].mxu1  ;;  %4661 = vrot.lane.b32.xlu1 %v13554_v12, %s11458_s24  ;;  %4667 = vrot.lane.b32.xlu0 %v13558_v15, %s11458_s24 }
 0xc2b   :  { %v13566_v16 = vpop.f32.mrb[64].mxu1 }
 0xc2c   :  { %v13568_v44 = vpop.f32.mrb[65].mxu1  ;;  %4665 = vrot.lane.b32.xlu1 %v13560_v52, %s11458_s24  ;;  %4671 = vrot.lane.b32.xlu0 %v13566_v16, %s11458_s24 }
 0xc2f   :  { %v13574_v32 = vpop.f32.mrb[66].mxu1 }
 0xc30   :  { %v13576_v21 = vpop.f32.mrb[67].mxu1  ;;  %4669 = vrot.lane.b32.xlu1 %v13568_v44, %s11458_s24  ;;  %4675 = vrot.lane.b32.xlu0 %v13574_v32, %s11458_s24 }
 0xc34   :  { %4673 = vrot.lane.b32.xlu1 %v13576_v21, %s11458_s24 }
 0xc40   :  { %v3875_v31 = vpop.xlane.xlu1 %3874 }
 0xc41   :  { %v3903_v57 = vmul.f32 0.015625, %v3875_v31  ;;  %v3872_v34 = vpop.xlane.xlu0 %3871 }
 0xc42   :  { %v3902_v23 = vmul.f32 0.015625, %v3872_v34 }
 0xc43   :  { %v3919_v28 = vadd.f32 1e-05, %v3903_v57 }
 0xc44   :  { %v3918_v63 = vadd.f32 1e-05, %v3902_v23  ;;  %v3881_v9 = vpop.xlane.xlu1 %3880 }
 0xc45   :  { %10815 = vrsqrt.f32 %v3919_v28  ;;  %v3905_v46 = vmul.f32 0.015625, %v3881_v9  ;;  %v3878_v42 = vpop.xlane.xlu0 %3877 }
 0xc46   :  { %10817 = vrsqrt.f32 %v3918_v63  ;;  %v3904_v3 = vmul.f32 0.015625, %v3878_v42 }
 0xc47   :  { %v3921_v62 = vadd.f32 1e-05, %v3905_v46 }
 0xc48   :  { %v3920_v25 = vadd.f32 1e-05, %v3904_v3  ;;  %v3887_v30 = vpop.xlane.xlu1 %3886 }
 0xc49   :  { %10819 = vrsqrt.f32 %v3921_v62  ;;  %v3907_v8 = vmul.f32 0.015625, %v3887_v30  ;;  %v3884_v51 = vpop.xlane.xlu0 %3883 }
 0xc4a   :  { %10821 = vrsqrt.f32 %v3920_v25  ;;  %v3906_v17 = vmul.f32 0.015625, %v3884_v51 }
 0xc4b   :  { %v3923_v41 = vadd.f32 1e-05, %v3907_v8 }
 0xc4c   :  { %v3922_v22 = vadd.f32 1e-05, %v3906_v17  ;;  %v3893_v37 = vpop.xlane.xlu1 %3892 }
 0xc4d   :  { %10823 = vrsqrt.f32 %v3923_v41  ;;  %v3909_v14 = vmul.f32 0.015625, %v3893_v37  ;;  %v3890_v39 = vpop.xlane.xlu0 %3889 }
 0xc4e   :  { %10825 = vrsqrt.f32 %v3922_v22  ;;  %v3908_v5 = vmul.f32 0.015625, %v3890_v39 }
 0xc4f   :  { %v10816_v11 = vpop.eup %10815  ;;  %v3925_v53 = vadd.f32 1e-05, %v3909_v14 }
 0xc50   :  { %v10818_v20 = vpop.eup %10817  ;;  %v3924_v54 = vadd.f32 1e-05, %v3908_v5  ;;  %v3951_v29 = vmul.f32 %v10816_v11, %v13497_v18 }
 0xc51   :  { %10827 = vrsqrt.f32 %v3925_v53  ;;  %v3950_v24 = vmul.f32 %v10818_v20, %v13502_v10  ;;  %v4678_v31 = vpop.permute.xlu0 %4677 }
 0xc52   :  { %10829 = vrsqrt.f32 %v3924_v54  ;;  %v3973_v57 = vmul.f32 %v13458_v38, %v3951_v29  ;;  %9775 = vmatprep.subr.msk.mxu1 %vm1592_vm2, %v4678_v31 }
 0xc53   :  { %v10820_v34 = vpop.eup %10819  ;;  %v3972_v23 = vmul.f32 %v13458_v38, %v3950_v24 }
 0xc54   :  { %v10822_v28 = vpop.eup %10821  ;;  %v3953_v63 = vmul.f32 %v10820_v34, %v13513_v7  ;;  %v3995_v18 = vadd.f32 %v13463_v1, %v3973_v57 }
 0xc55   :  { %v3994_v9 = vadd.f32 %v13463_v1, %v3972_v23  ;;  %v3952_v46 = vmul.f32 %v10822_v28, %v13517_v19 }
 0xc56   :  { %v3975_v10 = vmul.f32 %v13458_v38, %v3953_v63 }
 0xc57   :  { %v10824_v42 = vpop.eup %10823  ;;  %9716 = vmatprep.mubr.msk.f32.mxu1 %vm267_vm1, %v3994_v9  ;;  %v3974_v3 = vmul.f32 %v13458_v38, %v3952_v46 }
 0xc58   :  { %v10826_v62 = vpop.eup %10825  ;;  %9717 = vmatmul.mubr.msk.f32.gmra.mrb[68].mxu1 %vm267_vm1, %v3995_v18  ;;  %v3955_v25 = vmul.f32 %v10824_v42, %v13525_v2  ;;  %v3997_v19 = vadd.f32 %v13463_v1, %v3975_v10 }
 0xc59   :  { %v3996_v7 = vadd.f32 %v13463_v1, %v3974_v3  ;;  %v3954_v30 = vmul.f32 %v10826_v62, %v13529_v58 }
 0xc5a   :  { %v3977_v8 = vmul.f32 %v13458_v38, %v3955_v25 }
 0xc5b   :  { %v10828_v51 = vpop.eup %10827  ;;  %9719 = vmatprep.mubr.msk.f32.mxu1 %vm267_vm1, %v3996_v7  ;;  %v3976_v17 = vmul.f32 %v13458_v38, %v3954_v30 }
 0xc5c   :  { %v10830_v41 = vpop.eup %10829  ;;  %9720 = vmatmul.mubr.msk.f32.gmra.mrb[70].mxu1 %vm267_vm1, %v3997_v19  ;;  %v3957_v22 = vmul.f32 %v10828_v51, %v13537_v45  ;;  %v3999_v58 = vadd.f32 %v13463_v1, %v3977_v8 }
 0xc5d   :  { %v3998_v2 = vadd.f32 %v13463_v1, %v3976_v17  ;;  %v3956_v37 = vmul.f32 %v10830_v41, %v13541_v27 }
 0xc5e   :  { %v3979_v14 = vmul.f32 %v13458_v38, %v3957_v22 }
 0xc5f   :  { %9722 = vmatprep.mubr.msk.f32.mxu1 %vm267_vm1, %v3998_v2  ;;  %v3978_v39 = vmul.f32 %v13458_v38, %v3956_v37 }
 0xc60   :  { %9723 = vmatmul.mubr.msk.f32.gmra.mrb[72].mxu1 %vm267_vm1, %v3999_v58  ;;  %v4001_v11 = vadd.f32 %v13463_v1, %v3979_v14 }
 0xc61   :  { %v4000_v5 = vadd.f32 %v13463_v1, %v3978_v39 }
 0xc63   :  { %9725 = vmatprep.mubr.msk.f32.mxu1 %vm267_vm1, %v4000_v5 }
 0xc64   :  { %9726 = vmatmul.mubr.msk.f32.gmra.mrb[74].mxu1 %vm267_vm1, %v4001_v11 }
 0xc65   :  { %9749 = vmatprep.mubr.msk.f32.mxu1 %vm1592_vm2, %v13554_v12 }
 0xc68   :  { %9750 = vmatmul.mubr.msk.f32.vlgmr.msra.gmra.mrb[76].mxu1 %vm1592_vm2, %v13552_v40 }
 0xc69   :  { %9752 = vmatprep.mubr.msk.f32.mxu1 %vm1592_vm2, %v13560_v52  ;;  %9776 = vmatpush3.xpose.msk.msra.mxu1 %vm1592_vm2, %v4678_v31 }
 0xc6c   :  { %9753 = vmatmul.mubr.msk.f32.gmra.mrb[78].mxu1 %vm1592_vm2, %v13558_v15 }
 0xc6d   :  { %9755 = vmatprep.mubr.msk.f32.mxu1 %vm1592_vm2, %v13568_v44 }
 0xc70   :  { %9756 = vmatmul.mubr.msk.f32.gmra.mrb[80].mxu1 %vm1592_vm2, %v13566_v16 }
 0xc71   :  { %9758 = vmatprep.mubr.msk.f32.mxu1 %vm1592_vm2, %v13576_v21 }
 0xc74   :  { %9759 = vmatmul.mubr.msk.f32.gmra.mrb[82].mxu1 %vm1592_vm2, %v13574_v32 }
 0xc96   :  { %v4664_v38 = vpop.permute.xlu1 %4663 }
 0xc9a   :  { %v4662_v1 = vpop.permute.xlu1 %4661  ;;  %v4668_v45 = vpop.permute.xlu0 %4667 }
 0xc9b   :  { %9777 = vmatprep.mubr.msk.f32.mxu1 %vm1592_vm2, %v4662_v1 }
 0xc9c   :  { %9778 = vmatmul.mubr.msk.f32.vlgmr.msra.gmra.mrb[84].mxu1 %vm1592_vm2, %v4664_v38 }
 0xc9e   :  { %v4666_v27 = vpop.permute.xlu1 %4665  ;;  %v4672_v40 = vpop.permute.xlu0 %4671 }
 0xc9f   :  { %9780 = vmatprep.mubr.msk.f32.mxu1 %vm1592_vm2, %v4666_v27 }
 0xca0   :  { %9781 = vmatmul.mubr.msk.f32.gmra.mrb[86].mxu1 %vm1592_vm2, %v4668_v45 }
 0xca2   :  { %v4670_v12 = vpop.permute.xlu1 %4669  ;;  %v4676_v52 = vpop.permute.xlu0 %4675 }
 0xca3   :  { %9783 = vmatprep.mubr.msk.f32.mxu1 %vm1592_vm2, %v4670_v12 }
 0xca4   :  { %9784 = vmatmul.mubr.msk.f32.gmra.mrb[88].mxu1 %vm1592_vm2, %v4672_v40 }
 0xca6   :  { %v4674_v15 = vpop.permute.xlu1 %4673 }
 0xca7   :  { %9786 = vmatprep.mubr.msk.f32.mxu1 %vm1592_vm2, %v4674_v15 }
 0xca8   :  { %9787 = vmatmul.mubr.msk.f32.gmra.mrb[90].mxu1 %vm1592_vm2, %v4676_v52 }
 0xd2b   :  { %v13642_v16 = vpop.f32.mrb[68].mxu1 }
 0xd2c   :  { %v13644_v44 = vpop.f32.mrb[69].mxu1 }
 0xd2f   :  { %v13646_v32 = vpop.f32.mrb[70].mxu1 }
 0xd30   :  { %v13648_v21 = vpop.f32.mrb[71].mxu1 }
 0xd33   :  { %v13650_v53 = vpop.f32.mrb[72].mxu1 }
 0xd34   :  { %v13652_v20 = vpop.f32.mrb[73].mxu1 }
 0xd37   :  { %v13654_v54 = vpop.f32.mrb[74].mxu1 }
 0xd38   :  { %v13656_v29 = vpop.f32.mrb[75].mxu1 }
 0xd3b   :  { %v9751_v24 = vpop.f32.mrb[76].mxu1 }
 0xd3c   :  { %v13658_v31 = vmul.f32 0.17677669, %v9751_v24  ;;  %v4393_v57 = vpop.f32.mrb[77].mxu1 }
 0xd3d   :  { %v13660_v34 = vmul.f32 0.17677669, %v4393_v57 }
 0xd3e   :  { %v4444_v23 = vsel %vm4440_vm4, %v13658_v31, -inf }
 0xd3f   :  { %4445 = vmax.xlane.f32.xlu0 %v4444_v23  ;;  %v9754_v28 = vpop.f32.mrb[78].mxu1  ;;  %v4441_v63 = vsel %vm4440_vm4, %v13660_v34, -inf }
 0xd40   :  { %v13666_v9 = vmul.f32 0.17677669, %v9754_v28  ;;  %4442 = vmax.xlane.f32.xlu1 %v4441_v63  ;;  %v4403_v46 = vpop.f32.mrb[79].mxu1 }
 0xd41   :  { %v13668_v18 = vmul.f32 0.17677669, %v4403_v46 }
 0xd42   :  { %v4450_v10 = vsel %vm4440_vm4, %v13666_v9, -inf }
 0xd43   :  { %4451 = vmax.xlane.f32.xlu0 %v4450_v10  ;;  %v9757_v42 = vpop.f32.mrb[80].mxu1  ;;  %v4447_v7 = vsel %vm4440_vm4, %v13668_v18, -inf }
 0xd44   :  { %v4413_v3 = vpop.f32.mrb[81].mxu1  ;;  %v13674_v25 = vmul.f32 0.17677669, %v9757_v42 }
 0xd45   :  { %v13672_v62 = vmul.f32 0.17677669, %v4413_v3 }
 0xd46   :  { %v4456_v41 = vsel %vm4440_vm4, %v13674_v25, -inf }
 0xd47   :  { %4448 = vmax.xlane.f32.xlu0 %v4447_v7  ;;  %v9760_v30 = vpop.f32.mrb[82].mxu1  ;;  %v4453_v19 = vsel %vm4440_vm4, %v13672_v62, -inf }
 0xd48   :  { %4454 = vmax.xlane.f32.xlu1 %v4453_v19  ;;  %v4423_v8 = vpop.f32.mrb[83].mxu1  ;;  %v13682_v17 = vmul.f32 0.17677669, %v9760_v30 }
 0xd49   :  { %v13680_v51 = vmul.f32 0.17677669, %v4423_v8 }
 0xd4a   :  { %v4462_v2 = vsel %vm4440_vm4, %v13682_v17, -inf }
 0xd4b   :  { %4457 = vmax.xlane.f32.xlu0 %v4456_v41  ;;  %v4459_v22 = vsel %vm4440_vm4, %v13680_v51, -inf }
 0xd4c   :  { %4460 = vmax.xlane.f32.xlu1 %v4459_v22 }
 0xd4f   :  { %4463 = vmax.xlane.f32.xlu0 %v4462_v2 }
 0xd6f   :  { %v9779_v37 = vpop.f32.mrb[84].mxu1 }
 0xd70   :  { %v4803_v58 = vmul.f32 0.17677669, %v9779_v37  ;;  %v4763_v14 = vpop.f32.mrb[85].mxu1 }
 0xd71   :  { %v4802_v39 = vmul.f32 0.17677669, %v4763_v14 }
 0xd72   :  { %v4813_v5 = vsel %vm4440_vm4, %v4803_v58, -inf }
 0xd73   :  { %4814 = vmax.xlane.f32.xlu0 %v4813_v5  ;;  %v9782_v11 = vpop.f32.mrb[86].mxu1  ;;  %v4810_v38 = vsel %vm4440_vm4, %v4802_v39, -inf }
 0xd74   :  { %v13692_v1 = vmul.f32 0.17677669, %v9782_v11  ;;  %4811 = vmax.xlane.f32.xlu1 %v4810_v38  ;;  %v4773_v45 = vpop.f32.mrb[87].mxu1 }
 0xd75   :  { %v13694_v27 = vmul.f32 0.17677669, %v4773_v45 }
 0xd76   :  { %v4819_v40 = vsel %vm4440_vm4, %v13692_v1, -inf }
 0xd77   :  { %4820 = vmax.xlane.f32.xlu0 %v4819_v40  ;;  %v9785_v12 = vpop.f32.mrb[88].mxu1  ;;  %v4816_v15 = vsel %vm4440_vm4, %v13694_v27, -inf }
 0xd78   :  { %v13700_v52 = vmul.f32 0.17677669, %v9785_v12  ;;  %4817 = vmax.xlane.f32.xlu1 %v4816_v15  ;;  %v4783_v24 = vpop.f32.mrb[89].mxu1 }
 0xd79   :  { %v13702_v57 = vmul.f32 0.17677669, %v4783_v24 }
 0xd7a   :  { %v4825_v23 = vsel %vm4440_vm4, %v13700_v52, -inf }
 0xd7b   :  { %4826 = vmax.xlane.f32.xlu0 %v4825_v23  ;;  %v9788_v28 = vpop.f32.mrb[90].mxu1  ;;  %v4822_v63 = vsel %vm4440_vm4, %v13702_v57, -inf }
 0xd7c   :  { %v13708_v46 = vmul.f32 0.17677669, %v9788_v28  ;;  %4823 = vmax.xlane.f32.xlu1 %v4822_v63  ;;  %v4793_v10 = vpop.f32.mrb[91].mxu1 }
 0xd7d   :  { %v13710_v42 = vmul.f32 0.17677669, %v4793_v10 }
 0xd7e   :  { %v4831_v3 = vsel %vm4440_vm4, %v13708_v46, -inf }
 0xd7f   :  { %4832 = vmax.xlane.f32.xlu0 %v4831_v3  ;;  %v4828_v7 = vsel %vm4440_vm4, %v13710_v42, -inf }
 0xd83   :  { %4829 = vmax.xlane.f32.xlu0 %v4828_v7 }
 0xd8d   :  { %4513 = vrot.lane.b32.xlu1 %v13499_v0, %s11456_s3 }
 0xd99   :  { %4882 = vrot.lane.b32.xlu0 %v13499_v0, %s11457_s2 }
 0xdcc   :  { %v4446_v2 = vpop.xlane.xlu0 %4445 }
 0xdcd   :  { %v4443_v30 = vpop.xlane.xlu1 %4442  ;;  %v4466_v38 = vsub.f32 %v13658_v31, %v4446_v2 }
 0xdce   :  { %v4465_v19 = vsub.f32 %v13660_v34, %v4443_v30 }
 0xdcf   :  { %v4475_v34 = vmul.f32 1.442695, %v4466_v38 }
 0xdd0   :  { %v4473_v8 = vmul.f32 1.442695, %v4465_v19  ;;  %v4452_v37 = vpop.xlane.xlu0 %4451 }
 0xdd1   :  { %v4468_v12 = vsub.f32 %v13666_v9, %v4452_v37 }
 0xdd2   :  { %10831 = vpow2.f32 %v4473_v8 }
 0xdd3   :  { %10833 = vpow2.f32 %v4475_v34  ;;  %v4479_v30 = vmul.f32 1.442695, %v4468_v12 }
 0xdd4   :  { %v4449_v14 = vpop.xlane.xlu0 %4448 }
 0xdd5   :  { %v4455_v11 = vpop.xlane.xlu1 %4454  ;;  %v4467_v0 = vsub.f32 %v13668_v18, %v4449_v14 }
 0xdd6   :  { %v4469_v63 = vsub.f32 %v13672_v62, %v4455_v11 }
 0xdd7   :  { %v4477_v15 = vmul.f32 1.442695, %v4467_v0 }
 0xdd8   :  { %v4458_v5 = vpop.xlane.xlu0 %4457  ;;  %v4481_v9 = vmul.f32 1.442695, %v4469_v63 }
 0xdd9   :  { %v4461_v40 = vpop.xlane.xlu1 %4460  ;;  %v4470_v3 = vsub.f32 %v13674_v25, %v4458_v5  ;;  %10835 = vpow2.f32 %v4477_v15 }
 0xddb   :  { %v4483_v62 = vmul.f32 1.442695, %v4470_v3 }
 0xddc   :  { %v10832_v41 = vpop.eup %10831  ;;  %v4464_v45 = vpop.xlane.xlu0 %4463 }
 0xddd   :  { %9763 = vmatprep.mubr.msk.f32.mxu0 %vm4440_vm4, %v10832_v41  ;;  %v4489_v22 = vsel %vm4440_vm4, %v10832_v41, 0.0  ;;  %v4471_v41 = vsub.f32 %v13680_v51, %v4461_v40  ;;  %v10834_v0 = vpop.eup %10833 }
 0xdde   :  { %4490 = vadd.xlane.f32.xlu1 %v4489_v22 }
 0xde3   :  { %v10836_v40 = vpop.eup %10835 }
 0xe00   :  { %v4815_v24 = vpop.xlane.xlu0 %4814 }
 0xe01   :  { %v4835_v23 = vsub.f32 %v4803_v58, %v4815_v24  ;;  %v4812_v28 = vpop.xlane.xlu1 %4811 }
 0xe02   :  { %v4834_v10 = vsub.f32 %v4802_v39, %v4812_v28  ;;  %v4472_v39 = vsub.f32 %v13682_v17, %v4464_v45 }
 0xe03   :  { %v4844_v7 = vmul.f32 1.442695, %v4835_v23 }
 0xe04   :  { %v4842_v31 = vmul.f32 1.442695, %v4834_v10  ;;  %v4821_v18 = vpop.xlane.xlu0 %4820  ;;  %v4487_v51 = vmul.f32 1.442695, %v4472_v39 }
 0xe05   :  { %10837 = vpow2.f32 %v4844_v7  ;;  %v4837_v19 = vsub.f32 %v13692_v1, %v4821_v18  ;;  %v4818_v8 = vpop.xlane.xlu1 %4817  ;;  %v4485_v1 = vmul.f32 1.442695, %v4471_v41 }
 0xe06   :  { %10839 = vpow2.f32 %v4842_v31  ;;  %v4836_v58 = vsub.f32 %v13694_v27, %v4818_v8 }
 0xe07   :  { %v4848_v22 = vmul.f32 1.442695, %v4837_v19  ;;  %10841 = vpow2.f32 %v4479_v30 }
 0xe08   :  { %v4846_v25 = vmul.f32 1.442695, %v4836_v58  ;;  %v4827_v2 = vpop.xlane.xlu0 %4826 }
 0xe09   :  { %10843 = vpow2.f32 %v4848_v22  ;;  %v4839_v37 = vsub.f32 %v13700_v52, %v4827_v2  ;;  %v4824_v14 = vpop.xlane.xlu1 %4823  ;;  %v4492_v22 = vsel %vm4440_vm4, %v10834_v0, 0.0 }
 0xe0a   :  { %10845 = vpow2.f32 %v4481_v9  ;;  %v4838_v5 = vsub.f32 %v13702_v57, %v4824_v14 }
 0xe0b   :  { %10847 = vpow2.f32 %v4483_v62  ;;  %v4852_v11 = vmul.f32 1.442695, %v4839_v37 }
 0xe0c   :  { %10849 = vpow2.f32 %v4846_v25  ;;  %v4850_v27 = vmul.f32 1.442695, %v4838_v5  ;;  %v4833_v38 = vpop.xlane.xlu0 %4832  ;;  %v4495_v25 = vsel %vm4440_vm4, %v10836_v40, 0.0 }
 0xe0d   :  { %10851 = vpow2.f32 %v4852_v11  ;;  %v4841_v17 = vsub.f32 %v13708_v46, %v4833_v38  ;;  %v4514_v45 = vpop.permute.xlu1 %4513 }
 0xe0e   :  { %10853 = vpow2.f32 %v4485_v1  ;;  %9761 = vmatprep.subr.mxu0 %v4514_v45 }
 0xe0f   :  { %v10838_v52 = vpop.eup %10837  ;;  %10855 = vpow2.f32 %v4487_v51  ;;  %v4856_v34 = vmul.f32 1.442695, %v4841_v17  ;;  %9762 = vmatpush3.msra.mxu0 %v4514_v45 }
 0xe10   :  { %v10840_v12 = vpop.eup %10839  ;;  %10857 = vpow2.f32 %v4850_v27  ;;  %9764 = vmatmul.mubr.msk.f32.vlgmr.msra.gmra.mrb[78].mxu0 %vm4440_vm4, %v10834_v0  ;;  %v4830_v57 = vpop.xlane.xlu0 %4829  ;;  %v4861_v15 = vsel %vm4440_vm4, %v10838_v52, 0.0 }
 0xe11   :  { %10859 = vpow2.f32 %v4856_v34  ;;  %9766 = vmatprep.mubr.msk.f32.mxu0 %vm4440_vm4, %v10836_v40  ;;  %4862 = vadd.xlane.f32.xlu0 %v4861_v15  ;;  %v4858_v46 = vsel %vm4440_vm4, %v10840_v12, 0.0  ;;  %v10842_v24 = vpop.eup %10841  ;;  %v4840_v63 = vsub.f32 %v13710_v42, %v4830_v57 }
 0xe12   :  { %4859 = vadd.xlane.f32.xlu1 %v4858_v46  ;;  %v4498_v2 = vsel %vm4440_vm4, %v10842_v24, 0.0 }
 0xe13   :  { %v10844_v23 = vpop.eup %10843  ;;  %v4854_v19 = vmul.f32 1.442695, %v4840_v63 }
 0xe14   :  { %v10846_v28 = vpop.eup %10845  ;;  %9767 = vmatmul.mubr.msk.f32.gmra.mrb[80].mxu0 %vm4440_vm4, %v10842_v24  ;;  %v4883_v10 = vpop.permute.xlu0 %4882  ;;  %v4867_v3 = vsel %vm4440_vm4, %v10844_v23, 0.0 }
 0xe15   :  { %v10848_v7 = vpop.eup %10847  ;;  %9769 = vmatprep.mubr.msk.f32.mxu0 %vm4440_vm4, %v10846_v28  ;;  %9789 = vmatprep.subr.mxu0 %v4883_v10  ;;  %10861 = vpow2.f32 %v4854_v19  ;;  %v4501_v37 = vsel %vm4440_vm4, %v10846_v28, 0.0  ;;  %v4294_v19 = vld [vmem:[#allocation14 + $0x10] sm:$0xff] }
 0xe16   :  { %v10850_v30 = vpop.eup %10849  ;;  %4868 = vadd.xlane.f32.xlu1 %v4867_v3  ;;  %9790 = vmatpush3.msra.mxu0 %v4883_v10  ;;  %v4504_v1 = vsel %vm4440_vm4, %v10848_v7, 0.0 }
 0xe17   :  { %v10852_v31 = vpop.eup %10851  ;;  %9843 = vmatprep.subr.msk.mxu0 %vm1592_vm2, %v13494_v4  ;;  %v4864_v9 = vsel %vm4440_vm4, %v10850_v30, 0.0 }
 0xe18   :  { %v10854_v18 = vpop.eup %10853  ;;  %9770 = vmatmul.mubr.msk.f32.gmra.mrb[82].mxu0 %vm4440_vm4, %v10848_v7  ;;  %v4873_v42 = vsel %vm4440_vm4, %v10852_v31, 0.0 }
 0xe19   :  { %v10856_v8 = vpop.eup %10855  ;;  %9772 = vmatprep.mubr.msk.f32.mxu0 %vm4440_vm4, %v10854_v18  ;;  %4874 = vadd.xlane.f32.xlu0 %v4873_v42  ;;  %v4507_v11 = vsel %vm4440_vm4, %v10854_v18, 0.0  ;;  %v4295_v42 = vld [vmem:[#allocation14 + $0x18] sm:$0xff] }
 0xe1a   :  { %v10858_v41 = vpop.eup %10857  ;;  %4865 = vadd.xlane.f32.xlu1 %v4864_v9  ;;  %v4510_v51 = vsel %vm4440_vm4, %v10856_v8, 0.0 }
 0xe1b   :  { %v10860_v58 = vpop.eup %10859  ;;  %v4870_v39 = vsel %vm4440_vm4, %v10858_v41, 0.0 }
 0xe1c   :  { %9773 = vmatmul.mubr.msk.f32.gmra.mrb[84].mxu0 %vm4440_vm4, %v10856_v8  ;;  %v4879_v62 = vsel %vm4440_vm4, %v10860_v58, 0.0 }
 0xe1d   :  { %9791 = vmatprep.mubr.msk.f32.mxu0 %vm4440_vm4, %v10840_v12  ;;  %4880 = vadd.xlane.f32.xlu0 %v4879_v62 }
 0xe1e   :  { %4871 = vadd.xlane.f32.xlu1 %v4870_v39  ;;  %v13831_v39 = vpack.c.bf16 %v4295_v42, %v4294_v19 }
 0xe1f   :  { %v10862_v14 = vpop.eup %10861 }
 0xe20   :  { %9792 = vmatmul.mubr.msk.f32.vlgmr.msra.gmra.mrb[86].mxu0 %vm4440_vm4, %v10838_v52  ;;  %v4876_v5 = vsel %vm4440_vm4, %v10862_v14, 0.0 }
 0xe21   :  { %9844 = vmatpush3.xpose.msk.msra.mxu0 %vm1592_vm2, %v13494_v4  ;;  %4493 = vadd.xlane.f32.xlu0 %v4492_v22 }
 0xe22   :  { %9794 = vmatprep.mubr.msk.f32.mxu0 %vm4440_vm4, %v10850_v30  ;;  %4496 = vadd.xlane.f32.xlu1 %v4495_v25 }
 0xe24   :  { %9795 = vmatmul.mubr.msk.f32.gmra.mrb[88].mxu0 %vm4440_vm4, %v10844_v23 }
 0xe25   :  { %4499 = vadd.xlane.f32.xlu0 %v4498_v2  ;;  %9797 = vmatprep.mubr.msk.f32.mxu0 %vm4440_vm4, %v10858_v41 }
 0xe26   :  { %4502 = vadd.xlane.f32.xlu1 %v4501_v37 }
 0xe28   :  { %9798 = vmatmul.mubr.msk.f32.gmra.mrb[90].mxu0 %vm4440_vm4, %v10852_v31 }
 0xe29   :  { %4505 = vadd.xlane.f32.xlu0 %v4504_v1  ;;  %9800 = vmatprep.mubr.msk.f32.mxu0 %vm4440_vm4, %v10862_v14 }
 0xe2a   :  { %4877 = vadd.xlane.f32.xlu1 %v4876_v5 }
 0xe2c   :  { %9801 = vmatmul.mubr.msk.f32.gmra.mrb[92].mxu0 %vm4440_vm4, %v10860_v58 }
 0xe2d   :  { %4511 = vadd.xlane.f32.xlu0 %v4510_v51  ;;  %9845 = vmatprep.mubr.msk.f32.mxu0 %vm1592_vm2, %v13644_v44 }
 0xe2e   :  { %4508 = vadd.xlane.f32.xlu1 %v4507_v11 }
 0xe30   :  { %9846 = vmatmul.mubr.msk.f32.vlgmr.msra.gmra.mrb[94].mxu0 %vm1592_vm2, %v13642_v16 }
 0xe31   :  { %9848 = vmatprep.mubr.msk.f32.mxu0 %vm1592_vm2, %v13648_v21 }
 0xe34   :  { %9849 = vmatmul.mubr.msk.f32.gmra.mrb[96].mxu0 %vm1592_vm2, %v13646_v32 }
 0xe35   :  { %9851 = vmatprep.mubr.msk.f32.mxu0 %vm1592_vm2, %v13652_v20 }
 0xe38   :  { %9852 = vmatmul.mubr.msk.f32.gmra.mrb[98].mxu0 %vm1592_vm2, %v13650_v53 }
 0xe39   :  { %9854 = vmatprep.mubr.msk.f32.mxu0 %vm1592_vm2, %v13656_v29 }
 0xe3c   :  { %9855 = vmatmul.mubr.msk.f32.gmra.mrb[100].mxu0 %vm1592_vm2, %v13654_v54 }
 0xe3f   :  { %5664 = vrot.lane.b32.xlu1 %v13494_v4, %s11458_s24 }
 0xe43   :  { %5648 = vrot.lane.b32.xlu0 %v13644_v44, %s11458_s24  ;;  %5650 = vrot.lane.b32.xlu1 %v13642_v16, %s11458_s24  ;;  %v4296_v44 = vld [vmem:[#allocation14 + $0x20] sm:$0xff]  ;;  %v4297_v16 = vld [vmem:[#allocation14 + $0x28] sm:$0xff] }
 0xe44   :  { %v13804_v27 = vpack.c.bf16 %v4297_v16, %v4296_v44 }
 0xe46   :  { %10284 = vmatprep.subr.bf16.mxu1 %v13804_v27 }
 0xe47   :  { %5656 = vrot.lane.b32.xlu0 %v13652_v20, %s11458_s24  ;;  %5652 = vrot.lane.b32.xlu1 %v13648_v21, %s11458_s24  ;;  %v4298_v21 = vld [vmem:[#allocation14 + $0x30] sm:$0xff]  ;;  %v4299_v20 = vld [vmem:[#allocation14 + $0x38] sm:$0xff] }
 0xe48   :  { %10286 = vmatpush3.bf16.msra.mxu1 %v13804_v27 }
 0xe4b   :  { %5660 = vrot.lane.b32.xlu0 %v13656_v29, %s11458_s24  ;;  %5654 = vrot.lane.b32.xlu1 %v13646_v32, %s11458_s24  ;;  %v13808_v29 = vpack.c.bf16 %v4299_v20, %v4298_v21  ;;  %v4292_v32 = vld [vmem:[#allocation14] sm:$0xff] }
 0xe4d   :  { %10288 = vmatprep.subr.bf16.mxu1 %v13808_v29 }
 0xe4e   :  { %10290 = vmatpush3.bf16.msra.mxu1 %v13808_v29 }
 0xe4f   :  { %5658 = vrot.lane.b32.xlu1 %v13650_v53, %s11458_s24  ;;  %v4293_v53 = vld [vmem:[#allocation14 + $0x8] sm:$0xff] }
 0xe50   :  { %v13812_v38 = vpack.c.bf16 %v4293_v53, %v4292_v32 }
 0xe52   :  { %10292 = vmatprep.subr.bf16.mxu1 %v13812_v38 }
 0xe53   :  { %5662 = vrot.lane.b32.xlu1 %v13654_v54, %s11458_s24 }
 0xe6b   :  { %v4491_v54 = vpop.xlane.xlu1 %4490 }
 0xe9e   :  { %v4863_v52 = vpop.xlane.xlu0 %4862 }
 0xe9f   :  { %v4860_v0 = vpop.xlane.xlu1 %4859 }
 0xea0   :  { %10863 = vrcp.f32 %v4860_v0 }
 0xea1   :  { %10865 = vrcp.f32 %v4863_v52 }
 0xea3   :  { %v4869_v17 = vpop.xlane.xlu1 %4868 }
 0xea6   :  { %v4875_v15 = vpop.xlane.xlu0 %4874 }
 0xea7   :  { %v4866_v45 = vpop.xlane.xlu1 %4865 }
 0xea8   :  { %10867 = vrcp.f32 %v4866_v45 }
 0xea9   :  { %10869 = vrcp.f32 %v4869_v17 }
 0xeaa   :  { %v4881_v63 = vpop.xlane.xlu0 %4880  ;;  %v10864_v8 = vpop.eup %10863 }
 0xeab   :  { %v4872_v40 = vpop.xlane.xlu1 %4871  ;;  %v10866_v41 = vpop.eup %10865 }
 0xeac   :  { %10871 = vrcp.f32 %v4872_v40 }
 0xead   :  { %10873 = vrcp.f32 %v4875_v15 }
 0xeae   :  { %v4494_v31 = vpop.xlane.xlu0 %4493 }
 0xeaf   :  { %v4497_v57 = vpop.xlane.xlu1 %4496 }
 0xeb2   :  { %v10868_v2 = vpop.eup %10867  ;;  %v4500_v37 = vpop.xlane.xlu0 %4499 }
 0xeb3   :  { %v4503_v23 = vpop.xlane.xlu1 %4502  ;;  %v10870_v1 = vpop.eup %10869 }
 0xeb6   :  { %v10872_v44 = vpop.eup %10871  ;;  %v4506_v53 = vpop.xlane.xlu0 %4505 }
 0xeb7   :  { %v4878_v30 = vpop.xlane.xlu1 %4877  ;;  %v10874_v21 = vpop.eup %10873 }
 0xeb8   :  { %10875 = vrcp.f32 %v4878_v30 }
 0xeb9   :  { %10877 = vrcp.f32 %v4881_v63 }
 0xeba   :  { %10879 = vrcp.f32 %v4491_v54 }
 0xebb   :  { %v4509_v22 = vpop.xlane.xlu1 %4508  ;;  %10881 = vrcp.f32 %v4494_v31  ;;  %v4512_v31 = vpop.xlane.xlu0 %4511 }
 0xebc   :  { %10883 = vrcp.f32 %v4497_v57 }
 0xebd   :  { %10885 = vrcp.f32 %v4500_v37 }
 0xebe   :  { %10887 = vrcp.f32 %v4503_v23 }
 0xebf   :  { %v5665_v20 = vpop.permute.xlu1 %5664  ;;  %10889 = vrcp.f32 %v4506_v53 }
 0xec0   :  { %10891 = vrcp.f32 %v4509_v22 }
 0xec1   :  { %10893 = vrcp.f32 %v4512_v31 }
 0xec2   :  { %v10876_v17 = vpop.eup %10875 }
 0xec3   :  { %v10878_v40 = vpop.eup %10877 }
 0xec4   :  { %v10880_v57 = vpop.eup %10879 }
 0xec5   :  { %v10882_v19 = vpop.eup %10881 }
 0xee3   :  { %v13815_v34 = vpop.f32.mrb[78].mxu0 }
 0xee4   :  { %v13817_v12 = vpop.f32.mrb[79].mxu0 }
 0xee5   :  { %v4653_v63 = vmul.f32 %v10880_v57, %v13817_v12 }
 0xee7   :  { %v13819_v46 = vpop.f32.mrb[80].mxu0 }
 0xee8   :  { %v13821_v24 = vpop.f32.mrb[81].mxu0 }
 0xeeb   :  { %v13823_v28 = vpop.f32.mrb[82].mxu0 }
 0xeec   :  { %v13825_v10 = vpop.f32.mrb[83].mxu0 }
 0xeef   :  { %v13827_v3 = vpop.f32.mrb[84].mxu0 }
 0xef0   :  { %v13829_v7 = vpop.f32.mrb[85].mxu0 }
 0xef3   :  { %v9793_v18 = vpop.f32.mrb[86].mxu0 }
 0xef4   :  { %v4975_v9 = vpop.f32.mrb[87].mxu0  ;;  %v5023_v62 = vmul.f32 %v10866_v41, %v9793_v18 }
 0xef5   :  { %v5022_v58 = vmul.f32 %v10864_v8, %v4975_v9  ;;  %v10884_v8 = vpop.eup %10883  ;;  %v4654_v9 = vmul.f32 %v10882_v19, %v13815_v34 }
 0xef6   :  { %v4655_v41 = vmul.f32 %v10884_v8, %v13821_v24 }
 0xef7   :  { %v9796_v25 = vpop.f32.mrb[88].mxu0  ;;  %9811 = vmatprep.mubr.msk.f32.mxu1 %vm1592_vm2, %v5022_v58 }
 0xef8   :  { %v4985_v14 = vpop.f32.mrb[89].mxu0  ;;  %9812 = vmatmul.mubr.msk.f32.vlgmr.msra.gmra.mrb[92].mxu1 %vm1592_vm2, %v5023_v62  ;;  %v5025_v51 = vmul.f32 %v10870_v1, %v9796_v25 }
 0xef9   :  { %v5024_v5 = vmul.f32 %v10868_v2, %v4985_v14  ;;  %10294 = vmatpush3.bf16.msra.mxu1 %v13812_v38  ;;  %v10886_v2 = vpop.eup %10885  ;;  %v5651_v14 = vpop.permute.xlu1 %5650 }
 0xefa   :  { %10296 = vmatprep.subr.bf16.mxu1 %v13831_v39  ;;  %v10888_v34 = vpop.eup %10887  ;;  %v4656_v37 = vmul.f32 %v10886_v2, %v13819_v46 }
 0xefb   :  { %v9799_v11 = vpop.f32.mrb[90].mxu0  ;;  %9814 = vmatprep.mubr.msk.f32.mxu1 %vm1592_vm2, %v5024_v5  ;;  %v4657_v1 = vmul.f32 %v10888_v34, %v13825_v10 }
 0xefc   :  { %v4995_v16 = vpop.f32.mrb[91].mxu0  ;;  %9815 = vmatmul.mubr.msk.f32.gmra.mrb[94].mxu1 %vm1592_vm2, %v5025_v51  ;;  %v5027_v54 = vmul.f32 %v10874_v21, %v9799_v11 }
 0xefd   :  { %v5026_v32 = vmul.f32 %v10872_v44, %v4995_v16  ;;  %10298 = vmatpush3.bf16.msra.mxu1 %v13831_v39  ;;  %v10890_v16 = vpop.eup %10889 }
 0xefe   :  { %9871 = vmatprep.subr.msk.mxu1 %vm1592_vm2, %v5665_v20  ;;  %v10892_v46 = vpop.eup %10891  ;;  %v4658_v21 = vmul.f32 %v10890_v16, %v13823_v28  ;;  %v5653_v28 = vpop.permute.xlu1 %5652 }
 0xeff   :  { %v9802_v0 = vpop.f32.mrb[92].mxu0  ;;  %9817 = vmatprep.mubr.msk.f32.mxu1 %vm1592_vm2, %v5026_v32  ;;  %v4659_v10 = vmul.f32 %v10892_v46, %v13829_v7 }
 0xf00   :  { %v5005_v45 = vpop.f32.mrb[93].mxu0  ;;  %9818 = vmatmul.mubr.msk.f32.gmra.mrb[96].mxu1 %vm1592_vm2, %v5027_v54  ;;  %v5029_v15 = vmul.f32 %v10878_v40, %v9802_v0 }
 0xf01   :  { %v5028_v52 = vmul.f32 %v10876_v17, %v5005_v45  ;;  %v10894_v45 = vpop.eup %10893 }
 0xf02   :  { %v4660_v40 = vmul.f32 %v10894_v45, %v13827_v3 }
 0xf03   :  { %9820 = vmatprep.mubr.msk.f32.mxu1 %vm1592_vm2, %v5028_v52  ;;  %v9847_v30 = vpop.f32.mrb[94].mxu0 }
 0xf04   :  { %v13845_v18 = vmul.f32 0.17677669, %v9847_v30  ;;  %9821 = vmatmul.mubr.msk.f32.gmra.mrb[98].mxu1 %vm1592_vm2, %v5029_v15  ;;  %v5381_v23 = vpop.f32.mrb[95].mxu0  ;;  %v5649_v15 = vpop.permute.xlu0 %5648 }
 0xf05   :  { %v13848_v42 = vmul.f32 0.17677669, %v5381_v23  ;;  %9831 = vmatprep.mubr.msk.f32.mxu1 %vm1592_vm2, %v4653_v63  ;;  %v5655_v63 = vpop.permute.xlu1 %5654 }
 0xf06   :  { %v5431_v12 = vsel %vm4440_vm4, %v13845_v18, -inf }
 0xf07   :  { %5432 = vmax.xlane.f32.xlu1 %v5431_v12  ;;  %v9850_v58 = vpop.f32.mrb[96].mxu0  ;;  %v5428_v62 = vsel %vm4440_vm4, %v13848_v42, -inf }
 0xf08   :  { %v13857_v22 = vmul.f32 0.17677669, %v9850_v58  ;;  %5429 = vmax.xlane.f32.xlu0 %v5428_v62  ;;  %9832 = vmatmul.mubr.msk.f32.vlgmr.msra.gmra.mrb[92].mxu1 %vm1592_vm2, %v4654_v9  ;;  %v5391_v25 = vpop.f32.mrb[97].mxu0  ;;  %v5657_v3 = vpop.permute.xlu0 %5656 }
 0xf09   :  { %9872 = vmatpush3.xpose.msk.msra.mxu1 %vm1592_vm2, %v5665_v20  ;;  %9834 = vmatprep.mubr.msk.f32.mxu1 %vm1592_vm2, %v4655_v41  ;;  %v13867_v5 = vmul.f32 0.17677669, %v5391_v25  ;;  %v5659_v31 = vpop.permute.xlu1 %5658 }
 0xf0a   :  { %v5437_v24 = vsel %vm4440_vm4, %v13857_v22, -inf  ;;  %10300 = vmatprep.subr.bf16.mxu1 %v13804_v27 }
 0xf0b   :  { %v9853_v51 = vpop.f32.mrb[98].mxu0  ;;  %v5434_v54 = vsel %vm4440_vm4, %v13867_v5, -inf }
 0xf0c   :  { %v13869_v11 = vmul.f32 0.17677669, %v9853_v51  ;;  %5438 = vmax.xlane.f32.xlu0 %v5437_v24  ;;  %9835 = vmatmul.mubr.msk.f32.gmra.mrb[94].mxu1 %vm1592_vm2, %v4656_v37  ;;  %v5401_v44 = vpop.f32.mrb[99].mxu0  ;;  %v5661_v23 = vpop.permute.xlu0 %5660 }
 0xf0d   :  { %9837 = vmatprep.mubr.msk.f32.mxu1 %vm1592_vm2, %v4657_v1  ;;  %v13877_v32 = vmul.f32 0.17677669, %v5401_v44  ;;  %v5663_v19 = vpop.permute.xlu1 %5662 }
 0xf0e   :  { %v5443_v20 = vsel %vm4440_vm4, %v13869_v11, -inf }
 0xf0f   :  { %5444 = vmax.xlane.f32.xlu1 %v5443_v20  ;;  %v9856_v53 = vpop.f32.mrb[100].mxu0  ;;  %v5440_v57 = vsel %vm4440_vm4, %v13877_v32, -inf }
 0xf10   :  { %v13881_v0 = vmul.f32 0.17677669, %v9856_v53  ;;  %5435 = vmax.xlane.f32.xlu0 %v5434_v54  ;;  %9838 = vmatmul.mubr.msk.f32.gmra.mrb[96].mxu1 %vm1592_vm2, %v4658_v21  ;;  %v5411_v17 = vpop.f32.mrb[101].mxu0 }
 0xf11   :  { %9840 = vmatprep.mubr.msk.f32.mxu1 %vm1592_vm2, %v4659_v10  ;;  %v13888_v52 = vmul.f32 0.17677669, %v5411_v17 }
 0xf12   :  { %v5449_v7 = vsel %vm4440_vm4, %v13881_v0, -inf }
 0xf13   :  { %5450 = vmax.xlane.f32.xlu1 %v5449_v7  ;;  %v5446_v30 = vsel %vm4440_vm4, %v13888_v52, -inf }
 0xf14   :  { %5441 = vmax.xlane.f32.xlu0 %v5440_v57  ;;  %9841 = vmatmul.mubr.msk.f32.gmra.mrb[98].mxu1 %vm1592_vm2, %v4660_v40 }
 0xf15   :  { %9873 = vmatprep.mubr.msk.f32.mxu1 %vm1592_vm2, %v5649_v15 }
 0xf18   :  { %5447 = vmax.xlane.f32.xlu0 %v5446_v30  ;;  %9874 = vmatmul.mubr.msk.f32.vlgmr.msra.gmra.mrb[100].mxu1 %vm1592_vm2, %v5651_v14 }
 0xf19   :  { %9876 = vmatprep.mubr.msk.f32.mxu1 %vm1592_vm2, %v5653_v28  ;;  %10302 = vmatpush3.bf16.msra.mxu1 %v13804_v27 }
 0xf1a   :  { %10304 = vmatprep.subr.bf16.mxu1 %v13808_v29 }
 0xf1c   :  { %9877 = vmatmul.mubr.msk.f32.gmra.mrb[102].mxu1 %vm1592_vm2, %v5655_v63 }
 0xf1d   :  { %9879 = vmatprep.mubr.msk.f32.mxu1 %vm1592_vm2, %v5657_v3  ;;  %10306 = vmatpush3.bf16.msra.mxu1 %v13808_v29 }
 0xf1e   :  { %10308 = vmatprep.subr.bf16.mxu1 %v13812_v38 }
 0xf20   :  { %9880 = vmatmul.mubr.msk.f32.gmra.mrb[104].mxu1 %vm1592_vm2, %v5659_v31 }
 0xf21   :  { %9882 = vmatprep.mubr.msk.f32.mxu1 %vm1592_vm2, %v5661_v23 }
 0xf24   :  { %9883 = vmatmul.mubr.msk.f32.gmra.mrb[106].mxu1 %vm1592_vm2, %v5663_v19 }
 0xf95   :  { %v5430_v27 = vpop.xlane.xlu0 %5429 }
 0xf96   :  { %v5452_v8 = vsub.f32 %v13848_v42, %v5430_v27  ;;  %v5433_v27 = vpop.xlane.xlu1 %5432 }
 0xf98   :  { %v5460_v9 = vmul.f32 1.442695, %v5452_v8 }
 0xf99   :  { %v5439_v23 = vpop.xlane.xlu0 %5438 }
 0xf9a   :  { %10895 = vpow2.f32 %v5460_v9 }
 0xf9c   :  { %v5445_v8 = vpop.xlane.xlu1 %5444 }
 0xf9d   :  { %v5436_v19 = vpop.xlane.xlu0 %5435 }
 0xfa1   :  { %v5442_v9 = vpop.xlane.xlu0 %5441 }
 0xfa4   :  { %v13908_v12 = vpop.eup %10895 }
 0xfa5   :  { %9859 = vmatprep.mubr.msk.f32.mxu0 %vm4440_vm4, %v13908_v12 }
 0xfdb   :  { %v13912_v29 = vpop.f32.mrb[92].mxu1 }
 0xfdc   :  { %v13914_v41 = vpop.f32.mrb[93].mxu1 }
 0xfdf   :  { %v13916_v58 = vpop.f32.mrb[94].mxu1 }
 0xfe0   :  { %v13918_v62 = vpop.f32.mrb[95].mxu1 }
 0xfe3   :  { %v13920_v25 = vpop.f32.mrb[96].mxu1 }
 0xfe4   :  { %v13922_v2 = vpop.f32.mrb[97].mxu1 }
 0xfe7   :  { %v13924_v42 = vpop.f32.mrb[98].mxu1 }
 0xfe8   :  { %v13926_v34 = vpop.f32.mrb[99].mxu1 }
 0xfeb   :  { %v9875_v37 = vpop.f32.mrb[100].mxu1 }
 0xfec   :  { %v5790_v24 = vmul.f32 0.17677669, %v9875_v37  ;;  %v5750_v14 = vpop.f32.mrb[101].mxu1  ;;  %v5453_v37 = vsub.f32 %v13845_v18, %v5433_v27 }
 0xfed   :  { %v5789_v1 = vmul.f32 0.17677669, %v5750_v14  ;;  %v5454_v14 = vsub.f32 %v13867_v5, %v5436_v19 }
 0xfee   :  { %v5800_v51 = vsel %vm4440_vm4, %v5790_v24, -inf }
 0xfef   :  { %5801 = vmax.xlane.f32.xlu1 %v5800_v51  ;;  %v9878_v44 = vpop.f32.mrb[102].mxu1  ;;  %v5797_v16 = vsel %vm4440_vm4, %v5789_v1, -inf  ;;  %v5451_v51 = vpop.xlane.xlu1 %5450 }
 0xff0   :  { %v5792_v46 = vmul.f32 0.17677669, %v9878_v44  ;;  %5798 = vmax.xlane.f32.xlu0 %v5797_v16  ;;  %v5760_v21 = vpop.f32.mrb[103].mxu1  ;;  %v5448_v44 = vpop.xlane.xlu0 %5447  ;;  %v5462_v16 = vmul.f32 1.442695, %v5453_v37 }
 0xff1   :  { %v5791_v20 = vmul.f32 0.17677669, %v5760_v21  ;;  %v5455_v21 = vsub.f32 %v13857_v22, %v5439_v23  ;;  %v5458_v22 = vsub.f32 %v13888_v52, %v5448_v44 }
 0xff2   :  { %v5806_v10 = vsel %vm4440_vm4, %v5792_v46, -inf  ;;  %10897 = vpow2.f32 %v5462_v16 }
 0xff3   :  { %5807 = vmax.xlane.f32.xlu1 %v5806_v10  ;;  %v9881_v53 = vpop.f32.mrb[104].mxu1  ;;  %v5803_v54 = vsel %vm4440_vm4, %v5791_v20, -inf  ;;  %v5464_v10 = vmul.f32 1.442695, %v5454_v14  ;;  %v5472_v37 = vmul.f32 1.442695, %v5458_v22 }
 0xff4   :  { %v13932_v17 = vmul.f32 0.17677669, %v9881_v53  ;;  %5804 = vmax.xlane.f32.xlu0 %v5803_v54  ;;  %v5770_v45 = vpop.f32.mrb[105].mxu1 }
 0xff5   :  { %v5793_v28 = vmul.f32 0.17677669, %v5770_v45  ;;  %10899 = vpow2.f32 %v5464_v10 }
 0xff6   :  { %v5812_v40 = vsel %vm4440_vm4, %v13932_v17, -inf }
 0xff7   :  { %5813 = vmax.xlane.f32.xlu1 %v5812_v40  ;;  %v9884_v7 = vpop.f32.mrb[106].mxu1  ;;  %v5809_v57 = vsel %vm4440_vm4, %v5793_v28, -inf }
 0xff8   :  { %v13937_v15 = vmul.f32 0.17677669, %v9884_v7  ;;  %5810 = vmax.xlane.f32.xlu0 %v5809_v57  ;;  %v5780_v63 = vpop.f32.mrb[107].mxu1  ;;  %v5457_v7 = vsub.f32 %v13869_v11, %v5445_v8 }
 0xff9   :  { %v13939_v30 = vmul.f32 0.17677669, %v5780_v63  ;;  %v5466_v63 = vmul.f32 1.442695, %v5455_v21 }
 0xffa   :  { %v5818_v3 = vsel %vm4440_vm4, %v13937_v15, -inf  ;;  %v5470_v23 = vmul.f32 1.442695, %v5457_v7 }
 0xffb   :  { %5819 = vmax.xlane.f32.xlu1 %v5818_v3  ;;  %v5815_v31 = vsel %vm4440_vm4, %v13939_v30, -inf }
 0xffc   :  { %v10898_v44 = vpop.eup %10897 }
 0xfff   :  { %5816 = vmax.xlane.f32.xlu1 %v5815_v31  ;;  %v13958_v21 = vpop.eup %10899 }
0x100e   :  { %5500 = vrot.lane.b32.xlu0 %v13494_v4, %s11456_s3 }
0x1010   :  { %5869 = vrot.lane.b32.xlu1 %v13494_v4, %s11457_s2  ;;  %v5456_v4 = vsub.f32 %v13877_v32, %v5442_v9  ;;  %v5459_v32 = vsub.f32 %v13881_v0, %v5451_v51 }
0x1012   :  { %v5468_v19 = vmul.f32 1.442695, %v5456_v4  ;;  %v5474_v14 = vmul.f32 1.442695, %v5459_v32 }
0x107c   :  { %v5802_v53 = vpop.xlane.xlu1 %5801 }
0x107d   :  { %v5822_v54 = vsub.f32 %v5790_v24, %v5802_v53  ;;  %v5799_v45 = vpop.xlane.xlu0 %5798 }
0x107e   :  { %v5821_v40 = vsub.f32 %v5789_v1, %v5799_v45 }
0x107f   :  { %v5831_v57 = vmul.f32 1.442695, %v5822_v54 }
0x1080   :  { %v5829_v18 = vmul.f32 1.442695, %v5821_v40  ;;  %v5808_v5 = vpop.xlane.xlu1 %5807 }
0x1081   :  { %10901 = vpow2.f32 %v5831_v57  ;;  %v5824_v3 = vsub.f32 %v5792_v46, %v5808_v5  ;;  %v5805_v31 = vpop.xlane.xlu0 %5804 }
0x1082   :  { %10903 = vpow2.f32 %v5829_v18  ;;  %v5823_v24 = vsub.f32 %v5791_v20, %v5805_v31 }
0x1083   :  { %v5835_v1 = vmul.f32 1.442695, %v5824_v3  ;;  %10905 = vpow2.f32 %v5466_v63 }
0x1084   :  { %v5833_v27 = vmul.f32 1.442695, %v5823_v24  ;;  %v5814_v11 = vpop.xlane.xlu1 %5813 }
0x1085   :  { %10907 = vpow2.f32 %v5835_v1  ;;  %v5826_v8 = vsub.f32 %v13932_v17, %v5814_v11  ;;  %v5811_v9 = vpop.xlane.xlu0 %5810 }
0x1086   :  { %10909 = vpow2.f32 %v5468_v19  ;;  %v5825_v46 = vsub.f32 %v5793_v28, %v5811_v9 }
0x1087   :  { %10911 = vpow2.f32 %v5470_v23  ;;  %v5839_v16 = vmul.f32 1.442695, %v5826_v8  ;;  %v5479_v8 = vsel %vm4440_vm4, %v10898_v44, 0.0 }
0x1088   :  { %10913 = vpow2.f32 %v5833_v27  ;;  %v5837_v52 = vmul.f32 1.442695, %v5825_v46  ;;  %v5820_v20 = vpop.xlane.xlu1 %5819  ;;  %v13983_v46 = vld [vmem:[#allocation16] ss:$0 sm:$0xff] }
0x1089   :  { %10915 = vpow2.f32 %v5839_v16  ;;  %v5828_v0 = vsub.f32 %v13937_v15, %v5820_v20  ;;  %v5501_v51 = vpop.permute.xlu0 %5500  ;;  %v6283_v16 = vadd.f32 %v13912_v29, %v13983_v46  ;;  %v5482_v20 = vsel %vm4440_vm4, %v13958_v21, 0.0 }
0x108a   :  { %10917 = vpow2.f32 %v5472_v37  ;;  %9857 = vmatprep.subr.mxu0 %v5501_v51 }
0x108b   :  { %v10902_v17 = vpop.eup %10901  ;;  %10919 = vpow2.f32 %v5474_v14  ;;  %v5843_v10 = vmul.f32 1.442695, %v5828_v0  ;;  %9858 = vmatpush3.msra.mxu0 %v5501_v51  ;;  %v5476_v14 = vsel %vm4440_vm4, %v13908_v12, 0.0  ;;  %v6285_v12 = vadd.f32 %v13916_v58, %v13983_v46 }
0x108c   :  { %v10904_v28 = vpop.eup %10903  ;;  %10921 = vpow2.f32 %v5837_v52  ;;  %v5817_v53 = vpop.xlane.xlu1 %5816  ;;  %9860 = vmatmul.mubr.msk.f32.vlgmr.msra.gmra.mrb[102].mxu0 %vm4440_vm4, %v10898_v44  ;;  %v5848_v54 = vsel %vm4440_vm4, %v10902_v17, 0.0  ;;  %v13996_v44 = vadd.f32 %v6283_v16, %v13269_v33  ;;  %v6282_v0 = vadd.f32 %v13983_v46, %v13914_v41 }
0x108d   :  { %10923 = vpow2.f32 %v5843_v10  ;;  %v5827_v45 = vsub.f32 %v13939_v30, %v5817_v53  ;;  %5849 = vadd.xlane.f32.xlu1 %v5848_v54  ;;  %9862 = vmatprep.mubr.msk.f32.mxu0 %vm4440_vm4, %v13958_v21  ;;  %v5845_v15 = vsel %vm4440_vm4, %v10904_v28, 0.0  ;;  %v10906_v4 = vpop.eup %10905  ;;  %v14007_v21 = vadd.f32 %v6285_v12, %v13281_v36 }
0x108e   :  { %5846 = vadd.xlane.f32.xlu0 %v5845_v15  ;;  %v5485_v37 = vsel %vm4440_vm4, %v10906_v4, 0.0  ;;  %15837 = vst [vmem:[#allocation33_spill] sm:$0xff] %v13996_v44  ;;  %v6287_v33 = vadd.f32 %v13920_v25, %v13983_v46  ;;  %v6319_v58 = vsel %vm267_vm1, %v13996_v44, 0.0  ;;  %v14014_v10 = vadd.f32 %v6282_v0, %v13272_v13 }
0x108f   :  { %v10908_v40 = vpop.eup %10907  ;;  %v5841_v7 = vmul.f32 1.442695, %v5827_v45  ;;  %15839 = vst [vmem:[#allocation35_spill] sm:$0xff] %v14007_v21  ;;  %v6284_v41 = vadd.f32 %v13983_v46, %v13918_v62  ;;  %v6289_v36 = vadd.f32 %v13924_v42, %v13983_v46  ;;  %v6325_v25 = vsel %vm267_vm1, %v14007_v21, 0.0 }
0x1090   :  { %v10910_v57 = vpop.eup %10909  ;;  %v5870_v63 = vpop.permute.xlu1 %5869  ;;  %9863 = vmatmul.mubr.msk.f32.gmra.mrb[104].mxu0 %vm4440_vm4, %v10906_v4  ;;  %v5854_v18 = vsel %vm4440_vm4, %v10908_v40, 0.0  ;;  %15840 = vst [vmem:[#allocation34_spill] sm:$0xff] %v14014_v10  ;;  %v14020_v53 = vadd.f32 %v6287_v33, %v13293_v26  ;;  %v6286_v13 = vadd.f32 %v13983_v46, %v13922_v2  ;;  %v6316_v62 = vsel %vm267_vm1, %v14014_v10, 0.0 }
0x1091   :  { %v10912_v5 = vpop.eup %10911  ;;  %10925 = vpow2.f32 %v5841_v7  ;;  %9865 = vmatprep.mubr.msk.f32.mxu0 %vm4440_vm4, %v10910_v57  ;;  %9885 = vmatprep.subr.mxu0 %v5870_v63  ;;  %v5488_v51 = vsel %vm4440_vm4, %v10910_v57, 0.0  ;;  %v14027_v54 = vadd.f32 %v6284_v41, %v13284_v48  ;;  %v14034_v26 = vadd.f32 %v6289_v36, %v13305_v35 }
0x1092   :  { %v10914_v30 = vpop.eup %10913  ;;  %5855 = vadd.xlane.f32.xlu0 %v5854_v18  ;;  %9886 = vmatpush3.msra.mxu0 %v5870_v63  ;;  %v5491_v52 = vsel %vm4440_vm4, %v10912_v5, 0.0  ;;  %15841 = vst [vmem:[#allocation36_spill] sm:$0xff] %v14020_v53  ;;  %v6331_v42 = vsel %vm267_vm1, %v14020_v53, 0.0  ;;  %v14039_v45 = vadd.f32 %v6286_v13, %v13296_v49  ;;  %v6288_v48 = vadd.f32 %v13983_v46, %v13926_v34 }
0x1093   :  { %v10916_v3 = vpop.eup %10915  ;;  %v5851_v24 = vsel %vm4440_vm4, %v10914_v30, 0.0  ;;  %15842 = vst [vmem:[#allocation37_spill] sm:$0xff] %v14027_v54  ;;  %15843 = vst [vmem:[#allocation38_spill] sm:$0xff] %v14034_v26  ;;  %v6322_v2 = vsel %vm267_vm1, %v14027_v54, 0.0  ;;  %v6337_v15 = vsel %vm267_vm1, %v14034_v26, 0.0 }
0x1094   :  { %v10918_v31 = vpop.eup %10917  ;;  %9866 = vmatmul.mubr.msk.f32.gmra.mrb[106].mxu0 %vm4440_vm4, %v10912_v5  ;;  %v5860_v19 = vsel %vm4440_vm4, %v10916_v3, 0.0  ;;  %15844 = vst [vmem:[#allocation39_spill] sm:$0xff] %v14039_v45  ;;  %v14048_v35 = vadd.f32 %v6288_v48, %v13308_v59  ;;  %v6328_v4 = vsel %vm267_vm1, %v14039_v45, 0.0 }
0x1095   :  { %v10920_v22 = vpop.eup %10919  ;;  %5861 = vadd.xlane.f32.xlu1 %v5860_v19  ;;  %9868 = vmatprep.mubr.msk.f32.mxu0 %vm4440_vm4, %v10918_v31 }
0x1096   :  { %v10922_v23 = vpop.eup %10921  ;;  %5852 = vadd.xlane.f32.xlu0 %v5851_v24  ;;  %v5497_v29 = vsel %vm4440_vm4, %v10920_v22, 0.0  ;;  %15845 = vst [vmem:[#allocation40_spill] sm:$0xff] %v14048_v35  ;;  %v6334_v49 = vsel %vm267_vm1, %v14048_v35, 0.0 }
0x1097   :  { %v10924_v32 = vpop.eup %10923  ;;  %v5857_v27 = vsel %vm4440_vm4, %v10922_v23, 0.0 }
0x1098   :  { %9869 = vmatmul.mubr.msk.f32.gmra.mrb[108].mxu0 %vm4440_vm4, %v10920_v22  ;;  %v5866_v1 = vsel %vm4440_vm4, %v10924_v32, 0.0 }
0x1099   :  { %5867 = vadd.xlane.f32.xlu1 %v5866_v1  ;;  %9887 = vmatprep.mubr.msk.f32.mxu0 %vm4440_vm4, %v10904_v28  ;;  %v5494_v28 = vsel %vm4440_vm4, %v10918_v31, 0.0 }
0x109a   :  { %5858 = vadd.xlane.f32.xlu0 %v5857_v27 }
0x109b   :  { %v10926_v11 = vpop.eup %10925 }
0x109c   :  { %9888 = vmatmul.mubr.msk.f32.vlgmr.msra.gmra.mrb[110].mxu0 %vm4440_vm4, %v10902_v17  ;;  %v5863_v9 = vsel %vm4440_vm4, %v10926_v11, 0.0  ;;  %v15838_v17 = vmov 0.0  }
0x109d   :  { %5480 = vadd.xlane.f32.xlu1 %v5479_v8  ;;  %9890 = vmatprep.mubr.msk.f32.mxu0 %vm4440_vm4, %v10914_v30 }
0x109e   :  { %5864 = vadd.xlane.f32.xlu0 %v5863_v9 }
0x10a0   :  { %9891 = vmatmul.mubr.msk.f32.gmra.mrb[112].mxu0 %vm4440_vm4, %v10908_v40 }
0x10a1   :  { %5486 = vadd.xlane.f32.xlu1 %v5485_v37  ;;  %9893 = vmatprep.mubr.msk.f32.mxu0 %vm4440_vm4, %v10922_v23 }
0x10a2   :  { %5477 = vadd.xlane.f32.xlu0 %v5476_v14 }
0x10a4   :  { %9894 = vmatmul.mubr.msk.f32.gmra.mrb[114].mxu0 %vm4440_vm4, %v10916_v3 }
0x10a5   :  { %5492 = vadd.xlane.f32.xlu1 %v5491_v52  ;;  %9896 = vmatprep.mubr.msk.f32.mxu0 %vm4440_vm4, %v10926_v11 }
0x10a6   :  { %5483 = vadd.xlane.f32.xlu0 %v5482_v20 }
0x10a8   :  { %9897 = vmatmul.mubr.msk.f32.gmra.mrb[116].mxu0 %vm4440_vm4, %v10924_v32 }
0x10a9   :  { %5498 = vadd.xlane.f32.xlu1 %v5497_v29  ;;  %6734 = vmatprep.mubr.f32.mxu0 %v15838_v17 }
0x10aa   :  { %5489 = vadd.xlane.f32.xlu0 %v5488_v51 }
0x10ad   :  { %6320 = vadd.xlane.f32.xlu1 %v6319_v58 }
0x10ae   :  { %5495 = vadd.xlane.f32.xlu0 %v5494_v28 }
0x10b1   :  { %6326 = vadd.xlane.f32.xlu1 %v6325_v25 }
0x10b2   :  { %6317 = vadd.xlane.f32.xlu0 %v6316_v62 }
0x10b5   :  { %6332 = vadd.xlane.f32.xlu1 %v6331_v42 }
0x10b6   :  { %6323 = vadd.xlane.f32.xlu0 %v6322_v2 }
0x10b9   :  { %6338 = vadd.xlane.f32.xlu1 %v6337_v15 }
0x10ba   :  { %6329 = vadd.xlane.f32.xlu0 %v6328_v4 }
0x10be   :  { %6335 = vadd.xlane.f32.xlu0 %v6334_v49 }
0x111a   :  { %v5850_v57 = vpop.xlane.xlu1 %5849 }
0x111b   :  { %v5847_v34 = vpop.xlane.xlu0 %5846 }
0x111c   :  { %10927 = vrcp.f32 %v5847_v34 }
0x111d   :  { %10929 = vrcp.f32 %v5850_v57 }
0x111f   :  { %v5856_v40 = vpop.xlane.xlu0 %5855 }
0x1122   :  { %v5862_v59 = vpop.xlane.xlu1 %5861 }
0x1123   :  { %v5853_v7 = vpop.xlane.xlu0 %5852 }
0x1124   :  { %10931 = vrcp.f32 %v5853_v7 }
0x1125   :  { %10933 = vrcp.f32 %v5856_v40 }
0x1126   :  { %v5868_v22 = vpop.xlane.xlu1 %5867  ;;  %v10928_v8 = vpop.eup %10927 }
0x1127   :  { %v5859_v63 = vpop.xlane.xlu0 %5858  ;;  %v10930_v37 = vpop.eup %10929 }
0x1128   :  { %10935 = vrcp.f32 %v5859_v63 }
0x1129   :  { %10937 = vrcp.f32 %v5862_v59 }
0x112a   :  { %v5481_v27 = vpop.xlane.xlu1 %5480 }
0x112b   :  { %v5865_v31 = vpop.xlane.xlu0 %5864 }
0x112c   :  { %10939 = vrcp.f32 %v5865_v31 }
0x112d   :  { %10941 = vrcp.f32 %v5868_v22 }
0x112e   :  { %v10932_v12 = vpop.eup %10931  ;;  %v5487_v29 = vpop.xlane.xlu1 %5486 }
0x112f   :  { %v5478_v23 = vpop.xlane.xlu0 %5477  ;;  %v10934_v51 = vpop.eup %10933 }
0x1130   :  { %10943 = vrcp.f32 %v5478_v23 }
0x1131   :  { %10945 = vrcp.f32 %v5481_v27 }
0x1132   :  { %v10936_v36 = vpop.eup %10935  ;;  %v5493_v42 = vpop.xlane.xlu1 %5492 }
0x1133   :  { %v5484_v14 = vpop.xlane.xlu0 %5483  ;;  %v10938_v13 = vpop.eup %10937 }
0x1134   :  { %10947 = vrcp.f32 %v5484_v14 }
0x1135   :  { %10949 = vrcp.f32 %v5487_v29 }
0x1136   :  { %v10940_v2 = vpop.eup %10939 }
0x1137   :  { %v5490_v41 = vpop.xlane.xlu0 %5489  ;;  %v10942_v4 = vpop.eup %10941 }
0x1138   :  { %10951 = vrcp.f32 %v5490_v41 }
0x1139   :  { %10953 = vrcp.f32 %v5493_v42 }
0x113a   :  { %v10944_v40 = vpop.eup %10943 }
0x113b   :  { %v5496_v49 = vpop.xlane.xlu0 %5495  ;;  %v10946_v63 = vpop.eup %10945 }
0x113c   :  { %10955 = vrcp.f32 %v5496_v49 }
0x113e   :  { %v10948_v59 = vpop.eup %10947 }
0x113f   :  { %v10950_v23 = vpop.eup %10949 }
0x115f   :  { %v14054_v18 = vpop.f32.mrb[102].mxu0 }
0x1160   :  { %v14056_v5 = vpop.f32.mrb[103].mxu0  ;;  %v5641_v31 = vmul.f32 %v10946_v63, %v14054_v18 }
0x1161   :  { %v5640_v57 = vmul.f32 %v10944_v40, %v14056_v5  ;;  %v10952_v5 = vpop.eup %10951 }
0x1163   :  { %v14058_v30 = vpop.f32.mrb[104].mxu0 }
0x1164   :  { %v14060_v3 = vpop.f32.mrb[105].mxu0  ;;  %v5643_v27 = vmul.f32 %v10950_v23, %v14058_v30 }
0x1165   :  { %v5642_v22 = vmul.f32 %v10948_v59, %v14060_v3 }
0x1167   :  { %v14062_v19 = vpop.f32.mrb[106].mxu0 }
0x1168   :  { %v14064_v24 = vpop.f32.mrb[107].mxu0 }
0x116b   :  { %v14066_v32 = vpop.f32.mrb[108].mxu0 }
0x116c   :  { %v14068_v1 = vpop.f32.mrb[109].mxu0 }
0x116f   :  { %v9889_v11 = vpop.f32.mrb[110].mxu0 }
0x1170   :  { %v5962_v9 = vpop.f32.mrb[111].mxu0  ;;  %v6010_v52 = vmul.f32 %v10930_v37, %v9889_v11  ;;  %v5644_v11 = vmul.f32 %v10952_v5, %v14064_v24 }
0x1171   :  { %v6009_v16 = vmul.f32 %v10928_v8, %v5962_v9  ;;  %v10954_v8 = vpop.eup %10953 }
0x1172   :  { %v10956_v9 = vpop.eup %10955  ;;  %v5645_v18 = vmul.f32 %v10954_v8, %v14062_v19 }
0x1173   :  { %v9892_v20 = vpop.f32.mrb[112].mxu0  ;;  %9907 = vmatprep.mubr.msk.f32.mxu1 %vm1592_vm2, %v6009_v16  ;;  %v5646_v3 = vmul.f32 %v10956_v9, %v14068_v1  ;;  %v6318_v16 = vpop.xlane.xlu0 %6317 }
0x1174   :  { %v5972_v0 = vpop.f32.mrb[113].mxu0  ;;  %9908 = vmatmul.mubr.msk.f32.vlgmr.msra.gmra.mrb[108].mxu1 %vm1592_vm2, %v6010_v52  ;;  %v6012_v58 = vmul.f32 %v10934_v51, %v9892_v20 }
0x1175   :  { %v6011_v33 = vmul.f32 %v10932_v12, %v5972_v0  ;;  %10310 = vmatpush3.bf16.msra.mxu1 %v13812_v38 }
0x1176   :  { %10312 = vmatprep.subr.bf16.mxu1 %v13831_v39 }
0x1177   :  { %v9895_v28 = vpop.f32.mrb[114].mxu0  ;;  %9910 = vmatprep.mubr.msk.f32.mxu1 %vm1592_vm2, %v6011_v33 }
0x1178   :  { %v5982_v25 = vpop.f32.mrb[115].mxu0  ;;  %9911 = vmatmul.mubr.msk.f32.gmra.mrb[110].mxu1 %vm1592_vm2, %v6012_v58  ;;  %v6014_v48 = vmul.f32 %v10938_v13, %v9895_v28  ;;  %v6324_v28 = vpop.xlane.xlu0 %6323 }
0x1179   :  { %v6013_v62 = vmul.f32 %v10936_v36, %v5982_v25  ;;  %10314 = vmatpush3.bf16.msra.mxu1 %v13831_v39  ;;  %v5499_v39 = vpop.xlane.xlu1 %5498  ;;  %v6366_v63 = vmul.f32 0.015625, %v6324_v28 }
0x117a   :  { %10957 = vrcp.f32 %v5499_v39 }
0x117b   :  { %v9898_v38 = vpop.f32.mrb[116].mxu0  ;;  %9913 = vmatprep.mubr.msk.f32.mxu1 %vm1592_vm2, %v6013_v62 }
0x117c   :  { %v5992_v15 = vpop.f32.mrb[117].mxu0  ;;  %9914 = vmatmul.mubr.msk.f32.gmra.mrb[112].mxu1 %vm1592_vm2, %v6014_v48  ;;  %v6016_v7 = vmul.f32 %v10942_v4, %v9898_v38  ;;  %v6364_v48 = vmul.f32 0.015625, %v6318_v16  ;;  %v6330_v40 = vpop.xlane.xlu0 %6329 }
0x117d   :  { %v6015_v34 = vmul.f32 %v10940_v2, %v5992_v15  ;;  %v6321_v30 = vpop.xlane.xlu1 %6320 }
0x117e   :  { %v6365_v25 = vmul.f32 0.015625, %v6321_v30 }
0x117f   :  { %9916 = vmatprep.mubr.msk.f32.mxu1 %vm1592_vm2, %v6015_v34 }
0x1180   :  { %9917 = vmatmul.mubr.msk.f32.gmra.mrb[114].mxu1 %vm1592_vm2, %v6016_v7  ;;  %v14131_v49 = vsub.f32 %v13996_v44, %v6365_v25 }
0x1181   :  { %9927 = vmatprep.mubr.msk.f32.mxu1 %vm1592_vm2, %v5640_v57  ;;  %v6327_v33 = vpop.xlane.xlu1 %6326 }
0x1182   :  { %v6367_v34 = vmul.f32 0.015625, %v6327_v33 }
0x1184   :  { %9928 = vmatmul.mubr.msk.f32.vlgmr.msra.gmra.mrb[108].mxu1 %vm1592_vm2, %v5641_v31  ;;  %v10958_v37 = vpop.eup %10957  ;;  %v14149_v23 = vsub.f32 %v14007_v21, %v6367_v34 }
0x1185   :  { %9930 = vmatprep.mubr.msk.f32.mxu1 %vm1592_vm2, %v5642_v22  ;;  %v5647_v14 = vmul.f32 %v10958_v37, %v14066_v32 }
0x1186   :  { %v6399_v30 = vmul.f32 %v14149_v23, %v14149_v23 }
0x1188   :  { %9931 = vmatmul.mubr.msk.f32.gmra.mrb[110].mxu1 %vm1592_vm2, %v5643_v27 }
0x1189   :  { %9933 = vmatprep.mubr.msk.f32.mxu1 %vm1592_vm2, %v5644_v11  ;;  %v14156_v11 = vsub.f32 %v14027_v54, %v6366_v63  ;;  %v6577_v63 = vld [vmem:[%s15732_s20 + $0x48] sm:$0xff] }
0x118c   :  { %9934 = vmatmul.mubr.msk.f32.gmra.mrb[112].mxu1 %vm1592_vm2, %v5645_v18  ;;  %v6336_v18 = vpop.xlane.xlu0 %6335 }
0x118d   :  { %9936 = vmatprep.mubr.msk.f32.mxu1 %vm1592_vm2, %v5646_v3  ;;  %v6370_v16 = vmul.f32 0.015625, %v6336_v18  ;;  %v6582_v18 = vld [vmem:[%s15732_s20 + $0x70] sm:$0xff] }
0x1190   :  { %9937 = vmatmul.mubr.msk.f32.gmra.mrb[114].mxu1 %vm1592_vm2, %v5647_v14 }
0x1191   :  { %6895 = vmatprep.mubr.f32.mxu1 %v15838_v17 }
0x1257   :  { %v9929_v24 = vpop.f32.mrb[108].mxu1 }
0x1258   :  { %v6291_v52 = vadd.f32 %v9929_v24, %v13983_v46  ;;  %v6236_v20 = vpop.f32.mrb[109].mxu1 }
0x1259   :  { %v6290_v19 = vadd.f32 %v13983_v46, %v6236_v20  ;;  %v6398_v20 = vmul.f32 %v14156_v11, %v14156_v11 }
0x125a   :  { %v14101_v1 = vadd.f32 %v6291_v52, %v13410_v55 }
0x125b   :  { %v14104_v12 = vadd.f32 %v6290_v19, %v13413_v50  ;;  %v9932_v29 = vpop.f32.mrb[110].mxu1 }
0x125c   :  { %15846 = vst [vmem:[#allocation41_spill] sm:$0xff] %v14101_v1  ;;  %v6293_v32 = vadd.f32 %v9932_v29, %v13983_v46  ;;  %v6246_v0 = vpop.f32.mrb[111].mxu1  ;;  %v6343_v51 = vsel %vm267_vm1, %v14101_v1, 0.0  ;;  %v6421_v29 = vsel %vm267_vm1, %v6399_v30, 0.0  ;;  %v6589_v30 = vld [vmem:[%s15732_s20 + $0xa8] sm:$0xff] }
0x125d   :  { %15847 = vst [vmem:[#allocation42_spill] sm:$0xff] %v14104_v12  ;;  %v6292_v58 = vadd.f32 %v13983_v46, %v6246_v0  ;;  %6344 = vadd.xlane.f32.xlu1 %v6343_v51  ;;  %v6340_v41 = vsel %vm267_vm1, %v14104_v12, 0.0  ;;  %v14181_v0 = vsub.f32 %v14048_v35, %v6370_v16  ;;  %v6418_v51 = vsel %vm267_vm1, %v6398_v20, 0.0  ;;  %v6587_v16 = vld [vmem:[%s15732_s20 + $0x98] sm:$0xff] }
0x125e   :  { %v14113_v55 = vadd.f32 %v6293_v32, %v13422_v56  ;;  %6341 = vadd.xlane.f32.xlu0 %v6340_v41 }
0x125f   :  { %v14116_v50 = vadd.f32 %v6292_v58, %v13425_v43  ;;  %v9935_v36 = vpop.f32.mrb[112].mxu1  ;;  %v6333_v43 = vpop.xlane.xlu1 %6332 }
0x1260   :  { %15848 = vst [vmem:[#allocation43_spill] sm:$0xff] %v14113_v55  ;;  %v6295_v13 = vadd.f32 %v9935_v36, %v13983_v46  ;;  %v6256_v62 = vpop.f32.mrb[113].mxu1  ;;  %v6349_v42 = vsel %vm267_vm1, %v14113_v55, 0.0  ;;  %v6369_v5 = vmul.f32 0.015625, %v6333_v43  ;;  %v6402_v36 = vmul.f32 %v14181_v0, %v14181_v0  ;;  %v6568_v43 = vld [vmem:[%s15732_s20] sm:$0xff] }
0x1261   :  { %15849 = vst [vmem:[#allocation44_spill] sm:$0xff] %v14116_v50  ;;  %v6294_v38 = vadd.f32 %v13983_v46, %v6256_v62  ;;  %6350 = vadd.xlane.f32.xlu1 %v6349_v42  ;;  %v6346_v56 = vsel %vm267_vm1, %v14116_v50, 0.0  ;;  %v6569_v62 = vld [vmem:[%s15732_s20 + $0x8] sm:$0xff] }
0x1262   :  { %v14125_v2 = vadd.f32 %v6295_v13, %v13434_v6  ;;  %6347 = vadd.xlane.f32.xlu0 %v6346_v56  ;;  %v14137_v6 = vsub.f32 %v14014_v10, %v6364_v48  ;;  %v14163_v3 = vsub.f32 %v14020_v53, %v6369_v5  ;;  %v6430_v13 = vsel %vm267_vm1, %v6402_v36, 0.0  ;;  %v6573_v42 = vld [vmem:[%s15732_s20 + $0x28] sm:$0xff]  ;;  %v6571_v48 = vld [vmem:[%s15732_s20 + $0x18] sm:$0xff] }
0x1263   :  { %v14128_v15 = vadd.f32 %v6294_v38, %v13437_v60  ;;  %v9938_v4 = vpop.f32.mrb[114].mxu1  ;;  %v6339_v8 = vpop.xlane.xlu1 %6338  ;;  %v10315_v38 = vpack.c.bf16 %v6573_v42, %v6569_v62  ;;  %v6575_v56 = vld [vmem:[%s15732_s20 + $0x38] sm:$0xff]  ;;  %v6597_v36 = vld [vmem:[%s15732_s20 + $0xe8] sm:$0xff] }
0x1264   :  { %15850 = vst [vmem:[#allocation45_spill] sm:$0xff] %v14125_v2  ;;  %v6297_v7 = vadd.f32 %v9938_v4, %v13983_v46  ;;  %v6266_v57 = vpop.f32.mrb[115].mxu1  ;;  %v6355_v39 = vsel %vm267_vm1, %v14125_v2, 0.0  ;;  %v6396_v9 = vmul.f32 %v14137_v6, %v14137_v6  ;;  %v6371_v37 = vmul.f32 0.015625, %v6339_v8  ;;  %v6572_v4 = vld [vmem:[%s15732_s20 + $0x20] sm:$0xff]  ;;  %v6595_v62 = vld [vmem:[%s15732_s20 + $0xd8] sm:$0xff] }
0x1265   :  { %15851 = vst [vmem:[#allocation46_spill] sm:$0xff] %v14128_v15  ;;  %v6296_v59 = vadd.f32 %v13983_v46, %v6266_v57  ;;  %6356 = vadd.xlane.f32.xlu1 %v6355_v39  ;;  %v6352_v60 = vsel %vm267_vm1, %v14128_v15, 0.0  ;;  %v6397_v46 = vmul.f32 %v14131_v49, %v14131_v49  ;;  %v6401_v32 = vmul.f32 %v14163_v3, %v14163_v3  ;;  %v6574_v57 = vld [vmem:[%s15732_s20 + $0x30] sm:$0xff]  ;;  %v6580_v8 = vld [vmem:[%s15732_s20 + $0x60] sm:$0xff]  ;;  %v6599_v42 = vld [vmem:[%s15732_s20 + $0xf8] sm:$0xff] }
0x1266   :  { %v14143_v31 = vadd.f32 %v6297_v7, %v13446_v61  ;;  %6353 = vadd.xlane.f32.xlu0 %v6352_v60  ;;  %v6368_v61 = vmul.f32 0.015625, %v6330_v40  ;;  %v6412_v52 = vsel %vm267_vm1, %v6396_v9, 0.0  ;;  %v14175_v19 = vsub.f32 %v14034_v26, %v6371_v37  ;;  %v6570_v7 = vld [vmem:[%s15732_s20 + $0x10] sm:$0xff]  ;;  %10316 = vmatprep.subr.bf16.mxu0 %v10315_v38  ;;  %v6579_v60 = vld [vmem:[%s15732_s20 + $0x58] sm:$0xff]  ;;  %v6585_v37 = vld [vmem:[%s15732_s20 + $0x88] sm:$0xff] }
0x1267   :  { %v14146_v22 = vadd.f32 %v6296_v59, %v13449_v47  ;;  %v6415_v14 = vsel %vm267_vm1, %v6397_v46, 0.0  ;;  %v6427_v58 = vsel %vm267_vm1, %v6401_v32, 0.0  ;;  %v10331_v34 = vpack.c.bf16 %v6575_v56, %v6571_v48  ;;  %v6581_v59 = vld [vmem:[%s15732_s20 + $0x68] sm:$0xff]  ;;  %v6576_v46 = vld [vmem:[%s15732_s20 + $0x40] sm:$0xff]  ;;  %v6578_v9 = vld [vmem:[%s15732_s20 + $0x50] sm:$0xff] }
0x1268   :  { %15852 = vst [vmem:[#allocation47_spill] sm:$0xff] %v14143_v31  ;;  %v6361_v27 = vsel %vm267_vm1, %v14143_v31, 0.0  ;;  %v14169_v24 = vsub.f32 %v14039_v45, %v6368_v61  ;;  %v6403_v41 = vmul.f32 %v14175_v19, %v14175_v19  ;;  %v10317_v40 = vpack.c.bf16 %v6572_v4, %v6568_v43  ;;  %v6584_v32 = vld [vmem:[%s15732_s20 + $0x80] sm:$0xff]  ;;  %v6594_v43 = vld [vmem:[%s15732_s20 + $0xd0] sm:$0xff] }
0x1269   :  { %15853 = vst [vmem:[#allocation48_spill] sm:$0xff] %v14146_v22  ;;  %6362 = vadd.xlane.f32.xlu1 %v6361_v27  ;;  %v6358_v47 = vsel %vm267_vm1, %v14146_v22, 0.0  ;;  %v10333_v39 = vpack.c.bf16 %v6574_v57, %v6570_v7  ;;  %10332 = vmatprep.subr.bf16.mxu1 %v10331_v34  ;;  %v10319_v5 = vpack.c.bf16 %v6581_v59, %v6577_v63  ;;  %v6583_v27 = vld [vmem:[%s15732_s20 + $0x78] sm:$0xff]  ;;  %v6592_v48 = vld [vmem:[%s15732_s20 + $0xc0] sm:$0xff]  ;;  %v6598_v4 = vld [vmem:[%s15732_s20 + $0xf0] sm:$0xff] }
0x126a   :  { %6359 = vadd.xlane.f32.xlu0 %v6358_v47  ;;  %v6400_v33 = vmul.f32 %v14169_v24, %v14169_v24  ;;  %v6433_v25 = vsel %vm267_vm1, %v6403_v41, 0.0  ;;  %10318 = vmatpush1.bf16.msra.mxu0 %v10317_v40  ;;  %v10335_v61 = vpack.c.bf16 %v6583_v27, %v6579_v60  ;;  %v10321_v47 = vpack.c.bf16 %v6580_v8, %v6576_v46  ;;  %v6590_v41 = vld [vmem:[%s15732_s20 + $0xb0] sm:$0xff]  ;;  %v6596_v56 = vld [vmem:[%s15732_s20 + $0xe0] sm:$0xff] }
0x126b   :  { %10334 = vmatpush1.bf16.msra.mxu1 %v10333_v39  ;;  %10320 = vmatprep.subr.bf16.mxu0 %v10319_v5  ;;  %v10323_v20 = vpack.c.bf16 %v6589_v30, %v6585_v37  ;;  %v10343_v38 = vpack.c.bf16 %v6599_v42, %v6595_v62  ;;  %v10329_v34 = vpack.c.bf16 %v6596_v56, %v6592_v48 }
0x126c   :  { %v6424_v28 = vsel %vm267_vm1, %v6400_v33, 0.0  ;;  %10336 = vmatprep.subr.bf16.mxu1 %v10335_v61  ;;  %v6586_v33 = vld [vmem:[%s15732_s20 + $0x90] sm:$0xff]  ;;  %v10345_v40 = vpack.c.bf16 %v6598_v4, %v6594_v43 }
0x126d   :  { %6416 = vadd.xlane.f32.xlu1 %v6415_v14  ;;  %v10337_v14 = vpack.c.bf16 %v6582_v18, %v6578_v9 }
0x126e   :  { %6413 = vadd.xlane.f32.xlu0 %v6412_v52  ;;  %v6591_v52 = vld [vmem:[%s15732_s20 + $0xb8] sm:$0xff]  ;;  %10322 = vmatpush1.bf16.msra.mxu0 %v10321_v47 }
0x126f   :  { %10338 = vmatpush1.bf16.msra.mxu1 %v10337_v14  ;;  %10324 = vmatprep.subr.bf16.mxu0 %v10323_v20 }
0x1271   :  { %6422 = vadd.xlane.f32.xlu1 %v6421_v29  ;;  %v10339_v29 = vpack.c.bf16 %v6591_v52, %v6587_v16 }
0x1272   :  { %6419 = vadd.xlane.f32.xlu0 %v6418_v51  ;;  %v6588_v51 = vld [vmem:[%s15732_s20 + $0xa0] sm:$0xff] }
0x1273   :  { %10340 = vmatprep.subr.bf16.mxu1 %v10339_v29 }
0x1275   :  { %6428 = vadd.xlane.f32.xlu1 %v6427_v58  ;;  %v10325_v58 = vpack.c.bf16 %v6588_v51, %v6584_v32 }
0x1276   :  { %6425 = vadd.xlane.f32.xlu0 %v6424_v28  ;;  %v6593_v28 = vld [vmem:[%s15732_s20 + $0xc8] sm:$0xff] }
0x1277   :  { %10326 = vmatpush1.bf16.msra.mxu0 %v10325_v58 }
0x1279   :  { %6434 = vadd.xlane.f32.xlu1 %v6433_v25  ;;  %v10341_v25 = vpack.c.bf16 %v6590_v41, %v6586_v33 }
0x127a   :  { %6431 = vadd.xlane.f32.xlu0 %v6430_v13  ;;  %v10327_v13 = vpack.c.bf16 %v6597_v36, %v6593_v28 }
0x127b   :  { %10342 = vmatpush1.bf16.msra.mxu1 %v10341_v25 }
0x127c   :  { %10328 = vmatprep.subr.bf16.mxu0 %v10327_v13  ;;  %10344 = vmatprep.subr.bf16.mxu1 %v10343_v38 }
0x127d   :  { %10330 = vmatpush1.bf16.msra.mxu0 %v10329_v34 }
0x127f   :  { %10346 = vmatpush1.bf16.msra.mxu1 %v10345_v40 }
0x12ea   :  { %v6345_v7 = vpop.xlane.xlu1 %6344 }
0x12eb   :  { %v6373_v57 = vmul.f32 0.015625, %v6345_v7  ;;  %v6342_v39 = vpop.xlane.xlu0 %6341 }
0x12ec   :  { %v6372_v63 = vmul.f32 0.015625, %v6342_v39 }
0x12ed   :  { %v14291_v59 = vsub.f32 %v14101_v1, %v6373_v57 }
0x12ee   :  { %v14294_v60 = vsub.f32 %v14104_v12, %v6372_v63  ;;  %v6351_v5 = vpop.xlane.xlu1 %6350 }
0x12ef   :  { %v6375_v27 = vmul.f32 0.015625, %v6351_v5  ;;  %v6348_v46 = vpop.xlane.xlu0 %6347  ;;  %v6405_v8 = vmul.f32 %v14291_v59, %v14291_v59 }
0x12f0   :  { %v6374_v61 = vmul.f32 0.015625, %v6348_v46  ;;  %v6404_v47 = vmul.f32 %v14294_v60, %v14294_v60 }
0x12f1   :  { %v14301_v9 = vsub.f32 %v14113_v55, %v6375_v27  ;;  %v6439_v18 = vsel %vm267_vm1, %v6405_v8, 0.0 }
0x12f2   :  { %v14305_v37 = vsub.f32 %v14116_v50, %v6374_v61  ;;  %v6357_v14 = vpop.xlane.xlu1 %6356  ;;  %6440 = vadd.xlane.f32.xlu1 %v6439_v18  ;;  %v6436_v30 = vsel %vm267_vm1, %v6404_v47, 0.0 }
0x12f3   :  { %v6377_v16 = vmul.f32 0.015625, %v6357_v14  ;;  %6437 = vadd.xlane.f32.xlu0 %v6436_v30  ;;  %v6354_v52 = vpop.xlane.xlu0 %6353  ;;  %v6407_v20 = vmul.f32 %v14301_v9, %v14301_v9 }
0x12f4   :  { %v6376_v29 = vmul.f32 0.015625, %v6354_v52  ;;  %v6406_v32 = vmul.f32 %v14305_v37, %v14305_v37 }
0x12f5   :  { %v14313_v51 = vsub.f32 %v14125_v2, %v6377_v16  ;;  %v6445_v33 = vsel %vm267_vm1, %v6407_v20, 0.0 }
0x12f6   :  { %v14317_v58 = vsub.f32 %v14128_v15, %v6376_v29  ;;  %6446 = vadd.xlane.f32.xlu1 %v6445_v33  ;;  %v6363_v41 = vpop.xlane.xlu1 %6362  ;;  %v6442_v28 = vsel %vm267_vm1, %v6406_v32, 0.0 }
0x12f7   :  { %v6379_v36 = vmul.f32 0.015625, %v6363_v41  ;;  %6443 = vadd.xlane.f32.xlu0 %v6442_v28  ;;  %v6360_v25 = vpop.xlane.xlu0 %6359  ;;  %v6409_v13 = vmul.f32 %v14313_v51, %v14313_v51 }
0x12f8   :  { %v6378_v62 = vmul.f32 0.015625, %v6360_v25  ;;  %v6408_v42 = vmul.f32 %v14317_v58, %v14317_v58 }
0x12f9   :  { %v14325_v48 = vsub.f32 %v14143_v31, %v6379_v36  ;;  %v6451_v38 = vsel %vm267_vm1, %v6409_v13, 0.0  ;;  %v14338_v36 = vld [vmem:[#allocation17] ss:$0 sm:$0xff] }
0x12fa   :  { %v14329_v56 = vsub.f32 %v14146_v22, %v6378_v62  ;;  %6452 = vadd.xlane.f32.xlu1 %v6451_v38  ;;  %v6417_v43 = vpop.xlane.xlu1 %6416  ;;  %v6448_v4 = vsel %vm267_vm1, %v6408_v42, 0.0 }
0x12fb   :  { %v6461_v34 = vmul.f32 0.015625, %v6417_v43  ;;  %6449 = vadd.xlane.f32.xlu0 %v6448_v4  ;;  %v6414_v40 = vpop.xlane.xlu0 %6413  ;;  %v6411_v7 = vmul.f32 %v14325_v48, %v14325_v48  ;;  %v14342_v43 = vld [vmem:[#allocation19] ss:$0 sm:$0xff] }
0x12fc   :  { %v6460_v57 = vmul.f32 0.015625, %v6414_v40  ;;  %v6410_v39 = vmul.f32 %v14329_v56, %v14329_v56 }
0x12fd   :  { %v6477_v63 = vadd.f32 1e-05, %v6461_v34  ;;  %v6457_v5 = vsel %vm267_vm1, %v6411_v7, 0.0 }
0x12fe   :  { %v6476_v27 = vadd.f32 1e-05, %v6460_v57  ;;  %6458 = vadd.xlane.f32.xlu1 %v6457_v5  ;;  %v6423_v46 = vpop.xlane.xlu1 %6422  ;;  %v6454_v8 = vsel %vm267_vm1, %v6410_v39, 0.0 }
0x12ff   :  { %10959 = vrsqrt.f32 %v6477_v63  ;;  %v6463_v61 = vmul.f32 0.015625, %v6423_v46  ;;  %6455 = vadd.xlane.f32.xlu0 %v6454_v8  ;;  %v6420_v47 = vpop.xlane.xlu0 %6419 }
0x1300   :  { %10961 = vrsqrt.f32 %v6476_v27  ;;  %v6462_v18 = vmul.f32 0.015625, %v6420_v47 }
0x1301   :  { %v6479_v14 = vadd.f32 1e-05, %v6463_v61 }
0x1302   :  { %v6478_v30 = vadd.f32 1e-05, %v6462_v18  ;;  %v6429_v16 = vpop.xlane.xlu1 %6428 }
0x1303   :  { %v6426_v52 = vpop.xlane.xlu0 %6425  ;;  %v6465_v29 = vmul.f32 0.015625, %v6429_v16 }
0x1304   :  { %10963 = vrsqrt.f32 %v6478_v30  ;;  %v6464_v20 = vmul.f32 0.015625, %v6426_v52 }
0x1305   :  { %10965 = vrsqrt.f32 %v6479_v14  ;;  %v6481_v25 = vadd.f32 1e-05, %v6465_v29 }
0x1306   :  { %v6480_v32 = vadd.f32 1e-05, %v6464_v20  ;;  %v6435_v42 = vpop.xlane.xlu1 %6434 }
0x1307   :  { %v6432_v33 = vpop.xlane.xlu0 %6431  ;;  %v6467_v40 = vmul.f32 0.015625, %v6435_v42 }
0x1308   :  { %10967 = vrsqrt.f32 %v6480_v32  ;;  %v6466_v13 = vmul.f32 0.015625, %v6432_v33 }
0x1309   :  { %v10960_v41 = vpop.eup %10959  ;;  %10969 = vrsqrt.f32 %v6481_v25 }
0x130a   :  { %v10962_v28 = vpop.eup %10961  ;;  %v6509_v38 = vmul.f32 %v10960_v41, %v14131_v49  ;;  %v6482_v7 = vadd.f32 1e-05, %v6466_v13  ;;  %v6483_v49 = vadd.f32 1e-05, %v6467_v40 }
0x130b   :  { %v6508_v62 = vmul.f32 %v10962_v28, %v14137_v6 }
0x130c   :  { %v6531_v39 = vmul.f32 %v14338_v36, %v6509_v38  ;;  %10971 = vrsqrt.f32 %v6482_v7 }
0x130d   :  { %v6530_v4 = vmul.f32 %v14338_v36, %v6508_v62  ;;  %10973 = vrsqrt.f32 %v6483_v49 }
0x130e   :  { %v10964_v34 = vpop.eup %10963  ;;  %v6553_v6 = vadd.f32 %v14342_v43, %v6531_v39 }
0x130f   :  { %v6552_v57 = vadd.f32 %v14342_v43, %v6530_v4  ;;  %v6510_v63 = vmul.f32 %v10964_v34, %v14156_v11  ;;  %v10966_v5 = vpop.eup %10965 }
0x1310   :  { %v6511_v46 = vmul.f32 %v10966_v5, %v14149_v23 }
0x1311   :  { %8660 = vmatmul.mubr.msk.f32.vlgmr.msra.gmra.mrb[118].mxu0 %vm267_vm1, %v6552_v57  ;;  %8676 = vmatmul.mubr.msk.f32.vlgmr.msra.gmra.mrb[116].mxu1 %vm267_vm1, %v6552_v57  ;;  %v6532_v27 = vmul.f32 %v14338_v36, %v6510_v63 }
0x1312   :  { %6740 = vmatprep.mubr.f32.mxu0 %v15838_v17  ;;  %6901 = vmatprep.mubr.f32.mxu1 %v15838_v17  ;;  %v10968_v8 = vpop.eup %10967  ;;  %v6533_v61 = vmul.f32 %v14338_v36, %v6511_v46 }
0x1313   :  { %v6554_v11 = vadd.f32 %v14342_v43, %v6532_v27  ;;  %v6512_v47 = vmul.f32 %v10968_v8, %v14169_v24  ;;  %v10970_v18 = vpop.eup %10969 }
0x1314   :  { %v6555_v23 = vadd.f32 %v14342_v43, %v6533_v61  ;;  %v6513_v30 = vmul.f32 %v10970_v18, %v14163_v3 }
0x1315   :  { %8661 = vmatmul.mubr.msk.f32.gmra.mrb[120].mxu0 %vm267_vm1, %v6553_v6  ;;  %8677 = vmatmul.mubr.msk.f32.gmra.mrb[118].mxu1 %vm267_vm1, %v6553_v6  ;;  %v6534_v14 = vmul.f32 %v14338_v36, %v6512_v47 }
0x1316   :  { %6746 = vmatprep.mubr.f32.mxu0 %v15838_v17  ;;  %6907 = vmatprep.mubr.f32.mxu1 %v15838_v17  ;;  %v10972_v16 = vpop.eup %10971  ;;  %v6535_v52 = vmul.f32 %v14338_v36, %v6513_v30 }
0x1317   :  { %v6556_v24 = vadd.f32 %v14342_v43, %v6534_v14  ;;  %v6514_v20 = vmul.f32 %v10972_v16, %v14181_v0  ;;  %v10974_v29 = vpop.eup %10973 }
0x1318   :  { %v6557_v3 = vadd.f32 %v14342_v43, %v6535_v52  ;;  %v6515_v33 = vmul.f32 %v10974_v29, %v14175_v19 }
0x1319   :  { %8662 = vmatmul.mubr.msk.f32.gmra.mrb[122].mxu0 %vm267_vm1, %v6554_v11  ;;  %8678 = vmatmul.mubr.msk.f32.gmra.mrb[120].mxu1 %vm267_vm1, %v6554_v11  ;;  %v6536_v32 = vmul.f32 %v14338_v36, %v6514_v20 }
0x131a   :  { %6752 = vmatprep.mubr.f32.mxu0 %v15838_v17  ;;  %6913 = vmatprep.mubr.f32.mxu1 %v15838_v17  ;;  %v6537_v41 = vmul.f32 %v14338_v36, %v6515_v33 }
0x131b   :  { %v6558_v0 = vadd.f32 %v14342_v43, %v6536_v32 }
0x131c   :  { %v6559_v19 = vadd.f32 %v14342_v43, %v6537_v41 }
0x131d   :  { %8663 = vmatmul.mubr.msk.f32.gmra.mrb[124].mxu0 %vm267_vm1, %v6555_v23  ;;  %8679 = vmatmul.mubr.msk.f32.gmra.mrb[122].mxu1 %vm267_vm1, %v6555_v23 }
0x131e   :  { %6758 = vmatprep.mubr.f32.mxu0 %v15838_v17  ;;  %6919 = vmatprep.mubr.f32.mxu1 %v15838_v17 }
0x1321   :  { %8664 = vmatmul.mubr.msk.f32.gmra.mrb[126].mxu0 %vm267_vm1, %v6556_v24  ;;  %8680 = vmatmul.mubr.msk.f32.gmra.mrb[124].mxu1 %vm267_vm1, %v6556_v24 }
0x1322   :  { %6764 = vmatprep.mubr.f32.mxu0 %v15838_v17  ;;  %6925 = vmatprep.mubr.f32.mxu1 %v15838_v17 }
0x1325   :  { %8665 = vmatmul.mubr.msk.f32.gmra.mrb[128].mxu0 %vm267_vm1, %v6557_v3  ;;  %8681 = vmatmul.mubr.msk.f32.gmra.mrb[126].mxu1 %vm267_vm1, %v6557_v3 }
0x1326   :  { %6770 = vmatprep.mubr.f32.mxu0 %v15838_v17  ;;  %6931 = vmatprep.mubr.f32.mxu1 %v15838_v17 }
0x1329   :  { %8666 = vmatmul.mubr.msk.f32.gmra.mrb[130].mxu0 %vm267_vm1, %v6558_v0  ;;  %8682 = vmatmul.mubr.msk.f32.gmra.mrb[128].mxu1 %vm267_vm1, %v6558_v0 }
0x132a   :  { %6776 = vmatprep.mubr.f32.mxu0 %v15838_v17  ;;  %6937 = vmatprep.mubr.f32.mxu1 %v15838_v17 }
0x132d   :  { %8667 = vmatmul.mubr.msk.f32.gmra.mrb[132].mxu0 %vm267_vm1, %v6559_v19  ;;  %8683 = vmatmul.mubr.msk.f32.gmra.mrb[130].mxu1 %vm267_vm1, %v6559_v19 }
0x132e   :  { %6782 = vmatprep.mubr.f32.mxu0 %v15838_v17  ;;  %6943 = vmatprep.mubr.f32.mxu1 %v15838_v17 }
0x137f   :  { %v6441_v28 = vpop.xlane.xlu1 %6440 }
0x1380   :  { %v6469_v25 = vmul.f32 0.015625, %v6441_v28  ;;  %v6438_v13 = vpop.xlane.xlu0 %6437 }
0x1381   :  { %v6468_v62 = vmul.f32 0.015625, %v6438_v13 }
0x1382   :  { %v6485_v42 = vadd.f32 1e-05, %v6469_v25 }
0x1383   :  { %v6484_v38 = vadd.f32 1e-05, %v6468_v62  ;;  %v6447_v4 = vpop.xlane.xlu1 %6446 }
0x1384   :  { %10975 = vrsqrt.f32 %v6485_v42  ;;  %v6471_v34 = vmul.f32 0.015625, %v6447_v4  ;;  %v6444_v40 = vpop.xlane.xlu0 %6443 }
0x1385   :  { %10977 = vrsqrt.f32 %v6484_v38  ;;  %v6470_v7 = vmul.f32 0.015625, %v6444_v40 }
0x1386   :  { %v6487_v57 = vadd.f32 1e-05, %v6471_v34  ;;  %v7904_v34 = vld [vmem:[%s15734_s22 + $0x80] sm:$0xff] }
0x1387   :  { %v6486_v39 = vadd.f32 1e-05, %v6470_v7  ;;  %v6453_v63 = vpop.xlane.xlu1 %6452 }
0x1388   :  { %v6450_v5 = vpop.xlane.xlu0 %6449  ;;  %v6473_v6 = vmul.f32 0.015625, %v6453_v63 }
0x1389   :  { %10979 = vrsqrt.f32 %v6486_v39  ;;  %v6472_v49 = vmul.f32 0.015625, %v6450_v5  ;;  %v7889_v39 = vld [vmem:[%s15734_s22 + $0x8] sm:$0xff] }
0x138a   :  { %10981 = vrsqrt.f32 %v6487_v57  ;;  %v6489_v61 = vadd.f32 1e-05, %v6473_v6  ;;  %v7888_v57 = vld [vmem:[%s15734_s22] sm:$0xff] }
0x138b   :  { %v6488_v27 = vadd.f32 1e-05, %v6472_v49  ;;  %v6459_v18 = vpop.xlane.xlu1 %6458 }
0x138c   :  { %v6456_v46 = vpop.xlane.xlu0 %6455  ;;  %v6475_v24 = vmul.f32 0.015625, %v6459_v18 }
0x138d   :  { %10983 = vrsqrt.f32 %v6488_v27  ;;  %v6474_v47 = vmul.f32 0.015625, %v6456_v46  ;;  %v7906_v46 = vld [vmem:[%s15734_s22 + $0x90] sm:$0xff] }
0x138e   :  { %v10976_v8 = vpop.eup %10975  ;;  %10985 = vrsqrt.f32 %v6489_v61  ;;  %v7891_v61 = vld [vmem:[%s15734_s22 + $0x18] sm:$0xff] }
0x138f   :  { %v10978_v11 = vpop.eup %10977  ;;  %v6517_v14 = vmul.f32 %v10976_v8, %v14291_v59  ;;  %v6490_v52 = vadd.f32 1e-05, %v6474_v47  ;;  %v7907_v8 = vld [vmem:[%s15734_s22 + $0x98] sm:$0xff]  ;;  %v7909_v47 = vld [vmem:[%s15734_s22 + $0xa8] sm:$0xff] }
0x1390   :  { %v6516_v23 = vmul.f32 %v10978_v11, %v14294_v60  ;;  %v6491_v60 = vadd.f32 1e-05, %v6475_v24  ;;  %v10351_v11 = vpack.c.bf16 %v7907_v8, %v7906_v46  ;;  %v7911_v24 = vld [vmem:[%s15734_s22 + $0xb8] sm:$0xff] }
0x1391   :  { %v6539_v29 = vmul.f32 %v14338_v36, %v6517_v14  ;;  %10987 = vrsqrt.f32 %v6490_v52  ;;  %v7893_v14 = vld [vmem:[%s15734_s22 + $0x28] sm:$0xff] }
0x1392   :  { %v6538_v30 = vmul.f32 %v14338_v36, %v6516_v23  ;;  %10989 = vrsqrt.f32 %v6491_v60  ;;  %v7892_v23 = vld [vmem:[%s15734_s22 + $0x20] sm:$0xff]  ;;  %v7913_v60 = vld [vmem:[%s15734_s22 + $0xc8] sm:$0xff] }
0x1393   :  { %v10980_v16 = vpop.eup %10979  ;;  %v6561_v59 = vadd.f32 %v14342_v43, %v6539_v29  ;;  %v7895_v29 = vld [vmem:[%s15734_s22 + $0x38] sm:$0xff] }
0x1394   :  { %v6560_v20 = vadd.f32 %v14342_v43, %v6538_v30  ;;  %v6518_v3 = vmul.f32 %v10980_v16, %v14305_v37  ;;  %v10982_v32 = vpop.eup %10981  ;;  %v10357_v30 = vpack.c.bf16 %v7893_v14, %v7892_v23  ;;  %v7910_v16 = vld [vmem:[%s15734_s22 + $0xb0] sm:$0xff] }
0x1395   :  { %v6519_v0 = vmul.f32 %v10982_v32, %v14301_v9  ;;  %v10359_v52 = vpack.c.bf16 %v7911_v24, %v7910_v16  ;;  %v7912_v32 = vld [vmem:[%s15734_s22 + $0xc0] sm:$0xff] }
0x1396   :  { %8668 = vmatmul.mubr.msk.f32.gmra.mrb[134].mxu0 %vm267_vm1, %v6560_v20  ;;  %8684 = vmatmul.mubr.msk.f32.gmra.mrb[132].mxu1 %vm267_vm1, %v6560_v20  ;;  %v6540_v33 = vmul.f32 %v14338_v36, %v6518_v3  ;;  %v7894_v20 = vld [vmem:[%s15734_s22 + $0x30] sm:$0xff] }
0x1397   :  { %6788 = vmatprep.mubr.f32.mxu0 %v15838_v17  ;;  %6949 = vmatprep.mubr.f32.mxu1 %v15838_v17  ;;  %v10984_v41 = vpop.eup %10983  ;;  %v6541_v19 = vmul.f32 %v14338_v36, %v6519_v0  ;;  %v10361_v3 = vpack.c.bf16 %v7895_v29, %v7894_v20  ;;  %v7897_v0 = vld [vmem:[%s15734_s22 + $0x48] sm:$0xff] }
0x1398   :  { %v6562_v37 = vadd.f32 %v14342_v43, %v6540_v33  ;;  %v6520_v28 = vmul.f32 %v10984_v41, %v14317_v58  ;;  %v10986_v25 = vpop.eup %10985  ;;  %v7896_v33 = vld [vmem:[%s15734_s22 + $0x40] sm:$0xff] }
0x1399   :  { %v6563_v9 = vadd.f32 %v14342_v43, %v6541_v19  ;;  %v6521_v62 = vmul.f32 %v10986_v25, %v14313_v51  ;;  %v7905_v51 = vld [vmem:[%s15734_s22 + $0x88] sm:$0xff]  ;;  %v10365_v41 = vpack.c.bf16 %v7897_v0, %v7896_v33  ;;  %v7915_v19 = vld [vmem:[%s15734_s22 + $0xd8] sm:$0xff]  ;;  %v7898_v25 = vld [vmem:[%s15734_s22 + $0x50] sm:$0xff] }
0x139a   :  { %8669 = vmatmul.mubr.msk.f32.gmra.mrb[136].mxu0 %vm267_vm1, %v6561_v59  ;;  %8685 = vmatmul.mubr.msk.f32.gmra.mrb[134].mxu1 %vm267_vm1, %v6561_v59  ;;  %v6542_v13 = vmul.f32 %v14338_v36, %v6520_v28  ;;  %v10347_v7 = vpack.c.bf16 %v7905_v51, %v7904_v34  ;;  %v10363_v59 = vpack.c.bf16 %v7913_v60, %v7912_v32  ;;  %v7918_v51 = vld [vmem:[%s15734_s22 + $0xf0] sm:$0xff] }
0x139b   :  { %6794 = vmatprep.mubr.f32.mxu0 %v15838_v17  ;;  %6955 = vmatprep.mubr.f32.mxu1 %v15838_v17  ;;  %v10988_v42 = vpop.eup %10987  ;;  %v6543_v38 = vmul.f32 %v14338_v36, %v6521_v62  ;;  %v7916_v62 = vld [vmem:[%s15734_s22 + $0xe0] sm:$0xff] }
0x139c   :  { %v6564_v58 = vadd.f32 %v14342_v43, %v6542_v13  ;;  %v6522_v4 = vmul.f32 %v10988_v42, %v14329_v56  ;;  %v10990_v40 = vpop.eup %10989  ;;  %v10349_v56 = vpack.c.bf16 %v7889_v39, %v7888_v57  ;;  %10348 = vmatprep.subr.bf16.mxu0 %v10347_v7  ;;  %v7917_v42 = vld [vmem:[%s15734_s22 + $0xe8] sm:$0xff]  ;;  %v7902_v57 = vld [vmem:[%s15734_s22 + $0x70] sm:$0xff]  ;;  %v7903_v39 = vld [vmem:[%s15734_s22 + $0x78] sm:$0xff] }
0x139d   :  { %v6565_v63 = vadd.f32 %v14342_v43, %v6543_v38  ;;  %v6523_v49 = vmul.f32 %v10990_v40, %v14325_v48  ;;  %v7900_v38 = vld [vmem:[%s15734_s22 + $0x60] sm:$0xff]  ;;  %v7919_v40 = vld [vmem:[%s15734_s22 + $0xf8] sm:$0xff] }
0x139e   :  { %8670 = vmatmul.mubr.msk.f32.gmra.mrb[138].mxu0 %vm267_vm1, %v6562_v37  ;;  %8686 = vmatmul.mubr.msk.f32.gmra.mrb[136].mxu1 %vm267_vm1, %v6562_v37  ;;  %v6544_v5 = vmul.f32 %v14338_v36, %v6522_v4  ;;  %v7914_v37 = vld [vmem:[%s15734_s22 + $0xd0] sm:$0xff]  ;;  %v7901_v4 = vld [vmem:[%s15734_s22 + $0x68] sm:$0xff]  ;;  %v10375_v7 = vpack.c.bf16 %v7919_v40, %v7918_v51 }
0x139f   :  { %6800 = vmatprep.mubr.f32.mxu0 %v15838_v17  ;;  %6961 = vmatprep.mubr.f32.mxu1 %v15838_v17  ;;  %v6545_v27 = vmul.f32 %v14338_v36, %v6523_v49  ;;  %v7890_v36 = vld [vmem:[%s15734_s22 + $0x10] sm:$0xff]  ;;  %v10367_v28 = vpack.c.bf16 %v7915_v19, %v7914_v37  ;;  %v10373_v34 = vpack.c.bf16 %v7901_v4, %v7900_v38  ;;  %v6600_v49 = vld [vmem:[%s15733_s21] sm:$0xf] }
0x13a0   :  { %10350 = vmatpush3.bf16.msra.mxu0 %v10349_v56  ;;  %v6566_v6 = vadd.f32 %v14342_v43, %v6544_v5  ;;  %v10377_v56 = vpack.c.bf16 %v7903_v39, %v7902_v57 }
0x13a1   :  { %v6567_v48 = vadd.f32 %v14342_v43, %v6545_v27  ;;  %10352 = vmatprep.subr.bf16.mxu0 %v10351_v11  ;;  %v7908_v43 = vld [vmem:[%s15734_s22 + $0xa0] sm:$0xff] }
0x13a2   :  { %8671 = vmatmul.mubr.msk.f32.gmra.mrb[140].mxu0 %vm267_vm1, %v6563_v9  ;;  %8687 = vmatmul.mubr.msk.f32.gmra.mrb[138].mxu1 %vm267_vm1, %v6563_v9  ;;  %v10355_v18 = vpack.c.bf16 %v7909_v47, %v7908_v43  ;;  %v7899_v9 = vld [vmem:[%s15734_s22 + $0x58] sm:$0xff] }
0x13a3   :  { %6806 = vmatprep.mubr.f32.mxu0 %v15838_v17  ;;  %6967 = vmatprep.mubr.f32.mxu1 %v15838_v17  ;;  %v10369_v13 = vpack.c.bf16 %v7899_v9, %v7898_v25 }
0x13a6   :  { %8672 = vmatmul.mubr.msk.f32.gmra.mrb[142].mxu0 %vm267_vm1, %v6564_v58  ;;  %8688 = vmatmul.mubr.msk.f32.gmra.mrb[140].mxu1 %vm267_vm1, %v6564_v58  ;;  %v10371_v58 = vpack.c.bf16 %v7917_v42, %v7916_v62 }
0x13a7   :  { %6812 = vmatprep.mubr.f32.mxu0 %v15838_v17  ;;  %6973 = vmatprep.mubr.f32.mxu1 %v15838_v17 }
0x13aa   :  { %8673 = vmatmul.mubr.msk.f32.gmra.mrb[144].mxu0 %vm267_vm1, %v6565_v63  ;;  %8689 = vmatmul.mubr.msk.f32.gmra.mrb[142].mxu1 %vm267_vm1, %v6565_v63  ;;  %v15854_v63 = vld [vmem:[#allocation31_spill] sm:$0xff] }
0x13ab   :  { %6818 = vmatprep.mubr.f32.mxu0 %v15838_v17  ;;  %6979 = vmatprep.mubr.f32.mxu1 %v15838_v17  ;;  %v6612_v5 = vsub.s32 2, %v15854_v63 }
0x13ad   :  { %v14553_v27 = vrot.slane %v6600_v49, %v6612_v5 }
0x13ae   :  { %8674 = vmatmul.mubr.msk.f32.gmra.mrb[146].mxu0 %vm267_vm1, %v6566_v6  ;;  %8690 = vmatmul.mubr.msk.f32.gmra.mrb[144].mxu1 %vm267_vm1, %v6566_v6  ;;  %v6616_v6 = vsub.s32 3, %v15854_v63 }
0x13af   :  { %6824 = vmatprep.mubr.f32.mxu0 %v15838_v17  ;;  %6985 = vmatprep.mubr.f32.mxu1 %v15838_v17  ;;  %v10353_v17 = vpack.c.bf16 %v7891_v61, %v7890_v36 }
0x13b1   :  { %10354 = vmatpush3.bf16.msra.mxu0 %v10353_v17 }
0x13b2   :  { %8675 = vmatmul.mubr.msk.f32.gmra.mrb[148].mxu0 %vm267_vm1, %v6567_v48  ;;  %8691 = vmatmul.mubr.msk.f32.gmra.mrb[146].mxu1 %vm267_vm1, %v6567_v48  ;;  %v14555_v48 = vrot.slane %v6600_v49, %v6616_v6 }
0x13b3   :  { %10356 = vmatprep.subr.bf16.mxu0 %v10355_v18 }
0x13b5   :  { %10358 = vmatpush3.bf16.msra.mxu0 %v10357_v30 }
0x13b6   :  { %10360 = vmatprep.subr.bf16.mxu0 %v10359_v52 }
0x13b9   :  { %10362 = vmatpush3.bf16.msra.mxu0 %v10361_v3 }
0x13ba   :  { %10364 = vmatprep.subr.bf16.mxu0 %v10363_v59 }
0x13bd   :  { %10366 = vmatpush3.bf16.msra.mxu0 %v10365_v41 }
0x13be   :  { %10368 = vmatprep.subr.bf16.mxu0 %v10367_v28  ;;  %v6608_v28 = vsub.s32 1, %v15854_v63 }
0x13c0   :  { %v14603_v63 = vrot.slane %v6600_v49, %v6608_v28 }
0x13c1   :  { %10370 = vmatpush3.bf16.msra.mxu0 %v10369_v13  ;;  %v15855_v13 = vld [vmem:[#allocation32_spill] sm:$0xff] }
0x13c2   :  { %10372 = vmatprep.subr.bf16.mxu0 %v10371_v58  ;;  %v14584_v62 = vrot.slane %v6600_v49, %v15855_v13 }
0x13c5   :  { %10374 = vmatpush3.bf16.msra.mxu0 %v10373_v34 }
0x13c6   :  { %10376 = vmatprep.subr.bf16.mxu0 %v10375_v7 }
0x13c9   :  { %10378 = vmatpush3.bf16.msra.mxu0 %v10377_v56 }
0x13e4   :  { %v6736_v46 = vpop.f32.mrb[118].mxu0  ;;  %v6897_v8 = vpop.f32.mrb[116].mxu1 }
0x13e5   :  { %v6898_v11 = vadd.f32 %v6897_v8, %v14553_v27  ;;  %v6738_v36 = vpop.f32.mrb[119].mxu0  ;;  %v6899_v61 = vpop.f32.mrb[117].mxu1  ;;  %v14610_v8 = vadd.f32 %v6736_v46, %v14584_v62  ;;  %v15771_v46 = vmov -1.0  }
0x13e6   :  { %v6900_v17 = vadd.f32 %v6899_v61, %v14555_v48 }
0x13e7   :  { %v7024_v43 = vmul.f32 0.70710677, %v6898_v11  ;;  %v14612_v61 = vmul.f32 0.5, %v6898_v11 }
0x13e8   :  { %v14559_v47 = vmul.f32 0.70710677, %v6900_v17  ;;  %v14561_v18 = vpop.f32.mrb[120].mxu0  ;;  %v6903_v23 = vpop.f32.mrb[118].mxu1 }
0x13e9   :  { %v7120_v14 = vand.u32 2147483647, %v7024_v43  ;;  %v14564_v30 = vadd.f32 %v6903_v23, %v14553_v27  ;;  %v14566_v16 = vpop.f32.mrb[121].mxu0  ;;  %v6905_v24 = vpop.f32.mrb[119].mxu1  ;;  %vm7056_vm5 = vcmp.ge.f32.partialorder %v7024_v43, 0.0  ;;  %v14662_v15 = vadd.f32 %v14561_v18, %v14584_v62 }
0x13ea   :  { %v7121_v52 = vand.u32 2147483647, %v14559_v47  ;;  %v14575_v59 = vadd.f32 %v6905_v24, %v14555_v48  ;;  %vm7057_vm6 = vcmp.ge.f32.partialorder %v14559_v47, 0.0  ;;  %v14629_v11 = vsel %vm7056_vm5, 1.0, %v15771_v46 }
0x13eb   :  { %v7152_v20 = vmul.f32 0.3275911, %v7120_v14  ;;  %v14570_v3 = vmul.f32 0.70710677, %v14564_v30  ;;  %v7568_v34 = vsub.f32 0.0, %v7120_v14  ;;  %15859 = vst [vmem:[#allocation50_spill] sm:$0xff] %v14662_v15 }
0x13ec   :  { %v7153_v29 = vmul.f32 0.3275911, %v7121_v52  ;;  %v14572_v32 = vpop.f32.mrb[122].mxu0  ;;  %v6909_v33 = vpop.f32.mrb[120].mxu1  ;;  %v14587_v42 = vmul.f32 0.70710677, %v14575_v59 }
0x13ed   :  { %v7184_v60 = vadd.f32 1.0, %v7152_v20  ;;  %v14577_v0 = vpop.f32.mrb[123].mxu0  ;;  %v7122_v37 = vand.u32 2147483647, %v14570_v3  ;;  %v6911_v19 = vpop.f32.mrb[121].mxu1  ;;  %v14590_v58 = vadd.f32 %v6909_v33, %v14553_v27  ;;  %v7569_v57 = vsub.f32 0.0, %v7121_v52 }
0x13ee   :  { %v7185_v41 = vadd.f32 1.0, %v7153_v29  ;;  %v14595_v40 = vadd.f32 %v6911_v19, %v14555_v48  ;;  %v14598_v39 = vand.u32 2147483647, %v14587_v42  ;;  %v7600_v20 = vmul.f32 %v7568_v34, %v7120_v14 }
0x13ef   :  { %10991 = vrcp.f32 %v7184_v60  ;;  %v7154_v25 = vmul.f32 0.3275911, %v7122_v37  ;;  %v14601_v56 = vmul.f32 0.70710677, %v14590_v58  ;;  %v14618_v29 = vmul.f32 0.5, %v6900_v17 }
0x13f0   :  { %10993 = vrcp.f32 %v7185_v41  ;;  %v14581_v9 = vpop.f32.mrb[124].mxu0  ;;  %v6915_v38 = vpop.f32.mrb[122].mxu1  ;;  %v7155_v23 = vmul.f32 0.3275911, %v14598_v39  ;;  %v14622_v49 = vmul.f32 0.70710677, %v14595_v40  ;;  %v7601_v33 = vmul.f32 %v7569_v57, %v7121_v52 }
0x13f1   :  { %v14592_v4 = vpop.f32.mrb[125].mxu0  ;;  %v7186_v51 = vadd.f32 1.0, %v7154_v25  ;;  %v6917_v7 = vpop.f32.mrb[123].mxu1  ;;  %v14616_v24 = vand.u32 2147483647, %v14601_v56  ;;  %v14633_v17 = vadd.f32 %v6738_v36, %v14603_v63  ;;  %vm7058_vm7 = vcmp.ge.f32.partialorder %v14570_v3, 0.0 }
0x13f2   :  { %v7187_v41 = vadd.f32 1.0, %v7155_v23  ;;  %v7570_v14 = vsub.f32 0.0, %v7122_v37  ;;  %v14637_v28 = vand.u32 2147483647, %v14622_v49  ;;  %v14648_v52 = vsel %vm7057_vm6, 1.0, %v15771_v46 }
0x13f3   :  { %10995 = vrcp.f32 %v7186_v51  ;;  %v7156_v19 = vmul.f32 0.3275911, %v14616_v24  ;;  %15856 = vst [vmem:[#allocation31_spill] sm:$0xff] %v14633_v17  ;;  %v14651_v51 = vadd.f32 %v6915_v38, %v14553_v27  ;;  %v7632_v2 = vmul.f32 1.442695, %v7600_v20 }
0x13f4   :  { %v14605_v5 = vpop.f32.mrb[126].mxu0  ;;  %v14607_v6 = vpop.f32.mrb[124].mxu1  ;;  %10997 = vrcp.f32 %v7187_v41  ;;  %v7157_v47 = vmul.f32 0.3275911, %v14637_v28  ;;  %v14667_v38 = vmul.f32 0.5, %v14564_v30  ;;  %v14672_v55 = vsel %vm7058_vm7, 1.0, %v15771_v46 }
0x13f5   :  { %v14624_v43 = vpop.f32.mrb[127].mxu0  ;;  %v14626_v60 = vpop.f32.mrb[125].mxu1  ;;  %v7188_v36 = vadd.f32 1.0, %v7156_v19  ;;  %v7634_v19 = vmul.f32 1.442695, %v7601_v33  ;;  %v7602_v1 = vmul.f32 %v7570_v14, %v7122_v37  ;;  %v14680_v33 = vadd.f32 %v14566_v16, %v14603_v63 }
0x13f6   :  { %v7189_v20 = vadd.f32 1.0, %v7157_v47  ;;  %v14684_v30 = vadd.f32 %v14572_v32, %v14584_v62  ;;  %v14687_v3 = vmul.f32 0.70710677, %v14651_v51  ;;  %v14697_v47 = vmul.f32 0.5, %v14575_v59 }
0x13f7   :  { %10999 = vrcp.f32 %v7188_v36  ;;  %15861 = vst [vmem:[#allocation52_spill] sm:$0xff] %v14680_v33  ;;  %v14700_v16 = vadd.f32 %v6917_v7, %v14555_v48  ;;  %vm7059_vm8 = vcmp.ge.f32.partialorder %v14587_v42, 0.0  ;;  %v7636_v53 = vmul.f32 1.442695, %v7602_v1 }
0x13f8   :  { %v14639_v25 = vpop.f32.mrb[128].mxu0  ;;  %v14641_v13 = vpop.f32.mrb[126].mxu1  ;;  %15862 = vst [vmem:[#allocation53_spill] sm:$0xff] %v14684_v30  ;;  %11001 = vrcp.f32 %v7189_v20  ;;  %v14706_v46 = vand.u32 2147483647, %v14687_v3  ;;  %v7571_v54 = vsub.f32 0.0, %v14598_v39 }
0x13f9   :  { %15857 = vst [vmem:[#allocation32_spill] sm:$0xff] %v14639_v25  ;;  %v14643_v34 = vpop.eup %10991  ;;  %v14653_v57 = vpop.f32.mrb[129].mxu0  ;;  %11003 = vpow2.f32 %v7632_v2  ;;  %v14720_v2 = vmul.f32 0.5, %v14590_v58  ;;  %v14723_v1 = vmul.f32 0.70710677, %v14700_v16  ;;  %vm7060_vm9 = vcmp.ge.f32.partialorder %v14601_v56, 0.0 }
0x13fa   :  { %15858 = vst [vmem:[#allocation49_spill] sm:$0xff] %v14653_v57  ;;  %v14655_v23 = vpop.f32.mrb[127].mxu1  ;;  %v14657_v31 = vpop.eup %10993  ;;  %v7280_v22 = vmul.f32 1.0614054, %v14643_v34  ;;  %11005 = vpow2.f32 %v7634_v19  ;;  %v7158_v45 = vmul.f32 0.3275911, %v14706_v46  ;;  %v7603_v57 = vmul.f32 %v7571_v54, %v14598_v39 }
0x13fb   :  { %v7281_v41 = vmul.f32 1.0614054, %v14657_v31  ;;  %11007 = vpow2.f32 %v7636_v53  ;;  %v14764_v25 = vadd.f32 %v14581_v9, %v14584_v62  ;;  %vm7061_vm10 = vcmp.ge.f32.partialorder %v14622_v49, 0.0 }
0x13fc   :  { %v8692_v50 = vadd.f32 -1.4531521, %v7280_v22  ;;  %v14674_v12 = vpop.f32.mrb[130].mxu0  ;;  %v14676_v18 = vpop.f32.mrb[128].mxu1  ;;  %v7190_v58 = vadd.f32 1.0, %v7158_v45  ;;  %vm7062_vm11 = vcmp.ge.f32.partialorder %v14687_v3, 0.0 }
0x13fd   :  { %15860 = vst [vmem:[#allocation51_spill] sm:$0xff] %v14674_v12  ;;  %v8693_v26 = vadd.f32 -1.4531521, %v7281_v41  ;;  %v14689_v22 = vpop.f32.mrb[131].mxu0  ;;  %v14691_v37 = vpop.f32.mrb[129].mxu1  ;;  %15870 = vst [vmem:[#allocation60_spill] sm:$0xff] %v14764_v25 }
0x13fe   :  { %15863 = vst [vmem:[#allocation54_spill] sm:$0xff] %v14689_v22  ;;  %v14693_v14 = vpop.eup %10995  ;;  %v7344_v36 = vmul.f32 %v14643_v34, %v8692_v50  ;;  %v14710_v50 = vadd.f32 %v14577_v0, %v14603_v63  ;;  %11009 = vrcp.f32 %v7190_v58  ;;  %v7638_v17 = vmul.f32 1.442695, %v7603_v57 }
0x13ff   :  { %v7345_v32 = vmul.f32 %v14657_v31, %v8693_v26  ;;  %v7282_v41 = vmul.f32 1.0614054, %v14693_v14  ;;  %v14729_v44 = vpop.eup %10997  ;;  %vm7063_vm12 = vcmp.ge.f32.partialorder %v14723_v1, 0.0 }
0x1400   :  { %v7376_v35 = vadd.f32 1.4214138, %v7344_v36  ;;  %15864 = vst [vmem:[#allocation55_spill] sm:$0xff] %v14710_v50  ;;  %v14712_v59 = vpop.f32.mrb[132].mxu0  ;;  %v14714_v7 = vpop.f32.mrb[130].mxu1 }
0x1401   :  { %15865 = vst [vmem:[#allocation56_spill] sm:$0xff] %v14712_v59  ;;  %15866 = vst [vmem:[#allocation57_spill] sm:$0xff] %v14714_v7  ;;  %v7377_v20 = vadd.f32 1.4214138, %v7345_v32  ;;  %v8694_v26 = vadd.f32 -1.4531521, %v7282_v41 }
0x1402   :  { %v7408_v21 = vmul.f32 %v14643_v34, %v7376_v35  ;;  %v14725_v0 = vpop.f32.mrb[133].mxu0  ;;  %v14727_v36 = vpop.f32.mrb[131].mxu1  ;;  %v15869_v41 = vmov -1.0   ;;  %v7283_v59 = vmul.f32 1.0614054, %v14729_v44 }
0x1403   :  { %15867 = vst [vmem:[#allocation58_spill] sm:$0xff] %v14725_v0  ;;  %15868 = vst [vmem:[#allocation59_spill] sm:$0xff] %v14727_v36  ;;  %v7409_v19 = vmul.f32 %v14657_v31, %v7377_v20  ;;  %v7346_v32 = vmul.f32 %v14693_v14, %v8694_v26  ;;  %v14736_v35 = vsel %vm7059_vm8, 1.0, %v15869_v41  ;;  %v14740_v0 = vmul.f32 0.5, %v14595_v40  ;;  %v14743_v20 = vpop.eup %10999 }
0x1404   :  { %v8724_v10 = vadd.f32 -0.28449672, %v7408_v21  ;;  %v8695_v42 = vadd.f32 -1.4531521, %v7283_v59  ;;  %v14748_v21 = vand.u32 2147483647, %v14723_v1  ;;  %v14754_v56 = vpop.eup %11001  ;;  %v14885_v1 = vadd.f32 %v14655_v23, %v14555_v48 }
0x1405   :  { %v8725_v22 = vadd.f32 -0.28449672, %v7409_v19  ;;  %v7378_v12 = vadd.f32 1.4214138, %v7346_v32  ;;  %v7284_v45 = vmul.f32 1.0614054, %v14743_v20  ;;  %v11004_v30 = vpop.eup %11003 }
0x1406   :  { %v7472_v26 = vmul.f32 %v14643_v34, %v8724_v10  ;;  %v7572_v40 = vsub.f32 0.0, %v14616_v24  ;;  %v7573_v19 = vsub.f32 0.0, %v14637_v28  ;;  %v7347_v58 = vmul.f32 %v14729_v44, %v8695_v42  ;;  %v11006_v33 = vpop.eup %11005 }
0x1407   :  { %v7410_v53 = vmul.f32 %v14693_v14, %v7378_v12  ;;  %v14758_v10 = vsel %vm7060_vm9, 1.0, %v15869_v41  ;;  %v7159_v54 = vmul.f32 0.3275911, %v14748_v21  ;;  %v7473_v39 = vmul.f32 %v14657_v31, %v8725_v22  ;;  %v11008_v57 = vpop.eup %11007 }
0x1408   :  { %v7504_v32 = vadd.f32 0.2548296, %v7472_v26  ;;  %v8696_v12 = vadd.f32 -1.4531521, %v7284_v45  ;;  %v7379_v15 = vadd.f32 1.4214138, %v7347_v58  ;;  %v7604_v7 = vmul.f32 %v7572_v40, %v14616_v24 }
0x1409   :  { %v8726_v59 = vadd.f32 -0.28449672, %v7410_v53  ;;  %v7285_v26 = vmul.f32 1.0614054, %v14754_v56  ;;  %v7191_v42 = vadd.f32 1.0, %v7159_v54  ;;  %v7605_v22 = vmul.f32 %v7573_v19, %v14637_v28  ;;  %v14779_v28 = vpop.eup %11009 }
0x140a   :  { %v7536_v50 = vmul.f32 %v14643_v34, %v7504_v32  ;;  %v7348_v36 = vmul.f32 %v14743_v20, %v8696_v12  ;;  %v7411_v45 = vmul.f32 %v14729_v44, %v7379_v15  ;;  %v7505_v25 = vadd.f32 0.2548296, %v7473_v39 }
0x140b   :  { %v8697_v9 = vadd.f32 -1.4531521, %v7285_v26  ;;  %11011 = vrcp.f32 %v7191_v42  ;;  %v7474_v34 = vmul.f32 %v14693_v14, %v8726_v59  ;;  %v14775_v58 = vadd.f32 %v14607_v6, %v14553_v27 }
0x140c   :  { %v7696_v53 = vmul.f32 %v11004_v30, %v7536_v50  ;;  %v7380_v32 = vadd.f32 1.4214138, %v7348_v36  ;;  %v8727_v12 = vadd.f32 -0.28449672, %v7411_v45  ;;  %11013 = vpow2.f32 %v7638_v17 }
0x140d   :  { %v7349_v24 = vmul.f32 %v14754_v56, %v8697_v9  ;;  %v7640_v30 = vmul.f32 1.442695, %v7604_v7  ;;  %v7642_v50 = vmul.f32 1.442695, %v7605_v22  ;;  %v7286_v6 = vmul.f32 1.0614054, %v14779_v28 }
0x140e   :  { %v7728_v54 = vsub.f32 1.0, %v7696_v53  ;;  %v7412_v15 = vmul.f32 %v14743_v20, %v7380_v32  ;;  %v7574_v19 = vsub.f32 0.0, %v14706_v46  ;;  %v7537_v39 = vmul.f32 %v14657_v31, %v7505_v25 }
0x140f   :  { %v7381_v40 = vadd.f32 1.4214138, %v7349_v24  ;;  %v7506_v59 = vadd.f32 0.2548296, %v7474_v34  ;;  %v14787_v42 = vmul.f32 0.70710677, %v14775_v58  ;;  %v7475_v17 = vmul.f32 %v14729_v44, %v8727_v12 }
0x1410   :  { %v7760_v36 = vmul.f32 %v7728_v54, %v14629_v11  ;;  %v8728_v26 = vadd.f32 -0.28449672, %v7412_v15  ;;  %v8698_v22 = vadd.f32 -1.4531521, %v7286_v6  ;;  %11015 = vpow2.f32 %v7640_v30 }
0x1411   :  { %v7413_v7 = vmul.f32 %v14754_v56, %v7381_v40  ;;  %v14795_v45 = vsel %vm7061_vm10, 1.0, %v15869_v41  ;;  %v14798_v31 = vmul.f32 0.5, %v14651_v51  ;;  %11017 = vpow2.f32 %v7642_v50 }
0x1412   :  { %v7792_v53 = vadd.f32 1.0, %v7760_v36  ;;  %v7476_v11 = vmul.f32 %v14743_v20, %v8728_v26  ;;  %v7350_v34 = vmul.f32 %v14779_v28, %v8698_v22  ;;  %v7697_v32 = vmul.f32 %v11006_v33, %v7537_v39 }
0x1413   :  { %v8729_v9 = vadd.f32 -0.28449672, %v7413_v7  ;;  %v7538_v54 = vmul.f32 %v14693_v14, %v7506_v59  ;;  %v7606_v12 = vmul.f32 %v7574_v19, %v14706_v46  ;;  %v7128_v24 = vand.u32 2147483647, %v14787_v42 }
0x1414   :  { %v7824_v25 = vmul.f32 %v7792_v53, %v14612_v61  ;;  %v7507_v51 = vadd.f32 0.2548296, %v7475_v17  ;;  %v7382_v61 = vadd.f32 1.4214138, %v7350_v34  ;;  %v7508_v36 = vadd.f32 0.2548296, %v7476_v11 }
0x1415   :  { %v14805_v15 = vpop.eup %11011  ;;  %v7477_v30 = vmul.f32 %v14754_v56, %v8729_v9  ;;  %v14813_v50 = vadd.f32 %v14592_v4, %v14603_v63  ;;  %v7160_v14 = vmul.f32 0.3275911, %v7128_v24  ;;  %v7644_v19 = vmul.f32 1.442695, %v7606_v12 }
0x1416   :  { %v14808_v49 = vmul.f32 %v7824_v25, %v14610_v8  ;;  %v7287_v33 = vmul.f32 1.0614054, %v14805_v15  ;;  %v7414_v40 = vmul.f32 %v14779_v28, %v7382_v61  ;;  %v7575_v8 = vsub.f32 0.0, %v14748_v21  ;;  %v11014_v6 = vpop.eup %11013 }
0x1417   :  { %v7509_v46 = vadd.f32 0.2548296, %v7477_v30  ;;  %v7192_v59 = vadd.f32 1.0, %v7160_v14  ;;  %v14821_v26 = vadd.f32 %v14626_v60, %v14555_v48  ;;  %v7729_v4 = vsub.f32 1.0, %v7697_v32 }
0x1418   :  { %v8699_v39 = vadd.f32 -1.4531521, %v7287_v33  ;;  %v7698_v53 = vmul.f32 %v11008_v57, %v7538_v54  ;;  %v7539_v17 = vmul.f32 %v14729_v44, %v7507_v51  ;;  %v8730_v7 = vadd.f32 -0.28449672, %v7414_v40 }
0x1419   :  { %v7540_v22 = vmul.f32 %v14743_v20, %v7508_v36  ;;  %v14828_v25 = vadd.f32 %v14605_v5, %v14584_v62  ;;  %11019 = vrcp.f32 %v7192_v59  ;;  %v7541_v9 = vmul.f32 %v14754_v56, %v7509_v46 }
0x141a   :  { %v7351_v11 = vmul.f32 %v14805_v15, %v8699_v39  ;;  %v14834_v60 = vsel %vm7062_vm11, 1.0, %v15869_v41  ;;  %v14837_v57 = vmul.f32 0.5, %v14700_v16  ;;  %v7607_v44 = vmul.f32 %v7575_v8, %v14748_v21  ;;  %v11016_v20 = vpop.eup %11015 }
0x141b   :  { %v7478_v34 = vmul.f32 %v14779_v28, %v8730_v7  ;;  %v14842_v5 = vmul.f32 0.5, %v14775_v58  ;;  %v14845_v54 = vmul.f32 0.70710677, %v14821_v26  ;;  %v11018_v56 = vpop.eup %11017  ;;  %v7761_v3 = vmul.f32 %v7729_v4, %v14648_v52 }
0x141c   :  { %v7383_v32 = vadd.f32 1.4214138, %v7351_v11  ;;  %v7730_v12 = vsub.f32 1.0, %v7698_v53  ;;  %v7699_v51 = vmul.f32 %v11014_v6, %v7539_v17  ;;  %11021 = vpow2.f32 %v7644_v19 }
0x141d   :  { %v7700_v16 = vmul.f32 %v11016_v20, %v7540_v22  ;;  %v7576_v21 = vsub.f32 0.0, %v7128_v24  ;;  %v7129_v61 = vand.u32 2147483647, %v14845_v54  ;;  %v7701_v36 = vmul.f32 %v11018_v56, %v7541_v9 }
0x141e   :  { %v7415_v30 = vmul.f32 %v14805_v15, %v7383_v32  ;;  %v7646_v58 = vmul.f32 1.442695, %v7607_v44  ;;  %v14853_v33 = vadd.f32 %v14641_v13, %v14553_v27  ;;  %v7510_v14 = vadd.f32 0.2548296, %v7478_v34 }
0x141f   :  { %v14857_v52 = vadd.f32 %v14624_v43, %v14603_v63  ;;  %v7161_v40 = vmul.f32 0.3275911, %v7129_v61  ;;  %v7762_v8 = vmul.f32 %v7730_v12, %v14672_v55  ;;  %v7731_v6 = vsub.f32 1.0, %v7699_v51 }
0x1420   :  { %v8731_v46 = vadd.f32 -0.28449672, %v7415_v30  ;;  %vm7064_vm13 = vcmp.ge.f32.partialorder %v14787_v42, 0.0  ;;  %v14862_v19 = vmul.f32 0.70710677, %v14853_v33  ;;  %v7793_v39 = vadd.f32 1.0, %v7761_v3 }
0x1421   :  { %v7732_v59 = vsub.f32 1.0, %v7700_v16  ;;  %v7608_v4 = vmul.f32 %v7576_v21, %v7128_v24  ;;  %v7193_v13 = vadd.f32 1.0, %v7161_v40  ;;  %v7733_v53 = vsub.f32 1.0, %v7701_v36 }
0x1422   :  { %v7479_v17 = vmul.f32 %v14805_v15, %v8731_v46  ;;  %11023 = vpow2.f32 %v7646_v58  ;;  %v7130_v43 = vand.u32 2147483647, %v14862_v19  ;;  %v7542_v55 = vmul.f32 %v14779_v28, %v7510_v14 }
0x1423   :  { %v14866_v7 = vpop.eup %11019  ;;  %v14872_v42 = vsel %vm7063_vm12, 1.0, %v15869_v41  ;;  %v14875_v22 = vsel %vm7064_vm13, 1.0, %v15869_v41  ;;  %11025 = vrcp.f32 %v7193_v13  ;;  %v7794_v24 = vadd.f32 1.0, %v7762_v8 }
0x1424   :  { %v7763_v11 = vmul.f32 %v7731_v6, %v14736_v35  ;;  %v7288_v9 = vmul.f32 1.0614054, %v14866_v7  ;;  %v7162_v44 = vmul.f32 0.3275911, %v7130_v43  ;;  %v14880_v20 = vmul.f32 %v7793_v39, %v14618_v29 }
0x1425   :  { %v7764_v28 = vmul.f32 %v7732_v59, %v14758_v10  ;;  %v7648_v34 = vmul.f32 1.442695, %v7608_v4  ;;  %v7765_v56 = vmul.f32 %v7733_v53, %v14795_v45  ;;  %v7511_v3 = vadd.f32 0.2548296, %v7479_v17 }
0x1426   :  { %v11022_v32 = vpop.eup %11021  ;;  %v8700_v12 = vadd.f32 -1.4531521, %v7288_v9  ;;  %v7194_v51 = vadd.f32 1.0, %v7162_v44  ;;  %v7577_v16 = vsub.f32 0.0, %v7129_v61  ;;  %v14889_v30 = vmul.f32 0.70710677, %v14885_v1 }
0x1427   :  { %v7702_v35 = vmul.f32 %v11022_v32, %v7542_v55  ;;  %v14893_v29 = vadd.f32 %v14676_v18, %v14553_v27  ;;  %v14896_v10 = vmul.f32 %v7794_v24, %v14667_v38  ;;  %v7795_v23 = vadd.f32 1.0, %v7763_v11 }
0x1428   :  { %v7352_v21 = vmul.f32 %v14866_v7, %v8700_v12  ;;  %11027 = vrcp.f32 %v7194_v51  ;;  %v7796_v45 = vadd.f32 1.0, %v7764_v28  ;;  %v14900_v36 = vmul.f32 0.5, %v14821_v26  ;;  %v15871_v51 = vld [vmem:[#allocation57_spill] sm:$0xff] }
0x1429   :  { %vm7065_vm14 = vcmp.ge.f32.partialorder %v14845_v54, 0.0  ;;  %v7131_v58 = vand.u32 2147483647, %v14889_v30  ;;  %v7543_v14 = vmul.f32 %v14805_v15, %v7511_v3  ;;  %11029 = vpow2.f32 %v7648_v34 }
0x142a   :  { %v7384_v46 = vadd.f32 1.4214138, %v7352_v21  ;;  %v14906_v18 = vmul.f32 0.70710677, %v14893_v29  ;;  %v7797_v38 = vadd.f32 1.0, %v7765_v56  ;;  %v7734_v40 = vsub.f32 1.0, %v7702_v35 }
0x142b   :  { %v7609_v8 = vmul.f32 %v7577_v16, %v7129_v61  ;;  %v7163_v6 = vmul.f32 0.3275911, %v7131_v58  ;;  %v14909_v59 = vmul.f32 %v7795_v23, %v14697_v47  ;;  %v14913_v54 = vsel %vm7065_vm14, 1.0, %v15869_v41 }
0x142c   :  { %v11024_v39 = vpop.eup %11023  ;;  %v7416_v26 = vmul.f32 %v14866_v7, %v7384_v46  ;;  %v7132_v15 = vand.u32 2147483647, %v14906_v18  ;;  %v14919_v13 = vmul.f32 %v7796_v45, %v14720_v2  ;;  %v7578_v53 = vsub.f32 0.0, %v7130_v43 }
0x142d   :  { %v14916_v4 = vpop.eup %11025  ;;  %v7195_v17 = vadd.f32 1.0, %v7163_v6  ;;  %v14923_v61 = vadd.f32 %v14691_v37, %v14555_v48  ;;  %v7703_v47 = vmul.f32 %v11024_v39, %v7543_v14  ;;  %v14927_v9 = vmul.f32 %v7797_v38, %v14740_v0 }
0x142e   :  { %v8732_v55 = vadd.f32 -0.28449672, %v7416_v26  ;;  %v7289_v24 = vmul.f32 1.0614054, %v14916_v4  ;;  %v7164_v11 = vmul.f32 0.3275911, %v7132_v15  ;;  %v7766_v44 = vmul.f32 %v7734_v40, %v14834_v60 }
0x142f   :  { %v7650_v28 = vmul.f32 1.442695, %v7609_v8  ;;  %11031 = vrcp.f32 %v7195_v17  ;;  %v7579_v32 = vsub.f32 0.0, %v7131_v58  ;;  %v7610_v3 = vmul.f32 %v7578_v53, %v7130_v43 }
0x1430   :  { %v7480_v2 = vmul.f32 %v14866_v7, %v8732_v55  ;;  %v8701_v34 = vadd.f32 -1.4531521, %v7289_v24  ;;  %v7196_v56 = vadd.f32 1.0, %v7164_v11  ;;  %v7580_v37 = vsub.f32 0.0, %v7132_v15 }
0x1431   :  { %v14932_v12 = vmul.f32 0.70710677, %v14923_v61  ;;  %v14936_v35 = vadd.f32 %v15871_v51, %v14553_v27  ;;  %v7735_v16 = vsub.f32 1.0, %v7703_v47  ;;  %v7798_v21 = vadd.f32 1.0, %v7766_v44 }
0x1432   :  { %v14938_v0 = vpop.eup %11027  ;;  %v7512_v60 = vadd.f32 0.2548296, %v7480_v2  ;;  %v7353_v23 = vmul.f32 %v14916_v4, %v8701_v34  ;;  %11033 = vrcp.f32 %v7196_v56  ;;  %vm7066_vm15 = vcmp.ge.f32.partialorder %v14862_v19, 0.0 }
0x1433   :  { %11035 = vpow2.f32 %v7650_v28  ;;  %v7290_v43 = vmul.f32 1.0614054, %v14938_v0  ;;  %v11030_v45 = vpop.eup %11029  ;;  %v7611_v38 = vmul.f32 %v7579_v32, %v7131_v58  ;;  %v7133_v40 = vand.u32 2147483647, %v14932_v12 }
0x1434   :  { %v7544_v14 = vmul.f32 %v14866_v7, %v7512_v60  ;;  %v7385_v46 = vadd.f32 1.4214138, %v7353_v23  ;;  %v7652_v6 = vmul.f32 1.442695, %v7610_v3  ;;  %v7612_v39 = vmul.f32 %v7580_v37, %v7132_v15  ;;  %v15872_v60 = vld [vmem:[#allocation59_spill] sm:$0xff] }
0x1435   :  { %v8702_v8 = vadd.f32 -1.4531521, %v7290_v43  ;;  %v14946_v26 = vmul.f32 0.70710677, %v14936_v35  ;;  %v7767_v53 = vmul.f32 %v7735_v16, %v14872_v42  ;;  %v7165_v55 = vmul.f32 0.3275911, %v7133_v40 }
0x1436   :  { %v7704_v17 = vmul.f32 %v11030_v45, %v7544_v14  ;;  %v7417_v47 = vmul.f32 %v14916_v4, %v7385_v46  ;;  %v14951_v24 = vmul.f32 %v7798_v21, %v14798_v31  ;;  %v14956_v7 = vsel %vm7066_vm15, 1.0, %v15869_v41  ;;  %v15873_v14 = vld [vmem:[#allocation31_spill] sm:$0xff] }
0x1437   :  { %v7354_v58 = vmul.f32 %v14938_v0, %v8702_v8  ;;  %v14960_v15 = vand.u32 2147483647, %v14946_v26  ;;  %v7654_v42 = vmul.f32 1.442695, %v7611_v38  ;;  %v7197_v28 = vadd.f32 1.0, %v7165_v55 }
0x1438   :  { %v7736_v11 = vsub.f32 1.0, %v7704_v17  ;;  %v8733_v44 = vadd.f32 -0.28449672, %v7417_v47  ;;  %11037 = vpow2.f32 %v7652_v6  ;;  %v7656_v31 = vmul.f32 1.442695, %v7612_v39 }
0x1439   :  { %v14962_v2 = vpop.eup %11031  ;;  %v7386_v34 = vadd.f32 1.4214138, %v7354_v58  ;;  %v7166_v32 = vmul.f32 0.3275911, %v14960_v15  ;;  %v7799_v56 = vadd.f32 1.0, %v7767_v53  ;;  %11039 = vrcp.f32 %v7197_v28  ;;  %v15875_v28 = vld [vmem:[#allocation50_spill] sm:$0xff] }
0x143a   :  { %v7481_v19 = vmul.f32 %v14916_v4, %v8733_v44  ;;  %v7291_v3 = vmul.f32 1.0614054, %v14962_v2  ;;  %v7768_v37 = vmul.f32 %v7736_v11, %v14875_v22  ;;  %v14971_v23 = vadd.f32 %v15872_v60, %v14555_v48 }
0x143b   :  { %v7418_v51 = vmul.f32 %v14938_v0, %v7386_v34  ;;  %v7198_v16 = vadd.f32 1.0, %v7166_v32  ;;  %11041 = vpow2.f32 %v7654_v42  ;;  %v7857_v46 = vmul.f32 %v14880_v20, %v15873_v14  ;;  %v15874_v42 = vld [vmem:[#allocation52_spill] sm:$0xff] }
0x143c   :  { %v14973_v21 = vpop.eup %11033  ;;  %v7513_v43 = vadd.f32 0.2548296, %v7481_v19  ;;  %v8703_v45 = vadd.f32 -1.4531521, %v7291_v3  ;;  %11043 = vpow2.f32 %v7656_v31  ;;  %v7581_v22 = vsub.f32 0.0, %v7133_v40 }
0x143d   :  { %v11036_v38 = vpop.eup %11035  ;;  %v8734_v8 = vadd.f32 -0.28449672, %v7418_v51  ;;  %v7292_v6 = vmul.f32 1.0614054, %v14973_v21  ;;  %v7831_v39 = vmul.f32 %v7799_v56, %v14837_v57  ;;  %11045 = vrcp.f32 %v7198_v16  ;;  %7991 = vmatprep.mubr.f32.mxu0 %v7857_v46  ;;  %v15877_v46 = vld [vmem:[#allocation53_spill] sm:$0xff] }
0x143e   :  { %v7545_v53 = vmul.f32 %v14916_v4, %v7513_v43  ;;  %v7355_v17 = vmul.f32 %v14962_v2, %v8703_v45  ;;  %v7800_v47 = vadd.f32 1.0, %v7768_v37  ;;  %v14983_v20 = vmul.f32 0.70710677, %v14971_v23  ;;  %7992 = vmatmul.mubr.f32.vlgmr.msra.gmra.mrb[150].mxu0 %v14808_v49  ;;  %v15876_v37 = vld [vmem:[#allocation55_spill] sm:$0xff] }
0x143f   :  { %v7482_v55 = vmul.f32 %v14938_v0, %v8734_v8  ;;  %v8704_v58 = vadd.f32 -1.4531521, %v7292_v6  ;;  %v7859_v57 = vmul.f32 %v14909_v59, %v15874_v42  ;;  %v7858_v4 = vmul.f32 %v14896_v10, %v15875_v28 }
0x1440   :  { %v7705_v11 = vmul.f32 %v11036_v38, %v7545_v53  ;;  %v7387_v44 = vadd.f32 1.4214138, %v7355_v17  ;;  %v7613_v32 = vmul.f32 %v7581_v22, %v7133_v40  ;;  %v14992_v56 = vand.u32 2147483647, %v14983_v20 }
0x1441   :  { %v7514_v34 = vadd.f32 0.2548296, %v7482_v55  ;;  %v7356_v31 = vmul.f32 %v14973_v21, %v8704_v58  ;;  %v7582_v49 = vsub.f32 0.0, %v14960_v15  ;;  %7996 = vmatprep.mubr.f32.mxu0 %v7859_v57  ;;  %v7861_v51 = vmul.f32 %v14927_v9, %v15876_v37  ;;  %v15878_v55 = vld [vmem:[#allocation60_spill] sm:$0xff] }
0x1442   :  { %v7737_v19 = vsub.f32 1.0, %v7705_v11  ;;  %v7419_v3 = vmul.f32 %v14962_v2, %v7387_v44  ;;  %v11038_v59 = vpop.eup %11037  ;;  %v7832_v16 = vmul.f32 %v7800_v47, %v14842_v5  ;;  %v7167_v40 = vmul.f32 0.3275911, %v14992_v56  ;;  %7997 = vmatmul.mubr.f32.gmra.mrb[152].mxu0 %v7858_v4 }
0x1443   :  { %v7546_v10 = vmul.f32 %v14938_v0, %v7514_v34  ;;  %v7388_v60 = vadd.f32 1.4214138, %v7356_v31  ;;  %v15001_v43 = vpop.eup %11039  ;;  %8001 = vmatprep.mubr.f32.mxu0 %v7861_v51  ;;  %v7860_v38 = vmul.f32 %v14919_v13, %v15877_v46  ;;  %v7863_v9 = vmul.f32 %v7831_v39, %v14813_v50 }
0x1444   :  { %v7769_v45 = vmul.f32 %v7737_v19, %v14913_v54  ;;  %v8735_v14 = vadd.f32 -0.28449672, %v7419_v3  ;;  %v7293_v0 = vmul.f32 1.0614054, %v15001_v43  ;;  %v7199_v6 = vadd.f32 1.0, %v7167_v40 }
0x1445   :  { %v7706_v8 = vmul.f32 %v11038_v59, %v7546_v10  ;;  %v7420_v5 = vmul.f32 %v14973_v21, %v7388_v60  ;;  %v11042_v22 = vpop.eup %11041  ;;  %v7658_v47 = vmul.f32 1.442695, %v7613_v32  ;;  %v7862_v54 = vmul.f32 %v14951_v24, %v15878_v55  ;;  %v15879_v32 = vld [vmem:[#allocation32_spill] sm:$0xff]  ;;  %v15880_v55 = vld [vmem:[#allocation49_spill] sm:$0xff] }
0x1446   :  { %v7801_v53 = vadd.f32 1.0, %v7769_v45  ;;  %v7483_v17 = vmul.f32 %v14962_v2, %v8735_v14  ;;  %v11044_v58 = vpop.eup %11043  ;;  %v8705_v13 = vadd.f32 -1.4531521, %v7293_v0  ;;  %11047 = vrcp.f32 %v7199_v6  ;;  %8002 = vmatmul.mubr.f32.gmra.mrb[154].mxu0 %v7860_v38 }
0x1447   :  { %v7738_v11 = vsub.f32 1.0, %v7706_v8  ;;  %v8736_v44 = vadd.f32 -0.28449672, %v7420_v5  ;;  %v15012_v50 = vpop.eup %11045  ;;  %v7614_v57 = vmul.f32 %v7582_v49, %v14960_v15  ;;  %8006 = vmatprep.mubr.f32.mxu0 %v7863_v9  ;;  %v7864_v28 = vmul.f32 %v7832_v16, %v14828_v25 }
0x1448   :  { %v7833_v39 = vmul.f32 %v7801_v53, %v14900_v36  ;;  %v7515_v42 = vadd.f32 0.2548296, %v7483_v17  ;;  %v7357_v34 = vmul.f32 %v15001_v43, %v8705_v13  ;;  %v7294_v31 = vmul.f32 1.0614054, %v15012_v50 }
0x1449   :  { %v7770_v4 = vmul.f32 %v7738_v11, %v14956_v7  ;;  %v7484_v24 = vmul.f32 %v14973_v21, %v8736_v44  ;;  %v6767_v19 = vadd.f32 %v15879_v32, %v14584_v62  ;;  %v7002_v3 = vmul.f32 0.5, %v14853_v33 }
0x144a   :  { %v7547_v36 = vmul.f32 %v14962_v2, %v7515_v42  ;;  %v7865_v15 = vmul.f32 %v7833_v39, %v14857_v52  ;;  %vm7067_vm0 = vcmp.ge.f32.partialorder %v14889_v30, 0.0  ;;  %v7389_v7 = vadd.f32 1.4214138, %v7357_v34  ;;  %8007 = vmatmul.mubr.f32.gmra.mrb[156].mxu0 %v7862_v54 }
0x144b   :  { %v7802_v49 = vadd.f32 1.0, %v7770_v4  ;;  %v7516_v25 = vadd.f32 0.2548296, %v7484_v24  ;;  %11049 = vpow2.f32 %v7658_v47  ;;  %v8706_v51 = vadd.f32 -1.4531521, %v7294_v31  ;;  %v15881_v24 = vld [vmem:[#allocation51_spill] sm:$0xff] }
0x144c   :  { %v7707_v37 = vmul.f32 %v11042_v22, %v7547_v36  ;;  %v7660_v59 = vmul.f32 1.442695, %v7614_v57  ;;  %8011 = vmatprep.mubr.f32.mxu0 %v7865_v15  ;;  %v7421_v33 = vmul.f32 %v15001_v43, %v7389_v7  ;;  %v7583_v2 = vsub.f32 0.0, %v14992_v56 }
0x144d   :  { %v7834_v16 = vmul.f32 %v7802_v49, %v7002_v3  ;;  %v7548_v10 = vmul.f32 %v14973_v21, %v7516_v25  ;;  %v7099_v52 = vsel %vm7067_vm0, 1.0, %v15869_v41  ;;  %v7358_v30 = vmul.f32 %v15012_v50, %v8706_v51 }
0x144e   :  { %v7739_v60 = vsub.f32 1.0, %v7707_v37  ;;  %vm7068_vm2 = vcmp.ge.f32.partialorder %v14906_v18, 0.0  ;;  %v8737_v45 = vadd.f32 -0.28449672, %v7421_v33  ;;  %8012 = vmatmul.mubr.f32.gmra.mrb[158].mxu0 %v7864_v28  ;;  %v7003_v46 = vmul.f32 0.5, %v14885_v1  ;;  %v15882_v33 = vld [vmem:[#allocation54_spill] sm:$0xff] }
0x144f   :  { %v7708_v40 = vmul.f32 %v11044_v58, %v7548_v10  ;;  %v7866_v14 = vmul.f32 %v7834_v16, %v6767_v19  ;;  %v7390_v9 = vadd.f32 1.4214138, %v7358_v30  ;;  %11051 = vpow2.f32 %v7660_v59 }
0x1450   :  { %v7771_v38 = vmul.f32 %v7739_v60, %v7099_v52  ;;  %v11048_v21 = vpop.eup %11047  ;;  %v7485_v5 = vmul.f32 %v15001_v43, %v8737_v45  ;;  %v7615_v0 = vmul.f32 %v7583_v2, %v14992_v56  ;;  %v7100_v22 = vsel %vm7068_vm2, 1.0, %v15869_v41 }
0x1451   :  { %v7740_v8 = vsub.f32 1.0, %v7708_v40  ;;  %v7422_v18 = vmul.f32 %v15012_v50, %v7390_v9  ;;  %v7295_v53 = vmul.f32 1.0614054, %v11048_v21  ;;  %v6769_v1 = vadd.f32 %v15880_v55, %v14603_v63 }
0x1452   :  { %v7803_v6 = vadd.f32 1.0, %v7771_v38  ;;  %v7517_v47 = vadd.f32 0.2548296, %v7485_v5  ;;  %v7004_v44 = vmul.f32 0.5, %v14893_v29  ;;  %v7662_v56 = vmul.f32 1.442695, %v7615_v0 }
0x1453   :  { %v7772_v17 = vmul.f32 %v7740_v8, %v7100_v22  ;;  %v8738_v58 = vadd.f32 -0.28449672, %v7422_v18  ;;  %v8707_v11 = vadd.f32 -1.4531521, %v7295_v53  ;;  %v6773_v34 = vadd.f32 %v15881_v24, %v14584_v62 }
0x1454   :  { %v7835_v54 = vmul.f32 %v7803_v6, %v7003_v46  ;;  %v7549_v39 = vmul.f32 %v15001_v43, %v7517_v47  ;;  %vm7069_vm3 = vcmp.ge.f32.partialorder %v14932_v12, 0.0  ;;  %11053 = vpow2.f32 %v7662_v56 }
0x1455   :  { %v7804_v13 = vadd.f32 1.0, %v7772_v17  ;;  %v11050_v42 = vpop.eup %11049  ;;  %v7486_v57 = vmul.f32 %v15012_v50, %v8738_v58  ;;  %v7359_v28 = vmul.f32 %v11048_v21, %v8707_v11  ;;  %v7101_v36 = vsel %vm7069_vm3, 1.0, %v15869_v41 }
0x1456   :  { %v7867_v4 = vmul.f32 %v7835_v54, %v6769_v1  ;;  %v7709_v32 = vmul.f32 %v11050_v42, %v7549_v39  ;;  %vm7070_vm4 = vcmp.ge.f32.partialorder %v14946_v26, 0.0  ;;  %v7005_v12 = vmul.f32 0.5, %v14923_v61  ;;  %v15883_v61 = vld [vmem:[#allocation56_spill] sm:$0xff] }
0x1457   :  { %v7836_v31 = vmul.f32 %v7804_v13, %v7004_v44  ;;  %v7518_v19 = vadd.f32 0.2548296, %v7486_v57  ;;  %v7391_v3 = vadd.f32 1.4214138, %v7359_v28  ;;  %v6775_v2 = vadd.f32 %v15882_v33, %v14603_v63  ;;  %v15884_v44 = vld [vmem:[#allocation58_spill] sm:$0xff] }
0x1458   :  { %8016 = vmatprep.mubr.f32.mxu0 %v7867_v4  ;;  %v7741_v29 = vsub.f32 1.0, %v7709_v32  ;;  %v7102_v60 = vsel %vm7070_vm4, 1.0, %v15869_v41  ;;  %v7006_v45 = vmul.f32 0.5, %v14936_v35  ;;  %v6779_v38 = vadd.f32 %v15883_v61, %v14584_v62 }
0x1459   :  { %8017 = vmatmul.mubr.f32.gmra.mrb[160].mxu0 %v7866_v14  ;;  %v7868_v43 = vmul.f32 %v7836_v31, %v6773_v34  ;;  %v7550_v15 = vmul.f32 %v15012_v50, %v7518_v19  ;;  %v7423_v49 = vmul.f32 %v11048_v21, %v7391_v3  ;;  %v11052_v25 = vpop.eup %11051  ;;  %vm7071_vm5 = vcmp.ge.f32.partialorder %v14983_v20, 0.0 }
0x145a   :  { %v7773_v7 = vmul.f32 %v7741_v29, %v7101_v36  ;;  %v7103_v6 = vsel %vm7071_vm5, 1.0, %v15869_v41  ;;  %v7007_v55 = vmul.f32 0.5, %v14971_v23  ;;  %v6781_v13 = vadd.f32 %v15884_v44, %v14603_v63 }
0x145b   :  { %v7710_v37 = vmul.f32 %v11052_v25, %v7550_v15  ;;  %v8739_v51 = vadd.f32 -0.28449672, %v7423_v49 }
0x145c   :  { %v7805_v59 = vadd.f32 1.0, %v7773_v7 }
0x145d   :  { %v7742_v16 = vsub.f32 1.0, %v7710_v37  ;;  %v7487_v10 = vmul.f32 %v11048_v21, %v8739_v51 }
0x145e   :  { %v7837_v52 = vmul.f32 %v7805_v59, %v7005_v12  ;;  %v11054_v46 = vpop.eup %11053 }
0x145f   :  { %v7774_v30 = vmul.f32 %v7742_v16, %v7102_v60  ;;  %v7519_v50 = vadd.f32 0.2548296, %v7487_v10 }
0x1460   :  { %v7869_v40 = vmul.f32 %v7837_v52, %v6775_v2 }
0x1461   :  { %v7806_v14 = vadd.f32 1.0, %v7774_v30  ;;  %v7551_v26 = vmul.f32 %v11048_v21, %v7519_v50 }
0x1462   :  { %8021 = vmatprep.mubr.f32.mxu0 %v7869_v40 }
0x1463   :  { %v7838_v9 = vmul.f32 %v7806_v14, %v7006_v45  ;;  %v7711_v8 = vmul.f32 %v11054_v46, %v7551_v26  ;;  %8022 = vmatmul.mubr.f32.gmra.mrb[162].mxu0 %v7868_v43 }
0x1465   :  { %v7743_v5 = vsub.f32 1.0, %v7711_v8  ;;  %v7870_v0 = vmul.f32 %v7838_v9, %v6779_v38 }
0x1467   :  { %v7775_v53 = vmul.f32 %v7743_v5, %v7103_v6 }
0x1469   :  { %v6784_v22 = vpop.f32.mrb[134].mxu0  ;;  %v6945_v18 = vpop.f32.mrb[132].mxu1  ;;  %v7807_v1 = vadd.f32 1.0, %v7775_v53 }
0x146a   :  { %v6946_v35 = vadd.f32 %v6945_v18, %v14553_v27  ;;  %v6786_v21 = vpop.f32.mrb[135].mxu0  ;;  %v6947_v17 = vpop.f32.mrb[133].mxu1  ;;  %v15098_v30 = vadd.f32 %v6784_v22, %v14584_v62 }
0x146b   :  { %v6948_v47 = vadd.f32 %v6947_v17, %v14555_v48  ;;  %v7839_v39 = vmul.f32 %v7807_v1, %v7007_v55  ;;  %v15117_v9 = vadd.f32 %v6786_v21, %v14603_v63 }
0x146c   :  { %v7040_v54 = vmul.f32 0.70710677, %v6946_v35  ;;  %15885 = vst [vmem:[#allocation57_spill] sm:$0xff] %v15098_v30  ;;  %v15100_v50 = vmul.f32 0.5, %v6946_v35 }
0x146d   :  { %v7041_v20 = vmul.f32 0.70710677, %v6948_v47  ;;  %v6790_v58 = vpop.f32.mrb[136].mxu0  ;;  %v6951_v11 = vpop.f32.mrb[134].mxu1  ;;  %v7871_v24 = vmul.f32 %v7839_v39, %v6781_v13  ;;  %15886 = vst [vmem:[#allocation59_spill] sm:$0xff] %v15117_v9  ;;  %v15119_v8 = vmul.f32 0.5, %v6948_v47 }
0x146e   :  { %v7136_v56 = vand.u32 2147483647, %v7040_v54  ;;  %v15063_v42 = vpop.f32.mrb[137].mxu0  ;;  %v6953_v57 = vpop.f32.mrb[135].mxu1  ;;  %v15066_v4 = vadd.f32 %v6951_v11, %v14553_v27  ;;  %vm7072_vm6 = vcmp.ge.f32.partialorder %v7040_v54, 0.0  ;;  %v15133_v21 = vadd.f32 %v6790_v58, %v14584_v62 }
0x146f   :  { %v7137_v28 = vand.u32 2147483647, %v7041_v20  ;;  %8026 = vmatprep.mubr.f32.mxu0 %v7871_v24  ;;  %v15072_v19 = vadd.f32 %v6953_v57, %v14555_v48  ;;  %vm7073_vm7 = vcmp.ge.f32.partialorder %v7041_v20, 0.0  ;;  %v15114_v38 = vsel %vm7072_vm6, 1.0, %v15869_v41 }
0x1470   :  { %v7168_v34 = vmul.f32 0.3275911, %v7136_v56  ;;  %v15069_v31 = vmul.f32 0.70710677, %v15066_v4  ;;  %8027 = vmatmul.mubr.f32.gmra.mrb[164].mxu0 %v7870_v0  ;;  %v7584_v37 = vsub.f32 0.0, %v7136_v56  ;;  %v15130_v17 = vsel %vm7073_vm7, 1.0, %v15869_v41 }
0x1471   :  { %v7169_v23 = vmul.f32 0.3275911, %v7137_v28  ;;  %v15074_v3 = vpop.f32.mrb[138].mxu0  ;;  %v6957_v29 = vpop.f32.mrb[136].mxu1  ;;  %v15082_v51 = vmul.f32 0.70710677, %v15072_v19 }
0x1472   :  { %v7200_v32 = vadd.f32 1.0, %v7168_v34  ;;  %v7138_v36 = vand.u32 2147483647, %v15069_v31  ;;  %v15077_v15 = vpop.f32.mrb[139].mxu0  ;;  %v6959_v49 = vpop.f32.mrb[137].mxu1  ;;  %v15085_v12 = vadd.f32 %v6957_v29, %v14553_v27  ;;  %v7585_v2 = vsub.f32 0.0, %v7137_v28 }
0x1473   :  { %v7201_v43 = vadd.f32 1.0, %v7169_v23  ;;  %v15092_v52 = vand.u32 2147483647, %v15082_v51  ;;  %v15103_v40 = vadd.f32 %v6959_v49, %v14555_v48  ;;  %v7616_v26 = vmul.f32 %v7584_v37, %v7136_v56  ;;  %15887 = vst [vmem:[#allocation31_spill] sm:$0xff] %v15133_v21 }
0x1474   :  { %11055 = vrcp.f32 %v7200_v32  ;;  %v7170_v25 = vmul.f32 0.3275911, %v7138_v36  ;;  %v15095_v60 = vmul.f32 0.70710677, %v15085_v12  ;;  %v7617_v22 = vmul.f32 %v7585_v2, %v7137_v28 }
0x1475   :  { %11057 = vrcp.f32 %v7201_v43  ;;  %v15079_v7 = vpop.f32.mrb[140].mxu0  ;;  %v6963_v59 = vpop.f32.mrb[138].mxu1  ;;  %v7171_v46 = vmul.f32 0.3275911, %v15092_v52  ;;  %v15122_v5 = vmul.f32 0.70710677, %v15103_v40  ;;  %v15160_v28 = vadd.f32 %v15063_v42, %v14603_v63 }
0x1476   :  { %v15087_v16 = vpop.f32.mrb[141].mxu0  ;;  %v7202_v10 = vadd.f32 1.0, %v7170_v25  ;;  %v15089_v33 = vpop.f32.mrb[139].mxu1  ;;  %v15111_v61 = vand.u32 2147483647, %v15095_v60  ;;  %v7586_v18 = vsub.f32 0.0, %v7138_v36  ;;  %v15146_v44 = vadd.f32 %v6963_v59, %v14553_v27 }
0x1477   :  { %v7203_v53 = vadd.f32 1.0, %v7171_v46  ;;  %vm7074_vm8 = vcmp.ge.f32.partialorder %v15069_v31, 0.0  ;;  %v15137_v47 = vand.u32 2147483647, %v15122_v5  ;;  %v7664_v20 = vmul.f32 1.442695, %v7616_v26 }
0x1478   :  { %11059 = vrcp.f32 %v7202_v10  ;;  %v7172_v35 = vmul.f32 0.3275911, %v15111_v61  ;;  %v15156_v57 = vmul.f32 0.5, %v15066_v4  ;;  %15889 = vst [vmem:[#allocation50_spill] sm:$0xff] %v15160_v28  ;;  %v7666_v23 = vmul.f32 1.442695, %v7617_v22 }
0x1479   :  { %v15105_v45 = vpop.f32.mrb[142].mxu0  ;;  %v15107_v14 = vpop.f32.mrb[140].mxu1  ;;  %11061 = vrcp.f32 %v7203_v53  ;;  %v7173_v24 = vmul.f32 0.3275911, %v15137_v47  ;;  %v15167_v32 = vsel %vm7074_vm8, 1.0, %v15869_v41  ;;  %v7618_v29 = vmul.f32 %v7586_v18, %v7138_v36 }
0x147a   :  { %v15124_v0 = vpop.f32.mrb[143].mxu0  ;;  %v15126_v6 = vpop.f32.mrb[141].mxu1  ;;  %v7204_v11 = vadd.f32 1.0, %v7172_v35  ;;  %v15170_v49 = vmul.f32 0.5, %v15072_v19  ;;  %v15178_v59 = vadd.f32 %v15074_v3, %v14584_v62  ;;  %v15181_v31 = vmul.f32 0.70710677, %v15146_v44 }
0x147b   :  { %v7205_v4 = vadd.f32 1.0, %v7173_v24  ;;  %vm7075_vm9 = vcmp.ge.f32.partialorder %v15082_v51, 0.0  ;;  %v15193_v26 = vadd.f32 %v15089_v33, %v14555_v48  ;;  %v7668_v22 = vmul.f32 1.442695, %v7618_v29 }
0x147c   :  { %11063 = vrcp.f32 %v7204_v11  ;;  %15891 = vst [vmem:[#allocation53_spill] sm:$0xff] %v15178_v59  ;;  %v15198_v18 = vand.u32 2147483647, %v15181_v31  ;;  %v7587_v35 = vsub.f32 0.0, %v15092_v52  ;;  %vm7076_vm10 = vcmp.ge.f32.partialorder %v15095_v60, 0.0 }
0x147d   :  { %v15139_v55 = vpop.f32.mrb[144].mxu0  ;;  %v15141_v1 = vpop.f32.mrb[142].mxu1  ;;  %11065 = vpow2.f32 %v7664_v20  ;;  %v15208_v24 = vadd.f32 %v15077_v15, %v14603_v63  ;;  %v7588_v51 = vsub.f32 0.0, %v15111_v61  ;;  %v15242_v59 = vmul.f32 0.5, %v15103_v40 }
0x147e   :  { %v15143_v54 = vpop.eup %11055  ;;  %v15148_v13 = vpop.f32.mrb[145].mxu0  ;;  %11067 = vrcp.f32 %v7205_v4  ;;  %v15221_v4 = vmul.f32 0.70710677, %v15193_v26  ;;  %vm7077_vm11 = vcmp.ge.f32.partialorder %v15122_v5, 0.0  ;;  %vm7078_vm12 = vcmp.ge.f32.partialorder %v15181_v31, 0.0 }
0x147f   :  { %15888 = vst [vmem:[#allocation52_spill] sm:$0xff] %v15148_v13  ;;  %v15150_v58 = vpop.f32.mrb[143].mxu1  ;;  %v15152_v39 = vpop.eup %11057  ;;  %v7296_v56 = vmul.f32 1.0614054, %v15143_v54  ;;  %11069 = vpow2.f32 %v7666_v23  ;;  %15894 = vst [vmem:[#allocation49_spill] sm:$0xff] %v15208_v24  ;;  %v15215_v23 = vsel %vm7075_vm9, 1.0, %v15869_v41  ;;  %v7619_v13 = vmul.f32 %v7587_v35, %v15092_v52 }
0x1480   :  { %v7297_v34 = vmul.f32 1.0614054, %v15152_v39  ;;  %11071 = vpow2.f32 %v7668_v22  ;;  %v7589_v22 = vsub.f32 0.0, %v15137_v47  ;;  %v7620_v52 = vmul.f32 %v7588_v51, %v15111_v61 }
0x1481   :  { %v8708_v43 = vadd.f32 -1.4531521, %v7296_v56  ;;  %v15172_v25 = vpop.f32.mrb[146].mxu0  ;;  %v15174_v42 = vpop.f32.mrb[144].mxu1  ;;  %v7670_v21 = vmul.f32 1.442695, %v7619_v13 }
0x1482   :  { %15890 = vst [vmem:[#allocation55_spill] sm:$0xff] %v15172_v25  ;;  %v8709_v37 = vadd.f32 -1.4531521, %v7297_v34  ;;  %v15183_v36 = vpop.f32.mrb[147].mxu0  ;;  %v15185_v10 = vpop.f32.mrb[145].mxu1  ;;  %v7621_v51 = vmul.f32 %v7589_v22, %v15137_v47  ;;  %v15266_v9 = vsel %vm7077_vm11, 1.0, %v15869_v41 }
0x1483   :  { %15892 = vst [vmem:[#allocation60_spill] sm:$0xff] %v15183_v36  ;;  %v15187_v19 = vpop.eup %11059  ;;  %v7360_v2 = vmul.f32 %v15143_v54, %v8708_v43  ;;  %v7174_v34 = vmul.f32 0.3275911, %v15198_v18  ;;  %v15218_v43 = vmul.f32 0.5, %v15085_v12  ;;  %v15236_v36 = vsel %vm7076_vm10, 1.0, %v15869_v41 }
0x1484   :  { %v7361_v3 = vmul.f32 %v15152_v39, %v8709_v37  ;;  %v7298_v46 = vmul.f32 1.0614054, %v15187_v19  ;;  %v15227_v15 = vpop.eup %11061  ;;  %v7672_v5 = vmul.f32 1.442695, %v7620_v52  ;;  %v15276_v52 = vadd.f32 %v15107_v14, %v14553_v27 }
0x1485   :  { %v7392_v53 = vadd.f32 1.4214138, %v7360_v2  ;;  %v15202_v20 = vpop.f32.mrb[148].mxu0  ;;  %v15204_v11 = vpop.f32.mrb[146].mxu1  ;;  %v7299_v12 = vmul.f32 1.0614054, %v15227_v15 }
0x1486   :  { %15893 = vst [vmem:[#allocation32_spill] sm:$0xff] %v15202_v20  ;;  %v7393_v33 = vadd.f32 1.4214138, %v7361_v3  ;;  %v8710_v56 = vadd.f32 -1.4531521, %v7298_v46  ;;  %v15223_v37 = vpop.f32.mrb[149].mxu0 }
0x1487   :  { %v7424_v29 = vmul.f32 %v15143_v54, %v7392_v53  ;;  %15895 = vst [vmem:[#allocation51_spill] sm:$0xff] %v15223_v37  ;;  %v15225_v2 = vpop.f32.mrb[147].mxu1  ;;  %v7206_v53 = vadd.f32 1.0, %v7174_v34  ;;  %v15246_v34 = vand.u32 2147483647, %v15221_v4  ;;  %v7590_v14 = vsub.f32 0.0, %v15198_v18 }
0x1488   :  { %15896 = vst [vmem:[#allocation54_spill] sm:$0xff] %v15225_v2  ;;  %v7425_v3 = vmul.f32 %v15152_v39, %v7393_v33  ;;  %v7362_v46 = vmul.f32 %v15187_v19, %v8710_v56  ;;  %v15239_v33 = vpop.eup %11063  ;;  %v8711_v56 = vadd.f32 -1.4531521, %v7299_v12  ;;  %vm7079_vm13 = vcmp.ge.f32.partialorder %v15221_v4, 0.0 }
0x1489   :  { %v8740_v20 = vadd.f32 -0.28449672, %v7424_v29  ;;  %11073 = vrcp.f32 %v7206_v53  ;;  %v11066_v29 = vpop.eup %11065  ;;  %v7175_v12 = vmul.f32 0.3275911, %v15246_v34  ;;  %v15337_v4 = vsel %vm7079_vm13, 1.0, %v15869_v41 }
0x148a   :  { %v8741_v37 = vadd.f32 -0.28449672, %v7425_v3  ;;  %v7394_v25 = vadd.f32 1.4214138, %v7362_v46  ;;  %v7300_v46 = vmul.f32 1.0614054, %v15239_v33  ;;  %v15252_v35 = vpop.eup %11067  ;;  %v7363_v40 = vmul.f32 %v15227_v15, %v8711_v56 }
0x148b   :  { %v7488_v60 = vmul.f32 %v15143_v54, %v8740_v20  ;;  %v11070_v20 = vpop.eup %11069  ;;  %v7301_v61 = vmul.f32 1.0614054, %v15252_v35 }
0x148c   :  { %v7426_v3 = vmul.f32 %v15187_v19, %v7394_v25  ;;  %v7489_v53 = vmul.f32 %v15152_v39, %v8741_v37  ;;  %v8712_v28 = vadd.f32 -1.4531521, %v7300_v46  ;;  %v15260_v25 = vadd.f32 %v15079_v7, %v14584_v62  ;;  %v11072_v47 = vpop.eup %11071 }
0x148d   :  { %v7395_v30 = vadd.f32 1.4214138, %v7363_v40  ;;  %v7207_v37 = vadd.f32 1.0, %v7175_v12  ;;  %v7520_v2 = vadd.f32 0.2548296, %v7488_v60 }
0x148e   :  { %v8742_v24 = vadd.f32 -0.28449672, %v7426_v3  ;;  %15897 = vst [vmem:[#allocation56_spill] sm:$0xff] %v15260_v25  ;;  %v7364_v56 = vmul.f32 %v15239_v33, %v8712_v28  ;;  %v7521_v13 = vadd.f32 0.2548296, %v7489_v53  ;;  %v15271_v25 = vmul.f32 0.5, %v15146_v44 }
0x148f   :  { %v7427_v3 = vmul.f32 %v15227_v15, %v7395_v30  ;;  %v8713_v46 = vadd.f32 -1.4531521, %v7301_v61  ;;  %11075 = vrcp.f32 %v7207_v37  ;;  %v7674_v60 = vmul.f32 1.442695, %v7621_v51 }
0x1490   :  { %v7490_v7 = vmul.f32 %v15187_v19, %v8742_v24  ;;  %11077 = vpow2.f32 %v7670_v21  ;;  %v7396_v40 = vadd.f32 1.4214138, %v7364_v56  ;;  %v7552_v30 = vmul.f32 %v15143_v54, %v7520_v2 }
0x1491   :  { %v8743_v22 = vadd.f32 -0.28449672, %v7427_v3  ;;  %v7365_v28 = vmul.f32 %v15252_v35, %v8713_v46  ;;  %11079 = vpow2.f32 %v7672_v5  ;;  %v7553_v21 = vmul.f32 %v15152_v39, %v7521_v13 }
0x1492   :  { %v7428_v24 = vmul.f32 %v15239_v33, %v7396_v40  ;;  %v7522_v51 = vadd.f32 0.2548296, %v7490_v7  ;;  %v15289_v56 = vadd.f32 %v15087_v16, %v14603_v63  ;;  %11081 = vpow2.f32 %v7674_v60 }
0x1493   :  { %v15278_v53 = vpop.eup %11073  ;;  %v7491_v44 = vmul.f32 %v15227_v15, %v8743_v22  ;;  %v7397_v12 = vadd.f32 1.4214138, %v7365_v28  ;;  %v15293_v5 = vmul.f32 0.70710677, %v15276_v52  ;;  %v7712_v39 = vmul.f32 %v11066_v29, %v7552_v30 }
0x1494   :  { %v7302_v61 = vmul.f32 1.0614054, %v15278_v53  ;;  %v8744_v37 = vadd.f32 -0.28449672, %v7428_v24  ;;  %v15299_v46 = vsel %vm7078_vm12, 1.0, %v15869_v41  ;;  %v7713_v7 = vmul.f32 %v11070_v20, %v7553_v21 }
0x1495   :  { %v7429_v54 = vmul.f32 %v15252_v35, %v7397_v12  ;;  %v7523_v13 = vadd.f32 0.2548296, %v7491_v44  ;;  %v15303_v22 = vmul.f32 0.5, %v15193_v26  ;;  %v7554_v28 = vmul.f32 %v15187_v19, %v7522_v51 }
0x1496   :  { %v8714_v2 = vadd.f32 -1.4531521, %v7302_v61  ;;  %v7492_v3 = vmul.f32 %v15239_v33, %v8744_v37  ;;  %v7622_v29 = vmul.f32 %v7590_v14, %v15198_v18  ;;  %v7591_v30 = vsub.f32 0.0, %v15246_v34 }
0x1497   :  { %v8745_v40 = vadd.f32 -0.28449672, %v7429_v54  ;;  %v15313_v20 = vadd.f32 %v15105_v45, %v14584_v62  ;;  %v7144_v21 = vand.u32 2147483647, %v15293_v5  ;;  %v7744_v12 = vsub.f32 1.0, %v7712_v39 }
0x1498   :  { %v7366_v16 = vmul.f32 %v15278_v53, %v8714_v2  ;;  %v7524_v60 = vadd.f32 0.2548296, %v7492_v3  ;;  %v7555_v19 = vmul.f32 %v15227_v15, %v7523_v13  ;;  %v15320_v18 = vadd.f32 %v15126_v6, %v14555_v48 }
0x1499   :  { %v15308_v24 = vpop.eup %11075  ;;  %v7493_v31 = vmul.f32 %v15252_v35, %v8745_v40  ;;  %15898 = vst [vmem:[#allocation58_spill] sm:$0xff] %v15313_v20  ;;  %v7745_v51 = vsub.f32 1.0, %v7713_v7  ;;  %v7176_v54 = vmul.f32 0.3275911, %v7144_v21  ;;  %v7714_v2 = vmul.f32 %v11072_v47, %v7554_v28 }
0x149a   :  { %v7398_v44 = vadd.f32 1.4214138, %v7366_v16  ;;  %v11078_v26 = vpop.eup %11077  ;;  %v7303_v61 = vmul.f32 1.0614054, %v15308_v24  ;;  %v7556_v37 = vmul.f32 %v15239_v33, %v7524_v60  ;;  %v7676_v3 = vmul.f32 1.442695, %v7622_v29 }
0x149b   :  { %v11080_v45 = vpop.eup %11079  ;;  %v7623_v39 = vmul.f32 %v7591_v30, %v15246_v34  ;;  %v7525_v16 = vadd.f32 0.2548296, %v7493_v31  ;;  %v7208_v13 = vadd.f32 1.0, %v7176_v54  ;;  %v7715_v20 = vmul.f32 %v11078_v26, %v7555_v19 }
0x149c   :  { %v7430_v14 = vmul.f32 %v15278_v53, %v7398_v44  ;;  %v8715_v40 = vadd.f32 -1.4531521, %v7303_v61  ;;  %v15329_v33 = vadd.f32 %v15124_v0, %v14603_v63  ;;  %v15332_v7 = vmul.f32 0.70710677, %v15320_v18  ;;  %v11082_v47 = vpop.eup %11081 }
0x149d   :  { %v7776_v28 = vmul.f32 %v7744_v12, %v15114_v38  ;;  %v7777_v34 = vmul.f32 %v7745_v51, %v15130_v17  ;;  %v7716_v60 = vmul.f32 %v11080_v45, %v7556_v37  ;;  %11083 = vrcp.f32 %v7208_v13 }
0x149e   :  { %v8746_v15 = vadd.f32 -0.28449672, %v7430_v14  ;;  %v7367_v6 = vmul.f32 %v15308_v24, %v8715_v40  ;;  %v7746_v29 = vsub.f32 1.0, %v7714_v2  ;;  %v7678_v31 = vmul.f32 1.442695, %v7623_v39 }
0x149f   :  { %v7557_v44 = vmul.f32 %v15252_v35, %v7525_v16  ;;  %11085 = vpow2.f32 %v7676_v3  ;;  %v15342_v26 = vmul.f32 0.5, %v15276_v52  ;;  %v7747_v19 = vsub.f32 1.0, %v7715_v20 }
0x14a0   :  { %v7399_v30 = vadd.f32 1.4214138, %v7367_v6  ;;  %v7494_v0 = vmul.f32 %v15278_v53, %v8746_v15  ;;  %v7592_v17 = vsub.f32 0.0, %v7144_v21  ;;  %v7145_v12 = vand.u32 2147483647, %v15332_v7 }
0x14a1   :  { %v7808_v61 = vadd.f32 1.0, %v7776_v28  ;;  %v7809_v51 = vadd.f32 1.0, %v7777_v34  ;;  %v7748_v37 = vsub.f32 1.0, %v7716_v60  ;;  %v6976_v14 = vadd.f32 %v15141_v1, %v14553_v27 }
0x14a2   :  { %v7431_v38 = vmul.f32 %v15308_v24, %v7399_v30  ;;  %v7778_v35 = vmul.f32 %v7746_v29, %v15167_v32  ;;  %11087 = vpow2.f32 %v7678_v31  ;;  %v7177_v45 = vmul.f32 0.3275911, %v7145_v12 }
0x14a3   :  { %v7717_v2 = vmul.f32 %v11082_v47, %v7557_v44  ;;  %v7526_v52 = vadd.f32 0.2548296, %v7494_v0  ;;  %vm7080_vm14 = vcmp.ge.f32.partialorder %v15293_v5, 0.0  ;;  %v15350_v20 = vmul.f32 0.70710677, %v6976_v14 }
0x14a4   :  { %v8747_v54 = vadd.f32 -0.28449672, %v7431_v38  ;;  %v7779_v3 = vmul.f32 %v7747_v19, %v15215_v23  ;;  %v7624_v39 = vmul.f32 %v7592_v17, %v7144_v21  ;;  %v7209_v16 = vadd.f32 1.0, %v7177_v45 }
0x14a5   :  { %v15355_v15 = vmul.f32 %v7808_v61, %v15100_v50  ;;  %v15358_v1 = vmul.f32 %v7809_v51, %v15119_v8  ;;  %v7780_v32 = vmul.f32 %v7748_v37, %v15236_v36  ;;  %v7146_v13 = vand.u32 2147483647, %v15350_v20 }
0x14a6   :  { %v7495_v40 = vmul.f32 %v15308_v24, %v8747_v54  ;;  %v7810_v6 = vadd.f32 1.0, %v7778_v35  ;;  %v15363_v47 = vsel %vm7080_vm14, 1.0, %v15869_v41  ;;  %11089 = vrcp.f32 %v7209_v16 }
0x14a7   :  { %v15365_v23 = vpop.eup %11083  ;;  %v7749_v21 = vsub.f32 1.0, %v7717_v2  ;;  %v7558_v28 = vmul.f32 %v15278_v53, %v7526_v52  ;;  %v7178_v50 = vmul.f32 0.3275911, %v7146_v13  ;;  %v15370_v8 = vadd.f32 %v15150_v58, %v14555_v48 }
0x14a8   :  { %v7527_v5 = vadd.f32 0.2548296, %v7495_v40  ;;  %v7811_v34 = vadd.f32 1.0, %v7779_v3  ;;  %v7304_v36 = vmul.f32 1.0614054, %v15365_v23  ;;  %v15374_v29 = vmul.f32 0.5, %v15320_v18 }
0x14a9   :  { %v7680_v60 = vmul.f32 1.442695, %v7624_v39  ;;  %v11086_v30 = vpop.eup %11085  ;;  %v7812_v31 = vadd.f32 1.0, %v7780_v32  ;;  %vm7081_vm15 = vcmp.ge.f32.partialorder %v15332_v7, 0.0  ;;  %v7210_v0 = vadd.f32 1.0, %v7178_v50 }
0x14aa   :  { %v7559_v44 = vmul.f32 %v15308_v24, %v7527_v5  ;;  %v8716_v53 = vadd.f32 -1.4531521, %v7304_v36  ;;  %v7593_v19 = vsub.f32 0.0, %v7145_v12  ;;  %v15379_v38 = vmul.f32 0.70710677, %v15370_v8 }
0x14ab   :  { %v15383_v58 = vadd.f32 %v15174_v42, %v14553_v27  ;;  %v15386_v17 = vmul.f32 %v7810_v6, %v15156_v57  ;;  %v7781_v18 = vmul.f32 %v7749_v21, %v15266_v9  ;;  %v7718_v61 = vmul.f32 %v11086_v30, %v7558_v28 }
0x14ac   :  { %11091 = vrcp.f32 %v7210_v0  ;;  %v11088_v24 = vpop.eup %11087  ;;  %v15390_v7 = vmul.f32 %v7811_v34, %v15170_v49  ;;  %v7368_v51 = vmul.f32 %v15365_v23, %v8716_v53  ;;  %v15394_v37 = vsel %vm7081_vm15, 1.0, %v15869_v41 }
0x14ad   :  { %v7147_v35 = vand.u32 2147483647, %v15379_v38  ;;  %v7719_v42 = vmul.f32 %v11088_v24, %v7559_v44  ;;  %11093 = vpow2.f32 %v7680_v60  ;;  %v15399_v57 = vadd.f32 %v15139_v55, %v14584_v62 }
0x14ae   :  { %v15402_v9 = vmul.f32 0.70710677, %v15383_v58  ;;  %v15405_v54 = vmul.f32 %v7812_v31, %v15218_v43  ;;  %v7400_v49 = vadd.f32 1.4214138, %v7368_v51  ;;  %v7625_v45 = vmul.f32 %v7593_v19, %v7145_v12 }
0x14af   :  { %v7179_v2 = vmul.f32 0.3275911, %v7147_v35  ;;  %v7813_v52 = vadd.f32 1.0, %v7781_v18  ;;  %v7750_v3 = vsub.f32 1.0, %v7718_v61  ;;  %v15407_v40 = vmul.f32 0.5, %v6976_v14 }
0x14b0   :  { %v7148_v39 = vand.u32 2147483647, %v15402_v9  ;;  %v15410_v16 = vpop.eup %11089  ;;  %v7432_v55 = vmul.f32 %v15365_v23, %v7400_v49  ;;  %v7594_v32 = vsub.f32 0.0, %v7146_v13  ;;  %v15415_v5 = vadd.f32 %v15185_v10, %v14555_v48 }
0x14b1   :  { %v7211_v6 = vadd.f32 1.0, %v7179_v2  ;;  %v7751_v43 = vsub.f32 1.0, %v7719_v42  ;;  %v7305_v12 = vmul.f32 1.0614054, %v15410_v16  ;;  %vm7082_vm0 = vcmp.ge.f32.partialorder %v15350_v20, 0.0 }
0x14b2   :  { %v7180_v21 = vmul.f32 0.3275911, %v7148_v39  ;;  %v8748_v14 = vadd.f32 -0.28449672, %v7432_v55  ;;  %v7682_v28 = vmul.f32 1.442695, %v7625_v45  ;;  %v15420_v34 = vmul.f32 %v7813_v52, %v15242_v59 }
0x14b3   :  { %11095 = vrcp.f32 %v7211_v6  ;;  %v7595_v50 = vsub.f32 0.0, %v7147_v35  ;;  %v7782_v36 = vmul.f32 %v7750_v3, %v15299_v46  ;;  %v8717_v60 = vadd.f32 -1.4531521, %v7305_v12  ;;  %v15899_v55 = vld [vmem:[#allocation59_spill] sm:$0xff] }
0x14b4   :  { %v7212_v30 = vadd.f32 1.0, %v7180_v21  ;;  %v7496_v10 = vmul.f32 %v15365_v23, %v8748_v14  ;;  %v7626_v31 = vmul.f32 %v7594_v32, %v7146_v13  ;;  %v15425_v44 = vmul.f32 0.70710677, %v15415_v5 }
0x14b5   :  { %v15429_v0 = vadd.f32 %v15204_v11, %v14553_v27  ;;  %v7783_v19 = vmul.f32 %v7751_v43, %v15337_v4  ;;  %v7369_v59 = vmul.f32 %v15410_v16, %v8717_v60  ;;  %v15438_v46 = vsel %vm7082_vm0, 1.0, %v15869_v41 }
0x14b6   :  { %v15431_v53 = vpop.eup %11091  ;;  %11097 = vrcp.f32 %v7212_v30  ;;  %v7528_v13 = vadd.f32 0.2548296, %v7496_v10  ;;  %v7627_v61 = vmul.f32 %v7595_v50, %v7147_v35  ;;  %v7814_v27 = vadd.f32 1.0, %v7782_v36 }
0x14b7   :  { %11099 = vpow2.f32 %v7682_v28  ;;  %v7306_v18 = vmul.f32 1.0614054, %v15431_v53  ;;  %v11094_v24 = vpop.eup %11093  ;;  %v7401_v11 = vadd.f32 1.4214138, %v7369_v59  ;;  %v7596_v51 = vsub.f32 0.0, %v7148_v39 }
0x14b8   :  { %v7149_v42 = vand.u32 2147483647, %v15425_v44  ;;  %v7560_v4 = vmul.f32 %v15365_v23, %v7528_v13  ;;  %v7684_v45 = vmul.f32 1.442695, %v7626_v31  ;;  %v15444_v20 = vmul.f32 0.70710677, %v15429_v0 }
0x14b9   :  { %v8718_v49 = vadd.f32 -1.4531521, %v7306_v18  ;;  %v7815_v2 = vadd.f32 1.0, %v7783_v19  ;;  %v7433_v52 = vmul.f32 %v15410_v16, %v7401_v11  ;;  %v7873_v35 = vmul.f32 %v15358_v1, %v15899_v55  ;;  %v15900_v31 = vld [vmem:[#allocation54_spill] sm:$0xff] }
0x14ba   :  { %v7181_v3 = vmul.f32 0.3275911, %v7149_v42  ;;  %v7720_v32 = vmul.f32 %v11094_v24, %v7560_v4  ;;  %v7686_v43 = vmul.f32 1.442695, %v7627_v61  ;;  %v7150_v12 = vand.u32 2147483647, %v15444_v20 }
0x14bb   :  { %v7370_v6 = vmul.f32 %v15431_v53, %v8718_v49  ;;  %v8749_v21 = vadd.f32 -0.28449672, %v7433_v52  ;;  %v7628_v23 = vmul.f32 %v7596_v51, %v7148_v39  ;;  %v7597_v28 = vsub.f32 0.0, %v7149_v42  ;;  %8031 = vmatprep.mubr.f32.mxu0 %v7873_v35 }
0x14bc   :  { %v7213_v14 = vadd.f32 1.0, %v7181_v3  ;;  %v7752_v36 = vsub.f32 1.0, %v7720_v32  ;;  %11101 = vpow2.f32 %v7684_v45  ;;  %v7182_v30 = vmul.f32 0.3275911, %v7150_v12 }
0x14bd   :  { %v15451_v50 = vpop.eup %11095  ;;  %v7402_v60 = vadd.f32 1.4214138, %v7370_v6  ;;  %v7497_v10 = vmul.f32 %v15410_v16, %v8749_v21  ;;  %v15457_v19 = vadd.f32 %v15900_v31, %v14555_v48  ;;  %v15460_v39 = vmul.f32 %v7814_v27, %v15271_v25 }
0x14be   :  { %v7307_v1 = vmul.f32 1.0614054, %v15451_v50  ;;  %11103 = vrcp.f32 %v7213_v14  ;;  %v7847_v59 = vmul.f32 %v7815_v2, %v15303_v22  ;;  %v7214_v18 = vadd.f32 1.0, %v7182_v30  ;;  %v15903_v30 = vld [vmem:[#allocation31_spill] sm:$0xff] }
0x14bf   :  { %v7434_v13 = vmul.f32 %v15431_v53, %v7402_v60  ;;  %v7529_v24 = vadd.f32 0.2548296, %v7497_v10  ;;  %v7688_v51 = vmul.f32 1.442695, %v7628_v23  ;;  %v7629_v4 = vmul.f32 %v7597_v28, %v7149_v42  ;;  %v15901_v42 = vld [vmem:[#allocation57_spill] sm:$0xff] }
0x14c0   :  { %v15464_v61 = vpop.eup %11097  ;;  %v8719_v11 = vadd.f32 -1.4531521, %v7307_v1  ;;  %v7784_v45 = vmul.f32 %v7752_v36, %v15363_v47  ;;  %11105 = vrcp.f32 %v7214_v18  ;;  %v15471_v27 = vmul.f32 0.70710677, %v15457_v19  ;;  %v15902_v36 = vld [vmem:[#allocation50_spill] sm:$0xff] }
0x14c1   :  { %v11100_v49 = vpop.eup %11099  ;;  %v8750_v52 = vadd.f32 -0.28449672, %v7434_v13  ;;  %v7308_v48 = vmul.f32 1.0614054, %v15464_v61  ;;  %v7561_v25 = vmul.f32 %v15410_v16, %v7529_v24  ;;  %11107 = vpow2.f32 %v7686_v43 }
0x14c2   :  { %v7371_v22 = vmul.f32 %v15451_v50, %v8719_v11  ;;  %v7598_v55 = vsub.f32 0.0, %v7150_v12  ;;  %v7872_v35 = vmul.f32 %v15355_v15, %v15901_v42  ;;  %11109 = vpow2.f32 %v7688_v51 }
0x14c3   :  { %v7498_v2 = vmul.f32 %v15431_v53, %v8750_v52  ;;  %v8720_v3 = vadd.f32 -1.4531521, %v7308_v48  ;;  %v7721_v47 = vmul.f32 %v11100_v49, %v7561_v25  ;;  %v7690_v6 = vmul.f32 1.442695, %v7629_v4  ;;  %v15904_v4 = vld [vmem:[#allocation49_spill] sm:$0xff] }
0x14c4   :  { %v7403_v32 = vadd.f32 1.4214138, %v7371_v22  ;;  %v7816_v21 = vadd.f32 1.0, %v7784_v45  ;;  %v15478_v43 = vand.u32 2147483647, %v15471_v27  ;;  %8032 = vmatmul.mubr.f32.gmra.mrb[166].mxu0 %v7872_v35  ;;  %v7875_v60 = vmul.f32 %v15390_v7, %v15902_v36  ;;  %v15905_v49 = vld [vmem:[#allocation53_spill] sm:$0xff] }
0x14c5   :  { %v7530_v23 = vadd.f32 0.2548296, %v7498_v2  ;;  %v7372_v16 = vmul.f32 %v15464_v61, %v8720_v3  ;;  %v7753_v14 = vsub.f32 1.0, %v7721_v47  ;;  %v7874_v15 = vmul.f32 %v15386_v17, %v15903_v30 }
0x14c6   :  { %v7435_v28 = vmul.f32 %v15451_v50, %v7403_v32  ;;  %v11102_v10 = vpop.eup %11101  ;;  %vm7083_vm2 = vcmp.ge.f32.partialorder %v15379_v38, 0.0  ;;  %v7630_v13 = vmul.f32 %v7598_v55, %v7150_v12  ;;  %v7183_v18 = vmul.f32 0.3275911, %v15478_v43  ;;  %8036 = vmatprep.mubr.f32.mxu0 %v7875_v60 }
0x14c7   :  { %v7562_v1 = vmul.f32 %v15431_v53, %v7530_v23  ;;  %v7404_v31 = vadd.f32 1.4214138, %v7372_v16  ;;  %v7785_v11 = vmul.f32 %v7753_v14, %v15394_v37  ;;  %v7877_v7 = vmul.f32 %v15420_v34, %v15904_v4  ;;  %v8089_v16 = vld [vmem:[#allocation20 + $0x8] sm:$0xff]  ;;  %v8090_v14 = vld [vmem:[#allocation20 + $0x10] sm:$0xff] }
0x14c8   :  { %v15488_v24 = vpop.eup %11103  ;;  %v8751_v51 = vadd.f32 -0.28449672, %v7435_v28  ;;  %v7876_v17 = vmul.f32 %v15405_v54, %v15905_v49  ;;  %v7215_v12 = vadd.f32 1.0, %v7183_v18  ;;  %8037 = vmatmul.mubr.f32.gmra.mrb[168].mxu0 %v7874_v15  ;;  %v7848_v48 = vmul.f32 %v7816_v21, %v15342_v26  ;;  %v8088_v26 = vld [vmem:[#allocation20] sm:$0xff]  ;;  %v8091_v28 = vld [vmem:[#allocation20 + $0x18] sm:$0xff]  ;;  %v8093_v49 = vld [vmem:[#allocation20 + $0x28] sm:$0xff] }
0x14c9   :  { %v7722_v45 = vmul.f32 %v11102_v10, %v7562_v1  ;;  %v7436_v53 = vmul.f32 %v15464_v61, %v7404_v31  ;;  %v7309_v52 = vmul.f32 1.0614054, %v15488_v24  ;;  %v7817_v25 = vadd.f32 1.0, %v7785_v11  ;;  %8041 = vmatprep.mubr.f32.mxu0 %v7877_v7  ;;  %v15907_v1 = vld [vmem:[#allocation58_spill] sm:$0xff] }
0x14ca   :  { %v7499_v37 = vmul.f32 %v15451_v50, %v8751_v51  ;;  %v7879_v22 = vmul.f32 %v7847_v59, %v15289_v56  ;;  %v15500_v2 = vpop.eup %11105  ;;  %11111 = vrcp.f32 %v7215_v12  ;;  %v15906_v59 = vld [vmem:[#allocation56_spill] sm:$0xff]  ;;  %v7692_v60 = vmul.f32 1.442695, %v7630_v13 }
0x14cb   :  { %v7754_v34 = vsub.f32 1.0, %v7722_v45  ;;  %v8752_v3 = vadd.f32 -0.28449672, %v7436_v53  ;;  %v8721_v54 = vadd.f32 -1.4531521, %v7309_v52  ;;  %v11108_v55 = vpop.eup %11107  ;;  %v7849_v42 = vmul.f32 %v7817_v25, %v15374_v29 }
0x14cc   :  { %v7531_v35 = vadd.f32 0.2548296, %v7499_v37  ;;  %11113 = vpow2.f32 %v7690_v6  ;;  %v7310_v47 = vmul.f32 1.0614054, %v15500_v2  ;;  %8042 = vmatmul.mubr.f32.gmra.mrb[170].mxu0 %v7876_v17  ;;  %v7878_v23 = vmul.f32 %v15460_v39, %v15906_v59  ;;  %v11110_v36 = vpop.eup %11109 }
0x14cd   :  { %v7786_v32 = vmul.f32 %v7754_v34, %v15438_v46  ;;  %v7500_v21 = vmul.f32 %v15464_v61, %v8752_v3  ;;  %v7373_v56 = vmul.f32 %v15488_v24, %v8721_v54  ;;  %8046 = vmatprep.mubr.f32.mxu0 %v7879_v22  ;;  %v7881_v30 = vmul.f32 %v7849_v42, %v15329_v33  ;;  %v8092_v33 = vld [vmem:[#allocation20 + $0x20] sm:$0xff]  ;;  %v8094_v54 = vld [vmem:[#allocation20 + $0x30] sm:$0xff] }
0x14ce   :  { %v7563_v29 = vmul.f32 %v15451_v50, %v7531_v35  ;;  %v8722_v6 = vadd.f32 -1.4531521, %v7310_v47  ;;  %v7880_v31 = vmul.f32 %v7848_v48, %v15907_v1  ;;  %v10379_v39 = vpack.c.bf16 %v8089_v16, %v8088_v26 }
0x14cf   :  { %v7818_v46 = vadd.f32 1.0, %v7786_v32  ;;  %v7532_v15 = vadd.f32 0.2548296, %v7500_v21  ;;  %v7405_v10 = vadd.f32 1.4214138, %v7373_v56  ;;  %v10383_v51 = vpack.c.bf16 %v8091_v28, %v8090_v14  ;;  %v15908_v32 = vld [vmem:[#allocation52_spill] sm:$0xff] }
0x14d0   :  { %v7723_v18 = vmul.f32 %v11108_v55, %v7563_v29  ;;  %v7374_v11 = vmul.f32 %v15500_v2, %v8722_v6  ;;  %v7599_v13 = vsub.f32 0.0, %v15478_v43  ;;  %8047 = vmatmul.mubr.f32.gmra.mrb[172].mxu0 %v7878_v23  ;;  %v7115_v17 = vsel %vm7083_vm2, 1.0, %v15869_v41  ;;  %10380 = vmatprep.subr.bf16.mxu1 %v10379_v39  ;;  %v8095_v55 = vld [vmem:[#allocation20 + $0x38] sm:$0xff] }
0x14d1   :  { %v7850_v4 = vmul.f32 %v7818_v46, %v15407_v40  ;;  %v7564_v7 = vmul.f32 %v15464_v61, %v7532_v15  ;;  %v7437_v50 = vmul.f32 %v15488_v24, %v7405_v10  ;;  %vm7084_vm3 = vcmp.ge.f32.partialorder %v15402_v9, 0.0  ;;  %8051 = vmatprep.mubr.f32.mxu0 %v7881_v30  ;;  %10382 = vmatpush3.bf16.msra.mxu1 %v10379_v39  ;;  %v15909_v30 = vld [vmem:[#allocation55_spill] sm:$0xff] }
0x14d2   :  { %v7755_v45 = vsub.f32 1.0, %v7723_v18  ;;  %v7406_v53 = vadd.f32 1.4214138, %v7374_v11  ;;  %11115 = vpow2.f32 %v7692_v60  ;;  %10384 = vmatprep.subr.bf16.mxu1 %v10383_v51  ;;  %v10387_v25 = vpack.c.bf16 %v8093_v49, %v8092_v33 }
0x14d3   :  { %v7724_v40 = vmul.f32 %v11110_v36, %v7564_v7  ;;  %v8753_v52 = vadd.f32 -0.28449672, %v7437_v50  ;;  %v7882_v61 = vmul.f32 %v7850_v4, %v15399_v57  ;;  %v7019_v38 = vmul.f32 0.5, %v15370_v8 }
0x14d4   :  { %v7787_v12 = vmul.f32 %v7755_v45, %v7115_v17  ;;  %v7438_v48 = vmul.f32 %v15500_v2, %v7406_v53  ;;  %v15523_v37 = vpop.eup %11111  ;;  %v7631_v3 = vmul.f32 %v7599_v13, %v15478_v43  ;;  %8052 = vmatmul.mubr.f32.gmra.mrb[174].mxu0 %v7880_v31  ;;  %v7116_v35 = vsel %vm7084_vm3, 1.0, %v15869_v41  ;;  %v15910_v17 = vld [vmem:[#allocation60_spill] sm:$0xff] }
0x14d5   :  { %v7756_v22 = vsub.f32 1.0, %v7724_v40  ;;  %v7501_v34 = vmul.f32 %v15488_v24, %v8753_v52  ;;  %v7311_v26 = vmul.f32 1.0614054, %v15523_v37  ;;  %v6817_v8 = vadd.f32 %v15908_v32, %v14603_v63  ;;  %10386 = vmatpush3.bf16.msra.mxu1 %v10383_v51 }
0x14d6   :  { %v11114_v42 = vpop.eup %11113  ;;  %v7819_v57 = vadd.f32 1.0, %v7787_v12  ;;  %v8754_v47 = vadd.f32 -0.28449672, %v7438_v48  ;;  %10388 = vmatprep.subr.bf16.mxu1 %v10387_v25  ;;  %v10391_v16 = vpack.c.bf16 %v8095_v55, %v8094_v54  ;;  %v7020_v14 = vmul.f32 0.5, %v15383_v58  ;;  %v15911_v12 = vld [vmem:[#allocation32_spill] sm:$0xff] }
0x14d7   :  { %v7788_v21 = vmul.f32 %v7756_v22, %v7116_v35  ;;  %v7533_v56 = vadd.f32 0.2548296, %v7501_v34  ;;  %v8723_v23 = vadd.f32 -1.4531521, %v7311_v26  ;;  %v7694_v36 = vmul.f32 1.442695, %v7631_v3 }
0x14d8   :  { %v7851_v59 = vmul.f32 %v7819_v57, %v7019_v38  ;;  %v7502_v43 = vmul.f32 %v15500_v2, %v8754_v47  ;;  %v6821_v46 = vadd.f32 %v15909_v30, %v14584_v62  ;;  %vm7085_vm4 = vcmp.ge.f32.partialorder %v15425_v44, 0.0  ;;  %v15912_v57 = vld [vmem:[#allocation51_spill] sm:$0xff] }
0x14d9   :  { %v7820_v28 = vadd.f32 1.0, %v7788_v21  ;;  %v7565_v9 = vmul.f32 %v15488_v24, %v7533_v56  ;;  %v7375_v6 = vmul.f32 %v15523_v37, %v8723_v23  ;;  %10390 = vmatpush3.bf16.msra.mxu1 %v10387_v25  ;;  %11117 = vpow2.f32 %v7694_v36  ;;  %v15913_v21 = vld [vmem:[#allocation34_spill] sm:$0xff] }
0x14da   :  { %v7534_v29 = vadd.f32 0.2548296, %v7502_v43  ;;  %v7883_v60 = vmul.f32 %v7851_v59, %v6817_v8  ;;  %10392 = vmatprep.subr.bf16.mxu1 %v10391_v16  ;;  %v7117_v11 = vsel %vm7085_vm4, 1.0, %v15869_v41  ;;  %vm7086_vm5 = vcmp.ge.f32.partialorder %v15444_v20, 0.0 }
0x14db   :  { %v7852_v15 = vmul.f32 %v7820_v28, %v7020_v14  ;;  %v7725_v10 = vmul.f32 %v11114_v42, %v7565_v9  ;;  %v7407_v31 = vadd.f32 1.4214138, %v7375_v6  ;;  %v7118_v13 = vsel %vm7086_vm5, 1.0, %v15869_v41  ;;  %v15915_v6 = vld [vmem:[#allocation37_spill] sm:$0xff] }
0x14dc   :  { %v7566_v1 = vmul.f32 %v15500_v2, %v7534_v29  ;;  %8056 = vmatprep.mubr.f32.mxu0 %v7883_v60  ;;  %v11116_v58 = vpop.eup %11115  ;;  %v7021_v2 = vmul.f32 0.5, %v15415_v5  ;;  %v6823_v45 = vadd.f32 %v15910_v17, %v14603_v63  ;;  %v7022_v20 = vmul.f32 0.5, %v15429_v0  ;;  %v15919_v17 = vld [vmem:[#allocation40_spill] sm:$0xff] }
0x14dd   :  { %v7757_v24 = vsub.f32 1.0, %v7725_v10  ;;  %8057 = vmatmul.mubr.f32.gmra.mrb[176].mxu0 %v7882_v61  ;;  %v7884_v18 = vmul.f32 %v7852_v15, %v6821_v46  ;;  %v7439_v51 = vmul.f32 %v15523_v37, %v7407_v31  ;;  %10394 = vmatpush3.bf16.msra.mxu1 %v10391_v16  ;;  %v6827_v48 = vadd.f32 %v15911_v12, %v14584_v62  ;;  %v15914_v16 = vld [vmem:[#allocation33_spill] sm:$0xff] }
0x14de   :  { %v7726_v39 = vmul.f32 %v11116_v58, %v7566_v1  ;;  %vm7087_vm6 = vcmp.ge.f32.partialorder %v15471_v27, 0.0  ;;  %v7023_v55 = vmul.f32 0.5, %v15457_v19  ;;  %v6829_v62 = vadd.f32 %v15912_v57, %v14603_v63  ;;  %v15562_v27 = vld [vmem:[%s15735_s23] ss:$0 sm:$0xff]  ;;  %v15916_v1 = vld [vmem:[#allocation35_spill] sm:$0xff] }
0x14df   :  { %v7789_v44 = vmul.f32 %v7757_v24, %v7117_v11  ;;  %v8755_v7 = vadd.f32 -0.28449672, %v7439_v51  ;;  %v7119_v54 = vsel %vm7087_vm6, 1.0, %v15869_v41 }
0x14e0   :  { %v7758_v4 = vsub.f32 1.0, %v7726_v39 }
0x14e1   :  { %v7821_v50 = vadd.f32 1.0, %v7789_v44  ;;  %v7503_v49 = vmul.f32 %v15523_v37, %v8755_v7  ;;  %v15918_v7 = vld [vmem:[#allocation36_spill] sm:$0xff] }
0x14e2   :  { %v7790_v33 = vmul.f32 %v7758_v4, %v7118_v13 }
0x14e3   :  { %v7853_v53 = vmul.f32 %v7821_v50, %v7021_v2  ;;  %v7535_v52 = vadd.f32 0.2548296, %v7503_v49  ;;  %v11118_v38 = vpop.eup %11117 }
0x14e4   :  { %v7822_v40 = vadd.f32 1.0, %v7790_v33 }
0x14e5   :  { %v7885_v61 = vmul.f32 %v7853_v53, %v6823_v45  ;;  %v7567_v5 = vmul.f32 %v15523_v37, %v7535_v52 }
0x14e6   :  { %v7854_v25 = vmul.f32 %v7822_v40, %v7022_v20 }
0x14e7   :  { %8061 = vmatprep.mubr.f32.mxu0 %v7885_v61  ;;  %v7727_v22 = vmul.f32 %v11118_v38, %v7567_v5  ;;  %v15920_v61 = vld [vmem:[#allocation38_spill] sm:$0xff] }
0x14e8   :  { %8062 = vmatmul.mubr.f32.gmra.mrb[178].mxu0 %v7884_v18  ;;  %v7886_v34 = vmul.f32 %v7854_v25, %v6827_v48  ;;  %v15917_v18 = vld [vmem:[#allocation39_spill] sm:$0xff] }
0x14e9   :  { %v7759_v3 = vsub.f32 1.0, %v7727_v22 }
0x14eb   :  { %v7791_v0 = vmul.f32 %v7759_v3, %v7119_v54  ;;  %v15921_v3 = vld [vmem:[#allocation42_spill] sm:$0xff] }
0x14ed   :  { %v7823_v42 = vadd.f32 1.0, %v7791_v0 }
0x14ef   :  { %v7855_v35 = vmul.f32 %v7823_v42, %v7023_v55 }
0x14f1   :  { %v7887_v47 = vmul.f32 %v7855_v35, %v6829_v62  ;;  %v15922_v62 = vld [vmem:[#allocation41_spill] sm:$0xff] }
0x14f3   :  { %8066 = vmatprep.mubr.f32.mxu0 %v7887_v47 }
0x14f4   :  { %8067 = vmatmul.mubr.f32.gmra.mrb[180].mxu0 %v7886_v34 }
0x1511   :  { %v9196_v37 = vpop.f32.mrb[150].mxu0 }
0x1512   :  { %v9197_v26 = vpop.f32.mrb[151].mxu0 }
0x1513   :  { %v9198_v32 = vadd.f32 %v9197_v26, %v9196_v37 }
0x1515   :  { %v7994_v41 = vadd.f32 %v9198_v32, %v15562_v27  ;;  %v9199_v8 = vpop.f32.mrb[152].mxu0 }
0x1516   :  { %v9200_v19 = vpop.f32.mrb[153].mxu0 }
0x1517   :  { %v8072_v56 = vadd.f32 %v7994_v41, %v15913_v21  ;;  %v9201_v59 = vadd.f32 %v9200_v19, %v9199_v8  ;;  %v15923_v41 = vld [vmem:[#allocation44_spill] sm:$0xff] }
0x1519   :  { %v7999_v63 = vadd.f32 %v9201_v59, %v15562_v27  ;;  %v9202_v43 = vpop.f32.mrb[154].mxu0  ;;  %9955 = vmatprep.mubr.msk.f32.mxu1 %vm267_vm1, %v8072_v56 }
0x151a   :  { %v9203_v23 = vpop.f32.mrb[155].mxu0 }
0x151b   :  { %v8073_v14 = vadd.f32 %v7999_v63, %v15914_v16  ;;  %v9204_v28 = vadd.f32 %v9203_v23, %v9202_v43  ;;  %v15924_v63 = vld [vmem:[#allocation43_spill] sm:$0xff] }
0x151d   :  { %v8004_v9 = vadd.f32 %v9204_v28, %v15562_v27  ;;  %v9205_v36 = vpop.f32.mrb[156].mxu0  ;;  %9956 = vmatmul.mubr.msk.f32.vlgmr.msra.gmra.mrb[148].mxu1 %vm267_vm1, %v8073_v14  ;;  %v15925_v14 = vld [vmem:[#allocation46_spill] sm:$0xff] }
0x151e   :  { %v9206_v29 = vpop.f32.mrb[157].mxu0 }
0x151f   :  { %v8074_v60 = vadd.f32 %v8004_v9, %v15915_v6  ;;  %v9207_v30 = vadd.f32 %v9206_v29, %v9205_v36 }
0x1521   :  { %v8009_v46 = vadd.f32 %v9207_v30, %v15562_v27  ;;  %v9208_v15 = vpop.f32.mrb[158].mxu0  ;;  %9958 = vmatprep.mubr.msk.f32.mxu1 %vm267_vm1, %v8074_v60  ;;  %v15926_v60 = vld [vmem:[#allocation45_spill] sm:$0xff] }
0x1522   :  { %v9209_v10 = vpop.f32.mrb[159].mxu0 }
0x1523   :  { %v8075_v31 = vadd.f32 %v8009_v46, %v15916_v1  ;;  %v9210_v58 = vadd.f32 %v9209_v10, %v9208_v15 }
0x1525   :  { %v8014_v24 = vadd.f32 %v9210_v58, %v15562_v27  ;;  %9959 = vmatmul.mubr.msk.f32.gmra.mrb[150].mxu1 %vm267_vm1, %v8075_v31  ;;  %v15927_v31 = vld [vmem:[#allocation48_spill] sm:$0xff] }
0x1527   :  { %v8076_v11 = vadd.f32 %v8014_v24, %v15917_v18 }
0x1529   :  { %9961 = vmatprep.mubr.msk.f32.mxu1 %vm267_vm1, %v8076_v11 }
0x152c   :  { %v9211_v39 = vpop.f32.mrb[160].mxu0 }
0x152d   :  { %v9212_v51 = vpop.f32.mrb[161].mxu0 }
0x152e   :  { %v9213_v44 = vadd.f32 %v9212_v51, %v9211_v39  ;;  %v15928_v51 = vld [vmem:[#allocation47_spill] sm:$0xff] }
0x1530   :  { %v8019_v4 = vadd.f32 %v9213_v44, %v15562_v27 }
0x1532   :  { %v8077_v2 = vadd.f32 %v8019_v4, %v15918_v7  ;;  %v15615_v4 = vld [vmem:[%s15929_s5] ss:$0 sm:$0xff] }
0x1534   :  { %9962 = vmatmul.mubr.msk.f32.gmra.mrb[152].mxu1 %vm267_vm1, %v8077_v2 }
0x1536   :  { %v9214_v50 = vpop.f32.mrb[162].mxu0 }
0x1537   :  { %v9215_v13 = vpop.f32.mrb[163].mxu0 }
0x1538   :  { %v9216_v33 = vadd.f32 %v9215_v13, %v9214_v50 }
0x153a   :  { %v8024_v49 = vadd.f32 %v9216_v33, %v15562_v27  ;;  %v11119_v33 = vld [vmem:[%s15798_s29 + $0x8] sm:$0xff] }
0x153c   :  { %v8078_v45 = vadd.f32 %v8024_v49, %v15919_v17  ;;  %v11120_v49 = vld [vmem:[%s15798_s29] sm:$0xff] }
0x153e   :  { %9964 = vmatprep.mubr.msk.f32.mxu1 %vm267_vm1, %v8078_v45 }
0x1543   :  { %v9217_v53 = vpop.f32.mrb[164].mxu0 }
0x1544   :  { %v9218_v20 = vpop.f32.mrb[165].mxu0 }
0x1545   :  { %v9219_v40 = vadd.f32 %v9218_v20, %v9217_v53 }
0x1547   :  { %v8029_v52 = vadd.f32 %v9219_v40, %v15562_v27 }
0x1549   :  { %v8079_v12 = vadd.f32 %v8029_v52, %v15920_v61  ;;  %v11121_v52 = vld [vmem:[%s15798_s29 + $0x18] sm:$0xff] }
0x154b   :  { %9965 = vmatmul.mubr.msk.f32.gmra.mrb[154].mxu1 %vm267_vm1, %v8079_v12  ;;  %v11122_v12 = vld [vmem:[%s15798_s29 + $0x10] sm:$0xff] }
0x1597   :  { %v9220_v48 = vpop.f32.mrb[166].mxu0 }
0x1598   :  { %v9221_v25 = vpop.f32.mrb[167].mxu0 }
0x1599   :  { %v9222_v5 = vadd.f32 %v9221_v25, %v9220_v48 }
0x159b   :  { %v8034_v38 = vadd.f32 %v9222_v5, %v15562_v27  ;;  %v9223_v22 = vpop.f32.mrb[168].mxu0 }
0x159c   :  { %v9224_v34 = vpop.f32.mrb[169].mxu0 }
0x159d   :  { %v8080_v54 = vadd.f32 %v8034_v38, %v15921_v3  ;;  %v9225_v0 = vadd.f32 %v9224_v34, %v9223_v22  ;;  %v11123_v34 = vld [vmem:[%s15798_s29 + $0x28] sm:$0xff] }
0x159f   :  { %v8039_v55 = vadd.f32 %v9225_v0, %v15562_v27  ;;  %v9226_v42 = vpop.f32.mrb[170].mxu0  ;;  %9967 = vmatprep.mubr.msk.f32.mxu1 %vm267_vm1, %v8080_v54  ;;  %v11124_v54 = vld [vmem:[%s15798_s29 + $0x20] sm:$0xff] }
0x15a0   :  { %v9227_v57 = vpop.f32.mrb[171].mxu0 }
0x15a1   :  { %v8081_v35 = vadd.f32 %v8039_v55, %v15922_v62  ;;  %v9228_v47 = vadd.f32 %v9227_v57, %v9226_v42 }
0x15a3   :  { %v8044_v37 = vadd.f32 %v9228_v47, %v15562_v27  ;;  %v9229_v26 = vpop.f32.mrb[172].mxu0  ;;  %9968 = vmatmul.mubr.msk.f32.gmra.mrb[156].mxu1 %vm267_vm1, %v8081_v35  ;;  %v11125_v35 = vld [vmem:[%s15798_s29 + $0x38] sm:$0xff] }
0x15a4   :  { %v9230_v32 = vpop.f32.mrb[173].mxu0 }
0x15a5   :  { %v8082_v8 = vadd.f32 %v8044_v37, %v15923_v41  ;;  %v9231_v19 = vadd.f32 %v9230_v32, %v9229_v26  ;;  %v11126_v37 = vld [vmem:[%s15798_s29 + $0x30] sm:$0xff] }
0x15a7   :  { %v8049_v21 = vadd.f32 %v9231_v19, %v15562_v27  ;;  %v9232_v56 = vpop.f32.mrb[174].mxu0  ;;  %9970 = vmatprep.mubr.msk.f32.mxu1 %vm267_vm1, %v8082_v8 }
0x15a8   :  { %v9233_v59 = vpop.f32.mrb[175].mxu0 }
0x15a9   :  { %v8083_v43 = vadd.f32 %v8049_v21, %v15924_v63  ;;  %v9234_v23 = vadd.f32 %v9233_v59, %v9232_v56  ;;  %v11127_v21 = vld [vmem:[%s15798_s29 + $0x48] sm:$0xff]  ;;  %v11128_v59 = vld [vmem:[%s15798_s29 + $0x40] sm:$0xff] }
0x15ab   :  { %v8054_v16 = vadd.f32 %v9234_v23, %v15562_v27  ;;  %9971 = vmatmul.mubr.msk.f32.gmra.mrb[158].mxu1 %vm267_vm1, %v8083_v43 }
0x15ad   :  { %v8084_v28 = vadd.f32 %v8054_v16, %v15925_v14 }
0x15af   :  { %9973 = vmatprep.mubr.msk.f32.mxu1 %vm267_vm1, %v8084_v28  ;;  %v11129_v28 = vld [vmem:[%s15798_s29 + $0x58] sm:$0xff] }
0x15b0   :  { %v9235_v9 = vpop.f32.mrb[176].mxu0 }
0x15b1   :  { %v9236_v36 = vpop.f32.mrb[177].mxu0 }
0x15b2   :  { %v9237_v29 = vadd.f32 %v9236_v36, %v9235_v9  ;;  %v11130_v36 = vld [vmem:[%s15798_s29 + $0x50] sm:$0xff] }
0x15b4   :  { %v8059_v6 = vadd.f32 %v9237_v29, %v15562_v27 }
0x15b6   :  { %v8085_v30 = vadd.f32 %v8059_v6, %v15926_v60 }
0x15b8   :  { %9974 = vmatmul.mubr.msk.f32.gmra.mrb[160].mxu1 %vm267_vm1, %v8085_v30 }
0x15bb   :  { %v9238_v46 = vpop.f32.mrb[178].mxu0 }
0x15bc   :  { %v9239_v15 = vpop.f32.mrb[179].mxu0 }
0x15bd   :  { %v9240_v10 = vadd.f32 %v9239_v15, %v9238_v46  ;;  %v11131_v15 = vld [vmem:[%s15798_s29 + $0x68] sm:$0xff] }
0x15bf   :  { %v8064_v1 = vadd.f32 %v9240_v10, %v15562_v27 }
0x15c1   :  { %v8086_v58 = vadd.f32 %v8064_v1, %v15927_v31  ;;  %v11132_v1 = vld [vmem:[%s15798_s29 + $0x60] sm:$0xff] }
0x15c3   :  { %9976 = vmatprep.mubr.msk.f32.mxu1 %vm267_vm1, %v8086_v58 }
0x15c7   :  { %v9241_v24 = vpop.f32.mrb[180].mxu0 }
0x15c8   :  { %v9242_v18 = vpop.f32.mrb[181].mxu0 }
0x15c9   :  { %v9243_v11 = vadd.f32 %v9242_v18, %v9241_v24 }
0x15cb   :  { %v8069_v39 = vadd.f32 %v9243_v11, %v15562_v27 }
0x15cd   :  { %v8087_v44 = vadd.f32 %v8069_v39, %v15928_v51  ;;  %v11133_v39 = vld [vmem:[%s15798_s29 + $0x78] sm:$0xff] }
0x15cf   :  { %9977 = vmatmul.mubr.msk.f32.gmra.mrb[162].mxu1 %vm267_vm1, %v8087_v44  ;;  %v11134_v44 = vld [vmem:[%s15798_s29 + $0x70] sm:$0xff] }
0x15f0   :  { %v9957_v7 = vpop.f32.mrb[148].mxu1 }
0x15f1   :  { %v8223_v2 = vadd.f32 %v9957_v7, %v15615_v4  ;;  %v8217_v50 = vpop.f32.mrb[149].mxu1 }
0x15f2   :  { %v8218_v13 = vadd.f32 %v15615_v4, %v8217_v50 }
0x15f3   :  { %v8297_v27 = vadd.f32 %v11119_v33, %v8223_v2 }
0x15f4   :  { %v8296_v17 = vadd.f32 %v11120_v49, %v8218_v13 }
0x15f5   :  { %8313 = vst.msk [vmem:[#allocation22 + $0x8] sm:$0xff] %vm267_vm1, %v8297_v27 }
0x15f6   :  { %8312 = vst.msk [vmem:[#allocation22] sm:$0xff] %vm267_vm1, %v8296_v17 }
0x15f8   :  { %v9960_v45 = vpop.f32.mrb[150].mxu1 }
0x15f9   :  { %v8233_v53 = vadd.f32 %v9960_v45, %v15615_v4  ;;  %v8227_v20 = vpop.f32.mrb[151].mxu1 }
0x15fa   :  { %v8228_v40 = vadd.f32 %v15615_v4, %v8227_v20 }
0x15fb   :  { %v8299_v61 = vadd.f32 %v11121_v52, %v8233_v53 }
0x15fc   :  { %v8298_v48 = vadd.f32 %v11122_v12, %v8228_v40 }
0x15fd   :  { %8315 = vst.msk [vmem:[#allocation22 + $0x18] sm:$0xff] %vm267_vm1, %v8299_v61 }
0x15fe   :  { %8314 = vst.msk [vmem:[#allocation22 + $0x10] sm:$0xff] %vm267_vm1, %v8298_v48 }
0x1607   :  { %v9963_v25 = vpop.f32.mrb[152].mxu1 }
0x1608   :  { %v8243_v5 = vadd.f32 %v9963_v25, %v15615_v4  ;;  %v8237_v38 = vpop.f32.mrb[153].mxu1 }
0x1609   :  { %v8238_v22 = vadd.f32 %v15615_v4, %v8237_v38 }
0x160a   :  { %v8301_v3 = vadd.f32 %v11123_v34, %v8243_v5 }
0x160b   :  { %v8300_v0 = vadd.f32 %v11124_v54, %v8238_v22 }
0x160c   :  { %8317 = vst.msk [vmem:[#allocation22 + $0x28] sm:$0xff] %vm267_vm1, %v8301_v3 }
0x160d   :  { %8316 = vst.msk [vmem:[#allocation22 + $0x20] sm:$0xff] %vm267_vm1, %v8300_v0 }
0x161e   :  { %v9966_v55 = vpop.f32.mrb[154].mxu1 }
0x161f   :  { %v8253_v42 = vadd.f32 %v9966_v55, %v15615_v4  ;;  %v8247_v57 = vpop.f32.mrb[155].mxu1 }
0x1620   :  { %v8248_v62 = vadd.f32 %v15615_v4, %v8247_v57 }
0x1621   :  { %v8303_v47 = vadd.f32 %v11125_v35, %v8253_v42 }
0x1622   :  { %v8302_v26 = vadd.f32 %v11126_v37, %v8248_v62 }
0x1623   :  { %8319 = vst.msk [vmem:[#allocation22 + $0x38] sm:$0xff] %vm267_vm1, %v8303_v47 }
0x1624   :  { %8318 = vst.msk [vmem:[#allocation22 + $0x30] sm:$0xff] %vm267_vm1, %v8302_v26 }
0x1676   :  { %v9969_v32 = vpop.f32.mrb[156].mxu1 }
0x1677   :  { %v8263_v41 = vadd.f32 %v9969_v32, %v15615_v4  ;;  %v8257_v8 = vpop.f32.mrb[157].mxu1 }
0x1678   :  { %v8258_v19 = vadd.f32 %v15615_v4, %v8257_v8 }
0x1679   :  { %v8305_v56 = vadd.f32 %v11127_v21, %v8263_v41 }
0x167a   :  { %v8304_v63 = vadd.f32 %v11128_v59, %v8258_v19 }
0x167b   :  { %8321 = vst.msk [vmem:[#allocation22 + $0x48] sm:$0xff] %vm267_vm1, %v8305_v56 }
0x167c   :  { %8320 = vst.msk [vmem:[#allocation22 + $0x40] sm:$0xff] %vm267_vm1, %v8304_v63 }
0x167e   :  { %v9972_v43 = vpop.f32.mrb[158].mxu1 }
0x167f   :  { %v8273_v23 = vadd.f32 %v9972_v43, %v15615_v4  ;;  %v8267_v16 = vpop.f32.mrb[159].mxu1 }
0x1680   :  { %v8268_v14 = vadd.f32 %v15615_v4, %v8267_v16 }
0x1681   :  { %v8307_v9 = vadd.f32 %v11129_v28, %v8273_v23 }
0x1682   :  { %v8306_v29 = vadd.f32 %v11130_v36, %v8268_v14 }
0x1683   :  { %8323 = vst.msk [vmem:[#allocation22 + $0x58] sm:$0xff] %vm267_vm1, %v8307_v9 }
0x1684   :  { %8322 = vst.msk [vmem:[#allocation22 + $0x50] sm:$0xff] %vm267_vm1, %v8306_v29 }
0x168b   :  { %v9975_v6 = vpop.f32.mrb[160].mxu1 }
0x168c   :  { %v8283_v60 = vadd.f32 %v9975_v6, %v15615_v4  ;;  %v8277_v30 = vpop.f32.mrb[161].mxu1 }
0x168d   :  { %v8278_v46 = vadd.f32 %v15615_v4, %v8277_v30 }
0x168e   :  { %v8309_v10 = vadd.f32 %v11131_v15, %v8283_v60 }
0x168f   :  { %v8308_v31 = vadd.f32 %v11132_v1, %v8278_v46 }
0x1690   :  { %8325 = vst.msk [vmem:[#allocation22 + $0x68] sm:$0xff] %vm267_vm1, %v8309_v10 }
0x1691   :  { %8324 = vst.msk [vmem:[#allocation22 + $0x60] sm:$0xff] %vm267_vm1, %v8308_v31 }
0x16a2   :  { %v9978_v58 = vpop.f32.mrb[162].mxu1 }
0x16a3   :  { %v8293_v24 = vadd.f32 %v9978_v58, %v15615_v4  ;;  %v8287_v18 = vpop.f32.mrb[163].mxu1 }
0x16a4   :  { %v8288_v11 = vadd.f32 %v15615_v4, %v8287_v18 }
0x16a5   :  { %v8311_v51 = vadd.f32 %v11133_v39, %v8293_v24 }
0x16a6   :  { %v8310_v7 = vadd.f32 %v11134_v44, %v8288_v11 }
0x16a7   :  { %8327 = vst.msk [vmem:[#allocation22 + $0x78] sm:$0xff] %vm267_vm1, %v8311_v51 }
0x16a8   :  { %8326 = vst.msk [vmem:[#allocation22 + $0x70] sm:$0xff] %vm267_vm1, %v8310_v7 }
0x16a9   :  { %11410 = shalt.err (!%p11407_p2)
}
0x16aa   :  { %s15930_s3 = sld [smem:[#allocation73_spill]] }
0x16b0   :  { %s11411_s2 = scalar_lea.hbm %s15930_s3, 2048 }
0x16b1   :  { %p11412_p3 = scmp.ne.s32.totalorder %s15930_s3, %s11411_s2  ;;  %p11415_p4 = scmp.lt.u32.totalorder %s11411_s2, %s15930_s3 }
0x16b3   :  { %p11417_p5 = pnand %p11415_p4, %p11412_p3 }
0x16b5   :  { %11420 = shalt.err (!%p11417_p5)
}
0x16b6   :  { %8339 = dma.vmem_to_hbm [thread:$0]  %s8334_s25, 2048, %s15930_s3, [#allocation4], %s11439_s6, %s11439_s6, %s11440_s1  }
0x16b7   :  { %11435 = dma.done.wait [#allocation4], 2048  }
0x16b8   :  { %11436 = vsyncadd [#allocation4], 4294965248 }
0x16b9   :  { %8343 = vsyncpa [#allocation3], 1 }
0x16ba   :  { %8344 = vsyncpa [#allocation6], 1 }
0x16bb   :  { %8345 = vsyncpa [#allocation9], 1 }
0x16bc   :  { %8346 = vsyncpa [#allocation12], 1 }
0x16bd   :  { %8347 = vsyncpa [#allocation15], 1 }
0x16be   :  { %8348 = vsyncpa [#allocation18], 1 }
0x16bf   :  { %8349 = vsyncpa [#allocation21], 1 }
0x16c0   :  { %8350 = vsyncpa [#allocation4], 1 }

</bundles_post_ra>
